<compile_context>
chip_gen: v7x
topology: tpu7x:2x2x1
jax: 0.10.0
libtpu: 0.0.40
codegen_flags: <defaults>
</compile_context>

<pallas_src>
import functools
import math

import jax
import jax.numpy as jnp
from jax.experimental import pallas as pl
from jax.experimental.pallas import tpu as pltpu

# ---------------- config ----------------
VOCAB = 1000
HIDDEN = 768          # must stay 768 to match classifier Linear(768, 50)
N_HEADS = 12
HEAD_DIM = HIDDEN // N_HEADS
FFN = 3072
N_LAYERS = 2          # scaled down from 12
MAX_POS = 64
TYPE_VOCAB = 2
LN_EPS = 1e-12

WDTYPE = jnp.bfloat16  # streaming dtype for large weights
ADTYPE = jnp.bfloat16  # streaming dtype for activations between kernels


def _gelu(x):
    # TODO(synk): HF BERT uses exact erf-based GELU; tanh approximation used here.
    return 0.5 * x * (1.0 + jnp.tanh(0.7978845608028654 * (x + 0.044715 * x * x * x)))


def _pick_tn(n, target):
    """Largest multiple of 128 <= target that divides n (or n itself if small)."""
    if n % 128 != 0:
        return n
    tn = min(target, n)
    tn -= tn % 128
    while n % tn != 0:
        tn -= 128
    return tn


# ---------------- linear (N-tiled, bias + optional activation fused) ----------------
def _linear_kernel(x_ref, w_ref, b_ref, o_ref, *, act):
    y = jnp.dot(x_ref[...], w_ref[...], preferred_element_type=jnp.float32)
    y = y + b_ref[...].astype(jnp.float32)
    if act == "gelu":
        y = _gelu(y)
    elif act == "relu":
        y = jnp.maximum(y, 0.0)
    o_ref[...] = y.astype(o_ref.dtype)


def linear(x, w, b, act="none", out_dtype=None, tn_target=512):
    """x: (M, K) , w: (K, N) , b: (N,) -> (M, N); grid tiles the N axis."""
    M, K = x.shape
    N = w.shape[1]
    out_dtype = out_dtype or x.dtype
    tn = _pick_tn(N, tn_target)
    return pl.pallas_call(
        functools.partial(_linear_kernel, act=act),
        out_shape=jax.ShapeDtypeStruct((M, N), out_dtype),
        grid=(N // tn,),
        in_specs=[
            pl.BlockSpec((M, K), lambda j: (0, 0)),
            pl.BlockSpec((K, tn), lambda j: (0, j)),
            pl.BlockSpec((1, tn), lambda j: (0, j)),
        ],
        out_specs=pl.BlockSpec((M, tn), lambda j: (0, j)),
        compiler_params=pltpu.CompilerParams(dimension_semantics=("parallel",)),
    )(x, w, b.reshape(1, N))


# ---------------- fused FFN: x@W1 + b1 -> GELU -> @W2, accumulated over FFN chunks ----------------
def _ffn_kernel(x_ref, w1_ref, b1_ref, w2_ref, b2_ref, o_ref, acc_ref):
    k = pl.program_id(0)

    @pl.when(k == 0)
    def _():
        acc_ref[...] = jnp.zeros_like(acc_ref)

    h = jnp.dot(x_ref[...], w1_ref[...], preferred_element_type=jnp.float32)
    h = _gelu(h + b1_ref[...].astype(jnp.float32))
    acc_ref[...] += jnp.dot(h.astype(w2_ref.dtype), w2_ref[...],
                            preferred_element_type=jnp.float32)

    @pl.when(k == pl.num_programs(0) - 1)
    def _():
        o_ref[...] = (acc_ref[...] + b2_ref[...].astype(jnp.float32)).astype(o_ref.dtype)


def ffn(x, w1, b1, w2, b2, out_dtype=None, tf_target=512):
    """x: (M, H), w1: (H, F), w2: (F, H) -> (M, H) with GELU in between."""
    M, H = x.shape
    F = w1.shape[1]
    out_dtype = out_dtype or x.dtype
    tf = _pick_tn(F, tf_target)
    return pl.pallas_call(
        _ffn_kernel,
        out_shape=jax.ShapeDtypeStruct((M, H), out_dtype),
        grid=(F // tf,),
        in_specs=[
            pl.BlockSpec((M, H), lambda k: (0, 0)),
            pl.BlockSpec((H, tf), lambda k: (0, k)),
            pl.BlockSpec((1, tf), lambda k: (0, k)),
            pl.BlockSpec((tf, H), lambda k: (k, 0)),
            pl.BlockSpec((1, H), lambda k: (0, 0)),
        ],
        out_specs=pl.BlockSpec((M, H), lambda k: (0, 0)),
        scratch_shapes=[pltpu.VMEM((M, H), jnp.float32)],
        compiler_params=pltpu.CompilerParams(dimension_semantics=("arbitrary",)),
    )(x, w1, b1.reshape(1, F), w2, b2.reshape(1, H))


# ---------------- (residual +) LayerNorm, row-tiled ----------------
def _ln_kernel(*refs, has_residual):
    if has_residual:
        x_ref, r_ref, g_ref, b_ref, o_ref = refs
        x = x_ref[...].astype(jnp.float32) + r_ref[...].astype(jnp.float32)
    else:
        x_ref, g_ref, b_ref, o_ref = refs
        x = x_ref[...].astype(jnp.float32)
    mu = jnp.mean(x, axis=-1, keepdims=True)
    xc = x - mu
    var = jnp.mean(xc * xc, axis=-1, keepdims=True)
    y = xc * jax.lax.rsqrt(var + LN_EPS)
    o_ref[...] = (y * g_ref[...].astype(jnp.float32)
                  + b_ref[...].astype(jnp.float32)).astype(o_ref.dtype)


def layernorm(x, g, b, residual=None, out_dtype=None):
    """LayerNorm((x + residual)) over last dim.  x/residual: (M, D)."""
    M, D = x.shape
    out_dtype = out_dtype or x.dtype
    tm = 8 if M % 8 == 0 else M
    row_spec = pl.BlockSpec((tm, D), lambda i: (i, 0))
    vec_spec = pl.BlockSpec((1, D), lambda i: (0, 0))
    has_res = residual is not None
    in_specs = [row_spec] + ([row_spec] if has_res else []) + [vec_spec, vec_spec]
    args = (x,) + ((residual,) if has_res else ()) + (g.reshape(1, D), b.reshape(1, D))
    return pl.pallas_call(
        functools.partial(_ln_kernel, has_residual=has_res),
        out_shape=jax.ShapeDtypeStruct((M, D), out_dtype),
        grid=(M // tm,),
        in_specs=in_specs,
        out_specs=row_spec,
        compiler_params=pltpu.CompilerParams(dimension_semantics=("parallel",)),
    )(*args)


# ---------------- multi-head attention: all heads of one batch element per step ----------------
def _attention_kernel(q_ref, k_ref, v_ref, m_ref, o_ref, *, scale):
    q = q_ref[0]                               # (Hn, S, Dh)
    k = k_ref[0]
    v = v_ref[0]
    mask = m_ref[0]                            # (1, S) additive, f32
    s = jnp.einsum("hqd,hkd->hqk", q, k,
                   preferred_element_type=jnp.float32) * scale
    s = s + mask[None, :, :]                   # broadcast over heads / query rows
    s = s - jnp.max(s, axis=-1, keepdims=True)
    p = jnp.exp(s)
    p = p * pl.reciprocal(jnp.sum(p, axis=-1, keepdims=True), approx=True)
    o = jnp.einsum("hqk,hkd->hqd", p.astype(v.dtype), v,
                   preferred_element_type=jnp.float32)
    o_ref[0] = o.astype(o_ref.dtype)


def attention(q, k, v, add_mask):
    """q/k/v: (B, Hn, S, Dh), add_mask: (B, 1, S) -> (B, Hn, S, Dh)"""
    B, Hn, S, Dh = q.shape
    scale = 1.0 / math.sqrt(Dh)
    head_spec = pl.BlockSpec((1, Hn, S, Dh), lambda i: (i, 0, 0, 0))
    return pl.pallas_call(
        functools.partial(_attention_kernel, scale=scale),
        out_shape=jax.ShapeDtypeStruct((B, Hn, S, Dh), q.dtype),
        grid=(B,),
        in_specs=[
            head_spec,
            head_spec,
            head_spec,
            pl.BlockSpec((1, 1, S), lambda i: (i, 0, 0)),
        ],
        out_specs=head_spec,
        compiler_params=pltpu.CompilerParams(dimension_semantics=("parallel",)),
    )(q, k, v, add_mask)


# ---------------- fused classifier head: Linear(768,50) -> ReLU -> Linear(50,5) ----------------
def _classifier_kernel(x_ref, w1_ref, b1_ref, w2_ref, b2_ref, o_ref):
    x = x_ref[...].astype(jnp.float32)
    h = jnp.dot(x, w1_ref[...].astype(jnp.float32),
                preferred_element_type=jnp.float32)
    h = jnp.maximum(h + b1_ref[...], 0.0)
    # Dropout(0.3) in eval mode == identity.
    y = jnp.dot(h, w2_ref[...].astype(jnp.float32),
                preferred_element_type=jnp.float32)
    o_ref[...] = (y + b2_ref[...]).astype(o_ref.dtype)


def classifier_head(x, w1, b1, w2, b2):
    B, K = x.shape
    H1 = w1.shape[1]
    C = w2.shape[1]
    return pl.pallas_call(
        _classifier_kernel,
        out_shape=jax.ShapeDtypeStruct((B, C), jnp.float32),
        grid=(1,),
        in_specs=[
            pl.BlockSpec((B, K), lambda i: (0, 0)),
            pl.BlockSpec((K, H1), lambda i: (0, 0)),
            pl.BlockSpec((1, H1), lambda i: (0, 0)),
            pl.BlockSpec((H1, C), lambda i: (0, 0)),
            pl.BlockSpec((1, C), lambda i: (0, 0)),
        ],
        out_specs=pl.BlockSpec((B, C), lambda i: (0, 0)),
    )(x, w1, b1.reshape(1, H1), w2, b2.reshape(1, C))


# ---------------- parameter init (deterministic, synthetic) ----------------
def init_params(key):
    keys = iter(jax.random.split(key, 8 + 8 * N_LAYERS))

    def nrm(shape, dtype=WDTYPE):
        return (0.02 * jax.random.normal(next(keys), shape, jnp.float32)).astype(dtype)

    params = {
        "word_emb": nrm((VOCAB, HIDDEN), jnp.float32),
        "pos_emb": nrm((MAX_POS, HIDDEN), jnp.float32),
        "type_emb": nrm((TYPE_VOCAB, HIDDEN), jnp.float32),
        "emb_ln_g": jnp.ones((HIDDEN,), jnp.float32),
        "emb_ln_b": jnp.zeros((HIDDEN,), jnp.float32),
        "layers": [],
        # classifier head: Linear(768, 50) -> ReLU -> Dropout(eval) -> Linear(50, 5)
        "cls_w1": nrm((HIDDEN, 50), jnp.float32),
        "cls_b1": jnp.zeros((50,), jnp.float32),
        "cls_w2": nrm((50, 5), jnp.float32),
        "cls_b2": jnp.zeros((5,), jnp.float32),
    }
    for _ in range(N_LAYERS):
        layer = {
            # fused QKV projection (wq|wk|wv): (H, 3H) in bf16
            "w_qkv": nrm((HIDDEN, 3 * HIDDEN)),
            "b_qkv": jnp.zeros((3 * HIDDEN,), jnp.float32),
            "wo": nrm((HIDDEN, HIDDEN)),
            "bo": jnp.zeros((HIDDEN,), jnp.float32),
            "ln1_g": jnp.ones((HIDDEN,), jnp.float32),
            "ln1_b": jnp.zeros((HIDDEN,), jnp.float32),
            "w_ffn1": nrm((HIDDEN, FFN)),
            "b_ffn1": jnp.zeros((FFN,), jnp.float32),
            "w_ffn2": nrm((FFN, HIDDEN)),
            "b_ffn2": jnp.zeros((HIDDEN,), jnp.float32),
            "ln2_g": jnp.ones((HIDDEN,), jnp.float32),
            "ln2_b": jnp.zeros((HIDDEN,), jnp.float32),
        }
        params["layers"].append(layer)
    return params


# ---------------- forward pass ----------------
def bert_classifier_forward(params, input_ids, attention_mask):
    B, S = input_ids.shape
    M = B * S

    # --- embeddings (gather is XLA glue; LayerNorm in Pallas, emits bf16) ---
    emb = (
        jnp.take(params["word_emb"], input_ids, axis=0)
        + params["pos_emb"][None, :S, :]
        + params["type_emb"][0][None, None, :]
    )                                                                 # (B, S, H) f32
    h = layernorm(emb.reshape(M, HIDDEN), params["emb_ln_g"], params["emb_ln_b"],
                  out_dtype=ADTYPE)                                   # (M, H) bf16

    # additive attention mask kept in f32 (scores are accumulated in f32)
    add_mask = (1.0 - attention_mask.astype(jnp.float32)) * -1e9      # (B, S)
    add_mask = add_mask[:, None, :]                                   # (B, 1, S)

    def split_heads(x):      # (M, H) -> (B, Hn, S, Dh)
        return x.reshape(B, S, N_HEADS, HEAD_DIM).transpose(0, 2, 1, 3)

    def merge_heads(x):      # (B, Hn, S, Dh) -> (M, H)
        return x.transpose(0, 2, 1, 3).reshape(M, HIDDEN)

    for lp in params["layers"]:
        # fused QKV projection: one (768, 2304) matmul, N-tiled
        qkv = linear(h, lp["w_qkv"], lp["b_qkv"])                     # (M, 3H)
        q = split_heads(qkv[:, :HIDDEN])
        k = split_heads(qkv[:, HIDDEN:2 * HIDDEN])
        v = split_heads(qkv[:, 2 * HIDDEN:])
        attn = merge_heads(attention(q, k, v, add_mask))              # (M, H)
        attn = linear(attn, lp["wo"], lp["bo"])
        h = layernorm(attn, lp["ln1_g"], lp["ln1_b"], residual=h, out_dtype=ADTYPE)

        ffn_out = ffn(h, lp["w_ffn1"], lp["b_ffn1"], lp["w_ffn2"], lp["b_ffn2"])
        h = layernorm(ffn_out, lp["ln2_g"], lp["ln2_b"], residual=h, out_dtype=ADTYPE)

    # last_hidden_state_cls = outputs[0][:, 0, :]
    cls = h.reshape(B, S, HIDDEN)[:, 0, :]                            # (B, H)

    # fused classifier: Linear(768,50) -> ReLU -> Dropout(eval) -> Linear(50,5)
    logits = classifier_head(cls, params["cls_w1"], params["cls_b1"],
                             params["cls_w2"], params["cls_b2"])
    return logits                                                     # (B, 5) f32


# ---------------- main ----------------
if __name__ == "__main__":
    key = jax.random.PRNGKey(0)
    pkey, idkey = jax.random.split(key)

    B, S = 2, 8
    params = init_params(pkey)
    input_ids = jax.random.randint(idkey, (B, S), 0, VOCAB, dtype=jnp.int32)
    attention_mask = jnp.array(
        [[1, 1, 1, 1, 1, 1, 1, 1],
         [1, 1, 1, 1, 1, 0, 0, 0]], dtype=jnp.int32)

    logits = jax.jit(bert_classifier_forward)(params, input_ids, attention_mask)
    logits = jax.block_until_ready(logits)
    assert logits.shape == (B, 5) and bool(jnp.all(jnp.isfinite(logits)))
    print("KERNEL_OK")
</pallas_src>

<mosaic_0001>
module attributes {stable_mosaic.version = 11 : i64} {
  func.func @_linear_kernel(%arg0: i32, %arg1: memref<16x768xbf16, #tpu.memory_space<vmem>>, %arg2: memref<768x384xbf16, #tpu.memory_space<vmem>>, %arg3: memref<1x384xf32, #tpu.memory_space<vmem>>, %arg4: memref<16x384xbf16, #tpu.memory_space<vmem>>) attributes {dimension_semantics = [#tpu.dimension_semantics<parallel>], iteration_bounds = array<i64: 6>, scalar_prefetch = 0 : i64, scratch_operands = 0 : i64, tpu.core_type = #tpu.core_type<tc>, window_params = [{pipeline_mode = #tpu.pipeline_mode<synchronous>, transform_indices = @transform_0, window_bounds = array<i64: 16, 768>}, {transform_indices = @transform_1, window_bounds = array<i64: 768, 384>}, {transform_indices = @transform_2, window_bounds = array<i64: 1, 384>}, {transform_indices = @transform_3, window_bounds = array<i64: 16, 384>}]} {
    %c0 = arith.constant 0 : index
    %c0_0 = arith.constant 0 : index
    %0 = vector.load %arg1[%c0, %c0_0] : memref<16x768xbf16, #tpu.memory_space<vmem>>, vector<16x768xbf16>
    %c0_1 = arith.constant 0 : index
    %c0_2 = arith.constant 0 : index
    %1 = vector.load %arg2[%c0_1, %c0_2] : memref<768x384xbf16, #tpu.memory_space<vmem>>, vector<768x384xbf16>
    %cst = arith.constant dense<0.000000e+00> : vector<16x384xf32>
    %2 = tpu.matmul %0, %1, %cst {dimension_numbers = #tpu.dot_dimension_numbers<[1], [0], [0], [1], [0, 0, 1, 1], [], []>} : vector<16x768xbf16>, vector<768x384xbf16>, vector<16x384xf32> -> vector<16x384xf32>
    %c0_3 = arith.constant 0 : index
    %c0_4 = arith.constant 0 : index
    %3 = vector.load %arg3[%c0_3, %c0_4] : memref<1x384xf32, #tpu.memory_space<vmem>>, vector<1x384xf32>
    %4 = vector.broadcast %3 : vector<1x384xf32> to vector<16x384xf32>
    %5 = arith.addf %2, %4 : vector<16x384xf32>
    %6 = arith.truncf %5 : vector<16x384xf32> to vector<16x384xbf16>
    %c0_5 = arith.constant 0 : index
    %c0_6 = arith.constant 0 : index
    %7 = vector.load %arg4[%c0_5, %c0_6] : memref<16x384xbf16, #tpu.memory_space<vmem>>, vector<16x384xbf16>
    tpu.vector_store %arg4[%c0_5, %c0_6], %6 {strides = array<i32>} : memref<16x384xbf16, #tpu.memory_space<vmem>>, vector<16x384xbf16>,
    return
  }
  func.func @transform_0(%arg0: i32) -> (i32, i32) {
    %c0_i32 = arith.constant 0 : i32
    %c0_i32_0 = arith.constant 0 : i32
    %c0_i32_1 = arith.constant 0 : i32
    return %c0_i32, %c0_i32_0 : i32, i32
  }
  func.func @transform_1(%arg0: i32) -> (i32, i32) {
    %c0_i32 = arith.constant 0 : i32
    %c0_i32_0 = arith.constant 0 : i32
    return %c0_i32, %arg0 : i32, i32
  }
  func.func @transform_2(%arg0: i32) -> (i32, i32) {
    %c0_i32 = arith.constant 0 : i32
    %c0_i32_0 = arith.constant 0 : i32
    return %c0_i32, %arg0 : i32, i32
  }
  func.func @transform_3(%arg0: i32) -> (i32, i32) {
    %c0_i32 = arith.constant 0 : i32
    %c0_i32_0 = arith.constant 0 : i32
    return %c0_i32, %arg0 : i32, i32
  }
}

module attributes {stable_mosaic.version = 11 : i64} {
  func.func @_ln_kernel(%arg0: i32, %arg1: memref<8x768xf32, #tpu.memory_space<vmem>>, %arg2: memref<1x768xf32, #tpu.memory_space<vmem>>, %arg3: memref<1x768xf32, #tpu.memory_space<vmem>>, %arg4: memref<8x768xbf16, #tpu.memory_space<vmem>>) attributes {dimension_semantics = [#tpu.dimension_semantics<parallel>], iteration_bounds = array<i64: 2>, scalar_prefetch = 0 : i64, scratch_operands = 0 : i64, tpu.core_type = #tpu.core_type<tc>, window_params = [{transform_indices = @transform_0, window_bounds = array<i64: 8, 768>}, {pipeline_mode = #tpu.pipeline_mode<synchronous>, transform_indices = @transform_1, window_bounds = array<i64: 1, 768>}, {pipeline_mode = #tpu.pipeline_mode<synchronous>, transform_indices = @transform_2, window_bounds = array<i64: 1, 768>}, {transform_indices = @transform_3, window_bounds = array<i64: 8, 768>}]} {
    %c0 = arith.constant 0 : index
    %c0_0 = arith.constant 0 : index
    %0 = vector.load %arg1[%c0, %c0_0] : memref<8x768xf32, #tpu.memory_space<vmem>>, vector<8x768xf32>
    %cst = arith.constant dense<0.000000e+00> : vector<8xf32>
    %1 = vector.multi_reduction <add>, %0, %cst [1] : vector<8x768xf32> to vector<8xf32>
    %2 = vector.shape_cast %1 : vector<8xf32> to vector<8x1xf32>
    %cst_1 = arith.constant 7.680000e+02 : f32
    %3 = vector.broadcast %cst_1 : f32 to vector<8x1xf32>
    %4 = arith.divf %2, %3 : vector<8x1xf32>
    %5 = vector.broadcast %4 : vector<8x1xf32> to vector<8x768xf32>
    %6 = arith.subf %0, %5 : vector<8x768xf32>
    %7 = arith.mulf %6, %6 : vector<8x768xf32>
    %cst_2 = arith.constant dense<0.000000e+00> : vector<8xf32>
    %8 = vector.multi_reduction <add>, %7, %cst_2 [1] : vector<8x768xf32> to vector<8xf32>
    %9 = vector.shape_cast %8 : vector<8xf32> to vector<8x1xf32>
    %cst_3 = arith.constant 7.680000e+02 : f32
    %10 = vector.broadcast %cst_3 : f32 to vector<8x1xf32>
    %11 = arith.divf %9, %10 : vector<8x1xf32>
    %cst_4 = arith.constant 9.99999996E-13 : f32
    %12 = vector.broadcast %cst_4 : f32 to vector<8x1xf32>
    %13 = arith.addf %11, %12 : vector<8x1xf32>
    %14 = math.rsqrt %13 : vector<8x1xf32>
    %15 = vector.broadcast %14 : vector<8x1xf32> to vector<8x768xf32>
    %16 = arith.mulf %6, %15 : vector<8x768xf32>
    %c0_5 = arith.constant 0 : index
    %c0_6 = arith.constant 0 : index
    %17 = vector.load %arg2[%c0_5, %c0_6] : memref<1x768xf32, #tpu.memory_space<vmem>>, vector<1x768xf32>
    %18 = vector.broadcast %17 : vector<1x768xf32> to vector<8x768xf32>
    %19 = arith.mulf %16, %18 : vector<8x768xf32>
    %c0_7 = arith.constant 0 : index
    %c0_8 = arith.constant 0 : index
    %20 = vector.load %arg3[%c0_7, %c0_8] : memref<1x768xf32, #tpu.memory_space<vmem>>, vector<1x768xf32>
    %21 = vector.broadcast %20 : vector<1x768xf32> to vector<8x768xf32>
    %22 = arith.addf %19, %21 : vector<8x768xf32>
    %23 = arith.truncf %22 : vector<8x768xf32> to vector<8x768xbf16>
    %c0_9 = arith.constant 0 : index
    %c0_10 = arith.constant 0 : index
    %24 = vector.load %arg4[%c0_9, %c0_10] : memref<8x768xbf16, #tpu.memory_space<vmem>>, vector<8x768xbf16>
    tpu.vector_store %arg4[%c0_9, %c0_10], %23 {strides = array<i32>} : memref<8x768xbf16, #tpu.memory_space<vmem>>, vector<8x768xbf16>,
    return
  }
  func.func @transform_0(%arg0: i32) -> (i32, i32) {
    %c0_i32 = arith.constant 0 : i32
    %c0_i32_0 = arith.constant 0 : i32
    return %arg0, %c0_i32 : i32, i32
  }
  func.func @transform_1(%arg0: i32) -> (i32, i32) {
    %c0_i32 = arith.constant 0 : i32
    %c0_i32_0 = arith.constant 0 : i32
    %c0_i32_1 = arith.constant 0 : i32
    return %c0_i32, %c0_i32_0 : i32, i32
  }
  func.func @transform_2(%arg0: i32) -> (i32, i32) {
    %c0_i32 = arith.constant 0 : i32
    %c0_i32_0 = arith.constant 0 : i32
    %c0_i32_1 = arith.constant 0 : i32
    return %c0_i32, %c0_i32_0 : i32, i32
  }
  func.func @transform_3(%arg0: i32) -> (i32, i32) {
    %c0_i32 = arith.constant 0 : i32
    %c0_i32_0 = arith.constant 0 : i32
    return %arg0, %c0_i32 : i32, i32
  }
}

module attributes {stable_mosaic.version = 11 : i64} {
  func.func @_attention_kernel(%arg0: i32, %arg1: memref<1x12x8x64xbf16, #tpu.memory_space<vmem>>, %arg2: memref<1x12x8x64xbf16, #tpu.memory_space<vmem>>, %arg3: memref<1x12x8x64xbf16, #tpu.memory_space<vmem>>, %arg4: memref<1x1x8xf32, #tpu.memory_space<vmem>>, %arg5: memref<1x12x8x64xbf16, #tpu.memory_space<vmem>>) attributes {dimension_semantics = [#tpu.dimension_semantics<parallel>], iteration_bounds = array<i64: 2>, scalar_prefetch = 0 : i64, scratch_operands = 0 : i64, tpu.core_type = #tpu.core_type<tc>, window_params = [{transform_indices = @transform_0, window_bounds = array<i64: 1, 12, 8, 64>}, {transform_indices = @transform_1, window_bounds = array<i64: 1, 12, 8, 64>}, {transform_indices = @transform_2, window_bounds = array<i64: 1, 12, 8, 64>}, {transform_indices = @transform_3, window_bounds = array<i64: 1, 1, 8>}, {transform_indices = @transform_4, window_bounds = array<i64: 1, 12, 8, 64>}]} {
    %c0 = arith.constant 0 : index
    %c0_0 = arith.constant 0 : index
    %c0_1 = arith.constant 0 : index
    %c0_2 = arith.constant 0 : index
    %0 = vector.load %arg1[%c0, %c0_0, %c0_1, %c0_2] : memref<1x12x8x64xbf16, #tpu.memory_space<vmem>>, vector<1x12x8x64xbf16>
    %1 = vector.shape_cast %0 : vector<1x12x8x64xbf16> to vector<12x8x64xbf16>
    %c0_3 = arith.constant 0 : index
    %c0_4 = arith.constant 0 : index
    %c0_5 = arith.constant 0 : index
    %c0_6 = arith.constant 0 : index
    %2 = vector.load %arg2[%c0_3, %c0_4, %c0_5, %c0_6] : memref<1x12x8x64xbf16, #tpu.memory_space<vmem>>, vector<1x12x8x64xbf16>
    %3 = vector.shape_cast %2 : vector<1x12x8x64xbf16> to vector<12x8x64xbf16>
    %c0_7 = arith.constant 0 : index
    %c0_8 = arith.constant 0 : index
    %c0_9 = arith.constant 0 : index
    %c0_10 = arith.constant 0 : index
    %4 = vector.load %arg3[%c0_7, %c0_8, %c0_9, %c0_10] : memref<1x12x8x64xbf16, #tpu.memory_space<vmem>>, vector<1x12x8x64xbf16>
    %5 = vector.shape_cast %4 : vector<1x12x8x64xbf16> to vector<12x8x64xbf16>
    %c0_11 = arith.constant 0 : index
    %c0_12 = arith.constant 0 : index
    %c0_13 = arith.constant 0 : index
    %6 = vector.load %arg4[%c0_11, %c0_12, %c0_13] : memref<1x1x8xf32, #tpu.memory_space<vmem>>, vector<1x1x8xf32>
    %7 = vector.shape_cast %6 : vector<1x1x8xf32> to vector<1x8xf32>
    "tpu.trace_start"() <{level = 10 : i32, message = "hqd,hkd->hqk"}> : () -> ()
    %cst = arith.constant dense<0.000000e+00> : vector<12x8x8xf32>
    %8 = tpu.matmul %1, %3, %cst {dimension_numbers = #tpu.dot_dimension_numbers<[2], [2], [1], [1], [0, 0, 0, 1, 1, 1], [0], [0]>} : vector<12x8x64xbf16>, vector<12x8x64xbf16>, vector<12x8x8xf32> -> vector<12x8x8xf32>
    "tpu.trace_stop"() : () -> ()
    %cst_14 = arith.constant 1.250000e-01 : f32
    %9 = vector.broadcast %cst_14 : f32 to vector<12x8x8xf32>
    %10 = arith.mulf %8, %9 : vector<12x8x8xf32>
    %11 = vector.shape_cast %7 : vector<1x8xf32> to vector<1x1x8xf32>
    %12 = vector.broadcast %11 : vector<1x1x8xf32> to vector<12x8x8xf32>
    %13 = arith.addf %10, %12 : vector<12x8x8xf32>
    %cst_15 = arith.constant dense<0xFF800000> : vector<12x8xf32>
    %14 = vector.multi_reduction <maximumf>, %13, %cst_15 [2] : vector<12x8x8xf32> to vector<12x8xf32>
    %15 = vector.shape_cast %14 : vector<12x8xf32> to vector<12x8x1xf32>
    %16 = vector.broadcast %15 : vector<12x8x1xf32> to vector<12x8x8xf32>
    %17 = arith.subf %13, %16 : vector<12x8x8xf32>
    %18 = math.exp %17 : vector<12x8x8xf32>
    %cst_16 = arith.constant dense<0.000000e+00> : vector<12x8xf32>
    %19 = vector.multi_reduction <add>, %18, %cst_16 [2] : vector<12x8x8xf32> to vector<12x8xf32>
    %20 = vector.shape_cast %19 : vector<12x8xf32> to vector<12x8x1xf32>
    %21 = tpu.reciprocal %20 {approx = true} : vector<12x8x1xf32> -> vector<12x8x1xf32>
    %22 = vector.broadcast %21 : vector<12x8x1xf32> to vector<12x8x8xf32>
    %23 = arith.mulf %18, %22 : vector<12x8x8xf32>
    %24 = arith.truncf %23 : vector<12x8x8xf32> to vector<12x8x8xbf16>
    "tpu.trace_start"() <{level = 10 : i32, message = "hqk,hkd->hqd"}> : () -> ()
    %cst_17 = arith.constant dense<0.000000e+00> : vector<12x8x64xf32>
    %25 = tpu.matmul %24, %5, %cst_17 {dimension_numbers = #tpu.dot_dimension_numbers<[2], [1], [1], [2], [0, 0, 0, 1, 1, 2], [0], [0]>} : vector<12x8x8xbf16>, vector<12x8x64xbf16>, vector<12x8x64xf32> -> vector<12x8x64xf32>
    "tpu.trace_stop"() : () -> ()
    %26 = arith.truncf %25 : vector<12x8x64xf32> to vector<12x8x64xbf16>
    %c0_18 = arith.constant 0 : index
    %c0_19 = arith.constant 0 : index
    %c0_20 = arith.constant 0 : index
    %c0_21 = arith.constant 0 : index
    %27 = vector.load %arg5[%c0_18, %c0_19, %c0_20, %c0_21] : memref<1x12x8x64xbf16, #tpu.memory_space<vmem>>, vector<1x12x8x64xbf16>
    %28 = vector.shape_cast %27 : vector<1x12x8x64xbf16> to vector<12x8x64xbf16>
    %29 = vector.shape_cast %26 : vector<12x8x64xbf16> to vector<1x12x8x64xbf16>
    tpu.vector_store %arg5[%c0_18, %c0_19, %c0_20, %c0_21], %29 {strides = array<i32>} : memref<1x12x8x64xbf16, #tpu.memory_space<vmem>>, vector<1x12x8x64xbf16>,
    return
  }
  func.func @transform_0(%arg0: i32) -> (i32, i32, i32, i32) {
    %c0_i32 = arith.constant 0 : i32
    %c0_i32_0 = arith.constant 0 : i32
    %c0_i32_1 = arith.constant 0 : i32
    %c0_i32_2 = arith.constant 0 : i32
    return %arg0, %c0_i32, %c0_i32_0, %c0_i32_1 : i32, i32, i32, i32
  }
  func.func @transform_1(%arg0: i32) -> (i32, i32, i32, i32) {
    %c0_i32 = arith.constant 0 : i32
    %c0_i32_0 = arith.constant 0 : i32
    %c0_i32_1 = arith.constant 0 : i32
    %c0_i32_2 = arith.constant 0 : i32
    return %arg0, %c0_i32, %c0_i32_0, %c0_i32_1 : i32, i32, i32, i32
  }
  func.func @transform_2(%arg0: i32) -> (i32, i32, i32, i32) {
    %c0_i32 = arith.constant 0 : i32
    %c0_i32_0 = arith.constant 0 : i32
    %c0_i32_1 = arith.constant 0 : i32
    %c0_i32_2 = arith.constant 0 : i32
    return %arg0, %c0_i32, %c0_i32_0, %c0_i32_1 : i32, i32, i32, i32
  }
  func.func @transform_3(%arg0: i32) -> (i32, i32, i32) {
    %c0_i32 = arith.constant 0 : i32
    %c0_i32_0 = arith.constant 0 : i32
    %c0_i32_1 = arith.constant 0 : i32
    return %arg0, %c0_i32, %c0_i32_0 : i32, i32, i32
  }
  func.func @transform_4(%arg0: i32) -> (i32, i32, i32, i32) {
    %c0_i32 = arith.constant 0 : i32
    %c0_i32_0 = arith.constant 0 : i32
    %c0_i32_1 = arith.constant 0 : i32
    %c0_i32_2 = arith.constant 0 : i32
    return %arg0, %c0_i32, %c0_i32_0, %c0_i32_1 : i32, i32, i32, i32
  }
}

module attributes {stable_mosaic.version = 11 : i64} {
  func.func @_linear_kernel(%arg0: i32, %arg1: memref<16x768xbf16, #tpu.memory_space<vmem>>, %arg2: memref<768x384xbf16, #tpu.memory_space<vmem>>, %arg3: memref<1x384xf32, #tpu.memory_space<vmem>>, %arg4: memref<16x384xbf16, #tpu.memory_space<vmem>>) attributes {dimension_semantics = [#tpu.dimension_semantics<parallel>], iteration_bounds = array<i64: 2>, scalar_prefetch = 0 : i64, scratch_operands = 0 : i64, tpu.core_type = #tpu.core_type<tc>, window_params = [{pipeline_mode = #tpu.pipeline_mode<synchronous>, transform_indices = @transform_0, window_bounds = array<i64: 16, 768>}, {transform_indices = @transform_1, window_bounds = array<i64: 768, 384>}, {transform_indices = @transform_2, window_bounds = array<i64: 1, 384>}, {transform_indices = @transform_3, window_bounds = array<i64: 16, 384>}]} {
    %c0 = arith.constant 0 : index
    %c0_0 = arith.constant 0 : index
    %0 = vector.load %arg1[%c0, %c0_0] : memref<16x768xbf16, #tpu.memory_space<vmem>>, vector<16x768xbf16>
    %c0_1 = arith.constant 0 : index
    %c0_2 = arith.constant 0 : index
    %1 = vector.load %arg2[%c0_1, %c0_2] : memref<768x384xbf16, #tpu.memory_space<vmem>>, vector<768x384xbf16>
    %cst = arith.constant dense<0.000000e+00> : vector<16x384xf32>
    %2 = tpu.matmul %0, %1, %cst {dimension_numbers = #tpu.dot_dimension_numbers<[1], [0], [0], [1], [0, 0, 1, 1], [], []>} : vector<16x768xbf16>, vector<768x384xbf16>, vector<16x384xf32> -> vector<16x384xf32>
    %c0_3 = arith.constant 0 : index
    %c0_4 = arith.constant 0 : index
    %3 = vector.load %arg3[%c0_3, %c0_4] : memref<1x384xf32, #tpu.memory_space<vmem>>, vector<1x384xf32>
    %4 = vector.broadcast %3 : vector<1x384xf32> to vector<16x384xf32>
    %5 = arith.addf %2, %4 : vector<16x384xf32>
    %6 = arith.truncf %5 : vector<16x384xf32> to vector<16x384xbf16>
    %c0_5 = arith.constant 0 : index
    %c0_6 = arith.constant 0 : index
    %7 = vector.load %arg4[%c0_5, %c0_6] : memref<16x384xbf16, #tpu.memory_space<vmem>>, vector<16x384xbf16>
    tpu.vector_store %arg4[%c0_5, %c0_6], %6 {strides = array<i32>} : memref<16x384xbf16, #tpu.memory_space<vmem>>, vector<16x384xbf16>,
    return
  }
  func.func @transform_0(%arg0: i32) -> (i32, i32) {
    %c0_i32 = arith.constant 0 : i32
    %c0_i32_0 = arith.constant 0 : i32
    %c0_i32_1 = arith.constant 0 : i32
    return %c0_i32, %c0_i32_0 : i32, i32
  }
  func.func @transform_1(%arg0: i32) -> (i32, i32) {
    %c0_i32 = arith.constant 0 : i32
    %c0_i32_0 = arith.constant 0 : i32
    return %c0_i32, %arg0 : i32, i32
  }
  func.func @transform_2(%arg0: i32) -> (i32, i32) {
    %c0_i32 = arith.constant 0 : i32
    %c0_i32_0 = arith.constant 0 : i32
    return %c0_i32, %arg0 : i32, i32
  }
  func.func @transform_3(%arg0: i32) -> (i32, i32) {
    %c0_i32 = arith.constant 0 : i32
    %c0_i32_0 = arith.constant 0 : i32
    return %c0_i32, %arg0 : i32, i32
  }
}

module attributes {stable_mosaic.version = 11 : i64} {
  func.func @_ln_kernel(%arg0: i32, %arg1: memref<8x768xbf16, #tpu.memory_space<vmem>>, %arg2: memref<8x768xbf16, #tpu.memory_space<vmem>>, %arg3: memref<1x768xf32, #tpu.memory_space<vmem>>, %arg4: memref<1x768xf32, #tpu.memory_space<vmem>>, %arg5: memref<8x768xbf16, #tpu.memory_space<vmem>>) attributes {dimension_semantics = [#tpu.dimension_semantics<parallel>], iteration_bounds = array<i64: 2>, scalar_prefetch = 0 : i64, scratch_operands = 0 : i64, tpu.core_type = #tpu.core_type<tc>, window_params = [{transform_indices = @transform_0, window_bounds = array<i64: 8, 768>}, {transform_indices = @transform_1, window_bounds = array<i64: 8, 768>}, {pipeline_mode = #tpu.pipeline_mode<synchronous>, transform_indices = @transform_2, window_bounds = array<i64: 1, 768>}, {pipeline_mode = #tpu.pipeline_mode<synchronous>, transform_indices = @transform_3, window_bounds = array<i64: 1, 768>}, {transform_indices = @transform_4, window_bounds = array<i64: 8, 768>}]} {
    %c0 = arith.constant 0 : index
    %c0_0 = arith.constant 0 : index
    %0 = vector.load %arg1[%c0, %c0_0] : memref<8x768xbf16, #tpu.memory_space<vmem>>, vector<8x768xbf16>
    %1 = arith.extf %0 : vector<8x768xbf16> to vector<8x768xf32>
    %c0_1 = arith.constant 0 : index
    %c0_2 = arith.constant 0 : index
    %2 = vector.load %arg2[%c0_1, %c0_2] : memref<8x768xbf16, #tpu.memory_space<vmem>>, vector<8x768xbf16>
    %3 = arith.extf %2 : vector<8x768xbf16> to vector<8x768xf32>
    %4 = arith.addf %1, %3 : vector<8x768xf32>
    %cst = arith.constant dense<0.000000e+00> : vector<8xf32>
    %5 = vector.multi_reduction <add>, %4, %cst [1] : vector<8x768xf32> to vector<8xf32>
    %6 = vector.shape_cast %5 : vector<8xf32> to vector<8x1xf32>
    %cst_3 = arith.constant 7.680000e+02 : f32
    %7 = vector.broadcast %cst_3 : f32 to vector<8x1xf32>
    %8 = arith.divf %6, %7 : vector<8x1xf32>
    %9 = vector.broadcast %8 : vector<8x1xf32> to vector<8x768xf32>
    %10 = arith.subf %4, %9 : vector<8x768xf32>
    %11 = arith.mulf %10, %10 : vector<8x768xf32>
    %cst_4 = arith.constant dense<0.000000e+00> : vector<8xf32>
    %12 = vector.multi_reduction <add>, %11, %cst_4 [1] : vector<8x768xf32> to vector<8xf32>
    %13 = vector.shape_cast %12 : vector<8xf32> to vector<8x1xf32>
    %cst_5 = arith.constant 7.680000e+02 : f32
    %14 = vector.broadcast %cst_5 : f32 to vector<8x1xf32>
    %15 = arith.divf %13, %14 : vector<8x1xf32>
    %cst_6 = arith.constant 9.99999996E-13 : f32
    %16 = vector.broadcast %cst_6 : f32 to vector<8x1xf32>
    %17 = arith.addf %15, %16 : vector<8x1xf32>
    %18 = math.rsqrt %17 : vector<8x1xf32>
    %19 = vector.broadcast %18 : vector<8x1xf32> to vector<8x768xf32>
    %20 = arith.mulf %10, %19 : vector<8x768xf32>
    %c0_7 = arith.constant 0 : index
    %c0_8 = arith.constant 0 : index
    %21 = vector.load %arg3[%c0_7, %c0_8] : memref<1x768xf32, #tpu.memory_space<vmem>>, vector<1x768xf32>
    %22 = vector.broadcast %21 : vector<1x768xf32> to vector<8x768xf32>
    %23 = arith.mulf %20, %22 : vector<8x768xf32>
    %c0_9 = arith.constant 0 : index
    %c0_10 = arith.constant 0 : index
    %24 = vector.load %arg4[%c0_9, %c0_10] : memref<1x768xf32, #tpu.memory_space<vmem>>, vector<1x768xf32>
    %25 = vector.broadcast %24 : vector<1x768xf32> to vector<8x768xf32>
    %26 = arith.addf %23, %25 : vector<8x768xf32>
    %27 = arith.truncf %26 : vector<8x768xf32> to vector<8x768xbf16>
    %c0_11 = arith.constant 0 : index
    %c0_12 = arith.constant 0 : index
    %28 = vector.load %arg5[%c0_11, %c0_12] : memref<8x768xbf16, #tpu.memory_space<vmem>>, vector<8x768xbf16>
    tpu.vector_store %arg5[%c0_11, %c0_12], %27 {strides = array<i32>} : memref<8x768xbf16, #tpu.memory_space<vmem>>, vector<8x768xbf16>,
    return
  }
  func.func @transform_0(%arg0: i32) -> (i32, i32) {
    %c0_i32 = arith.constant 0 : i32
    %c0_i32_0 = arith.constant 0 : i32
    return %arg0, %c0_i32 : i32, i32
  }
  func.func @transform_1(%arg0: i32) -> (i32, i32) {
    %c0_i32 = arith.constant 0 : i32
    %c0_i32_0 = arith.constant 0 : i32
    return %arg0, %c0_i32 : i32, i32
  }
  func.func @transform_2(%arg0: i32) -> (i32, i32) {
    %c0_i32 = arith.constant 0 : i32
    %c0_i32_0 = arith.constant 0 : i32
    %c0_i32_1 = arith.constant 0 : i32
    return %c0_i32, %c0_i32_0 : i32, i32
  }
  func.func @transform_3(%arg0: i32) -> (i32, i32) {
    %c0_i32 = arith.constant 0 : i32
    %c0_i32_0 = arith.constant 0 : i32
    %c0_i32_1 = arith.constant 0 : i32
    return %c0_i32, %c0_i32_0 : i32, i32
  }
  func.func @transform_4(%arg0: i32) -> (i32, i32) {
    %c0_i32 = arith.constant 0 : i32
    %c0_i32_0 = arith.constant 0 : i32
    return %arg0, %c0_i32 : i32, i32
  }
}

module attributes {stable_mosaic.version = 11 : i64} {
  func.func @_linear_kernel(%arg0: i32, %arg1: memref<16x768xbf16, #tpu.memory_space<vmem>>, %arg2: memref<768x384xbf16, #tpu.memory_space<vmem>>, %arg3: memref<1x384xf32, #tpu.memory_space<vmem>>, %arg4: memref<16x384xbf16, #tpu.memory_space<vmem>>) attributes {dimension_semantics = [#tpu.dimension_semantics<parallel>], iteration_bounds = array<i64: 6>, scalar_prefetch = 0 : i64, scratch_operands = 0 : i64, tpu.core_type = #tpu.core_type<tc>, window_params = [{pipeline_mode = #tpu.pipeline_mode<synchronous>, transform_indices = @transform_0, window_bounds = array<i64: 16, 768>}, {transform_indices = @transform_1, window_bounds = array<i64: 768, 384>}, {transform_indices = @transform_2, window_bounds = array<i64: 1, 384>}, {transform_indices = @transform_3, window_bounds = array<i64: 16, 384>}]} {
    %c0 = arith.constant 0 : index
    %c0_0 = arith.constant 0 : index
    %0 = vector.load %arg1[%c0, %c0_0] : memref<16x768xbf16, #tpu.memory_space<vmem>>, vector<16x768xbf16>
    %c0_1 = arith.constant 0 : index
    %c0_2 = arith.constant 0 : index
    %1 = vector.load %arg2[%c0_1, %c0_2] : memref<768x384xbf16, #tpu.memory_space<vmem>>, vector<768x384xbf16>
    %cst = arith.constant dense<0.000000e+00> : vector<16x384xf32>
    %2 = tpu.matmul %0, %1, %cst {dimension_numbers = #tpu.dot_dimension_numbers<[1], [0], [0], [1], [0, 0, 1, 1], [], []>} : vector<16x768xbf16>, vector<768x384xbf16>, vector<16x384xf32> -> vector<16x384xf32>
    %c0_3 = arith.constant 0 : index
    %c0_4 = arith.constant 0 : index
    %3 = vector.load %arg3[%c0_3, %c0_4] : memref<1x384xf32, #tpu.memory_space<vmem>>, vector<1x384xf32>
    %4 = vector.broadcast %3 : vector<1x384xf32> to vector<16x384xf32>
    %5 = arith.addf %2, %4 : vector<16x384xf32>
    %6 = arith.truncf %5 : vector<16x384xf32> to vector<16x384xbf16>
    %c0_5 = arith.constant 0 : index
    %c0_6 = arith.constant 0 : index
    %7 = vector.load %arg4[%c0_5, %c0_6] : memref<16x384xbf16, #tpu.memory_space<vmem>>, vector<16x384xbf16>
    tpu.vector_store %arg4[%c0_5, %c0_6], %6 {strides = array<i32>} : memref<16x384xbf16, #tpu.memory_space<vmem>>, vector<16x384xbf16>,
    return
  }
  func.func @transform_0(%arg0: i32) -> (i32, i32) {
    %c0_i32 = arith.constant 0 : i32
    %c0_i32_0 = arith.constant 0 : i32
    %c0_i32_1 = arith.constant 0 : i32
    return %c0_i32, %c0_i32_0 : i32, i32
  }
  func.func @transform_1(%arg0: i32) -> (i32, i32) {
    %c0_i32 = arith.constant 0 : i32
    %c0_i32_0 = arith.constant 0 : i32
    return %c0_i32, %arg0 : i32, i32
  }
  func.func @transform_2(%arg0: i32) -> (i32, i32) {
    %c0_i32 = arith.constant 0 : i32
    %c0_i32_0 = arith.constant 0 : i32
    return %c0_i32, %arg0 : i32, i32
  }
  func.func @transform_3(%arg0: i32) -> (i32, i32) {
    %c0_i32 = arith.constant 0 : i32
    %c0_i32_0 = arith.constant 0 : i32
    return %c0_i32, %arg0 : i32, i32
  }
}

module attributes {stable_mosaic.version = 11 : i64} {
  func.func @_ffn_kernel(%arg0: i32, %arg1: memref<16x768xbf16, #tpu.memory_space<vmem>>, %arg2: memref<768x512xbf16, #tpu.memory_space<vmem>>, %arg3: memref<1x512xf32, #tpu.memory_space<vmem>>, %arg4: memref<512x768xbf16, #tpu.memory_space<vmem>>, %arg5: memref<1x768xf32, #tpu.memory_space<vmem>>, %arg6: memref<16x768xbf16, #tpu.memory_space<vmem>>, %arg7: memref<16x768xf32, #tpu.memory_space<vmem>>) attributes {dimension_semantics = [#tpu.dimension_semantics<arbitrary>], iteration_bounds = array<i64: 6>, scalar_prefetch = 0 : i64, scratch_operands = 1 : i64, tpu.core_type = #tpu.core_type<tc>, window_params = [{pipeline_mode = #tpu.pipeline_mode<synchronous>, transform_indices = @transform_0, window_bounds = array<i64: 16, 768>}, {transform_indices = @transform_1, window_bounds = array<i64: 768, 512>}, {transform_indices = @transform_2, window_bounds = array<i64: 1, 512>}, {transform_indices = @transform_3, window_bounds = array<i64: 512, 768>}, {pipeline_mode = #tpu.pipeline_mode<synchronous>, transform_indices = @transform_4, window_bounds = array<i64: 1, 768>}, {pipeline_mode = #tpu.pipeline_mode<synchronous>, transform_indices = @transform_5, window_bounds = array<i64: 16, 768>}]} {
    %c0_i32 = arith.constant 0 : i32
    %0 = arith.cmpi eq, %arg0, %c0_i32 : i32
    %1 = arith.extui %0 : i1 to i32
    %c0_i32_0 = arith.constant 0 : i32
    %2 = arith.cmpi ne, %1, %c0_i32_0 : i32
    scf.if %2 {
      %cst_18 = arith.constant 0.000000e+00 : f32
      %31 = vector.broadcast %cst_18 : f32 to vector<16x768xf32>
      %c0_19 = arith.constant 0 : index
      %c0_20 = arith.constant 0 : index
      %32 = vector.load %arg7[%c0_19, %c0_20] : memref<16x768xf32, #tpu.memory_space<vmem>>, vector<16x768xf32>
      tpu.vector_store %arg7[%c0_19, %c0_20], %31 {strides = array<i32>} : memref<16x768xf32, #tpu.memory_space<vmem>>, vector<16x768xf32>,
    } else {
    }
    %c0 = arith.constant 0 : index
    %c0_1 = arith.constant 0 : index
    %3 = vector.load %arg1[%c0, %c0_1] : memref<16x768xbf16, #tpu.memory_space<vmem>>, vector<16x768xbf16>
    %c0_2 = arith.constant 0 : index
    %c0_3 = arith.constant 0 : index
    %4 = vector.load %arg2[%c0_2, %c0_3] : memref<768x512xbf16, #tpu.memory_space<vmem>>, vector<768x512xbf16>
    %cst = arith.constant dense<0.000000e+00> : vector<16x512xf32>
    %5 = tpu.matmul %3, %4, %cst {dimension_numbers = #tpu.dot_dimension_numbers<[1], [0], [0], [1], [0, 0, 1, 1], [], []>} : vector<16x768xbf16>, vector<768x512xbf16>, vector<16x512xf32> -> vector<16x512xf32>
    %c0_4 = arith.constant 0 : index
    %c0_5 = arith.constant 0 : index
    %6 = vector.load %arg3[%c0_4, %c0_5] : memref<1x512xf32, #tpu.memory_space<vmem>>, vector<1x512xf32>
    %7 = vector.broadcast %6 : vector<1x512xf32> to vector<16x512xf32>
    %8 = arith.addf %5, %7 : vector<16x512xf32>
    %cst_6 = arith.constant 5.000000e-01 : f32
    %9 = vector.broadcast %cst_6 : f32 to vector<16x512xf32>
    %10 = arith.mulf %9, %8 : vector<16x512xf32>
    %cst_7 = arith.constant 4.471500e-02 : f32
    %11 = vector.broadcast %cst_7 : f32 to vector<16x512xf32>
    %12 = arith.mulf %11, %8 : vector<16x512xf32>
    %13 = arith.mulf %12, %8 : vector<16x512xf32>
    %14 = arith.mulf %13, %8 : vector<16x512xf32>
    %15 = arith.addf %8, %14 : vector<16x512xf32>
    %cst_8 = arith.constant 0.797884583 : f32
    %16 = vector.broadcast %cst_8 : f32 to vector<16x512xf32>
    %17 = arith.mulf %16, %15 : vector<16x512xf32>
    %18 = math.tanh %17 : vector<16x512xf32>
    %cst_9 = arith.constant 1.000000e+00 : f32
    %19 = vector.broadcast %cst_9 : f32 to vector<16x512xf32>
    %20 = arith.addf %19, %18 : vector<16x512xf32>
    %21 = arith.mulf %10, %20 : vector<16x512xf32>
    %c0_10 = arith.constant 0 : index
    %c0_11 = arith.constant 0 : index
    %22 = vector.load %arg7[%c0_10, %c0_11] : memref<16x768xf32, #tpu.memory_space<vmem>>, vector<16x768xf32>
    %23 = arith.truncf %21 : vector<16x512xf32> to vector<16x512xbf16>
    %c0_12 = arith.constant 0 : index
    %c0_13 = arith.constant 0 : index
    %24 = vector.load %arg4[%c0_12, %c0_13] : memref<512x768xbf16, #tpu.memory_space<vmem>>, vector<512x768xbf16>
    %cst_14 = arith.constant dense<0.000000e+00> : vector<16x768xf32>
    %25 = tpu.matmul %23, %24, %cst_14 {dimension_numbers = #tpu.dot_dimension_numbers<[1], [0], [0], [1], [0, 0, 1, 1], [], []>} : vector<16x512xbf16>, vector<512x768xbf16>, vector<16x768xf32> -> vector<16x768xf32>
    %26 = arith.addf %22, %25 : vector<16x768xf32>
    %c0_15 = arith.constant 0 : index
    %c0_16 = arith.constant 0 : index
    %27 = vector.load %arg7[%c0_15, %c0_16] : memref<16x768xf32, #tpu.memory_space<vmem>>, vector<16x768xf32>
    tpu.vector_store %arg7[%c0_15, %c0_16], %26 {strides = array<i32>} : memref<16x768xf32, #tpu.memory_space<vmem>>, vector<16x768xf32>,
    %c5_i32 = arith.constant 5 : i32
    %28 = arith.cmpi eq, %arg0, %c5_i32 : i32
    %29 = arith.extui %28 : i1 to i32
    %c0_i32_17 = arith.constant 0 : i32
    %30 = arith.cmpi ne, %29, %c0_i32_17 : i32
    scf.if %30 {
      %c0_18 = arith.constant 0 : index
      %c0_19 = arith.constant 0 : index
      %31 = vector.load %arg7[%c0_18, %c0_19] : memref<16x768xf32, #tpu.memory_space<vmem>>, vector<16x768xf32>
      %c0_20 = arith.constant 0 : index
      %c0_21 = arith.constant 0 : index
      %32 = vector.load %arg5[%c0_20, %c0_21] : memref<1x768xf32, #tpu.memory_space<vmem>>, vector<1x768xf32>
      %33 = vector.broadcast %32 : vector<1x768xf32> to vector<16x768xf32>
      %34 = arith.addf %31, %33 : vector<16x768xf32>
      %35 = arith.truncf %34 : vector<16x768xf32> to vector<16x768xbf16>
      %c0_22 = arith.constant 0 : index
      %c0_23 = arith.constant 0 : index
      %36 = vector.load %arg6[%c0_22, %c0_23] : memref<16x768xbf16, #tpu.memory_space<vmem>>, vector<16x768xbf16>
      tpu.vector_store %arg6[%c0_22, %c0_23], %35 {strides = array<i32>} : memref<16x768xbf16, #tpu.memory_space<vmem>>, vector<16x768xbf16>,
    } else {
    }
    return
  }
  func.func @transform_0(%arg0: i32) -> (i32, i32) {
    %c0_i32 = arith.constant 0 : i32
    %c0_i32_0 = arith.constant 0 : i32
    %c0_i32_1 = arith.constant 0 : i32
    return %c0_i32, %c0_i32_0 : i32, i32
  }
  func.func @transform_1(%arg0: i32) -> (i32, i32) {
    %c0_i32 = arith.constant 0 : i32
    %c0_i32_0 = arith.constant 0 : i32
    return %c0_i32, %arg0 : i32, i32
  }
  func.func @transform_2(%arg0: i32) -> (i32, i32) {
    %c0_i32 = arith.constant 0 : i32
    %c0_i32_0 = arith.constant 0 : i32
    return %c0_i32, %arg0 : i32, i32
  }
  func.func @transform_3(%arg0: i32) -> (i32, i32) {
    %c0_i32 = arith.constant 0 : i32
    %c0_i32_0 = arith.constant 0 : i32
    return %arg0, %c0_i32 : i32, i32
  }
  func.func @transform_4(%arg0: i32) -> (i32, i32) {
    %c0_i32 = arith.constant 0 : i32
    %c0_i32_0 = arith.constant 0 : i32
    %c0_i32_1 = arith.constant 0 : i32
    return %c0_i32, %c0_i32_0 : i32, i32
  }
  func.func @transform_5(%arg0: i32) -> (i32, i32) {
    %c0_i32 = arith.constant 0 : i32
    %c0_i32_0 = arith.constant 0 : i32
    %c0_i32_1 = arith.constant 0 : i32
    return %c0_i32, %c0_i32_0 : i32, i32
  }
}

module attributes {stable_mosaic.version = 11 : i64} {
  func.func @_ffn_kernel(%arg0: i32, %arg1: memref<16x768xbf16, #tpu.memory_space<vmem>>, %arg2: memref<768x512xbf16, #tpu.memory_space<vmem>>, %arg3: memref<1x512xf32, #tpu.memory_space<vmem>>, %arg4: memref<512x768xbf16, #tpu.memory_space<vmem>>, %arg5: memref<1x768xf32, #tpu.memory_space<vmem>>, %arg6: memref<16x768xbf16, #tpu.memory_space<vmem>>, %arg7: memref<16x768xf32, #tpu.memory_space<vmem>>) attributes {dimension_semantics = [#tpu.dimension_semantics<arbitrary>], iteration_bounds = array<i64: 6>, scalar_prefetch = 0 : i64, scratch_operands = 1 : i64, tpu.core_type = #tpu.core_type<tc>, window_params = [{pipeline_mode = #tpu.pipeline_mode<synchronous>, transform_indices = @transform_0, window_bounds = array<i64: 16, 768>}, {transform_indices = @transform_1, window_bounds = array<i64: 768, 512>}, {transform_indices = @transform_2, window_bounds = array<i64: 1, 512>}, {transform_indices = @transform_3, window_bounds = array<i64: 512, 768>}, {pipeline_mode = #tpu.pipeline_mode<synchronous>, transform_indices = @transform_4, window_bounds = array<i64: 1, 768>}, {pipeline_mode = #tpu.pipeline_mode<synchronous>, transform_indices = @transform_5, window_bounds = array<i64: 16, 768>}]} {
    %c0_i32 = arith.constant 0 : i32
    %0 = arith.cmpi eq, %arg0, %c0_i32 : i32
    %1 = arith.extui %0 : i1 to i32
    %c0_i32_0 = arith.constant 0 : i32
    %2 = arith.cmpi ne, %1, %c0_i32_0 : i32
    scf.if %2 {
      %cst_18 = arith.constant 0.000000e+00 : f32
      %31 = vector.broadcast %cst_18 : f32 to vector<16x768xf32>
      %c0_19 = arith.constant 0 : index
      %c0_20 = arith.constant 0 : index
      %32 = vector.load %arg7[%c0_19, %c0_20] : memref<16x768xf32, #tpu.memory_space<vmem>>, vector<16x768xf32>
      tpu.vector_store %arg7[%c0_19, %c0_20], %31 {strides = array<i32>} : memref<16x768xf32, #tpu.memory_space<vmem>>, vector<16x768xf32>,
    } else {
    }
    %c0 = arith.constant 0 : index
    %c0_1 = arith.constant 0 : index
    %3 = vector.load %arg1[%c0, %c0_1] : memref<16x768xbf16, #tpu.memory_space<vmem>>, vector<16x768xbf16>
    %c0_2 = arith.constant 0 : index
    %c0_3 = arith.constant 0 : index
    %4 = vector.load %arg2[%c0_2, %c0_3] : memref<768x512xbf16, #tpu.memory_space<vmem>>, vector<768x512xbf16>
    %cst = arith.constant dense<0.000000e+00> : vector<16x512xf32>
    %5 = tpu.matmul %3, %4, %cst {dimension_numbers = #tpu.dot_dimension_numbers<[1], [0], [0], [1], [0, 0, 1, 1], [], []>} : vector<16x768xbf16>, vector<768x512xbf16>, vector<16x512xf32> -> vector<16x512xf32>
    %c0_4 = arith.constant 0 : index
    %c0_5 = arith.constant 0 : index
    %6 = vector.load %arg3[%c0_4, %c0_5] : memref<1x512xf32, #tpu.memory_space<vmem>>, vector<1x512xf32>
    %7 = vector.broadcast %6 : vector<1x512xf32> to vector<16x512xf32>
    %8 = arith.addf %5, %7 : vector<16x512xf32>
    %cst_6 = arith.constant 5.000000e-01 : f32
    %9 = vector.broadcast %cst_6 : f32 to vector<16x512xf32>
    %10 = arith.mulf %9, %8 : vector<16x512xf32>
    %cst_7 = arith.constant 4.471500e-02 : f32
    %11 = vector.broadcast %cst_7 : f32 to vector<16x512xf32>
    %12 = arith.mulf %11, %8 : vector<16x512xf32>
    %13 = arith.mulf %12, %8 : vector<16x512xf32>
    %14 = arith.mulf %13, %8 : vector<16x512xf32>
    %15 = arith.addf %8, %14 : vector<16x512xf32>
    %cst_8 = arith.constant 0.797884583 : f32
    %16 = vector.broadcast %cst_8 : f32 to vector<16x512xf32>
    %17 = arith.mulf %16, %15 : vector<16x512xf32>
    %18 = math.tanh %17 : vector<16x512xf32>
    %cst_9 = arith.constant 1.000000e+00 : f32
    %19 = vector.broadcast %cst_9 : f32 to vector<16x512xf32>
    %20 = arith.addf %19, %18 : vector<16x512xf32>
    %21 = arith.mulf %10, %20 : vector<16x512xf32>
    %c0_10 = arith.constant 0 : index
    %c0_11 = arith.constant 0 : index
    %22 = vector.load %arg7[%c0_10, %c0_11] : memref<16x768xf32, #tpu.memory_space<vmem>>, vector<16x768xf32>
    %23 = arith.truncf %21 : vector<16x512xf32> to vector<16x512xbf16>
    %c0_12 = arith.constant 0 : index
    %c0_13 = arith.constant 0 : index
    %24 = vector.load %arg4[%c0_12, %c0_13] : memref<512x768xbf16, #tpu.memory_space<vmem>>, vector<512x768xbf16>
    %cst_14 = arith.constant dense<0.000000e+00> : vector<16x768xf32>
    %25 = tpu.matmul %23, %24, %cst_14 {dimension_numbers = #tpu.dot_dimension_numbers<[1], [0], [0], [1], [0, 0, 1, 1], [], []>} : vector<16x512xbf16>, vector<512x768xbf16>, vector<16x768xf32> -> vector<16x768xf32>
    %26 = arith.addf %22, %25 : vector<16x768xf32>
    %c0_15 = arith.constant 0 : index
    %c0_16 = arith.constant 0 : index
    %27 = vector.load %arg7[%c0_15, %c0_16] : memref<16x768xf32, #tpu.memory_space<vmem>>, vector<16x768xf32>
    tpu.vector_store %arg7[%c0_15, %c0_16], %26 {strides = array<i32>} : memref<16x768xf32, #tpu.memory_space<vmem>>, vector<16x768xf32>,
    %c5_i32 = arith.constant 5 : i32
    %28 = arith.cmpi eq, %arg0, %c5_i32 : i32
    %29 = arith.extui %28 : i1 to i32
    %c0_i32_17 = arith.constant 0 : i32
    %30 = arith.cmpi ne, %29, %c0_i32_17 : i32
    scf.if %30 {
      %c0_18 = arith.constant 0 : index
      %c0_19 = arith.constant 0 : index
      %31 = vector.load %arg7[%c0_18, %c0_19] : memref<16x768xf32, #tpu.memory_space<vmem>>, vector<16x768xf32>
      %c0_20 = arith.constant 0 : index
      %c0_21 = arith.constant 0 : index
      %32 = vector.load %arg5[%c0_20, %c0_21] : memref<1x768xf32, #tpu.memory_space<vmem>>, vector<1x768xf32>
      %33 = vector.broadcast %32 : vector<1x768xf32> to vector<16x768xf32>
      %34 = arith.addf %31, %33 : vector<16x768xf32>
      %35 = arith.truncf %34 : vector<16x768xf32> to vector<16x768xbf16>
      %c0_22 = arith.constant 0 : index
      %c0_23 = arith.constant 0 : index
      %36 = vector.load %arg6[%c0_22, %c0_23] : memref<16x768xbf16, #tpu.memory_space<vmem>>, vector<16x768xbf16>
      tpu.vector_store %arg6[%c0_22, %c0_23], %35 {strides = array<i32>} : memref<16x768xbf16, #tpu.memory_space<vmem>>, vector<16x768xbf16>,
    } else {
    }
    return
  }
  func.func @transform_0(%arg0: i32) -> (i32, i32) {
    %c0_i32 = arith.constant 0 : i32
    %c0_i32_0 = arith.constant 0 : i32
    %c0_i32_1 = arith.constant 0 : i32
    return %c0_i32, %c0_i32_0 : i32, i32
  }
  func.func @transform_1(%arg0: i32) -> (i32, i32) {
    %c0_i32 = arith.constant 0 : i32
    %c0_i32_0 = arith.constant 0 : i32
    return %c0_i32, %arg0 : i32, i32
  }
  func.func @transform_2(%arg0: i32) -> (i32, i32) {
    %c0_i32 = arith.constant 0 : i32
    %c0_i32_0 = arith.constant 0 : i32
    return %c0_i32, %arg0 : i32, i32
  }
  func.func @transform_3(%arg0: i32) -> (i32, i32) {
    %c0_i32 = arith.constant 0 : i32
    %c0_i32_0 = arith.constant 0 : i32
    return %arg0, %c0_i32 : i32, i32
  }
  func.func @transform_4(%arg0: i32) -> (i32, i32) {
    %c0_i32 = arith.constant 0 : i32
    %c0_i32_0 = arith.constant 0 : i32
    %c0_i32_1 = arith.constant 0 : i32
    return %c0_i32, %c0_i32_0 : i32, i32
  }
  func.func @transform_5(%arg0: i32) -> (i32, i32) {
    %c0_i32 = arith.constant 0 : i32
    %c0_i32_0 = arith.constant 0 : i32
    %c0_i32_1 = arith.constant 0 : i32
    return %c0_i32, %c0_i32_0 : i32, i32
  }
}

module attributes {stable_mosaic.version = 11 : i64} {
  func.func @_classifier_kernel(%arg0: i32, %arg1: memref<2x768xbf16, #tpu.memory_space<vmem>>, %arg2: memref<768x50xf32, #tpu.memory_space<vmem>>, %arg3: memref<1x50xf32, #tpu.memory_space<vmem>>, %arg4: memref<50x5xf32, #tpu.memory_space<vmem>>, %arg5: memref<1x5xf32, #tpu.memory_space<vmem>>, %arg6: memref<2x5xf32, #tpu.memory_space<vmem>>) attributes {dimension_semantics = [#tpu.dimension_semantics<arbitrary>], iteration_bounds = array<i64: 1>, scalar_prefetch = 0 : i64, scratch_operands = 0 : i64, tpu.core_type = #tpu.core_type<tc>, window_params = [{pipeline_mode = #tpu.pipeline_mode<synchronous>, transform_indices = @transform_0, window_bounds = array<i64: 2, 768>}, {pipeline_mode = #tpu.pipeline_mode<synchronous>, transform_indices = @transform_1, window_bounds = array<i64: 768, 50>}, {pipeline_mode = #tpu.pipeline_mode<synchronous>, transform_indices = @transform_2, window_bounds = array<i64: 1, 50>}, {pipeline_mode = #tpu.pipeline_mode<synchronous>, transform_indices = @transform_3, window_bounds = array<i64: 50, 5>}, {pipeline_mode = #tpu.pipeline_mode<synchronous>, transform_indices = @transform_4, window_bounds = array<i64: 1, 5>}, {pipeline_mode = #tpu.pipeline_mode<synchronous>, transform_indices = @transform_5, window_bounds = array<i64: 2, 5>}]} {
    %c0 = arith.constant 0 : index
    %c0_0 = arith.constant 0 : index
    %0 = vector.load %arg1[%c0, %c0_0] : memref<2x768xbf16, #tpu.memory_space<vmem>>, vector<2x768xbf16>
    %1 = arith.extf %0 : vector<2x768xbf16> to vector<2x768xf32>
    %c0_1 = arith.constant 0 : index
    %c0_2 = arith.constant 0 : index
    %2 = vector.load %arg2[%c0_1, %c0_2] : memref<768x50xf32, #tpu.memory_space<vmem>>, vector<768x50xf32>
    %cst = arith.constant dense<0.000000e+00> : vector<2x50xf32>
    %3 = tpu.matmul %1, %2, %cst {dimension_numbers = #tpu.dot_dimension_numbers<[1], [0], [0], [1], [0, 0, 1, 1], [], []>} : vector<2x768xf32>, vector<768x50xf32>, vector<2x50xf32> -> vector<2x50xf32>
    %c0_3 = arith.constant 0 : index
    %c0_4 = arith.constant 0 : index
    %4 = vector.load %arg3[%c0_3, %c0_4] : memref<1x50xf32, #tpu.memory_space<vmem>>, vector<1x50xf32>
    %5 = vector.broadcast %4 : vector<1x50xf32> to vector<2x50xf32>
    %6 = arith.addf %3, %5 : vector<2x50xf32>
    %cst_5 = arith.constant 0.000000e+00 : f32
    %7 = vector.broadcast %cst_5 : f32 to vector<2x50xf32>
    %8 = arith.maximumf %6, %7 : vector<2x50xf32>
    %c0_6 = arith.constant 0 : index
    %c0_7 = arith.constant 0 : index
    %9 = vector.load %arg4[%c0_6, %c0_7] : memref<50x5xf32, #tpu.memory_space<vmem>>, vector<50x5xf32>
    %cst_8 = arith.constant dense<0.000000e+00> : vector<2x5xf32>
    %10 = tpu.matmul %8, %9, %cst_8 {dimension_numbers = #tpu.dot_dimension_numbers<[1], [0], [0], [1], [0, 0, 1, 1], [], []>} : vector<2x50xf32>, vector<50x5xf32>, vector<2x5xf32> -> vector<2x5xf32>
    %c0_9 = arith.constant 0 : index
    %c0_10 = arith.constant 0 : index
    %11 = vector.load %arg5[%c0_9, %c0_10] : memref<1x5xf32, #tpu.memory_space<vmem>>, vector<1x5xf32>
    %12 = vector.broadcast %11 : vector<1x5xf32> to vector<2x5xf32>
    %13 = arith.addf %10, %12 : vector<2x5xf32>
    %c0_11 = arith.constant 0 : index
    %c0_12 = arith.constant 0 : index
    %14 = vector.load %arg6[%c0_11, %c0_12] : memref<2x5xf32, #tpu.memory_space<vmem>>, vector<2x5xf32>
    tpu.vector_store %arg6[%c0_11, %c0_12], %13 {strides = array<i32>} : memref<2x5xf32, #tpu.memory_space<vmem>>, vector<2x5xf32>,
    return
  }
  func.func @transform_0(%arg0: i32) -> (i32, i32) {
    %c0_i32 = arith.constant 0 : i32
    %c0_i32_0 = arith.constant 0 : i32
    %c0_i32_1 = arith.constant 0 : i32
    return %c0_i32, %c0_i32_0 : i32, i32
  }
  func.func @transform_1(%arg0: i32) -> (i32, i32) {
    %c0_i32 = arith.constant 0 : i32
    %c0_i32_0 = arith.constant 0 : i32
    %c0_i32_1 = arith.constant 0 : i32
    return %c0_i32, %c0_i32_0 : i32, i32
  }
  func.func @transform_2(%arg0: i32) -> (i32, i32) {
    %c0_i32 = arith.constant 0 : i32
    %c0_i32_0 = arith.constant 0 : i32
    %c0_i32_1 = arith.constant 0 : i32
    return %c0_i32, %c0_i32_0 : i32, i32
  }
  func.func @transform_3(%arg0: i32) -> (i32, i32) {
    %c0_i32 = arith.constant 0 : i32
    %c0_i32_0 = arith.constant 0 : i32
    %c0_i32_1 = arith.constant 0 : i32
    return %c0_i32, %c0_i32_0 : i32, i32
  }
  func.func @transform_4(%arg0: i32) -> (i32, i32) {
    %c0_i32 = arith.constant 0 : i32
    %c0_i32_0 = arith.constant 0 : i32
    %c0_i32_1 = arith.constant 0 : i32
    return %c0_i32, %c0_i32_0 : i32, i32
  }
  func.func @transform_5(%arg0: i32) -> (i32, i32) {
    %c0_i32 = arith.constant 0 : i32
    %c0_i32_0 = arith.constant 0 : i32
    %c0_i32_1 = arith.constant 0 : i32
    return %c0_i32, %c0_i32_0 : i32, i32
  }
}

</mosaic_0001>

<bundles_post_ra>
// kernel: bert_classifier_forward.14
= control target key start
LH: loop header
LB: loop body
LE: loop exit
PB: predicated region body
PF: predicated region fallthrough
CT: control target
= control target key end

     0   :  { %s427_s12 = smov 0   ;;  %s454_s0 = inlined_call_operand.vmem [shape: f32[16,768], index: 0, kind: input, shape index: {}]   ;;  %s455_s1 = inlined_call_operand.vmem [shape: f32[1,768], index: 1, kind: input, shape index: {}]   ;;  %s456_s2 = inlined_call_operand.vmem [shape: f32[1,768], index: 2, kind: input, shape index: {}]   ;;  %s457_s3 = inlined_call_operand.vmem [shape: bf16[16,768], index: 3, kind: output, shape index: {}]  }
   0x1 LB: > { %s372_s13 = sadd.s32 4294967295, %s405_s12   ;;  %p376_p0 = scmp.ge.s32.totalorder %s405_s12, 1  ;;  %s405_s12 = sphi %s427_s12, %s13_s12  }
   0x2   : > { %p137_p1 = scmp.lt.s32.totalorder %s405_s12, 3 }
   0x4   : > { %p138_p2 = pnand %p376_p0, %p137_p1 }
   0x5   : > { %p161_p3 = scmp.lt.s32.totalorder (!%p138_p2), %s372_s13, 1  ;;  %v216_v31 = vlaneseq (!%p138_p2)  ;;  %v214_v37 = vld [vmem:[%s455_s1] sm:$0x3f] (!%p138_p2) }
   0x6   : > { %141 = sbr.rel (%p138_p2) target bundleno = 353 (0x161), region = 32  ;;  %v252_v42 = vld [vmem:[%s456_s2] sm:$0x3f] (!%p138_p2) }
   0x7   : > { %v217_v34 = vshrl.u32 (!%p138_p2), %v216_v31, 7 }
   0x9   : > { %v218_v35 = vsub.s32 (!%p138_p2), 0, %v217_v34  ;;  %v222_v36 = vsub.s32 (!%p138_p2), 1, %v217_v34  ;;  %v226_v38 = vsub.s32 (!%p138_p2), 2, %v217_v34  ;;  %v230_v39 = vsub.s32 (!%p138_p2), 3, %v217_v34 }
   0xa   : > { %v234_v40 = vsub.s32 (!%p138_p2), 4, %v217_v34  ;;  %v238_v41 = vsub.s32 (!%p138_p2), 5, %v217_v34 }
   0xb   : > { %v219_v43 = vrot.slane (!%p138_p2), %v214_v37, %v218_v35  ;;  %v223_v44 = vrot.slane (!%p138_p2), %v214_v37, %v222_v36  ;;  %v227_v45 = vrot.slane (!%p138_p2), %v214_v37, %v226_v38  ;;  %v231_v46 = vrot.slane (!%p138_p2), %v214_v37, %v230_v39 }
   0xc   : > { %v235_v47 = vrot.slane (!%p138_p2), %v214_v37, %v234_v40  ;;  %v239_v48 = vrot.slane (!%p138_p2), %v214_v37, %v238_v41  ;;  %v257_v50 = vrot.slane (!%p138_p2), %v252_v42, %v218_v35  ;;  %v261_v51 = vrot.slane (!%p138_p2), %v252_v42, %v222_v36 }
   0xd   : > { %s459_s13 = smov (!%p161_p3, %s372_s13), 1  ;;  %v265_v52 = vrot.slane %v252_v42, %v226_v38  ;;  %v269_v53 = vrot.slane %v252_v42, %v230_v39  ;;  %v273_v58 = vrot.slane %v252_v42, %v234_v40  ;;  %v277_v59 = vrot.slane %v252_v42, %v238_v41 }
   0xe   : > { %s387_s14 = smul.u32 48, %s459_s13 }
   0xf   : > { %s388_s22 = smul.u32 24, %s459_s13 }
  0x10   : > { %s165_s17 = scalar_lea.vmem %s454_s0, %s387_s14 }
  0x11   : > { %v171_v0 = vld [vmem:[%s165_s17] sm:$0xff]  ;;  %v172_v1 = vld [vmem:[%s165_s17 + $0x8] sm:$0xff]  ;;  %v173_v2 = vld [vmem:[%s165_s17 + $0x10] sm:$0xff]  ;;  %s170_s25 = scalar_lea.vmem %s457_s3, %s388_s22 }
  0x12   : > { %v177_v3 = vadd.f32 %v172_v1, %v171_v0  ;;  %v174_v4 = vld [vmem:[%s165_s17 + $0x18] sm:$0xff]  ;;  %v175_v6 = vld [vmem:[%s165_s17 + $0x20] sm:$0xff]  ;;  %v176_v8 = vld [vmem:[%s165_s17 + $0x28] sm:$0xff] }
  0x14   : > { %v178_v5 = vadd.f32 %v177_v3, %v173_v2 }
  0x16   : > { %v179_v7 = vadd.f32 %v178_v5, %v174_v4 }
  0x18   : > { %v180_v9 = vadd.f32 %v179_v7, %v175_v6 }
  0x1a   : > { %v181_v10 = vadd.f32 %v180_v9, %v176_v8 }
  0x1c   : > { %182 = vadd.xlane.f32.xlu0 %v181_v10 }
  0xa9   : > { %v183_v11 = vpop.xlane.xlu0 %182 }
  0xaa   : > { %v185_v12 = vmul.f32 0.0013020834, %v183_v11 }
  0xac   : > { %v186_v13 = vsub.f32 %v171_v0, %v185_v12  ;;  %v187_v14 = vsub.f32 %v172_v1, %v185_v12  ;;  %v188_v15 = vsub.f32 %v173_v2, %v185_v12  ;;  %v189_v16 = vsub.f32 %v174_v4, %v185_v12 }
  0xad   : > { %v190_v19 = vsub.f32 %v175_v6, %v185_v12  ;;  %v191_v22 = vsub.f32 %v176_v8, %v185_v12 }
  0xae   : > { %v192_v17 = vmul.f32 %v186_v13, %v186_v13  ;;  %v193_v18 = vmul.f32 %v187_v14, %v187_v14  ;;  %v194_v20 = vmul.f32 %v188_v15, %v188_v15  ;;  %v195_v23 = vmul.f32 %v189_v16, %v189_v16 }
  0xaf   : > { %v196_v25 = vmul.f32 %v190_v19, %v190_v19  ;;  %v197_v27 = vmul.f32 %v191_v22, %v191_v22 }
  0xb0   : > { %v198_v21 = vadd.f32 %v193_v18, %v192_v17 }
  0xb2   : > { %v199_v24 = vadd.f32 %v198_v21, %v194_v20 }
  0xb4   : > { %v200_v26 = vadd.f32 %v199_v24, %v195_v23 }
  0xb6   : > { %v201_v28 = vadd.f32 %v200_v26, %v196_v25 }
  0xb8   : > { %v202_v29 = vadd.f32 %v201_v28, %v197_v27 }
  0xba   : > { %203 = vadd.xlane.f32.xlu0 %v202_v29 }
 0x147   : > { %v204_v30 = vpop.xlane.xlu0 %203 }
 0x148   : > { %v205_v32 = vmul.f32 0.0013020834, %v204_v30 }
 0x14a   : > { %v206_v33 = vadd.f32 1e-12, %v205_v32 }
 0x14c   : > { %397 = vrsqrt.f32 %v206_v33 }
 0x156   : > { %v398_v49 = vpop.eup %397 }
 0x157   : > { %v208_v54 = vmul.f32 %v398_v49, %v186_v13  ;;  %v209_v55 = vmul.f32 %v398_v49, %v187_v14  ;;  %v210_v56 = vmul.f32 %v398_v49, %v188_v15  ;;  %v211_v57 = vmul.f32 %v398_v49, %v189_v16 }
 0x158   : > { %v212_v60 = vmul.f32 %v398_v49, %v190_v19  ;;  %v213_v61 = vmul.f32 %v398_v49, %v191_v22 }
 0x159   : > { %v246_v62 = vmul.f32 %v219_v43, %v208_v54  ;;  %v247_v63 = vmul.f32 %v223_v44, %v209_v55  ;;  %v248_v0 = vmul.f32 %v227_v45, %v210_v56  ;;  %v249_v1 = vmul.f32 %v231_v46, %v211_v57 }
 0x15a   : > { %v250_v2 = vmul.f32 %v235_v47, %v212_v60  ;;  %v251_v3 = vmul.f32 %v239_v48, %v213_v61 }
 0x15b   : > { %v284_v4 = vadd.f32 %v257_v50, %v246_v62  ;;  %v285_v5 = vadd.f32 %v261_v51, %v247_v63  ;;  %v286_v6 = vadd.f32 %v265_v52, %v248_v0  ;;  %v287_v7 = vadd.f32 %v269_v53, %v249_v1 }
 0x15c   : > { %v288_v8 = vadd.f32 %v273_v58, %v250_v2  ;;  %v289_v9 = vadd.f32 %v277_v59, %v251_v3 }
 0x15d   : > { %v384_v10 = vpack.c.bf16 %v285_v5, %v284_v4  ;;  %v385_v11 = vpack.c.bf16 %v287_v7, %v286_v6 }
 0x15e   : > { %v386_v12 = vpack.c.bf16 %v289_v9, %v288_v8 }
 0x15f   : > { %314 = vst [vmem:[%s170_s25] sm:$0xff] %v384_v10  ;;  %315 = vst [vmem:[%s170_s25 + $0x8] sm:$0xff] %v385_v11 }
 0x160   : > { %316 = vst [vmem:[%s170_s25 + $0x10] sm:$0xff] %v386_v12 }
 0x161 PF: > { %s13_s12 = sadd.s32 1, %s405_s12  }
 0x162   : > { %p10_p4 = scmp.ge.s32.totalorder %s13_s12, 4  }
 0x164   :  { %12 = sbr.rel (!%p10_p4) target bundleno = 1 (0x1), region = 62 }

// kernel: bert_classifier_forward.16
= control target key start
LH: loop header
LB: loop body
LE: loop exit
PB: predicated region body
PF: predicated region fallthrough
CT: control target
= control target key end

     0   :  { %s2006_s15 = smov 0   ;;  %s2382_s0 = inlined_call_operand.vmem [shape: bf16[2,12,8,64], index: 0, kind: input, shape index: {}]   ;;  %s2383_s1 = inlined_call_operand.vmem [shape: bf16[2,12,8,64], index: 1, kind: input, shape index: {}]   ;;  %s2384_s2 = inlined_call_operand.vmem [shape: bf16[2,12,8,64], index: 2, kind: input, shape index: {}]   ;;  %s2385_s3 = inlined_call_operand.vmem [shape: f32[2,1,8], index: 3, kind: input, shape index: {}]   ;;  %s2386_s4 = inlined_call_operand.vmem [shape: bf16[2,12,8,64], index: 4, kind: output, shape index: {}]  }
   0x1 LB: > { %s1684_s16 = sadd.s32 4294967295, %s1977_s15   ;;  %p1688_p0 = scmp.ge.s32.totalorder %s1977_s15, 1  ;;  %s1977_s15 = sphi %s2006_s15, %s14_s15  }
   0x2   : > { %p190_p1 = scmp.lt.s32.totalorder %s1977_s15, 3 }
   0x4   : > { %p191_p2 = pnand %p1688_p0, %p190_p1 }
   0x5   : > { %p229_p3 = scmp.lt.s32.totalorder (!%p191_p2), %s1684_s16, 1  ;;  %v1979_v0 = vmov (!%p191_p2), 0.0   ;;  %vm1980_vm0 = vmmov (!%p191_p2), 0   ;;  %vm290_vm1 = vcmask (!%p191_p2), 523264   ;;  %vm873_vm2 = vcmask (!%p191_p2), 64512  }
   0x6   : > { %194 = sbr.rel (%p191_p2) target bundleno = 817 (0x331), region = 36  ;;  %1768 = vmatprep.subr.bf16.mxu0 (!%p191_p2), %v1979_v0  ;;  %1774 = vmatprep.subr.bf16.mxu1 (!%p191_p2), %v1979_v0  ;;  %vm1021_vm3 = vcmask (!%p191_p2), 1043456   ;;  %vm1583_vm4 = vcmask (!%p191_p2), 519168  }
   0x7   : > { %1770 = vmatprep.mubr.msk.bf16.mxu0 (!%p191_p2), %vm1980_vm0, %v1979_v0  ;;  %1776 = vmatprep.mubr.msk.bf16.mxu1 (!%p191_p2), %vm1980_vm0, %v1979_v0 }
   0xd   : > { %s2388_s16 = smov (!%p229_p3, %s1684_s16), 1 }
   0xe   : > { %s2023_s17 = smul.u32 48, %s2388_s16  ;;  %s246_s26 = scalar_lea.vmem %s2385_s3, %s2388_s16 }
   0xf   : > { %v2125_v39 = vld [vmem:[%s246_s26] ss:$0 sm:$0xff] }
  0x10   : > { %s2029_s20 = scalar_lea.vmem %s2383_s1, %s2023_s17  ;;  %s2039_s23 = scalar_lea.vmem %s2382_s0, %s2023_s17 }
  0x11   : > { %v265_v1 = vld [vmem:[%s2029_s20] sm:$0xf]  ;;  %v266_v2 = vld [vmem:[%s2029_s20 + $0x4] sm:$0xf]  ;;  %v267_v5 = vld [vmem:[%s2029_s20 + $0x8] sm:$0xf]  ;;  %s2235_s29 = scalar_lea.vmem %s2384_s2, %s2023_s17  ;;  %s2353_s6 = scalar_lea.vmem %s2386_s4, %s2023_s17 }
  0x12   : > { %v295_v3 = vsel %vm290_vm1, %v265_v1, 0  ;;  %v341_v4 = vsel %vm290_vm1, %v266_v2, 0  ;;  %v268_v6 = vld [vmem:[%s2029_s20 + $0xc] sm:$0xf]  ;;  %v253_v7 = vld [vmem:[%s2039_s23] sm:$0xf] }
  0x13   : > { %1769 = vmatpush3.bf16.xpose.msra.mxu0 %v295_v3  ;;  %1775 = vmatpush3.bf16.xpose.msra.mxu1 %v341_v4  ;;  %v254_v8 = vld [vmem:[%s2039_s23 + $0x4] sm:$0xf]  ;;  %v387_v9 = vsel %vm290_vm1, %v267_v5, 0  ;;  %v433_v10 = vsel %vm290_vm1, %v268_v6, 0  ;;  %v269_v11 = vld [vmem:[%s2029_s20 + $0x10] sm:$0xf] }
  0x14   : > { %1780 = vmatprep.subr.bf16.mxu0 %v1979_v0  ;;  %1786 = vmatprep.subr.bf16.mxu1 %v1979_v0  ;;  %v270_v12 = vld [vmem:[%s2029_s20 + $0x14] sm:$0xf]  ;;  %v255_v13 = vld [vmem:[%s2039_s23 + $0x8] sm:$0xf]  ;;  %v256_v14 = vld [vmem:[%s2039_s23 + $0xc] sm:$0xf] }
  0x15   : > { %v479_v15 = vsel %vm290_vm1, %v269_v11, 0  ;;  %v525_v16 = vsel %vm290_vm1, %v270_v12, 0  ;;  %v271_v17 = vld [vmem:[%s2029_s20 + $0x18] sm:$0xf]  ;;  %v272_v18 = vld [vmem:[%s2029_s20 + $0x1c] sm:$0xf] }
  0x16   : > { %v257_v19 = vld [vmem:[%s2039_s23 + $0x10] sm:$0xf]  ;;  %v258_v20 = vld [vmem:[%s2039_s23 + $0x14] sm:$0xf]  ;;  %v571_v21 = vsel %vm290_vm1, %v271_v17, 0  ;;  %v617_v22 = vsel %vm290_vm1, %v272_v18, 0 }
  0x17   : > { %v273_v23 = vld [vmem:[%s2029_s20 + $0x20] sm:$0xf]  ;;  %v274_v24 = vld [vmem:[%s2029_s20 + $0x24] sm:$0xf]  ;;  %v259_v25 = vld [vmem:[%s2039_s23 + $0x18] sm:$0xf] }
  0x18   : > { %v260_v26 = vld [vmem:[%s2039_s23 + $0x1c] sm:$0xf]  ;;  %v663_v27 = vsel %vm290_vm1, %v273_v23, 0  ;;  %v709_v28 = vsel %vm290_vm1, %v274_v24, 0  ;;  %v275_v29 = vld [vmem:[%s2029_s20 + $0x28] sm:$0xf] }
  0x19   : > { %v276_v30 = vld [vmem:[%s2029_s20 + $0x2c] sm:$0xf]  ;;  %v261_v31 = vld [vmem:[%s2039_s23 + $0x20] sm:$0xf]  ;;  %v262_v32 = vld [vmem:[%s2039_s23 + $0x24] sm:$0xf] }
  0x1a   : > { %1771 = vmatmul.mubr.msk.bf16.vlgmr.msra.gmra.mrb[0].mxu0 %vm290_vm1, %v253_v7  ;;  %1777 = vmatmul.mubr.msk.bf16.vlgmr.msra.gmra.mrb[0].mxu1 %vm290_vm1, %v254_v8  ;;  %v755_v33 = vsel %vm290_vm1, %v275_v29, 0  ;;  %v801_v34 = vsel %vm290_vm1, %v276_v30, 0  ;;  %v263_v35 = vld [vmem:[%s2039_s23 + $0x28] sm:$0xf]  ;;  %v264_v36 = vld [vmem:[%s2039_s23 + $0x2c] sm:$0xf] }
  0x1b   : > { %1781 = vmatpush3.bf16.xpose.msra.mxu0 %v387_v9  ;;  %1787 = vmatpush3.bf16.xpose.msra.mxu1 %v433_v10 }
  0x1c   : > { %1782 = vmatprep.mubr.msk.bf16.mxu0 %vm1980_vm0, %v1979_v0  ;;  %1788 = vmatprep.mubr.msk.bf16.mxu1 %vm1980_vm0, %v1979_v0 }
  0x1d   : > { %1792 = vmatprep.subr.bf16.mxu0 %v1979_v0  ;;  %1798 = vmatprep.subr.bf16.mxu1 %v1979_v0 }
  0x22   : > { %1783 = vmatmul.mubr.msk.bf16.vlgmr.msra.gmra.mrb[4].mxu0 %vm290_vm1, %v255_v13  ;;  %1789 = vmatmul.mubr.msk.bf16.vlgmr.msra.gmra.mrb[4].mxu1 %vm290_vm1, %v256_v14 }
  0x23   : > { %1793 = vmatpush3.bf16.xpose.msra.mxu0 %v479_v15  ;;  %1799 = vmatpush3.bf16.xpose.msra.mxu1 %v525_v16 }
  0x24   : > { %1794 = vmatprep.mubr.msk.bf16.mxu0 %vm1980_vm0, %v1979_v0  ;;  %1800 = vmatprep.mubr.msk.bf16.mxu1 %vm1980_vm0, %v1979_v0 }
  0x25   : > { %1804 = vmatprep.subr.bf16.mxu0 %v1979_v0  ;;  %1810 = vmatprep.subr.bf16.mxu1 %v1979_v0 }
  0x2a   : > { %1795 = vmatmul.mubr.msk.bf16.vlgmr.msra.gmra.mrb[8].mxu0 %vm290_vm1, %v257_v19  ;;  %1801 = vmatmul.mubr.msk.bf16.vlgmr.msra.gmra.mrb[8].mxu1 %vm290_vm1, %v258_v20 }
  0x2b   : > { %1805 = vmatpush3.bf16.xpose.msra.mxu0 %v571_v21  ;;  %1811 = vmatpush3.bf16.xpose.msra.mxu1 %v617_v22 }
  0x2c   : > { %1806 = vmatprep.mubr.msk.bf16.mxu0 %vm1980_vm0, %v1979_v0  ;;  %1812 = vmatprep.mubr.msk.bf16.mxu1 %vm1980_vm0, %v1979_v0 }
  0x2d   : > { %1816 = vmatprep.subr.bf16.mxu0 %v1979_v0  ;;  %1822 = vmatprep.subr.bf16.mxu1 %v1979_v0 }
  0x32   : > { %1807 = vmatmul.mubr.msk.bf16.vlgmr.msra.gmra.mrb[12].mxu0 %vm290_vm1, %v259_v25  ;;  %1813 = vmatmul.mubr.msk.bf16.vlgmr.msra.gmra.mrb[12].mxu1 %vm290_vm1, %v260_v26 }
  0x33   : > { %1817 = vmatpush3.bf16.xpose.msra.mxu0 %v663_v27  ;;  %1823 = vmatpush3.bf16.xpose.msra.mxu1 %v709_v28 }
  0x34   : > { %1818 = vmatprep.mubr.msk.bf16.mxu0 %vm1980_vm0, %v1979_v0  ;;  %1824 = vmatprep.mubr.msk.bf16.mxu1 %vm1980_vm0, %v1979_v0 }
  0x35   : > { %1828 = vmatprep.subr.bf16.mxu0 %v1979_v0  ;;  %1834 = vmatprep.subr.bf16.mxu1 %v1979_v0 }
  0x3a   : > { %1819 = vmatmul.mubr.msk.bf16.vlgmr.msra.gmra.mrb[16].mxu0 %vm290_vm1, %v261_v31  ;;  %1825 = vmatmul.mubr.msk.bf16.vlgmr.msra.gmra.mrb[16].mxu1 %vm290_vm1, %v262_v32 }
  0x3b   : > { %1829 = vmatpush3.bf16.xpose.msra.mxu0 %v755_v33  ;;  %1835 = vmatpush3.bf16.xpose.msra.mxu1 %v801_v34 }
  0x3c   : > { %1830 = vmatprep.mubr.msk.bf16.mxu0 %vm1980_vm0, %v1979_v0  ;;  %1836 = vmatprep.mubr.msk.bf16.mxu1 %vm1980_vm0, %v1979_v0 }
  0x3d   : > { %1840 = vmatprep.subr.bf16.mxu0 %v1979_v0  ;;  %1846 = vmatprep.subr.bf16.mxu1 %v1979_v0 }
  0x42   : > { %1831 = vmatmul.mubr.msk.bf16.vlgmr.msra.gmra.mrb[20].mxu0 %vm290_vm1, %v263_v35  ;;  %1837 = vmatmul.mubr.msk.bf16.vlgmr.msra.gmra.mrb[20].mxu1 %vm290_vm1, %v264_v36 }
  0x43   : > { %1842 = vmatprep.mubr.msk.bf16.mxu0 %vm1980_vm0, %v1979_v0  ;;  %1848 = vmatprep.mubr.msk.bf16.mxu1 %vm1980_vm0, %v1979_v0 }
  0xed   : > { %v331_v37 = vpop.f32.mrb[0].mxu0  ;;  %v377_v38 = vpop.f32.mrb[0].mxu1 }
  0xee   : > { %v843_v40 = vmul.f32 0.125, %v331_v37  ;;  %v1772_v41 = vpop.f32.mrb[1].mxu0  ;;  %v844_v42 = vmul.f32 0.125, %v377_v38  ;;  %v1778_v43 = vpop.f32.mrb[1].mxu1 }
  0xef   : > { %v334_v44 = vpop.f32.mrb[2].mxu0  ;;  %v380_v45 = vpop.f32.mrb[2].mxu1 }
  0xf0   : > { %v1773_v46 = vpop.f32.mrb[3].mxu0  ;;  %v1779_v47 = vpop.f32.mrb[3].mxu1  ;;  %v2128_v48 = vadd.f32 %v2125_v39, %v843_v40  ;;  %v2131_v49 = vadd.f32 %v2125_v39, %v844_v42 }
  0xf2   : > { %v874_v50 = vsel %vm873_vm2, %v2128_v48, -inf  ;;  %v877_v51 = vsel %vm873_vm2, %v2131_v49, -inf }
  0xf3   : > { %875 = vmax.xlane.f32.xlu0 %v874_v50 }
  0xf5   : > { %v423_v52 = vpop.f32.mrb[4].mxu0  ;;  %v469_v53 = vpop.f32.mrb[4].mxu1 }
  0xf6   : > { %v845_v54 = vmul.f32 0.125, %v423_v52  ;;  %v1784_v55 = vpop.f32.mrb[5].mxu0  ;;  %v846_v56 = vmul.f32 0.125, %v469_v53  ;;  %v1790_v57 = vpop.f32.mrb[5].mxu1 }
  0xf7   : > { %878 = vmax.xlane.f32.xlu0 %v877_v51  ;;  %v426_v58 = vpop.f32.mrb[6].mxu0  ;;  %v472_v59 = vpop.f32.mrb[6].mxu1 }
  0xf8   : > { %v1785_v60 = vpop.f32.mrb[7].mxu0  ;;  %v1791_v61 = vpop.f32.mrb[7].mxu1  ;;  %v2138_v62 = vadd.f32 %v2125_v39, %v845_v54  ;;  %v2141_v63 = vadd.f32 %v2125_v39, %v846_v56 }
  0xfa   : > { %v880_v1 = vsel %vm873_vm2, %v2138_v62, -inf  ;;  %v883_v2 = vsel %vm873_vm2, %v2141_v63, -inf }
  0xfb   : > { %881 = vmax.xlane.f32.xlu1 %v880_v1 }
  0xfd   : > { %v515_v3 = vpop.f32.mrb[8].mxu0  ;;  %v561_v4 = vpop.f32.mrb[8].mxu1 }
  0xfe   : > { %v847_v5 = vmul.f32 0.125, %v515_v3  ;;  %v848_v6 = vmul.f32 0.125, %v561_v4  ;;  %v1796_v7 = vpop.f32.mrb[9].mxu0  ;;  %v1802_v8 = vpop.f32.mrb[9].mxu1 }
  0xff   : > { %884 = vmax.xlane.f32.xlu1 %v883_v2  ;;  %v518_v9 = vpop.f32.mrb[10].mxu0  ;;  %v564_v10 = vpop.f32.mrb[10].mxu1 }
 0x100   : > { %v1797_v11 = vpop.f32.mrb[11].mxu0  ;;  %v1803_v12 = vpop.f32.mrb[11].mxu1  ;;  %v2148_v13 = vadd.f32 %v2125_v39, %v848_v6  ;;  %v2151_v14 = vadd.f32 %v2125_v39, %v847_v5 }
 0x102   : > { %v889_v15 = vsel %vm873_vm2, %v2148_v13, -inf  ;;  %v886_v16 = vsel %vm873_vm2, %v2151_v14, -inf }
 0x103   : > { %890 = vmax.xlane.f32.xlu1 %v889_v15  ;;  %887 = vmax.xlane.f32.xlu0 %v886_v16 }
 0x105   : > { %v607_v17 = vpop.f32.mrb[12].mxu0  ;;  %v653_v18 = vpop.f32.mrb[12].mxu1 }
 0x106   : > { %v849_v19 = vmul.f32 0.125, %v607_v17  ;;  %v850_v20 = vmul.f32 0.125, %v653_v18  ;;  %v1808_v21 = vpop.f32.mrb[13].mxu0  ;;  %v1814_v22 = vpop.f32.mrb[13].mxu1 }
 0x107   : > { %v610_v23 = vpop.f32.mrb[14].mxu0  ;;  %v656_v24 = vpop.f32.mrb[14].mxu1 }
 0x108   : > { %v1809_v25 = vpop.f32.mrb[15].mxu0  ;;  %v1815_v26 = vpop.f32.mrb[15].mxu1  ;;  %v2158_v27 = vadd.f32 %v2125_v39, %v850_v20  ;;  %v2161_v28 = vadd.f32 %v2125_v39, %v849_v19 }
 0x10a   : > { %v895_v29 = vsel %vm873_vm2, %v2158_v27, -inf  ;;  %v892_v30 = vsel %vm873_vm2, %v2161_v28, -inf }
 0x10b   : > { %896 = vmax.xlane.f32.xlu1 %v895_v29  ;;  %893 = vmax.xlane.f32.xlu0 %v892_v30 }
 0x10d   : > { %v699_v31 = vpop.f32.mrb[16].mxu0  ;;  %v745_v32 = vpop.f32.mrb[16].mxu1 }
 0x10e   : > { %v851_v33 = vmul.f32 0.125, %v699_v31  ;;  %v852_v34 = vmul.f32 0.125, %v745_v32  ;;  %v1820_v35 = vpop.f32.mrb[17].mxu0  ;;  %v1826_v36 = vpop.f32.mrb[17].mxu1 }
 0x10f   : > { %v702_v37 = vpop.f32.mrb[18].mxu0  ;;  %v748_v38 = vpop.f32.mrb[18].mxu1 }
 0x110   : > { %v1821_v40 = vpop.f32.mrb[19].mxu0  ;;  %v1827_v41 = vpop.f32.mrb[19].mxu1  ;;  %v2168_v42 = vadd.f32 %v2125_v39, %v852_v34  ;;  %v2171_v43 = vadd.f32 %v2125_v39, %v851_v33 }
 0x112   : > { %v901_v44 = vsel %vm873_vm2, %v2168_v42, -inf  ;;  %v898_v45 = vsel %vm873_vm2, %v2171_v43, -inf }
 0x113   : > { %902 = vmax.xlane.f32.xlu1 %v901_v44  ;;  %899 = vmax.xlane.f32.xlu0 %v898_v45 }
 0x115   : > { %v791_v46 = vpop.f32.mrb[20].mxu0  ;;  %v837_v47 = vpop.f32.mrb[20].mxu1 }
 0x116   : > { %v853_v50 = vmul.f32 0.125, %v791_v46  ;;  %v854_v51 = vmul.f32 0.125, %v837_v47  ;;  %v1832_v52 = vpop.f32.mrb[21].mxu0  ;;  %v1838_v53 = vpop.f32.mrb[21].mxu1  ;;  %v277_v47 = vld [vmem:[%s2235_s29] sm:$0xf] }
 0x117   : > { %v794_v54 = vpop.f32.mrb[22].mxu0  ;;  %v840_v55 = vpop.f32.mrb[22].mxu1  ;;  %v1023_v52 = vsel %vm1021_vm3, %v277_v47, 0  ;;  %v278_v53 = vld [vmem:[%s2235_s29 + $0x4] sm:$0xf] }
 0x118   : > { %v1833_v56 = vpop.f32.mrb[23].mxu0  ;;  %v1839_v57 = vpop.f32.mrb[23].mxu1  ;;  %v2178_v58 = vadd.f32 %v2125_v39, %v854_v51  ;;  %v2181_v59 = vadd.f32 %v2125_v39, %v853_v50  ;;  %1841 = vmatpush3.bf16.msra.mxu0 %v1023_v52  ;;  %v1069_v55 = vsel %vm1021_vm3, %v278_v53, 0 }
 0x119   : > { %1852 = vmatprep.subr.bf16.mxu0 %v1979_v0  ;;  %1847 = vmatpush3.bf16.msra.mxu1 %v1069_v55 }
 0x11a   : > { %v907_v60 = vsel %vm873_vm2, %v2178_v58, -inf  ;;  %v904_v61 = vsel %vm873_vm2, %v2181_v59, -inf  ;;  %1858 = vmatprep.subr.bf16.mxu1 %v1979_v0 }
 0x11b   : > { %908 = vmax.xlane.f32.xlu1 %v907_v60  ;;  %905 = vmax.xlane.f32.xlu0 %v904_v61  ;;  %v280_v61 = vld [vmem:[%s2235_s29 + $0xc] sm:$0xf] }
 0x180   : > { %v876_v1 = vpop.xlane.xlu0 %875 }
 0x181   : > { %v910_v2 = vsub.f32 %v2128_v48, %v876_v1 }
 0x183   : > { %v922_v3 = vmul.f32 1.442695, %v910_v2  ;;  %v1161_v2 = vsel %vm1021_vm3, %v280_v61, 0 }
 0x184   : > { %v879_v4 = vpop.xlane.xlu0 %878 }
 0x185   : > { %1923 = vpow2.f32 %v922_v3  ;;  %v911_v5 = vsub.f32 %v2131_v49, %v879_v4 }
 0x187   : > { %v924_v6 = vmul.f32 1.442695, %v911_v5 }
 0x188   : > { %v882_v7 = vpop.xlane.xlu1 %881 }
 0x189   : > { %1925 = vpow2.f32 %v924_v6  ;;  %v912_v39 = vsub.f32 %v2138_v62, %v882_v7  ;;  %v281_v6 = vld [vmem:[%s2235_s29 + $0x10] sm:$0xf] }
 0x18a   : > { %v1207_v7 = vsel %vm1021_vm3, %v281_v6, 0 }
 0x18b   : > { %v926_v8 = vmul.f32 1.442695, %v912_v39  ;;  %v282_v39 = vld [vmem:[%s2235_s29 + $0x14] sm:$0xf] }
 0x18c   : > { %v885_v9 = vpop.xlane.xlu1 %884 }
 0x18d   : > { %1927 = vpow2.f32 %v926_v8  ;;  %v913_v10 = vsub.f32 %v2141_v63, %v885_v9  ;;  %v1253_v8 = vsel %vm1021_vm3, %v282_v39, 0  ;;  %v283_v9 = vld [vmem:[%s2235_s29 + $0x18] sm:$0xf] }
 0x18f   : > { %v2191_v11 = vpop.eup %1923  ;;  %v928_v12 = vmul.f32 1.442695, %v913_v10  ;;  %v2269_v10 = vsel %vm1021_vm3, %v283_v9, 0 }
 0x190   : > { %v891_v15 = vpop.xlane.xlu1 %890  ;;  %v888_v48 = vpop.xlane.xlu0 %887  ;;  %v946_v16 = vsel %vm873_vm2, %v2191_v11, 0.0 }
 0x191   : > { %1929 = vpow2.f32 %v928_v12  ;;  %v915_v49 = vsub.f32 %v2148_v13, %v891_v15  ;;  %v914_v17 = vsub.f32 %v2151_v14, %v888_v48  ;;  %947 = vadd.xlane.f32.xlu0 %v946_v16  ;;  %v284_v12 = vld [vmem:[%s2235_s29 + $0x1c] sm:$0xf]  ;;  %v285_v48 = vld [vmem:[%s2235_s29 + $0x20] sm:$0xf] }
 0x192   : > { %v2273_v15 = vsel %vm1021_vm3, %v284_v12, 0  ;;  %v2277_v16 = vsel %vm1021_vm3, %v285_v48, 0 }
 0x193   : > { %v2197_v62 = vpop.eup %1925  ;;  %v932_v18 = vmul.f32 1.442695, %v915_v49  ;;  %v930_v19 = vmul.f32 1.442695, %v914_v17  ;;  %v286_v49 = vld [vmem:[%s2235_s29 + $0x24] sm:$0xf] }
 0x194   : > { %v949_v63 = vsel %vm873_vm2, %v2197_v62, 0.0  ;;  %v2281_v17 = vsel %vm1021_vm3, %v286_v49, 0 }
 0x195   : > { %1931 = vpow2.f32 %v932_v18  ;;  %950 = vadd.xlane.f32.xlu1 %v949_v63  ;;  %v287_v18 = vld [vmem:[%s2235_s29 + $0x28] sm:$0xf]  ;;  %v288_v63 = vld [vmem:[%s2235_s29 + $0x2c] sm:$0xf] }
 0x196   : > { %1933 = vpow2.f32 %v930_v19  ;;  %v2285_v19 = vsel %vm1021_vm3, %v287_v18, 0 }
 0x197   : > { %v2201_v20 = vpop.eup %1927 }
 0x198   : > { %v897_v21 = vpop.xlane.xlu1 %896  ;;  %v894_v22 = vpop.xlane.xlu0 %893  ;;  %v952_v13 = vsel %vm873_vm2, %v2201_v20, 0.0 }
 0x199   : > { %v917_v14 = vsub.f32 %v2158_v27, %v897_v21  ;;  %v916_v23 = vsub.f32 %v2161_v28, %v894_v22  ;;  %953 = vadd.xlane.f32.xlu0 %v952_v13  ;;  %v2289_v21 = vsel %vm1021_vm3, %v288_v63, 0 }
 0x19b   : > { %v2207_v24 = vpop.eup %1929  ;;  %v936_v25 = vmul.f32 1.442695, %v917_v14  ;;  %v934_v26 = vmul.f32 1.442695, %v916_v23 }
 0x19c   : > { %v955_v29 = vsel %vm873_vm2, %v2207_v24, 0.0 }
 0x19d   : > { %1935 = vpow2.f32 %v936_v25  ;;  %956 = vadd.xlane.f32.xlu1 %v955_v29 }
 0x19e   : > { %1937 = vpow2.f32 %v934_v26 }
 0x19f   : > { %v2211_v30 = vpop.eup %1931 }
 0x1a0   : > { %v2213_v31 = vpop.eup %1933  ;;  %v903_v32 = vpop.xlane.xlu1 %902  ;;  %v961_v27 = vsel %vm873_vm2, %v2211_v30, 0.0 }
 0x1a1   : > { %v900_v33 = vpop.xlane.xlu0 %899  ;;  %v919_v28 = vsub.f32 %v2168_v42, %v903_v32  ;;  %962 = vadd.xlane.f32.xlu1 %v961_v27  ;;  %v958_v35 = vsel %vm873_vm2, %v2213_v31, 0.0 }
 0x1a2   : > { %v918_v34 = vsub.f32 %v2171_v43, %v900_v33  ;;  %959 = vadd.xlane.f32.xlu0 %v958_v35 }
 0x1a3   : > { %v940_v36 = vmul.f32 1.442695, %v919_v28 }
 0x1a4   : > { %v938_v37 = vmul.f32 1.442695, %v918_v34 }
 0x1a5   : > { %1939 = vpow2.f32 %v940_v36 }
 0x1a6   : > { %1941 = vpow2.f32 %v938_v37 }
 0x1a7   : > { %v2221_v38 = vpop.eup %1935 }
 0x1a8   : > { %v2223_v40 = vpop.eup %1937  ;;  %v909_v41 = vpop.xlane.xlu1 %908  ;;  %v967_v42 = vsel %vm873_vm2, %v2221_v38, 0.0 }
 0x1a9   : > { %v906_v44 = vpop.xlane.xlu0 %905  ;;  %v921_v43 = vsub.f32 %v2178_v58, %v909_v41  ;;  %968 = vadd.xlane.f32.xlu1 %v967_v42  ;;  %v964_v46 = vsel %vm873_vm2, %v2223_v40, 0.0 }
 0x1aa   : > { %v920_v45 = vsub.f32 %v2181_v59, %v906_v44  ;;  %965 = vadd.xlane.f32.xlu0 %v964_v46  ;;  %v279_v59 = vld [vmem:[%s2235_s29 + $0x8] sm:$0xf] }
 0x1ab   : > { %v944_v50 = vmul.f32 1.442695, %v921_v43  ;;  %v1115_v60 = vsel %vm1021_vm3, %v279_v59, 0 }
 0x1ac   : > { %v942_v51 = vmul.f32 1.442695, %v920_v45 }
 0x1ad   : > { %1943 = vpow2.f32 %v944_v50 }
 0x1ae   : > { %1945 = vpow2.f32 %v942_v51 }
 0x1af   : > { %v2241_v54 = vpop.eup %1939 }
 0x1b0   : > { %v2244_v56 = vpop.eup %1941  ;;  %v973_v57 = vsel %vm873_vm2, %v2241_v54, 0.0 }
 0x1b1   : > { %974 = vadd.xlane.f32.xlu1 %v973_v57  ;;  %v970_v58 = vsel %vm873_vm2, %v2244_v56, 0.0 }
 0x1b2   : > { %971 = vadd.xlane.f32.xlu0 %v970_v58 }
 0x1b7   : > { %v2254_v1 = vpop.eup %1943 }
 0x1b8   : > { %v2257_v3 = vpop.eup %1945  ;;  %v979_v4 = vsel %vm873_vm2, %v2254_v1, 0.0 }
 0x1b9   : > { %980 = vadd.xlane.f32.xlu1 %v979_v4  ;;  %v976_v5 = vsel %vm873_vm2, %v2257_v3, 0.0 }
 0x1ba   : > { %977 = vadd.xlane.f32.xlu0 %v976_v5 }
 0x21e   : > { %v948_v22 = vpop.xlane.xlu0 %947 }
 0x21f   : > { %1947 = vrcp.f32 %v948_v22 }
 0x222   : > { %v951_v13 = vpop.xlane.xlu1 %950 }
 0x223   : > { %1949 = vrcp.f32 %v951_v13 }
 0x226   : > { %v954_v14 = vpop.xlane.xlu0 %953 }
 0x227   : > { %1951 = vrcp.f32 %v954_v14 }
 0x229   : > { %v1948_v23 = vpop.eup %1947 }
 0x22a   : > { %v994_v25 = vmul.f32 %v1948_v23, %v2191_v11  ;;  %v957_v26 = vpop.xlane.xlu1 %956 }
 0x22b   : > { %1953 = vrcp.f32 %v957_v26 }
 0x22c   : > { %v1006_v29 = vpack.c.bf16 %v994_v25, %v994_v25 }
 0x22d   : > { %v1950_v32 = vpop.eup %1949 }
 0x22e   : > { %v995_v33 = vmul.f32 %v1950_v32, %v2197_v62  ;;  %v963_v27 = vpop.xlane.xlu1 %962  ;;  %1843 = vmatmul.mubr.msk.bf16.vlgmr.msra.gmra.mrb[24].mxu0 %vm873_vm2, %v1006_v29 }
 0x22f   : > { %1955 = vrcp.f32 %v963_v27  ;;  %v960_v28 = vpop.xlane.xlu0 %959  ;;  %1853 = vmatpush3.bf16.msra.mxu0 %v1115_v60  ;;  %1854 = vmatprep.mubr.msk.bf16.mxu0 %vm1980_vm0, %v1979_v0 }
 0x230   : > { %1957 = vrcp.f32 %v960_v28  ;;  %v1007_v34 = vpack.c.bf16 %v995_v33, %v995_v33  ;;  %1864 = vmatprep.subr.bf16.mxu0 %v1979_v0 }
 0x231   : > { %v1952_v11 = vpop.eup %1951 }
 0x232   : > { %v996_v35 = vmul.f32 %v1952_v11, %v2201_v20  ;;  %1849 = vmatmul.mubr.msk.bf16.vlgmr.msra.gmra.mrb[24].mxu1 %vm873_vm2, %v1007_v34 }
 0x233   : > { %1859 = vmatpush3.bf16.msra.mxu1 %v1161_v2  ;;  %1860 = vmatprep.mubr.msk.bf16.mxu1 %vm1980_vm0, %v1979_v0 }
 0x234   : > { %v1008_v62 = vpack.c.bf16 %v996_v35, %v996_v35  ;;  %1870 = vmatprep.subr.bf16.mxu1 %v1979_v0 }
 0x235   : > { %v1954_v36 = vpop.eup %1953 }
 0x236   : > { %v997_v37 = vmul.f32 %v1954_v36, %v2207_v24  ;;  %v969_v41 = vpop.xlane.xlu1 %968  ;;  %1855 = vmatmul.mubr.msk.bf16.vlgmr.msra.gmra.mrb[28].mxu0 %vm873_vm2, %v1008_v62 }
 0x237   : > { %1959 = vrcp.f32 %v969_v41  ;;  %v966_v44 = vpop.xlane.xlu0 %965  ;;  %1865 = vmatpush3.bf16.msra.mxu0 %v1207_v7  ;;  %1866 = vmatprep.mubr.msk.bf16.mxu0 %vm1980_vm0, %v1979_v0 }
 0x238   : > { %1961 = vrcp.f32 %v966_v44  ;;  %v1009_v20 = vpack.c.bf16 %v997_v37, %v997_v37  ;;  %1876 = vmatprep.subr.bf16.mxu0 %v1979_v0 }
 0x239   : > { %v1956_v42 = vpop.eup %1955 }
 0x23a   : > { %v1958_v43 = vpop.eup %1957  ;;  %1861 = vmatmul.mubr.msk.bf16.vlgmr.msra.gmra.mrb[28].mxu1 %vm873_vm2, %v1009_v20  ;;  %v999_v24 = vmul.f32 %v1956_v42, %v2211_v30 }
 0x23b   : > { %v998_v45 = vmul.f32 %v1958_v43, %v2213_v31  ;;  %1871 = vmatpush3.bf16.msra.mxu1 %v1253_v8  ;;  %1872 = vmatprep.mubr.msk.bf16.mxu1 %vm1980_vm0, %v1979_v0 }
 0x23c   : > { %1882 = vmatprep.subr.bf16.mxu1 %v1979_v0  ;;  %v1011_v51 = vpack.c.bf16 %v999_v24, %v999_v24 }
 0x23d   : > { %v1010_v46 = vpack.c.bf16 %v998_v45, %v998_v45 }
 0x23e   : > { %v975_v47 = vpop.xlane.xlu1 %974 }
 0x23f   : > { %1963 = vrcp.f32 %v975_v47  ;;  %1867 = vmatmul.mubr.msk.bf16.vlgmr.msra.gmra.mrb[32].mxu0 %vm873_vm2, %v1010_v46  ;;  %v972_v50 = vpop.xlane.xlu0 %971 }
 0x240   : > { %1965 = vrcp.f32 %v972_v50  ;;  %1877 = vmatpush3.bf16.msra.mxu0 %v2269_v10  ;;  %1878 = vmatprep.mubr.msk.bf16.mxu0 %vm1980_vm0, %v1979_v0 }
 0x241   : > { %v1960_v31 = vpop.eup %1959  ;;  %1888 = vmatprep.subr.bf16.mxu0 %v1979_v0 }
 0x242   : > { %v1962_v52 = vpop.eup %1961  ;;  %1873 = vmatmul.mubr.msk.bf16.vlgmr.msra.gmra.mrb[32].mxu1 %vm873_vm2, %v1011_v51  ;;  %v1001_v53 = vmul.f32 %v1960_v31, %v2221_v38 }
 0x243   : > { %v1000_v30 = vmul.f32 %v1962_v52, %v2223_v40  ;;  %1883 = vmatpush3.bf16.msra.mxu1 %v2273_v15  ;;  %1884 = vmatprep.mubr.msk.bf16.mxu1 %vm1980_vm0, %v1979_v0 }
 0x244   : > { %1894 = vmatprep.subr.bf16.mxu1 %v1979_v0  ;;  %v1013_v59 = vpack.c.bf16 %v1001_v53, %v1001_v53 }
 0x245   : > { %v1012_v55 = vpack.c.bf16 %v1000_v30, %v1000_v30 }
 0x246   : > { %v981_v57 = vpop.xlane.xlu1 %980 }
 0x247   : > { %1967 = vrcp.f32 %v981_v57  ;;  %1879 = vmatmul.mubr.msk.bf16.vlgmr.msra.gmra.mrb[36].mxu0 %vm873_vm2, %v1012_v55  ;;  %v978_v58 = vpop.xlane.xlu0 %977 }
 0x248   : > { %1969 = vrcp.f32 %v978_v58  ;;  %1889 = vmatpush3.bf16.msra.mxu0 %v2277_v16  ;;  %1890 = vmatprep.mubr.msk.bf16.mxu0 %vm1980_vm0, %v1979_v0 }
 0x249   : > { %v1964_v40 = vpop.eup %1963  ;;  %1900 = vmatprep.subr.bf16.mxu0 %v1979_v0 }
 0x24a   : > { %v1966_v60 = vpop.eup %1965  ;;  %1885 = vmatmul.mubr.msk.bf16.vlgmr.msra.gmra.mrb[36].mxu1 %vm873_vm2, %v1013_v59  ;;  %v1003_v61 = vmul.f32 %v1964_v40, %v2241_v54 }
 0x24b   : > { %v1002_v38 = vmul.f32 %v1966_v60, %v2244_v56  ;;  %1895 = vmatpush3.bf16.msra.mxu1 %v2281_v17  ;;  %1896 = vmatprep.mubr.msk.bf16.mxu1 %vm1980_vm0, %v1979_v0 }
 0x24c   : > { %1906 = vmatprep.subr.bf16.mxu1 %v1979_v0  ;;  %v1015_v4 = vpack.c.bf16 %v1003_v61, %v1003_v61 }
 0x24d   : > { %v1014_v2 = vpack.c.bf16 %v1002_v38, %v1002_v38 }
 0x24f   : > { %1891 = vmatmul.mubr.msk.bf16.vlgmr.msra.gmra.mrb[40].mxu0 %vm873_vm2, %v1014_v2 }
 0x250   : > { %1901 = vmatpush3.bf16.msra.mxu0 %v2285_v19  ;;  %1902 = vmatprep.mubr.msk.bf16.mxu0 %vm1980_vm0, %v1979_v0 }
 0x251   : > { %v1968_v56 = vpop.eup %1967 }
 0x252   : > { %v1970_v5 = vpop.eup %1969  ;;  %1897 = vmatmul.mubr.msk.bf16.vlgmr.msra.gmra.mrb[40].mxu1 %vm873_vm2, %v1015_v4  ;;  %v1005_v54 = vmul.f32 %v1968_v56, %v2254_v1 }
 0x253   : > { %v1004_v6 = vmul.f32 %v1970_v5, %v2257_v3  ;;  %1907 = vmatpush3.bf16.msra.mxu1 %v2289_v21  ;;  %1908 = vmatprep.mubr.msk.bf16.mxu1 %vm1980_vm0, %v1979_v0 }
 0x254   : > { %v1017_v39 = vpack.c.bf16 %v1005_v54, %v1005_v54 }
 0x255   : > { %v1016_v7 = vpack.c.bf16 %v1004_v6, %v1004_v6 }
 0x257   : > { %1903 = vmatmul.mubr.msk.bf16.vlgmr.msra.gmra.mrb[44].mxu0 %vm873_vm2, %v1016_v7 }
 0x25a   : > { %1909 = vmatmul.mubr.msk.bf16.vlgmr.msra.gmra.mrb[44].mxu1 %vm873_vm2, %v1017_v39 }
 0x301   : > { %v1059_v3 = vpop.f32.mrb[24].mxu0 }
 0x302   : > { %v1571_v8 = vpack.c.bf16 %v1059_v3, %v1059_v3  ;;  %v1844_v0 = vpop.f32.mrb[25].mxu0 }
 0x303   : > { %v1062_v9 = vpop.f32.mrb[26].mxu0 }
 0x304   : > { %1584 = vst.msk [vmem:[%s2353_s6] sm:$0xf] %vm1583_vm4, %v1571_v8  ;;  %v1845_v1 = vpop.f32.mrb[27].mxu0 }
 0x305   : > { %v1105_v10 = vpop.f32.mrb[24].mxu1 }
 0x306   : > { %v1572_v12 = vpack.c.bf16 %v1105_v10, %v1105_v10  ;;  %v1850_v15 = vpop.f32.mrb[25].mxu1 }
 0x307   : > { %v1108_v48 = vpop.f32.mrb[26].mxu1 }
 0x308   : > { %1585 = vst.msk [vmem:[%s2353_s6 + $0x4] sm:$0xf] %vm1583_vm4, %v1572_v12  ;;  %v1851_v16 = vpop.f32.mrb[27].mxu1 }
 0x309   : > { %v1151_v49 = vpop.f32.mrb[28].mxu0 }
 0x30a   : > { %v1573_v17 = vpack.c.bf16 %v1151_v49, %v1151_v49  ;;  %v1856_v18 = vpop.f32.mrb[29].mxu0 }
 0x30b   : > { %v1154_v19 = vpop.f32.mrb[30].mxu0 }
 0x30c   : > { %1586 = vst.msk [vmem:[%s2353_s6 + $0x8] sm:$0xf] %vm1583_vm4, %v1573_v17  ;;  %v1857_v63 = vpop.f32.mrb[31].mxu0 }
 0x30d   : > { %v1197_v21 = vpop.f32.mrb[28].mxu1 }
 0x30e   : > { %v1574_v22 = vpack.c.bf16 %v1197_v21, %v1197_v21  ;;  %v1862_v13 = vpop.f32.mrb[29].mxu1 }
 0x30f   : > { %v1200_v14 = vpop.f32.mrb[30].mxu1 }
 0x310   : > { %1587 = vst.msk [vmem:[%s2353_s6 + $0xc] sm:$0xf] %vm1583_vm4, %v1574_v22  ;;  %v1863_v23 = vpop.f32.mrb[31].mxu1 }
 0x312   : > { %v1243_v25 = vpop.f32.mrb[32].mxu0 }
 0x313   : > { %v1575_v26 = vpack.c.bf16 %v1243_v25, %v1243_v25  ;;  %v1868_v29 = vpop.f32.mrb[33].mxu0 }
 0x314   : > { %v1246_v32 = vpop.f32.mrb[34].mxu0 }
 0x315   : > { %1588 = vst.msk [vmem:[%s2353_s6 + $0x10] sm:$0xf] %vm1583_vm4, %v1575_v26  ;;  %v1869_v33 = vpop.f32.mrb[35].mxu0  ;;  %v1289_v27 = vpop.f32.mrb[32].mxu1 }
 0x316   : > { %v1576_v28 = vpack.c.bf16 %v1289_v27, %v1289_v27  ;;  %v1874_v34 = vpop.f32.mrb[33].mxu1 }
 0x317   : > { %v1292_v11 = vpop.f32.mrb[34].mxu1 }
 0x318   : > { %1589 = vst.msk [vmem:[%s2353_s6 + $0x14] sm:$0xf] %vm1583_vm4, %v1576_v28  ;;  %v1875_v35 = vpop.f32.mrb[35].mxu1 }
 0x31a   : > { %v1335_v62 = vpop.f32.mrb[36].mxu0 }
 0x31b   : > { %v1577_v36 = vpack.c.bf16 %v1335_v62, %v1335_v62  ;;  %v1880_v37 = vpop.f32.mrb[37].mxu0 }
 0x31c   : > { %v1338_v41 = vpop.f32.mrb[38].mxu0 }
 0x31d   : > { %1590 = vst.msk [vmem:[%s2353_s6 + $0x18] sm:$0xf] %vm1583_vm4, %v1577_v36  ;;  %v1881_v44 = vpop.f32.mrb[39].mxu0  ;;  %v1381_v20 = vpop.f32.mrb[36].mxu1 }
 0x31e   : > { %v1578_v42 = vpack.c.bf16 %v1381_v20, %v1381_v20  ;;  %v1886_v43 = vpop.f32.mrb[37].mxu1 }
 0x31f   : > { %v1384_v45 = vpop.f32.mrb[38].mxu1 }
 0x320   : > { %1591 = vst.msk [vmem:[%s2353_s6 + $0x1c] sm:$0xf] %vm1583_vm4, %v1578_v42  ;;  %v1887_v24 = vpop.f32.mrb[39].mxu1 }
 0x322   : > { %v1427_v46 = vpop.f32.mrb[40].mxu0 }
 0x323   : > { %v1579_v47 = vpack.c.bf16 %v1427_v46, %v1427_v46  ;;  %v1892_v50 = vpop.f32.mrb[41].mxu0 }
 0x324   : > { %v1430_v51 = vpop.f32.mrb[42].mxu0 }
 0x325   : > { %1592 = vst.msk [vmem:[%s2353_s6 + $0x20] sm:$0xf] %vm1583_vm4, %v1579_v47  ;;  %v1893_v31 = vpop.f32.mrb[43].mxu0  ;;  %v1473_v52 = vpop.f32.mrb[40].mxu1 }
 0x326   : > { %v1580_v30 = vpack.c.bf16 %v1473_v52, %v1473_v52  ;;  %v1898_v53 = vpop.f32.mrb[41].mxu1 }
 0x327   : > { %v1476_v55 = vpop.f32.mrb[42].mxu1 }
 0x328   : > { %1593 = vst.msk [vmem:[%s2353_s6 + $0x24] sm:$0xf] %vm1583_vm4, %v1580_v30  ;;  %v1899_v57 = vpop.f32.mrb[43].mxu1 }
 0x32a   : > { %v1519_v58 = vpop.f32.mrb[44].mxu0 }
 0x32b   : > { %v1581_v59 = vpack.c.bf16 %v1519_v58, %v1519_v58  ;;  %v1904_v40 = vpop.f32.mrb[45].mxu0 }
 0x32c   : > { %v1522_v60 = vpop.f32.mrb[46].mxu0 }
 0x32d   : > { %1594 = vst.msk [vmem:[%s2353_s6 + $0x28] sm:$0xf] %vm1583_vm4, %v1581_v59  ;;  %v1905_v38 = vpop.f32.mrb[47].mxu0  ;;  %v1565_v61 = vpop.f32.mrb[44].mxu1 }
 0x32e   : > { %v1582_v2 = vpack.c.bf16 %v1565_v61, %v1565_v61  ;;  %v1910_v4 = vpop.f32.mrb[45].mxu1 }
 0x32f   : > { %v1568_v56 = vpop.f32.mrb[46].mxu1 }
 0x330   : > { %1595 = vst.msk [vmem:[%s2353_s6 + $0x2c] sm:$0xf] %vm1583_vm4, %v1582_v2  ;;  %v1911_v5 = vpop.f32.mrb[47].mxu1 }
 0x331 PF: > { %s14_s15 = sadd.s32 1, %s1977_s15  }
 0x332   : > { %p11_p4 = scmp.ge.s32.totalorder %s14_s15, 4  }
 0x334   :  { %13 = sbr.rel (!%p11_p4) target bundleno = 1 (0x1), region = 75 }

// kernel: bert_classifier_forward.15
= control target key start
LH: loop header
LB: loop body
LE: loop exit
PB: predicated region body
PF: predicated region fallthrough
CT: control target
= control target key end

     0   :  { %8 = vsyncpa [#allocation3], 0  ;;  %s2500_s0 = inlined_call_operand.vmem [shape: bf16[16,768], index: 0, kind: input, shape index: {}]   ;;  %s2501_s1 = inlined_call_operand.hbm [shape: bf16[768,2304], index: 1, kind: input, shape index: {}]   ;;  %s2502_s2 = inlined_call_operand.vmem [shape: f32[1,2304], index: 2, kind: input, shape index: {}]   ;;  %s2503_s3 = inlined_call_operand.vmem [shape: bf16[16,2304], index: 3, kind: output, shape index: {}]  }
   0x1   :  { %10 = vsyncpa [#allocation3 + $0x1], 0  ;;  %s2199_s12 = smov 0   ;;  %s2201_s13 = smov 0  }
   0x2   :  { %s2203_s14 = smov 0   ;;  %s2205_s15 = smov 0  }
   0x3 LB: > { %s2218_s16 = sadd.s32 4294967295, %s2173_s15   ;;  %s2221_s17 = sadd.s32 1, %s2173_s15   ;;  %s2173_s15 = sphi %s2205_s15, %s2511_s15   ;;  %s2169_s14 = sphi %s2203_s14, %s2510_s14   ;;  %s2165_s13 = sphi %s2201_s13, %s2509_s13   ;;  %s2161_s12 = sphi %s2199_s12, %s2508_s12  }
   0x4   : > { %s41_s18 = ssub.s32 %s2173_s15, %s2221_s17  ;;  %s44_s19 = sadd.s32 1, %s2169_s14 }
   0x5   : > { %p42_p0 = scmp.eq.s32.totalorder %s41_s18, 0  ;;  %p51_p1 = scmp.ne.s32.totalorder %s2169_s14, %s2165_s13 }
   0x6   : > { %p52_p2 = scmp.eq.s32.totalorder %s2173_s15, 0  ;;  %p57_p3 = scmp.ne.s32.totalorder %s2165_s13, %s2161_s12 }
   0x7   : > { %s2231_s20 = scalar_select %p42_p0, %s2169_s14, %s44_s19  }
   0x8   : > { %p53_p4 = por %p52_p2, %p51_p1  ;;  %p58_p5 = scmp.eq.s32.totalorder %s2218_s16, 0 }
   0x9   : > { %p107_p6 = scmp.eq.s32.totalorder %s2218_s16, 5  ;;  %p1872_p8 = scmp.lt.s32.totalorder %s2173_s15, 6 }
   0xa   : > { %p2235_p7 = por %p58_p5, %p57_p3  ;;  %s136_s23 = sand.u32 1, %s2169_s14  }
   0xb   : > { %p2240_p9 = por %p107_p6, %p51_p1  ;;  %s1863_s24 = smul.u32 1152, %s136_s23 }
   0xc   : > { %s1779_s25 = smul.u32 192, %s2173_s15  ;;  %p2246_p10 = pnand %p1872_p8, %p53_p4 }
   0xd   : > { %s2505_s22 = scalar_select %p2240_p9, 1, 0 }
   0xe   : > { %s2253_s29 = scalar_lea.hbm %s2501_s1, %s1779_s25  ;;  %s140_s30 = scalar_lea.vmem [#allocation2], %s1863_s24 }
   0xf   : > { %s147_s4 = sshll.u32 %s140_s30, 4  ;;  %s2257_s5 = scalar_lea.sflag [#allocation3], %s136_s23  ;;  %s2255_s4 = int_to_ptr.vmem [resolvable:$true] %s147_s4 }
  0x10   : > { %s2109_s6 = scalar_lea.hbm %s2253_s29, 18432  ;;  %p2111_p12 = pneg %p2246_p10 }
  0x11   : > { %p2110_p11 = scmp.ne.s32.totalorder %s2253_s29, %s2109_s6  ;;  %s2114_s9 = scalar_lea.hbm %s2501_s1, 110592 }
  0x12   : > { %p2115_p1 = scmp.lt.u32.totalorder %s2253_s29, %s2501_s1  ;;  %p2116_p2 = scmp.lt.u32.totalorder %s2114_s9, %s2109_s6 }
  0x13   : > { %p2112_p13 = pnand %p2111_p12, %p2110_p11  ;;  %p2118_p4 = scmp.lt.u32.totalorder %s2109_s6, %s2253_s29 }
  0x14   : > { %p2117_p3 = por %p2116_p2, %p2115_p1 }
  0x15   : > { %p2113_p0 = pneg %p2112_p13 }
  0x16   : > { %p2119_p5 = por %p2118_p4, %p2117_p3 }
  0x18   : > { %p2120_p6 = pnand %p2119_p5, %p2113_p0 }
  0x1a   : > { %2123 = shalt.err (!%p2120_p6)
}
  0x1b   : > { %s2124_s12 = scalar_lea.vmem %s2255_s4, 18432  ;;  %s2175_s18 = smov [#allocation2]  }
  0x1c   : > { %p2125_p8 = scmp.ne.s32.totalorder %s2255_s4, %s2124_s12  ;;  %s2129_s19 = sshll.u32 %s2175_s18, 4  ;;  %s2130_s19 = int_to_ptr.vmem [resolvable:$false] %s2129_s19 }
  0x1d   : > { %s2131_s23 = scalar_lea.vmem %s2130_s19, 36864  ;;  %p2132_p9 = scmp.lt.s32.totalorder %s2255_s4, %s2130_s19 }
  0x1e   : > { %p2127_p11 = pnand %p2125_p8, %p2111_p12  ;;  %p2133_p1 = scmp.lt.s32.totalorder %s2131_s23, %s2124_s12 }
  0x20   : > { %p2128_p13 = pneg %p2127_p11  ;;  %p2134_p2 = por %p2133_p1, %p2132_p9 }
  0x22   : > { %p2135_p3 = pnand %p2134_p2, %p2128_p13 }
  0x24   : > { %2138 = shalt.err (!%p2135_p3)
}
  0x25   : > { %s2176_s24 = smov 1152   ;;  %s2177_s25 = smov 192  }
  0x26   : > { %s2178_s27 = smov 12   ;;  %p1617_p12 = scmp.ge.s32.totalorder %s2173_s15, 1 }
  0x27   : > { %1871 = dma.hbm_to_vmem [thread:$0]  (!%p2246_p10), %s2253_s29, 18432, %s2255_s4, %s2257_s5, %s2176_s24, %s2177_s25, %s2178_s27  }
  0x28   : > { %p163_p0 = scmp.lt.s32.totalorder %s2173_s15, 7 }
  0x2a   : > { %p164_p4 = pnand %p1617_p12, %p163_p0 }
  0x2b   : > { %s2288_s28 = sand.u32 (!%p164_p4), 1, %s2165_s13  }
  0x2c   : > { %167 = sbr.rel (%p164_p4) target bundleno = 443 (0x1bb), region = 32  ;;  %s170_s6 = scalar_lea.sflag (!%p164_p4), [#allocation3], %s2288_s28 }
  0x2d   : > { %s1864_s30 = smul.u32 (!%p164_p4), 1152, %s2288_s28 }
  0x2f   : > { %s2292_s7 = scalar_lea.vmem (!%p164_p4), [#allocation2], %s1864_s30 }
  0x33   : > { %2156 = dma.done.wait (%p2235_p7), %s170_s6, 18432  }
  0x34   : > { %2158 = vsyncadd (%p2235_p7), %s170_s6, 4294948864  ;;  %v1908_v0 = vld [vmem:[%s2292_s7 + $0x4] ss:$12 sps:$4 sm:$0xff]   ;;  %v1912_v2 = vld [vmem:[%s2292_s7] ss:$12 sps:$4 sm:$0xff]   ;;  %s200_s19 = smul.u32 3, %s2218_s16 }
  0x35   : > { %v1910_v1 = vld [vmem:[%s2292_s7 + $0x184] ss:$12 sps:$4 sm:$0xff]   ;;  %1220 = vmatprep.subr.bf16.mxu1 %v1908_v0  ;;  %v1913_v3 = vld [vmem:[%s2292_s7 + $0x180] ss:$12 sps:$4 sm:$0xff]   ;;  %v1914_v4 = vld [vmem:[%s2292_s7 + $0x1c] ss:$12 sps:$4 sm:$0xff]  }
  0x36   : > { %1263 = vmatprep.subr.bf16.mxu0 %v1910_v1  ;;  %1221 = vmatpush1.bf16.msra.mxu1 %v1912_v2  ;;  %v1916_v5 = vld [vmem:[%s2292_s7 + $0x19c] ss:$12 sps:$4 sm:$0xff]   ;;  %v1918_v6 = vld [vmem:[%s2292_s7 + $0x18] ss:$12 sps:$4 sm:$0xff]   ;;  %v1920_v8 = vld [vmem:[%s2292_s7 + $0x34] ss:$12 sps:$4 sm:$0xff]  }
  0x37   : > { %1264 = vmatpush1.bf16.msra.mxu0 %v1913_v3  ;;  %1222 = vmatprep.subr.bf16.mxu1 %v1914_v4  ;;  %v1919_v7 = vld [vmem:[%s2292_s7 + $0x198] ss:$12 sps:$4 sm:$0xff]   ;;  %v1922_v9 = vld [vmem:[%s2292_s7 + $0x1b4] ss:$12 sps:$4 sm:$0xff]   ;;  %v1924_v10 = vld [vmem:[%s2292_s7 + $0x30] ss:$12 sps:$4 sm:$0xff]  }
  0x38   : > { %1265 = vmatprep.subr.bf16.mxu0 %v1916_v5  ;;  %v1925_v11 = vld [vmem:[%s2292_s7 + $0x1b0] ss:$12 sps:$4 sm:$0xff]   ;;  %v1926_v12 = vld [vmem:[%s2292_s7 + $0x4c] ss:$12 sps:$4 sm:$0xff]   ;;  %v1930_v14 = vld [vmem:[%s2292_s7 + $0x48] ss:$12 sps:$4 sm:$0xff]  }
  0x39   : > { %v1928_v13 = vld [vmem:[%s2292_s7 + $0x1cc] ss:$12 sps:$4 sm:$0xff]   ;;  %v1931_v15 = vld [vmem:[%s2292_s7 + $0x1c8] ss:$12 sps:$4 sm:$0xff]   ;;  %v1932_v16 = vld [vmem:[%s2292_s7 + $0x64] ss:$12 sps:$4 sm:$0xff]  }
  0x3a   : > { %1223 = vmatpush1.bf16.msra.mxu1 %v1918_v6  ;;  %v1934_v17 = vld [vmem:[%s2292_s7 + $0x1e4] ss:$12 sps:$4 sm:$0xff]   ;;  %v1936_v18 = vld [vmem:[%s2292_s7 + $0x60] ss:$12 sps:$4 sm:$0xff]   ;;  %v1938_v20 = vld [vmem:[%s2292_s7 + $0x7c] ss:$12 sps:$4 sm:$0xff]  }
  0x3b   : > { %1266 = vmatpush1.bf16.msra.mxu0 %v1919_v7  ;;  %1224 = vmatprep.subr.bf16.mxu1 %v1920_v8  ;;  %v1937_v19 = vld [vmem:[%s2292_s7 + $0x1e0] ss:$12 sps:$4 sm:$0xff]   ;;  %v1940_v21 = vld [vmem:[%s2292_s7 + $0x1fc] ss:$12 sps:$4 sm:$0xff]   ;;  %v1942_v22 = vld [vmem:[%s2292_s7 + $0x78] ss:$12 sps:$4 sm:$0xff]  }
  0x3c   : > { %1267 = vmatprep.subr.bf16.mxu0 %v1922_v9  ;;  %v1943_v23 = vld [vmem:[%s2292_s7 + $0x1f8] ss:$12 sps:$4 sm:$0xff]   ;;  %v1944_v24 = vld [vmem:[%s2292_s7 + $0x94] ss:$12 sps:$4 sm:$0xff]   ;;  %v1948_v26 = vld [vmem:[%s2292_s7 + $0x90] ss:$12 sps:$4 sm:$0xff]  }
  0x3d   : > { %v1946_v25 = vld [vmem:[%s2292_s7 + $0x214] ss:$12 sps:$4 sm:$0xff]   ;;  %v1949_v27 = vld [vmem:[%s2292_s7 + $0x210] ss:$12 sps:$4 sm:$0xff]   ;;  %v1950_v28 = vld [vmem:[%s2292_s7 + $0xac] ss:$12 sps:$4 sm:$0xff]  }
  0x3e   : > { %1225 = vmatpush1.bf16.msra.mxu1 %v1924_v10  ;;  %v1952_v29 = vld [vmem:[%s2292_s7 + $0x22c] ss:$12 sps:$4 sm:$0xff]   ;;  %v1954_v30 = vld [vmem:[%s2292_s7 + $0xa8] ss:$12 sps:$4 sm:$0xff]   ;;  %v1956_v32 = vld [vmem:[%s2292_s7 + $0xc4] ss:$12 sps:$4 sm:$0xff]  }
  0x3f   : > { %1268 = vmatpush1.bf16.msra.mxu0 %v1925_v11  ;;  %1226 = vmatprep.subr.bf16.mxu1 %v1926_v12  ;;  %v1955_v31 = vld [vmem:[%s2292_s7 + $0x228] ss:$12 sps:$4 sm:$0xff]   ;;  %v1958_v33 = vld [vmem:[%s2292_s7 + $0x244] ss:$12 sps:$4 sm:$0xff]   ;;  %v1960_v34 = vld [vmem:[%s2292_s7 + $0xc0] ss:$12 sps:$4 sm:$0xff]  }
  0x40   : > { %1269 = vmatprep.subr.bf16.mxu0 %v1928_v13  ;;  %v1961_v35 = vld [vmem:[%s2292_s7 + $0x240] ss:$12 sps:$4 sm:$0xff]   ;;  %v1962_v36 = vld [vmem:[%s2292_s7 + $0xdc] ss:$12 sps:$4 sm:$0xff]   ;;  %v1966_v38 = vld [vmem:[%s2292_s7 + $0xd8] ss:$12 sps:$4 sm:$0xff]  }
  0x41   : > { %v1964_v37 = vld [vmem:[%s2292_s7 + $0x25c] ss:$12 sps:$4 sm:$0xff]   ;;  %v1967_v39 = vld [vmem:[%s2292_s7 + $0x258] ss:$12 sps:$4 sm:$0xff]   ;;  %v1968_v40 = vld [vmem:[%s2292_s7 + $0xf4] ss:$12 sps:$4 sm:$0xff]  }
  0x42   : > { %1227 = vmatpush1.bf16.msra.mxu1 %v1930_v14  ;;  %v1970_v41 = vld [vmem:[%s2292_s7 + $0x274] ss:$12 sps:$4 sm:$0xff]   ;;  %v1972_v42 = vld [vmem:[%s2292_s7 + $0xf0] ss:$12 sps:$4 sm:$0xff]   ;;  %v1974_v44 = vld [vmem:[%s2292_s7 + $0x10c] ss:$12 sps:$4 sm:$0xff]  }
  0x43   : > { %1270 = vmatpush1.bf16.msra.mxu0 %v1931_v15  ;;  %1228 = vmatprep.subr.bf16.mxu1 %v1932_v16  ;;  %v1973_v43 = vld [vmem:[%s2292_s7 + $0x270] ss:$12 sps:$4 sm:$0xff]   ;;  %v1976_v45 = vld [vmem:[%s2292_s7 + $0x28c] ss:$12 sps:$4 sm:$0xff]   ;;  %v1978_v46 = vld [vmem:[%s2292_s7 + $0x108] ss:$12 sps:$4 sm:$0xff]  }
  0x44   : > { %1271 = vmatprep.subr.bf16.mxu0 %v1934_v17  ;;  %v1979_v47 = vld [vmem:[%s2292_s7 + $0x288] ss:$12 sps:$4 sm:$0xff]   ;;  %v1980_v48 = vld [vmem:[%s2292_s7 + $0x124] ss:$12 sps:$4 sm:$0xff]   ;;  %v1984_v52 = vld [vmem:[%s2292_s7 + $0x120] ss:$12 sps:$4 sm:$0xff]  }
  0x45   : > { %v2006_v49 = vld [vmem:[%s2500_s0 + $0x4] ss:$24 sps:$4 sm:$0xff]   ;;  %v1985_v53 = vld [vmem:[%s2292_s7 + $0x2a0] ss:$12 sps:$4 sm:$0xff]   ;;  %v2002_v0 = vld [vmem:[%s2292_s7 + $0x168] ss:$12 sps:$4 sm:$0xff]  }
  0x46   : > { %1229 = vmatpush1.bf16.msra.mxu1 %v1936_v18  ;;  %v1982_v50 = vld [vmem:[%s2292_s7 + $0x2a4] ss:$12 sps:$4 sm:$0xff]   ;;  %1252 = vmatprep.mubr.bf16.mxu1 %v2006_v49  ;;  %v1986_v54 = vld [vmem:[%s2292_s7 + $0x13c] ss:$12 sps:$4 sm:$0xff]   ;;  %v1992_v58 = vld [vmem:[%s2292_s7 + $0x154] ss:$12 sps:$4 sm:$0xff]  }
  0x47   : > { %1272 = vmatpush1.bf16.msra.mxu0 %v1937_v19  ;;  %1230 = vmatprep.subr.bf16.mxu1 %v1938_v20  ;;  %v2354_v51 = vld [vmem:[%s2500_s0 + $0xc] ss:$24 sps:$4 sm:$0xff]   ;;  %v1988_v55 = vld [vmem:[%s2292_s7 + $0x2bc] ss:$12 sps:$4 sm:$0xff]   ;;  %v1994_v59 = vld [vmem:[%s2292_s7 + $0x2d4] ss:$12 sps:$4 sm:$0xff]  }
  0x48   : > { %1273 = vmatprep.subr.bf16.mxu0 %v1940_v21  ;;  %1295 = vmatprep.mubr.bf16.mxu0 %v2354_v51  ;;  %v1990_v56 = vld [vmem:[%s2292_s7 + $0x138] ss:$12 sps:$4 sm:$0xff]   ;;  %v1996_v60 = vld [vmem:[%s2292_s7 + $0x150] ss:$12 sps:$4 sm:$0xff]   ;;  %v2003_v1 = vld [vmem:[%s2292_s7 + $0x2e8] ss:$12 sps:$4 sm:$0xff]  }
  0x49   : > { %v1991_v57 = vld [vmem:[%s2292_s7 + $0x2b8] ss:$12 sps:$4 sm:$0xff]   ;;  %v1997_v61 = vld [vmem:[%s2292_s7 + $0x2d0] ss:$12 sps:$4 sm:$0xff]   ;;  %v2380_v4 = vld [vmem:[%s2500_s0 + $0x8] ss:$24 sps:$4 sm:$0xff]  }
  0x4a   : > { %1231 = vmatpush1.bf16.msra.mxu1 %v1942_v22  ;;  %v1998_v62 = vld [vmem:[%s2292_s7 + $0x16c] ss:$12 sps:$4 sm:$0xff]   ;;  %v2012_v2 = vld [vmem:[%s2292_s7 + $0x304] ss:$12 sps:$4 sm:$0xff]   ;;  %v2013_v5 = vld [vmem:[%s2292_s7 + $0xc8] ss:$12 sps:$4 sm:$0xff]  }
  0x4b   : > { %1274 = vmatpush1.bf16.msra.mxu0 %v1943_v23  ;;  %1232 = vmatprep.subr.bf16.mxu1 %v1944_v24  ;;  %v2000_v63 = vld [vmem:[%s2292_s7 + $0x2ec] ss:$12 sps:$4 sm:$0xff]   ;;  %v2014_v7 = vld [vmem:[%s2292_s7 + $0x8] ss:$12 sps:$4 sm:$0xff]   ;;  %v2020_v14 = vld [vmem:[%s2292_s7 + $0x330] ss:$12 sps:$4 sm:$0xff]  }
  0x4c   : > { %1275 = vmatprep.subr.bf16.mxu0 %v1946_v25  ;;  %v2375_v3 = vld [vmem:[%s2500_s0] ss:$24 sps:$4 sm:$0xff]   ;;  %v2017_v8 = vld [vmem:[%s2292_s7 + $0x31c] ss:$12 sps:$4 sm:$0xff]   ;;  %v2032_v20 = vld [vmem:[%s2292_s7 + $0x364] ss:$12 sps:$4 sm:$0xff]  }
  0x4d   : > { %v2010_v6 = vld [vmem:[%s2292_s7 + $0x300] ss:$12 sps:$4 sm:$0xff]   ;;  %v2015_v10 = vld [vmem:[%s2292_s7 + $0x318] ss:$12 sps:$4 sm:$0xff]   ;;  %v2028_v17 = vld [vmem:[%s2292_s7 + $0x110] ss:$12 sps:$4 sm:$0xff]  }
  0x4e   : > { %1233 = vmatpush1.bf16.msra.mxu1 %v1948_v26  ;;  %v2018_v9 = vld [vmem:[%s2292_s7 + $0xe0] ss:$12 sps:$4 sm:$0xff]   ;;  %v2023_v13 = vld [vmem:[%s2292_s7 + $0xf8] ss:$12 sps:$4 sm:$0xff]   ;;  %v2025_v18 = vld [vmem:[%s2292_s7 + $0x348] ss:$12 sps:$4 sm:$0xff]  }
  0x4f   : > { %1276 = vmatpush1.bf16.msra.mxu0 %v1949_v27  ;;  %1234 = vmatprep.subr.bf16.mxu1 %v1950_v28  ;;  %v2019_v11 = vld [vmem:[%s2292_s7 + $0x20] ss:$12 sps:$4 sm:$0xff]   ;;  %v2024_v15 = vld [vmem:[%s2292_s7 + $0x38] ss:$12 sps:$4 sm:$0xff]   ;;  %v2029_v19 = vld [vmem:[%s2292_s7 + $0x50] ss:$12 sps:$4 sm:$0xff]  }
  0x50   : > { %1277 = vmatprep.subr.bf16.mxu0 %v1952_v29  ;;  %v2022_v12 = vld [vmem:[%s2292_s7 + $0x334] ss:$12 sps:$4 sm:$0xff]   ;;  %v2027_v16 = vld [vmem:[%s2292_s7 + $0x34c] ss:$12 sps:$4 sm:$0xff]   ;;  %v2037_v24 = vld [vmem:[%s2292_s7 + $0x37c] ss:$12 sps:$4 sm:$0xff]  }
  0x51   : > { %v2033_v21 = vld [vmem:[%s2292_s7 + $0x128] ss:$12 sps:$4 sm:$0xff]   ;;  %v2030_v22 = vld [vmem:[%s2292_s7 + $0x360] ss:$12 sps:$4 sm:$0xff]   ;;  %v2035_v26 = vld [vmem:[%s2292_s7 + $0x378] ss:$12 sps:$4 sm:$0xff]  }
  0x52   : > { %1235 = vmatpush1.bf16.msra.mxu1 %v1954_v30  ;;  %v2034_v23 = vld [vmem:[%s2292_s7 + $0x68] ss:$12 sps:$4 sm:$0xff]   ;;  %v2038_v25 = vld [vmem:[%s2292_s7 + $0x140] ss:$12 sps:$4 sm:$0xff]   ;;  %v2043_v29 = vld [vmem:[%s2292_s7 + $0x158] ss:$12 sps:$4 sm:$0xff]  }
  0x53   : > { %1278 = vmatpush1.bf16.msra.mxu0 %v1955_v31  ;;  %1236 = vmatprep.subr.bf16.mxu1 %v1956_v32  ;;  %v2039_v27 = vld [vmem:[%s2292_s7 + $0x80] ss:$12 sps:$4 sm:$0xff]   ;;  %v2040_v30 = vld [vmem:[%s2292_s7 + $0x390] ss:$12 sps:$4 sm:$0xff]   ;;  %v2044_v31 = vld [vmem:[%s2292_s7 + $0x98] ss:$12 sps:$4 sm:$0xff]  }
  0x54   : > { %1279 = vmatprep.subr.bf16.mxu0 %v1958_v33  ;;  %v2042_v28 = vld [vmem:[%s2292_s7 + $0x394] ss:$12 sps:$4 sm:$0xff]   ;;  %v2047_v32 = vld [vmem:[%s2292_s7 + $0x3ac] ss:$12 sps:$4 sm:$0xff]   ;;  %v2048_v33 = vld [vmem:[%s2292_s7 + $0x170] ss:$12 sps:$4 sm:$0xff]  }
  0x55   : > { %p201_p7 = scmp.lt.s32.totalorder %s200_s19, 17  ;;  %s1865_s27 = smul.u32 24, %s2288_s28 }
  0x56   : > { %1237 = vmatpush1.bf16.msra.mxu1 %v1960_v34  ;;  %v2045_v34 = vld [vmem:[%s2292_s7 + $0x3a8] ss:$12 sps:$4 sm:$0xff]   ;;  %p2507_p9 = scmp.ne.s32.totalorder %s2505_s22, 0 }
  0x57   : > { %1280 = vmatpush1.bf16.msra.mxu0 %v1961_v35  ;;  %1238 = vmatprep.subr.bf16.mxu1 %v1962_v36  ;;  %v2049_v35 = vld [vmem:[%s2292_s7 + $0xb0] ss:$12 sps:$4 sm:$0xff]   ;;  %s2513_s19 = smov (!%p201_p7, %s200_s19), 17  ;;  %s198_s28 = scalar_lea.vmem [#allocation4], %s1865_s27 }
  0x58   : > { %1281 = vmatprep.subr.bf16.mxu0 %v1964_v37  ;;  %v2052_v36 = vld [vmem:[%s2292_s7 + $0x3c4] ss:$12 sps:$4 sm:$0xff]   ;;  %v2053_v37 = vld [vmem:[%s2292_s7 + $0x248] ss:$12 sps:$4 sm:$0xff]   ;;  %s203_s25 = scalar_lea.vmem %s2502_s2, %s2513_s19  ;;  %s1784_s30 = smul.u32 (%p2507_p9), 12, %s2218_s16 }
  0x5a   : > { %1239 = vmatpush1.bf16.msra.mxu1 %v1966_v38  ;;  %v2050_v38 = vld [vmem:[%s2292_s7 + $0x3c0] ss:$12 sps:$4 sm:$0xff]   ;;  %s1505_s15 = scalar_lea.vmem (%p2507_p9), %s2503_s3, %s1784_s30 }
  0x5b   : > { %1282 = vmatpush1.bf16.msra.mxu0 %v1967_v39  ;;  %1240 = vmatprep.subr.bf16.mxu1 %v1968_v40  ;;  %v2054_v39 = vld [vmem:[%s2292_s7 + $0x188] ss:$12 sps:$4 sm:$0xff]  }
  0x5c   : > { %1283 = vmatprep.subr.bf16.mxu0 %v1970_v41  ;;  %v2057_v40 = vld [vmem:[%s2292_s7 + $0x3dc] ss:$12 sps:$4 sm:$0xff]   ;;  %v2058_v41 = vld [vmem:[%s2292_s7 + $0x260] ss:$12 sps:$4 sm:$0xff]  }
  0x5e   : > { %1241 = vmatpush1.bf16.msra.mxu1 %v1972_v42  ;;  %v2055_v42 = vld [vmem:[%s2292_s7 + $0x3d8] ss:$12 sps:$4 sm:$0xff]  }
  0x5f   : > { %1284 = vmatpush1.bf16.msra.mxu0 %v1973_v43  ;;  %1242 = vmatprep.subr.bf16.mxu1 %v1974_v44  ;;  %v2059_v43 = vld [vmem:[%s2292_s7 + $0x1a0] ss:$12 sps:$4 sm:$0xff]  }
  0x60   : > { %1285 = vmatprep.subr.bf16.mxu0 %v1976_v45  ;;  %v2427_v44 = vld [vmem:[%s2500_s0 + $0x14] ss:$24 sps:$4 sm:$0xff]  }
  0x61   : > { %v2062_v45 = vld [vmem:[%s2292_s7 + $0x3f4] ss:$12 sps:$4 sm:$0xff]  }
  0x62   : > { %1243 = vmatpush1.bf16.msra.mxu1 %v1978_v46  ;;  %v2063_v46 = vld [vmem:[%s2292_s7 + $0x278] ss:$12 sps:$4 sm:$0xff]  }
  0x63   : > { %1286 = vmatpush1.bf16.msra.mxu0 %v1979_v47  ;;  %1244 = vmatprep.subr.bf16.mxu1 %v1980_v48  ;;  %v2060_v47 = vld [vmem:[%s2292_s7 + $0x3f0] ss:$12 sps:$4 sm:$0xff]   ;;  %v2064_v48 = vld [vmem:[%s2292_s7 + $0x1b8] ss:$12 sps:$4 sm:$0xff]  }
  0x64   : > { %1287 = vmatprep.subr.bf16.mxu0 %v1982_v50  ;;  %v2068_v50 = vld [vmem:[%s2292_s7 + $0x290] ss:$12 sps:$4 sm:$0xff]  }
  0x66   : > { %1245 = vmatpush1.bf16.msra.mxu1 %v1984_v52  ;;  %v2065_v52 = vld [vmem:[%s2292_s7 + $0x408] ss:$12 sps:$4 sm:$0xff]  }
  0x67   : > { %1288 = vmatpush1.bf16.msra.mxu0 %v1985_v53  ;;  %1246 = vmatprep.subr.bf16.mxu1 %v1986_v54  ;;  %v2069_v53 = vld [vmem:[%s2292_s7 + $0x1d0] ss:$12 sps:$4 sm:$0xff]  }
  0x68   : > { %1289 = vmatprep.subr.bf16.mxu0 %v1988_v55  ;;  %v2072_v54 = vld [vmem:[%s2292_s7 + $0x424] ss:$12 sps:$4 sm:$0xff]   ;;  %v2070_v55 = vld [vmem:[%s2292_s7 + $0x420] ss:$12 sps:$4 sm:$0xff]  }
  0x6a   : > { %1247 = vmatpush1.bf16.msra.mxu1 %v1990_v56  ;;  %v2074_v56 = vld [vmem:[%s2292_s7 + $0x1e8] ss:$12 sps:$4 sm:$0xff]  }
  0x6b   : > { %1290 = vmatpush1.bf16.msra.mxu0 %v1991_v57  ;;  %1248 = vmatprep.subr.bf16.mxu1 %v1992_v58  ;;  %v2077_v57 = vld [vmem:[%s2292_s7 + $0x43c] ss:$12 sps:$4 sm:$0xff]   ;;  %v2078_v58 = vld [vmem:[%s2292_s7 + $0x2c0] ss:$12 sps:$4 sm:$0xff]  }
  0x6c   : > { %1291 = vmatprep.subr.bf16.mxu0 %v1994_v59  ;;  %v2075_v59 = vld [vmem:[%s2292_s7 + $0x438] ss:$12 sps:$4 sm:$0xff]  }
  0x6e   : > { %1249 = vmatpush1.bf16.msra.mxu1 %v1996_v60  ;;  %v2079_v60 = vld [vmem:[%s2292_s7 + $0x200] ss:$12 sps:$4 sm:$0xff]  }
  0x6f   : > { %1292 = vmatpush1.bf16.msra.mxu0 %v1997_v61  ;;  %1250 = vmatprep.subr.bf16.mxu1 %v1998_v62  ;;  %v2082_v61 = vld [vmem:[%s2292_s7 + $0x454] ss:$12 sps:$4 sm:$0xff]   ;;  %v2083_v62 = vld [vmem:[%s2292_s7 + $0x2d8] ss:$12 sps:$4 sm:$0xff]  }
  0x70   : > { %1293 = vmatprep.subr.bf16.mxu0 %v2000_v63  ;;  %v2080_v63 = vld [vmem:[%s2292_s7 + $0x450] ss:$12 sps:$4 sm:$0xff]  }
  0x72   : > { %1251 = vmatpush1.bf16.msra.mxu1 %v2002_v0  ;;  %v2084_v0 = vld [vmem:[%s2292_s7 + $0x218] ss:$12 sps:$4 sm:$0xff]  }
  0x73   : > { %1294 = vmatpush1.bf16.msra.mxu0 %v2003_v1  ;;  %1785 = vmatprep.subr.bf16.mxu1 %v2013_v5  ;;  %v2087_v1 = vld [vmem:[%s2292_s7 + $0x46c] ss:$12 sps:$4 sm:$0xff]   ;;  %v2089_v5 = vld [vmem:[%s2292_s7 + $0x230] ss:$12 sps:$4 sm:$0xff]  }
  0x74   : > { %1306 = vmatprep.subr.bf16.mxu0 %v2012_v2  ;;  %v2088_v2 = vld [vmem:[%s2292_s7 + $0x2f0] ss:$12 sps:$4 sm:$0xff]  }
  0x75   : > { %1253 = vmatmul.mubr.bf16.vlgmr.msra.gmra.mrb[0].mxu1 %v2375_v3 }
  0x76   : > { %1296 = vmatmul.mubr.bf16.vlgmr.msra.gmra.mrb[0].mxu0 %v2380_v4  ;;  %1786 = vmatpush3.bf16.msra.mxu1 %v2014_v7  ;;  %v2090_v7 = vld [vmem:[%s2500_s0 + $0x10] ss:$24 sps:$4 sm:$0xff]  }
  0x77   : > { %1307 = vmatpush1.bf16.msra.mxu0 %v2010_v6  ;;  %1787 = vmatprep.subr.bf16.mxu1 %v2018_v9  ;;  %v2093_v6 = vld [vmem:[%s2292_s7 + $0x3c8] ss:$12 sps:$4 sm:$0xff]   ;;  %v2095_v9 = vld [vmem:[%s2292_s7 + $0x3e0] ss:$12 sps:$4 sm:$0xff]  }
  0x78   : > { %1308 = vmatprep.subr.bf16.mxu0 %v2017_v8  ;;  %1381 = vmatprep.mubr.bf16.mxu1 %v2006_v49  ;;  %v2067_v49 = vld [vmem:[%s2292_s7 + $0x40c] ss:$12 sps:$4 sm:$0xff]   ;;  %v2094_v8 = vld [vmem:[%s2292_s7 + $0x308] ss:$12 sps:$4 sm:$0xff]  }
  0x79   : > { %1338 = vmatprep.mubr.bf16.mxu0 %v2427_v44 }
  0x7a   : > { %1788 = vmatpush3.bf16.msra.mxu1 %v2019_v11  ;;  %v2097_v11 = vld [vmem:[%s2292_s7 + $0x3f8] ss:$12 sps:$4 sm:$0xff]  }
  0x7b   : > { %1309 = vmatpush1.bf16.msra.mxu0 %v2015_v10  ;;  %1789 = vmatprep.subr.bf16.mxu1 %v2023_v13  ;;  %v2096_v10 = vld [vmem:[%s2292_s7 + $0x320] ss:$12 sps:$4 sm:$0xff]   ;;  %v2099_v13 = vld [vmem:[%s2292_s7 + $0x410] ss:$12 sps:$4 sm:$0xff]  }
  0x7c   : > { %1310 = vmatprep.subr.bf16.mxu0 %v2022_v12  ;;  %v2098_v12 = vld [vmem:[%s2292_s7 + $0x338] ss:$12 sps:$4 sm:$0xff]  }
  0x7e   : > { %1790 = vmatpush3.bf16.msra.mxu1 %v2024_v15  ;;  %v2102_v15 = vld [vmem:[%s2292_s7 + $0x368] ss:$12 sps:$4 sm:$0xff]  }
  0x7f   : > { %1311 = vmatpush1.bf16.msra.mxu0 %v2020_v14  ;;  %1791 = vmatprep.subr.bf16.mxu1 %v2028_v17  ;;  %v2100_v14 = vld [vmem:[%s2292_s7 + $0x350] ss:$12 sps:$4 sm:$0xff]   ;;  %v2104_v17 = vld [vmem:[%s2292_s7 + $0x380] ss:$12 sps:$4 sm:$0xff]  }
  0x80   : > { %1312 = vmatprep.subr.bf16.mxu0 %v2027_v16  ;;  %v2103_v16 = vld [vmem:[%s2292_s7 + $0x440] ss:$12 sps:$4 sm:$0xff]  }
  0x82   : > { %1792 = vmatpush3.bf16.msra.mxu1 %v2029_v19  ;;  %v2106_v19 = vld [vmem:[%s2292_s7 + $0x398] ss:$12 sps:$4 sm:$0xff]  }
  0x83   : > { %1313 = vmatpush1.bf16.msra.mxu0 %v2025_v18  ;;  %1793 = vmatprep.subr.bf16.mxu1 %v2033_v21  ;;  %v2105_v18 = vld [vmem:[%s2292_s7 + $0x458] ss:$12 sps:$4 sm:$0xff]   ;;  %v2108_v21 = vld [vmem:[%s2292_s7 + $0x3b0] ss:$12 sps:$4 sm:$0xff]  }
  0x84   : > { %1314 = vmatprep.subr.bf16.mxu0 %v2032_v20  ;;  %v2107_v20 = vld [vmem:[%s2292_s7 + $0x470] ss:$12 sps:$4 sm:$0xff]  }
  0x86   : > { %1794 = vmatpush3.bf16.msra.mxu1 %v2034_v23 }
  0x87   : > { %1315 = vmatpush1.bf16.msra.mxu0 %v2030_v22  ;;  %1795 = vmatprep.subr.bf16.mxu1 %v2038_v25 }
  0x88   : > { %1316 = vmatprep.subr.bf16.mxu0 %v2037_v24 }
  0x8a   : > { %1796 = vmatpush3.bf16.msra.mxu1 %v2039_v27 }
  0x8b   : > { %1317 = vmatpush1.bf16.msra.mxu0 %v2035_v26  ;;  %1797 = vmatprep.subr.bf16.mxu1 %v2043_v29 }
  0x8c   : > { %1318 = vmatprep.subr.bf16.mxu0 %v2042_v28 }
  0x8e   : > { %1798 = vmatpush3.bf16.msra.mxu1 %v2044_v31 }
  0x8f   : > { %1319 = vmatpush1.bf16.msra.mxu0 %v2040_v30  ;;  %1799 = vmatprep.subr.bf16.mxu1 %v2048_v33 }
  0x90   : > { %1320 = vmatprep.subr.bf16.mxu0 %v2047_v32  ;;  %v407_v32 = vlaneseq }
  0x92   : > { %1800 = vmatpush3.bf16.msra.mxu1 %v2049_v35  ;;  %v408_v33 = vshrl.u32 %v407_v32, 7  ;;  %v405_v35 = vld [vmem:[%s203_s25] sm:$0x7] }
  0x93   : > { %1321 = vmatpush1.bf16.msra.mxu0 %v2045_v34  ;;  %1807 = vmatprep.subr.bf16.mxu1 %v2053_v37 }
  0x94   : > { %1322 = vmatprep.subr.bf16.mxu0 %v2052_v36  ;;  %v409_v34 = vsub.s32 0, %v408_v33  ;;  %v413_v36 = vsub.s32 1, %v408_v33  ;;  %v417_v37 = vsub.s32 2, %v408_v33 }
  0x95   : > { %1382 = vmatmul.mubr.bf16.vlgmr.msra.gmra.mrb[4].mxu1 %v2375_v3  ;;  %v2085_v3 = vld [vmem:[%s2292_s7 + $0x468] ss:$12 sps:$4 sm:$0xff]  }
  0x96   : > { %1808 = vmatpush3.bf16.msra.mxu1 %v2054_v39  ;;  %1422 = vmatprep.mubr.bf16.mxu1 %v2354_v51  ;;  %v2073_v51 = vld [vmem:[%s2292_s7 + $0x2a8] ss:$12 sps:$4 sm:$0xff]   ;;  %v414_v39 = vrot.slane %v405_v35, %v413_v36 }
  0x97   : > { %1323 = vmatpush1.bf16.msra.mxu0 %v2050_v38  ;;  %1809 = vmatprep.subr.bf16.mxu1 %v2058_v41  ;;  %v410_v38 = vrot.slane %v405_v35, %v409_v34 }
  0x98   : > { %1324 = vmatprep.subr.bf16.mxu0 %v2057_v40  ;;  %v418_v40 = vrot.slane %v405_v35, %v417_v37 }
  0x9a   : > { %1810 = vmatpush3.bf16.msra.mxu1 %v2059_v43 }
  0x9b   : > { %1325 = vmatpush1.bf16.msra.mxu0 %v2055_v42  ;;  %1811 = vmatprep.subr.bf16.mxu1 %v2063_v46 }
  0x9c   : > { %1326 = vmatprep.subr.bf16.mxu0 %v2062_v45 }
  0x9e   : > { %1812 = vmatpush3.bf16.msra.mxu1 %v2064_v48 }
  0x9f   : > { %1327 = vmatpush1.bf16.msra.mxu0 %v2060_v47  ;;  %1813 = vmatprep.subr.bf16.mxu1 %v2068_v50 }
  0xa0   : > { %1328 = vmatprep.subr.bf16.mxu0 %v2067_v49 }
  0xa2   : > { %1814 = vmatpush3.bf16.msra.mxu1 %v2069_v53 }
  0xa3   : > { %1329 = vmatpush1.bf16.msra.mxu0 %v2065_v52  ;;  %1815 = vmatprep.subr.bf16.mxu1 %v2073_v51 }
  0xa4   : > { %1330 = vmatprep.subr.bf16.mxu0 %v2072_v54 }
  0xa6   : > { %1816 = vmatpush3.bf16.msra.mxu1 %v2074_v56 }
  0xa7   : > { %1331 = vmatpush1.bf16.msra.mxu0 %v2070_v55  ;;  %1817 = vmatprep.subr.bf16.mxu1 %v2078_v58 }
  0xa8   : > { %1332 = vmatprep.subr.bf16.mxu0 %v2077_v57 }
  0xaa   : > { %1818 = vmatpush3.bf16.msra.mxu1 %v2079_v60 }
  0xab   : > { %1333 = vmatpush1.bf16.msra.mxu0 %v2075_v59  ;;  %1819 = vmatprep.subr.bf16.mxu1 %v2083_v62 }
  0xac   : > { %1334 = vmatprep.subr.bf16.mxu0 %v2082_v61 }
  0xae   : > { %1820 = vmatpush3.bf16.msra.mxu1 %v2084_v0 }
  0xaf   : > { %1335 = vmatpush1.bf16.msra.mxu0 %v2080_v63  ;;  %1821 = vmatprep.subr.bf16.mxu1 %v2088_v2 }
  0xb0   : > { %1336 = vmatprep.subr.bf16.mxu0 %v2087_v1 }
  0xb2   : > { %1822 = vmatpush3.bf16.msra.mxu1 %v2089_v5 }
  0xb3   : > { %1337 = vmatpush1.bf16.msra.mxu0 %v2085_v3  ;;  %1829 = vmatprep.subr.bf16.mxu1 %v2093_v6 }
  0xb5   : > { %1423 = vmatmul.mubr.bf16.vlgmr.msra.gmra.mrb[8].mxu1 %v2380_v4  ;;  %v2101_v4 = vld [vmem:[%s2292_s7 + $0x428] ss:$12 sps:$4 sm:$0xff]  }
  0xb6   : > { %1339 = vmatmul.mubr.bf16.vlgmr.msra.gmra.mrb[0].mxu0 %v2090_v7  ;;  %1830 = vmatpush3.bf16.msra.mxu1 %v2094_v8 }
  0xb7   : > { %1463 = vmatprep.mubr.bf16.mxu1 %v2427_v44  ;;  %1831 = vmatprep.subr.bf16.mxu1 %v2095_v9 }
  0xba   : > { %1832 = vmatpush3.bf16.msra.mxu1 %v2096_v10 }
  0xbb   : > { %1833 = vmatprep.subr.bf16.mxu1 %v2097_v11 }
  0xbe   : > { %1834 = vmatpush3.bf16.msra.mxu1 %v2098_v12 }
  0xbf   : > { %1835 = vmatprep.subr.bf16.mxu1 %v2099_v13 }
  0xc2   : > { %1836 = vmatpush3.bf16.msra.mxu1 %v2100_v14 }
  0xc3   : > { %1837 = vmatprep.subr.bf16.mxu1 %v2101_v4 }
  0xc6   : > { %1838 = vmatpush3.bf16.msra.mxu1 %v2102_v15 }
  0xc7   : > { %1839 = vmatprep.subr.bf16.mxu1 %v2103_v16 }
  0xca   : > { %1840 = vmatpush3.bf16.msra.mxu1 %v2104_v17 }
  0xcb   : > { %1841 = vmatprep.subr.bf16.mxu1 %v2105_v18 }
  0xce   : > { %1842 = vmatpush3.bf16.msra.mxu1 %v2106_v19 }
  0xcf   : > { %1843 = vmatprep.subr.bf16.mxu1 %v2107_v20 }
  0xd2   : > { %1844 = vmatpush3.bf16.msra.mxu1 %v2108_v21 }
  0xd5   : > { %1464 = vmatmul.mubr.bf16.vlgmr.msra.gmra.mrb[12].mxu1 %v2090_v7 }
 0x148   : > { %v1254_v22 = vpop.f32.mrb[0].mxu1 }
 0x149   : > { %v1256_v23 = vpop.f32.mrb[1].mxu1  ;;  %v1255_v41 = vadd.f32 %v1254_v22, %v410_v38 }
 0x14a   : > { %v1258_v24 = vpop.f32.mrb[2].mxu1  ;;  %v1257_v42 = vadd.f32 %v1256_v23, %v414_v39 }
 0x14b   : > { %v1260_v25 = vpop.f32.mrb[3].mxu1  ;;  %v1259_v45 = vadd.f32 %v1258_v24, %v410_v38 }
 0x14c   : > { %v1261_v49 = vadd.f32 %v1260_v25, %v414_v39 }
 0x168   : > { %v1801_v26 = vpop.f32.mrb[4].mxu1 }
 0x169   : > { %v1802_v27 = vpop.f32.mrb[5].mxu1 }
 0x16a   : > { %v1803_v28 = vadd.f32 %v1802_v27, %v1801_v26  ;;  %v1804_v29 = vpop.f32.mrb[6].mxu1 }
 0x16b   : > { %v1805_v30 = vpop.f32.mrb[7].mxu1 }
 0x16c   : > { %v1806_v31 = vadd.f32 %v1805_v30, %v1804_v29  ;;  %v1384_v50 = vadd.f32 %v1803_v28, %v418_v40 }
 0x16e   : > { %v1387_v55 = vadd.f32 %v1806_v31, %v418_v40 }
 0x188   : > { %v1823_v44 = vpop.f32.mrb[8].mxu1 }
 0x189   : > { %v1340_v43 = vpop.f32.mrb[0].mxu0  ;;  %v1824_v48 = vpop.f32.mrb[9].mxu1 }
 0x18a   : > { %v1852_v46 = vadd.f32 %v1340_v43, %v1255_v41  ;;  %v1342_v47 = vpop.f32.mrb[1].mxu0  ;;  %v1825_v53 = vadd.f32 %v1824_v48, %v1823_v44  ;;  %v1826_v51 = vpop.f32.mrb[10].mxu1 }
 0x18b   : > { %v1854_v52 = vadd.f32 %v1342_v47, %v1257_v42  ;;  %v1344_v54 = vpop.f32.mrb[2].mxu0  ;;  %v1827_v58 = vpop.f32.mrb[11].mxu1 }
 0x18c   : > { %v1856_v56 = vadd.f32 %v1344_v54, %v1259_v45  ;;  %v1346_v57 = vpop.f32.mrb[3].mxu0  ;;  %v1425_v60 = vadd.f32 %v1825_v53, %v1384_v50  ;;  %v1828_v62 = vadd.f32 %v1827_v58, %v1826_v51 }
 0x18d   : > { %v1780_v59 = vpack.c.bf16 %v1854_v52, %v1852_v46  ;;  %v1858_v61 = vadd.f32 %v1346_v57, %v1261_v49 }
 0x18e   : > { %v1428_v0 = vadd.f32 %v1828_v62, %v1387_v55 }
 0x18f   : > { %1492 = vst [vmem:[%s198_s28] sm:$0xff] %v1780_v59  ;;  %v1782_v63 = vpack.c.bf16 %v1858_v61, %v1856_v56 }
 0x191   : > { %1494 = vst [vmem:[%s198_s28 + $0xc] sm:$0xff] %v1782_v63 }
 0x196   : > { %v1520_v12 = vld [vmem:[%s198_s28] sm:$0xff] (%p2507_p9) }
 0x197   : > { %1521 = vst [vmem:[%s1505_s15] sm:$0xff] (%p2507_p9), %v1520_v12 }
 0x198   : > { %v1522_v13 = vld [vmem:[%s198_s28 + $0xc] sm:$0xff] (%p2507_p9) }
 0x199   : > { %1523 = vst [vmem:[%s1505_s15 + $0x48] sm:$0xff] (%p2507_p9), %v1522_v13 }
 0x1a8   : > { %v1845_v1 = vpop.f32.mrb[12].mxu1 }
 0x1a9   : > { %v1846_v2 = vpop.f32.mrb[13].mxu1 }
 0x1aa   : > { %v1847_v3 = vadd.f32 %v1846_v2, %v1845_v1  ;;  %v1848_v5 = vpop.f32.mrb[14].mxu1 }
 0x1ab   : > { %v1849_v6 = vpop.f32.mrb[15].mxu1 }
 0x1ac   : > { %v1466_v7 = vadd.f32 %v1847_v3, %v1425_v60  ;;  %v1850_v8 = vadd.f32 %v1849_v6, %v1848_v5  ;;  %1502 = sbr.rel (!%p2507_p9) target bundleno = 443 (0x1bb), region = 40 }
 0x1ae   : > { %v1781_v9 = vpack.c.bf16 %v1466_v7, %v1466_v7  ;;  %v1469_v10 = vadd.f32 %v1850_v8, %v1428_v0 }
 0x1b0   : > { %1493 = vst [vmem:[%s198_s28 + $0x8] sm:$0xf] %v1781_v9  ;;  %v1783_v11 = vpack.c.bf16 %v1469_v10, %v1469_v10 }
 0x1b2   : > { %1495 = vst [vmem:[%s198_s28 + $0x14] sm:$0xf] %v1783_v11 }
 0x1b7   : > { %v1773_v14 = vld [vmem:[%s198_s28 + $0x8] sm:$0xf] }
 0x1b8   : > { %1774 = vst [vmem:[%s1505_s15 + $0x8] sm:$0xf] %v1773_v14 }
 0x1b9   : > { %v1775_v4 = vld [vmem:[%s198_s28 + $0x14] sm:$0xf] }
 0x1ba   : > { %1776 = vst [vmem:[%s1505_s15 + $0x50] sm:$0xf] %v1775_v4 }
 0x1bb PF: > { %p13_p10 = scmp.ge.s32.totalorder %s2221_s17, 8   ;;  %s2508_s12 = smov %s2165_s13 }
 0x1bc   : > { %s2509_s13 = smov %s2169_s14  ;;  %s2510_s14 = smov %s2231_s20 }
 0x1bd   : > { %s2511_s15 = smov %s2221_s17  ;;  %15 = sbr.rel (!%p13_p10) target bundleno = 3 (0x3), region = 107 }
 0x1c4   :  { %1550 = vsyncpa [#allocation3], 1 }
 0x1c5   :  { %1552 = vsyncpa [#allocation3 + $0x1], 1 }

// kernel: bert_classifier_forward.18
= control target key start
LH: loop header
LB: loop body
LE: loop exit
PB: predicated region body
PF: predicated region fallthrough
CT: control target
= control target key end

     0   :  { %s509_s15 = smov 0   ;;  %s540_s0 = inlined_call_operand.vmem [shape: bf16[16,768], index: 0, kind: input, shape index: {}]   ;;  %s541_s1 = inlined_call_operand.vmem [shape: bf16[16,768], index: 1, kind: input, shape index: {}]   ;;  %s542_s2 = inlined_call_operand.vmem [shape: f32[1,768], index: 2, kind: input, shape index: {}]   ;;  %s543_s3 = inlined_call_operand.vmem [shape: f32[1,768], index: 3, kind: input, shape index: {}]   ;;  %s544_s4 = inlined_call_operand.vmem [shape: bf16[16,768], index: 4, kind: output, shape index: {}]  }
   0x1 LB: > { %s449_s16 = sadd.s32 4294967295, %s482_s15   ;;  %p453_p0 = scmp.ge.s32.totalorder %s482_s15, 1  ;;  %s482_s15 = sphi %s509_s15, %s14_s15  }
   0x2   : > { %p172_p1 = scmp.lt.s32.totalorder %s482_s15, 3 }
   0x4   : > { %p173_p2 = pnand %p453_p0, %p172_p1 }
   0x5   : > { %p203_p3 = scmp.lt.s32.totalorder (!%p173_p2), %s449_s16, 1  ;;  %v281_v49 = vlaneseq (!%p173_p2)  ;;  %v279_v55 = vld [vmem:[%s542_s2] sm:$0x3f] (!%p173_p2) }
   0x6   : > { %176 = sbr.rel (%p173_p2) target bundleno = 358 (0x166), region = 36  ;;  %v317_v60 = vld [vmem:[%s543_s3] sm:$0x3f] (!%p173_p2) }
   0x7   : > { %v282_v52 = vshrl.u32 (!%p173_p2), %v281_v49, 7 }
   0x9   : > { %v283_v53 = vsub.s32 (!%p173_p2), 0, %v282_v52  ;;  %v287_v54 = vsub.s32 (!%p173_p2), 1, %v282_v52  ;;  %v291_v56 = vsub.s32 (!%p173_p2), 2, %v282_v52  ;;  %v295_v57 = vsub.s32 (!%p173_p2), 3, %v282_v52 }
   0xa   : > { %v299_v58 = vsub.s32 (!%p173_p2), 4, %v282_v52  ;;  %v303_v59 = vsub.s32 (!%p173_p2), 5, %v282_v52 }
   0xb   : > { %v284_v61 = vrot.slane (!%p173_p2), %v279_v55, %v283_v53  ;;  %v288_v62 = vrot.slane (!%p173_p2), %v279_v55, %v287_v54  ;;  %v292_v63 = vrot.slane (!%p173_p2), %v279_v55, %v291_v56 }
   0xd   : > { %s546_s16 = smov (!%p203_p3, %s449_s16), 1 }
   0xe   : > { %s517_s17 = smul.u32 24, %s546_s16 }
  0x10   : > { %s207_s20 = scalar_lea.vmem %s540_s0, %s517_s17  ;;  %s212_s23 = scalar_lea.vmem %s541_s1, %s517_s17 }
  0x11   : > { %v218_v0 = vld [vmem:[%s207_s20] sm:$0xff]  ;;  %v219_v1 = vld [vmem:[%s207_s20 + $0x8] sm:$0xff]  ;;  %v220_v2 = vld [vmem:[%s207_s20 + $0x10] sm:$0xff]  ;;  %s217_s30 = scalar_lea.vmem %s544_s4, %s517_s17 }
  0x12   : > { %v221_v3 = vunpack.c.l.bf16 %v218_v0  ;;  %v222_v4 = vunpack.c.h.bf16 %v218_v0  ;;  %v223_v5 = vunpack.c.l.bf16 %v219_v1  ;;  %v227_v6 = vld [vmem:[%s212_s23] sm:$0xff]  ;;  %v228_v7 = vld [vmem:[%s212_s23 + $0x8] sm:$0xff]  ;;  %v229_v8 = vld [vmem:[%s212_s23 + $0x10] sm:$0xff]  ;;  %v224_v9 = vunpack.c.h.bf16 %v219_v1 }
  0x13   : > { %v230_v10 = vunpack.c.l.bf16 %v227_v6  ;;  %v231_v11 = vunpack.c.h.bf16 %v227_v6  ;;  %v232_v12 = vunpack.c.l.bf16 %v228_v7  ;;  %v233_v13 = vunpack.c.h.bf16 %v228_v7 }
  0x14   : > { %v225_v14 = vunpack.c.l.bf16 %v220_v2  ;;  %v234_v15 = vunpack.c.l.bf16 %v229_v8  ;;  %v226_v19 = vunpack.c.h.bf16 %v220_v2  ;;  %v235_v20 = vunpack.c.h.bf16 %v229_v8 }
  0x15   : > { %v236_v16 = vadd.f32 %v230_v10, %v221_v3  ;;  %v237_v17 = vadd.f32 %v231_v11, %v222_v4  ;;  %v238_v18 = vadd.f32 %v232_v12, %v223_v5  ;;  %v239_v21 = vadd.f32 %v233_v13, %v224_v9 }
  0x16   : > { %v240_v23 = vadd.f32 %v234_v15, %v225_v14  ;;  %v241_v25 = vadd.f32 %v235_v20, %v226_v19  ;;  %v296_v0 = vrot.slane %v279_v55, %v295_v57  ;;  %v300_v1 = vrot.slane %v279_v55, %v299_v58 }
  0x17   : > { %v242_v22 = vadd.f32 %v237_v17, %v236_v16  ;;  %v304_v2 = vrot.slane %v279_v55, %v303_v59  ;;  %v322_v4 = vrot.slane %v317_v60, %v283_v53  ;;  %v326_v5 = vrot.slane %v317_v60, %v287_v54 }
  0x18   : > { %v330_v6 = vrot.slane %v317_v60, %v291_v56  ;;  %v334_v7 = vrot.slane %v317_v60, %v295_v57  ;;  %v338_v12 = vrot.slane %v317_v60, %v299_v58  ;;  %v342_v13 = vrot.slane %v317_v60, %v303_v59 }
  0x19   : > { %v243_v24 = vadd.f32 %v242_v22, %v238_v18 }
  0x1b   : > { %v244_v26 = vadd.f32 %v243_v24, %v239_v21 }
  0x1d   : > { %v245_v27 = vadd.f32 %v244_v26, %v240_v23 }
  0x1f   : > { %v246_v28 = vadd.f32 %v245_v27, %v241_v25 }
  0x21   : > { %247 = vadd.xlane.f32.xlu0 %v246_v28 }
  0xae   : > { %v248_v29 = vpop.xlane.xlu0 %247 }
  0xaf   : > { %v250_v30 = vmul.f32 0.0013020834, %v248_v29 }
  0xb1   : > { %v251_v31 = vsub.f32 %v236_v16, %v250_v30  ;;  %v252_v32 = vsub.f32 %v237_v17, %v250_v30  ;;  %v253_v33 = vsub.f32 %v238_v18, %v250_v30  ;;  %v254_v34 = vsub.f32 %v239_v21, %v250_v30 }
  0xb2   : > { %v255_v37 = vsub.f32 %v240_v23, %v250_v30  ;;  %v256_v40 = vsub.f32 %v241_v25, %v250_v30 }
  0xb3   : > { %v257_v35 = vmul.f32 %v251_v31, %v251_v31  ;;  %v258_v36 = vmul.f32 %v252_v32, %v252_v32  ;;  %v259_v38 = vmul.f32 %v253_v33, %v253_v33  ;;  %v260_v41 = vmul.f32 %v254_v34, %v254_v34 }
  0xb4   : > { %v261_v43 = vmul.f32 %v255_v37, %v255_v37  ;;  %v262_v45 = vmul.f32 %v256_v40, %v256_v40 }
  0xb5   : > { %v263_v39 = vadd.f32 %v258_v36, %v257_v35 }
  0xb7   : > { %v264_v42 = vadd.f32 %v263_v39, %v259_v38 }
  0xb9   : > { %v265_v44 = vadd.f32 %v264_v42, %v260_v41 }
  0xbb   : > { %v266_v46 = vadd.f32 %v265_v44, %v261_v43 }
  0xbd   : > { %v267_v47 = vadd.f32 %v266_v46, %v262_v45 }
  0xbf   : > { %268 = vadd.xlane.f32.xlu0 %v267_v47 }
 0x14c   : > { %v269_v48 = vpop.xlane.xlu0 %268 }
 0x14d   : > { %v270_v50 = vmul.f32 0.0013020834, %v269_v48 }
 0x14f   : > { %v271_v51 = vadd.f32 1e-12, %v270_v50 }
 0x151   : > { %474 = vrsqrt.f32 %v271_v51 }
 0x15b   : > { %v475_v3 = vpop.eup %474 }
 0x15c   : > { %v273_v8 = vmul.f32 %v475_v3, %v251_v31  ;;  %v274_v9 = vmul.f32 %v475_v3, %v252_v32  ;;  %v275_v10 = vmul.f32 %v475_v3, %v253_v33  ;;  %v276_v11 = vmul.f32 %v475_v3, %v254_v34 }
 0x15d   : > { %v277_v14 = vmul.f32 %v475_v3, %v255_v37  ;;  %v278_v15 = vmul.f32 %v475_v3, %v256_v40 }
 0x15e   : > { %v311_v16 = vmul.f32 %v284_v61, %v273_v8  ;;  %v312_v17 = vmul.f32 %v288_v62, %v274_v9  ;;  %v313_v18 = vmul.f32 %v292_v63, %v275_v10  ;;  %v314_v19 = vmul.f32 %v296_v0, %v276_v11 }
 0x15f   : > { %v315_v20 = vmul.f32 %v300_v1, %v277_v14  ;;  %v316_v21 = vmul.f32 %v304_v2, %v278_v15 }
 0x160   : > { %v349_v22 = vadd.f32 %v322_v4, %v311_v16  ;;  %v350_v23 = vadd.f32 %v326_v5, %v312_v17  ;;  %v351_v24 = vadd.f32 %v330_v6, %v313_v18  ;;  %v352_v25 = vadd.f32 %v334_v7, %v314_v19 }
 0x161   : > { %v353_v26 = vadd.f32 %v338_v12, %v315_v20  ;;  %v354_v27 = vadd.f32 %v342_v13, %v316_v21 }
 0x162   : > { %v462_v28 = vpack.c.bf16 %v350_v23, %v349_v22  ;;  %v463_v29 = vpack.c.bf16 %v352_v25, %v351_v24 }
 0x163   : > { %v464_v30 = vpack.c.bf16 %v354_v27, %v353_v26 }
 0x164   : > { %379 = vst [vmem:[%s217_s30] sm:$0xff] %v462_v28  ;;  %380 = vst [vmem:[%s217_s30 + $0x8] sm:$0xff] %v463_v29 }
 0x165   : > { %381 = vst [vmem:[%s217_s30 + $0x10] sm:$0xff] %v464_v30 }
 0x166 PF: > { %s14_s15 = sadd.s32 1, %s482_s15  }
 0x167   : > { %p11_p4 = scmp.ge.s32.totalorder %s14_s15, 4  }
 0x169   :  { %13 = sbr.rel (!%p11_p4) target bundleno = 1 (0x1), region = 69 }

// kernel: bert_classifier_forward.17
= control target key start
LH: loop header
LB: loop body
LE: loop exit
PB: predicated region body
PF: predicated region fallthrough
CT: control target
= control target key end

     0   :  { %s2717_s12 = smov 0   ;;  %s2719_s13 = smov 0   ;;  %s3357_s0 = inlined_call_operand.vmem [shape: bf16[16,768], index: 0, kind: input, shape index: {}]   ;;  %s3358_s1 = inlined_call_operand.vmem [shape: bf16[768,768], index: 1, kind: input, shape index: {}]   ;;  %s3359_s2 = inlined_call_operand.vmem [shape: f32[1,768], index: 2, kind: input, shape index: {}]   ;;  %s3360_s3 = inlined_call_operand.vmem [shape: bf16[16,768], index: 3, kind: output, shape index: {}]  }
   0x1   :  { %s2721_s14 = smov 0  }
   0x2 LB: > { %s2733_s15 = sadd.s32 4294967295, %s2695_s14   ;;  %s2736_s16 = sadd.s32 1, %s2695_s14   ;;  %s2695_s14 = sphi %s2721_s14, %s3364_s14   ;;  %s2691_s13 = sphi %s2719_s13, %s3363_s13   ;;  %s2687_s12 = sphi %s2717_s12, %s3362_s12  }
   0x3   : > { %s38_s17 = ssub.s32 %s2695_s14, %s2736_s16  ;;  %s41_s18 = sadd.s32 1, %s2691_s13 }
   0x4   : > { %p39_p0 = scmp.eq.s32.totalorder %s38_s17, 0  ;;  %p48_p1 = scmp.ne.s32.totalorder %s2691_s13, %s2687_s12 }
   0x5   : > { %p49_p2 = scmp.eq.s32.totalorder %s2695_s14, 0  ;;  %p104_p3 = scmp.eq.s32.totalorder %s2733_s15, 1 }
   0x6   : > { %s2746_s19 = scalar_select %p39_p0, %s2691_s13, %s41_s18  }
   0x7   : > { %p50_p4 = por %p49_p2, %p48_p1  ;;  %p2748_p5 = por %p104_p3, %p48_p1 }
   0x8   : > { %p2005_p6 = scmp.ge.s32.totalorder %s2695_s14, 2 }
   0xa   : > { %129 = sbr.rel (%p2005_p6) target bundleno = 134 (0x86), region = 20 }
  0x11   : > { %132 = sbr.rel (!%p50_p4) target bundleno = 134 (0x86), region = 24  ;;  %s134_s21 = sand.u32 (%p50_p4), 1, %s2691_s13  }
  0x12   : > { %s2361_s22 = smul.u32 (%p50_p4), 12, %s2695_s14 }
  0x13   : > { %s2445_s23 = smul.u32 (%p50_p4), 1152, %s134_s21 }
  0x14   : > { %s2758_s26 = scalar_lea.vmem (%p50_p4), %s3358_s1, %s2361_s22 }
  0x15   : > { %v154_v0 = vld [vmem:[%s2758_s26] sm:$0xff] (%p50_p4)  ;;  %v156_v1 = vld [vmem:[%s2758_s26 + $0x18] sm:$0xff] (%p50_p4)  ;;  %v158_v2 = vld [vmem:[%s2758_s26 + $0x30] sm:$0xff] (%p50_p4)  ;;  %s2763_s27 = scalar_lea.vmem (%p50_p4), [#allocation2], %s2445_s23 }
  0x16   : > { %155 = vst [vmem:[%s2763_s27] sm:$0xff] (%p50_p4), %v154_v0  ;;  %157 = vst [vmem:[%s2763_s27 + $0xc] sm:$0xff] (%p50_p4), %v156_v1  ;;  %v160_v3 = vld [vmem:[%s2758_s26 + $0x48] sm:$0xff] (%p50_p4)  ;;  %v162_v4 = vld [vmem:[%s2758_s26 + $0x60] sm:$0xff] (%p50_p4) }
  0x17   : > { %159 = vst [vmem:[%s2763_s27 + $0x18] sm:$0xff] (%p50_p4), %v158_v2  ;;  %v164_v5 = vld [vmem:[%s2758_s26 + $0x78] sm:$0xff] (%p50_p4)  ;;  %161 = vst [vmem:[%s2763_s27 + $0x24] sm:$0xff] (%p50_p4), %v160_v3  ;;  %v166_v6 = vld [vmem:[%s2758_s26 + $0x90] sm:$0xff] (%p50_p4) }
  0x18   : > { %163 = vst [vmem:[%s2763_s27 + $0x30] sm:$0xff] %v162_v4  ;;  %165 = vst [vmem:[%s2763_s27 + $0x3c] sm:$0xff] %v164_v5  ;;  %v168_v7 = vld [vmem:[%s2758_s26 + $0xa8] sm:$0xff]  ;;  %v170_v8 = vld [vmem:[%s2758_s26 + $0xc0] sm:$0xff] }
  0x19   : > { %167 = vst [vmem:[%s2763_s27 + $0x48] sm:$0xff] %v166_v6  ;;  %169 = vst [vmem:[%s2763_s27 + $0x54] sm:$0xff] %v168_v7  ;;  %v172_v9 = vld [vmem:[%s2758_s26 + $0xd8] sm:$0xff]  ;;  %v174_v10 = vld [vmem:[%s2758_s26 + $0xf0] sm:$0xff] }
  0x1a   : > { %171 = vst [vmem:[%s2763_s27 + $0x60] sm:$0xff] %v170_v8  ;;  %v176_v11 = vld [vmem:[%s2758_s26 + $0x108] sm:$0xff]  ;;  %173 = vst [vmem:[%s2763_s27 + $0x6c] sm:$0xff] %v172_v9  ;;  %v178_v12 = vld [vmem:[%s2758_s26 + $0x120] sm:$0xff] }
  0x1b   : > { %175 = vst [vmem:[%s2763_s27 + $0x78] sm:$0xff] %v174_v10  ;;  %177 = vst [vmem:[%s2763_s27 + $0x84] sm:$0xff] %v176_v11  ;;  %v180_v13 = vld [vmem:[%s2758_s26 + $0x138] sm:$0xff]  ;;  %v182_v14 = vld [vmem:[%s2758_s26 + $0x150] sm:$0xff] }
  0x1c   : > { %179 = vst [vmem:[%s2763_s27 + $0x90] sm:$0xff] %v178_v12  ;;  %181 = vst [vmem:[%s2763_s27 + $0x9c] sm:$0xff] %v180_v13  ;;  %v184_v15 = vld [vmem:[%s2758_s26 + $0x168] sm:$0xff]  ;;  %v186_v16 = vld [vmem:[%s2758_s26 + $0x180] sm:$0xff] }
  0x1d   : > { %183 = vst [vmem:[%s2763_s27 + $0xa8] sm:$0xff] %v182_v14  ;;  %v188_v17 = vld [vmem:[%s2758_s26 + $0x198] sm:$0xff]  ;;  %185 = vst [vmem:[%s2763_s27 + $0xb4] sm:$0xff] %v184_v15  ;;  %v190_v18 = vld [vmem:[%s2758_s26 + $0x1b0] sm:$0xff] }
  0x1e   : > { %187 = vst [vmem:[%s2763_s27 + $0xc0] sm:$0xff] %v186_v16  ;;  %189 = vst [vmem:[%s2763_s27 + $0xcc] sm:$0xff] %v188_v17  ;;  %v192_v19 = vld [vmem:[%s2758_s26 + $0x1c8] sm:$0xff]  ;;  %v194_v20 = vld [vmem:[%s2758_s26 + $0x1e0] sm:$0xff] }
  0x1f   : > { %191 = vst [vmem:[%s2763_s27 + $0xd8] sm:$0xff] %v190_v18  ;;  %193 = vst [vmem:[%s2763_s27 + $0xe4] sm:$0xff] %v192_v19  ;;  %v196_v21 = vld [vmem:[%s2758_s26 + $0x1f8] sm:$0xff]  ;;  %v198_v22 = vld [vmem:[%s2758_s26 + $0x210] sm:$0xff] }
  0x20   : > { %195 = vst [vmem:[%s2763_s27 + $0xf0] sm:$0xff] %v194_v20  ;;  %v200_v23 = vld [vmem:[%s2758_s26 + $0x228] sm:$0xff]  ;;  %197 = vst [vmem:[%s2763_s27 + $0xfc] sm:$0xff] %v196_v21  ;;  %v202_v24 = vld [vmem:[%s2758_s26 + $0x240] sm:$0xff] }
  0x21   : > { %199 = vst [vmem:[%s2763_s27 + $0x108] sm:$0xff] %v198_v22  ;;  %201 = vst [vmem:[%s2763_s27 + $0x114] sm:$0xff] %v200_v23  ;;  %v204_v25 = vld [vmem:[%s2758_s26 + $0x258] sm:$0xff]  ;;  %v206_v26 = vld [vmem:[%s2758_s26 + $0x270] sm:$0xff] }
  0x22   : > { %203 = vst [vmem:[%s2763_s27 + $0x120] sm:$0xff] %v202_v24  ;;  %205 = vst [vmem:[%s2763_s27 + $0x12c] sm:$0xff] %v204_v25  ;;  %v208_v27 = vld [vmem:[%s2758_s26 + $0x288] sm:$0xff]  ;;  %v210_v28 = vld [vmem:[%s2758_s26 + $0x2a0] sm:$0xff] }
  0x23   : > { %207 = vst [vmem:[%s2763_s27 + $0x138] sm:$0xff] %v206_v26  ;;  %v212_v29 = vld [vmem:[%s2758_s26 + $0x2b8] sm:$0xff]  ;;  %209 = vst [vmem:[%s2763_s27 + $0x144] sm:$0xff] %v208_v27  ;;  %v214_v30 = vld [vmem:[%s2758_s26 + $0x2d0] sm:$0xff] }
  0x24   : > { %211 = vst [vmem:[%s2763_s27 + $0x150] sm:$0xff] %v210_v28  ;;  %213 = vst [vmem:[%s2763_s27 + $0x15c] sm:$0xff] %v212_v29  ;;  %v216_v31 = vld [vmem:[%s2758_s26 + $0x2e8] sm:$0xff]  ;;  %v218_v32 = vld [vmem:[%s2758_s26 + $0x300] sm:$0xff] }
  0x25   : > { %215 = vst [vmem:[%s2763_s27 + $0x168] sm:$0xff] %v214_v30  ;;  %217 = vst [vmem:[%s2763_s27 + $0x174] sm:$0xff] %v216_v31  ;;  %v220_v33 = vld [vmem:[%s2758_s26 + $0x318] sm:$0xff]  ;;  %v222_v34 = vld [vmem:[%s2758_s26 + $0x330] sm:$0xff] }
  0x26   : > { %219 = vst [vmem:[%s2763_s27 + $0x180] sm:$0xff] %v218_v32  ;;  %v224_v35 = vld [vmem:[%s2758_s26 + $0x348] sm:$0xff]  ;;  %221 = vst [vmem:[%s2763_s27 + $0x18c] sm:$0xff] %v220_v33  ;;  %v226_v36 = vld [vmem:[%s2758_s26 + $0x360] sm:$0xff] }
  0x27   : > { %223 = vst [vmem:[%s2763_s27 + $0x198] sm:$0xff] %v222_v34  ;;  %225 = vst [vmem:[%s2763_s27 + $0x1a4] sm:$0xff] %v224_v35  ;;  %v228_v37 = vld [vmem:[%s2758_s26 + $0x378] sm:$0xff]  ;;  %v230_v38 = vld [vmem:[%s2758_s26 + $0x390] sm:$0xff] }
  0x28   : > { %227 = vst [vmem:[%s2763_s27 + $0x1b0] sm:$0xff] %v226_v36  ;;  %229 = vst [vmem:[%s2763_s27 + $0x1bc] sm:$0xff] %v228_v37  ;;  %v232_v39 = vld [vmem:[%s2758_s26 + $0x3a8] sm:$0xff]  ;;  %v234_v40 = vld [vmem:[%s2758_s26 + $0x3c0] sm:$0xff] }
  0x29   : > { %231 = vst [vmem:[%s2763_s27 + $0x1c8] sm:$0xff] %v230_v38  ;;  %v236_v41 = vld [vmem:[%s2758_s26 + $0x3d8] sm:$0xff]  ;;  %233 = vst [vmem:[%s2763_s27 + $0x1d4] sm:$0xff] %v232_v39  ;;  %v238_v42 = vld [vmem:[%s2758_s26 + $0x3f0] sm:$0xff] }
  0x2a   : > { %235 = vst [vmem:[%s2763_s27 + $0x1e0] sm:$0xff] %v234_v40  ;;  %237 = vst [vmem:[%s2763_s27 + $0x1ec] sm:$0xff] %v236_v41  ;;  %v240_v43 = vld [vmem:[%s2758_s26 + $0x408] sm:$0xff]  ;;  %v242_v44 = vld [vmem:[%s2758_s26 + $0x420] sm:$0xff] }
  0x2b   : > { %239 = vst [vmem:[%s2763_s27 + $0x1f8] sm:$0xff] %v238_v42  ;;  %241 = vst [vmem:[%s2763_s27 + $0x204] sm:$0xff] %v240_v43  ;;  %v244_v45 = vld [vmem:[%s2758_s26 + $0x438] sm:$0xff]  ;;  %v246_v46 = vld [vmem:[%s2758_s26 + $0x450] sm:$0xff] }
  0x2c   : > { %243 = vst [vmem:[%s2763_s27 + $0x210] sm:$0xff] %v242_v44  ;;  %v248_v47 = vld [vmem:[%s2758_s26 + $0x468] sm:$0xff]  ;;  %245 = vst [vmem:[%s2763_s27 + $0x21c] sm:$0xff] %v244_v45  ;;  %v250_v48 = vld [vmem:[%s2758_s26 + $0x480] sm:$0xff] }
  0x2d   : > { %247 = vst [vmem:[%s2763_s27 + $0x228] sm:$0xff] %v246_v46  ;;  %249 = vst [vmem:[%s2763_s27 + $0x234] sm:$0xff] %v248_v47  ;;  %v252_v49 = vld [vmem:[%s2758_s26 + $0x498] sm:$0xff]  ;;  %v254_v50 = vld [vmem:[%s2758_s26 + $0x4b0] sm:$0xff] }
  0x2e   : > { %251 = vst [vmem:[%s2763_s27 + $0x240] sm:$0xff] %v250_v48  ;;  %253 = vst [vmem:[%s2763_s27 + $0x24c] sm:$0xff] %v252_v49  ;;  %v256_v51 = vld [vmem:[%s2758_s26 + $0x4c8] sm:$0xff]  ;;  %v258_v52 = vld [vmem:[%s2758_s26 + $0x4e0] sm:$0xff] }
  0x2f   : > { %255 = vst [vmem:[%s2763_s27 + $0x258] sm:$0xff] %v254_v50  ;;  %v260_v53 = vld [vmem:[%s2758_s26 + $0x4f8] sm:$0xff]  ;;  %257 = vst [vmem:[%s2763_s27 + $0x264] sm:$0xff] %v256_v51  ;;  %v262_v54 = vld [vmem:[%s2758_s26 + $0x510] sm:$0xff] }
  0x30   : > { %259 = vst [vmem:[%s2763_s27 + $0x270] sm:$0xff] %v258_v52  ;;  %261 = vst [vmem:[%s2763_s27 + $0x27c] sm:$0xff] %v260_v53  ;;  %v264_v55 = vld [vmem:[%s2758_s26 + $0x528] sm:$0xff]  ;;  %v266_v56 = vld [vmem:[%s2758_s26 + $0x540] sm:$0xff] }
  0x31   : > { %263 = vst [vmem:[%s2763_s27 + $0x288] sm:$0xff] %v262_v54  ;;  %265 = vst [vmem:[%s2763_s27 + $0x294] sm:$0xff] %v264_v55  ;;  %v268_v57 = vld [vmem:[%s2758_s26 + $0x558] sm:$0xff]  ;;  %v270_v58 = vld [vmem:[%s2758_s26 + $0x570] sm:$0xff] }
  0x32   : > { %267 = vst [vmem:[%s2763_s27 + $0x2a0] sm:$0xff] %v266_v56  ;;  %v272_v59 = vld [vmem:[%s2758_s26 + $0x588] sm:$0xff]  ;;  %269 = vst [vmem:[%s2763_s27 + $0x2ac] sm:$0xff] %v268_v57  ;;  %v274_v60 = vld [vmem:[%s2758_s26 + $0x5a0] sm:$0xff] }
  0x33   : > { %271 = vst [vmem:[%s2763_s27 + $0x2b8] sm:$0xff] %v270_v58  ;;  %273 = vst [vmem:[%s2763_s27 + $0x2c4] sm:$0xff] %v272_v59  ;;  %v276_v61 = vld [vmem:[%s2758_s26 + $0x5b8] sm:$0xff]  ;;  %v278_v62 = vld [vmem:[%s2758_s26 + $0x5d0] sm:$0xff] }
  0x34   : > { %275 = vst [vmem:[%s2763_s27 + $0x2d0] sm:$0xff] %v274_v60  ;;  %277 = vst [vmem:[%s2763_s27 + $0x2dc] sm:$0xff] %v276_v61  ;;  %v280_v63 = vld [vmem:[%s2758_s26 + $0x5e8] sm:$0xff]  ;;  %v282_v0 = vld [vmem:[%s2758_s26 + $0x600] sm:$0xff] }
  0x35   : > { %279 = vst [vmem:[%s2763_s27 + $0x2e8] sm:$0xff] %v278_v62  ;;  %v284_v1 = vld [vmem:[%s2758_s26 + $0x618] sm:$0xff]  ;;  %281 = vst [vmem:[%s2763_s27 + $0x2f4] sm:$0xff] %v280_v63  ;;  %v286_v2 = vld [vmem:[%s2758_s26 + $0x630] sm:$0xff] }
  0x36   : > { %283 = vst [vmem:[%s2763_s27 + $0x300] sm:$0xff] %v282_v0  ;;  %285 = vst [vmem:[%s2763_s27 + $0x30c] sm:$0xff] %v284_v1  ;;  %v288_v3 = vld [vmem:[%s2758_s26 + $0x648] sm:$0xff]  ;;  %v290_v4 = vld [vmem:[%s2758_s26 + $0x660] sm:$0xff] }
  0x37   : > { %287 = vst [vmem:[%s2763_s27 + $0x318] sm:$0xff] %v286_v2  ;;  %289 = vst [vmem:[%s2763_s27 + $0x324] sm:$0xff] %v288_v3  ;;  %v292_v5 = vld [vmem:[%s2758_s26 + $0x678] sm:$0xff]  ;;  %v294_v6 = vld [vmem:[%s2758_s26 + $0x690] sm:$0xff] }
  0x38   : > { %291 = vst [vmem:[%s2763_s27 + $0x330] sm:$0xff] %v290_v4  ;;  %v296_v7 = vld [vmem:[%s2758_s26 + $0x6a8] sm:$0xff]  ;;  %293 = vst [vmem:[%s2763_s27 + $0x33c] sm:$0xff] %v292_v5  ;;  %v298_v8 = vld [vmem:[%s2758_s26 + $0x6c0] sm:$0xff] }
  0x39   : > { %295 = vst [vmem:[%s2763_s27 + $0x348] sm:$0xff] %v294_v6  ;;  %297 = vst [vmem:[%s2763_s27 + $0x354] sm:$0xff] %v296_v7  ;;  %v300_v9 = vld [vmem:[%s2758_s26 + $0x6d8] sm:$0xff]  ;;  %v302_v10 = vld [vmem:[%s2758_s26 + $0x6f0] sm:$0xff] }
  0x3a   : > { %299 = vst [vmem:[%s2763_s27 + $0x360] sm:$0xff] %v298_v8  ;;  %301 = vst [vmem:[%s2763_s27 + $0x36c] sm:$0xff] %v300_v9  ;;  %v304_v11 = vld [vmem:[%s2758_s26 + $0x708] sm:$0xff]  ;;  %v306_v12 = vld [vmem:[%s2758_s26 + $0x720] sm:$0xff] }
  0x3b   : > { %303 = vst [vmem:[%s2763_s27 + $0x378] sm:$0xff] %v302_v10  ;;  %v308_v13 = vld [vmem:[%s2758_s26 + $0x738] sm:$0xff]  ;;  %305 = vst [vmem:[%s2763_s27 + $0x384] sm:$0xff] %v304_v11  ;;  %v310_v14 = vld [vmem:[%s2758_s26 + $0x750] sm:$0xff] }
  0x3c   : > { %307 = vst [vmem:[%s2763_s27 + $0x390] sm:$0xff] %v306_v12  ;;  %309 = vst [vmem:[%s2763_s27 + $0x39c] sm:$0xff] %v308_v13  ;;  %v312_v15 = vld [vmem:[%s2758_s26 + $0x768] sm:$0xff]  ;;  %v314_v16 = vld [vmem:[%s2758_s26 + $0x780] sm:$0xff] }
  0x3d   : > { %311 = vst [vmem:[%s2763_s27 + $0x3a8] sm:$0xff] %v310_v14  ;;  %313 = vst [vmem:[%s2763_s27 + $0x3b4] sm:$0xff] %v312_v15  ;;  %v316_v17 = vld [vmem:[%s2758_s26 + $0x798] sm:$0xff]  ;;  %v318_v18 = vld [vmem:[%s2758_s26 + $0x7b0] sm:$0xff] }
  0x3e   : > { %315 = vst [vmem:[%s2763_s27 + $0x3c0] sm:$0xff] %v314_v16  ;;  %v320_v19 = vld [vmem:[%s2758_s26 + $0x7c8] sm:$0xff]  ;;  %317 = vst [vmem:[%s2763_s27 + $0x3cc] sm:$0xff] %v316_v17  ;;  %v322_v20 = vld [vmem:[%s2758_s26 + $0x7e0] sm:$0xff] }
  0x3f   : > { %319 = vst [vmem:[%s2763_s27 + $0x3d8] sm:$0xff] %v318_v18  ;;  %321 = vst [vmem:[%s2763_s27 + $0x3e4] sm:$0xff] %v320_v19  ;;  %v324_v21 = vld [vmem:[%s2758_s26 + $0x7f8] sm:$0xff]  ;;  %v326_v22 = vld [vmem:[%s2758_s26 + $0x810] sm:$0xff] }
  0x40   : > { %323 = vst [vmem:[%s2763_s27 + $0x3f0] sm:$0xff] %v322_v20  ;;  %325 = vst [vmem:[%s2763_s27 + $0x3fc] sm:$0xff] %v324_v21  ;;  %v328_v23 = vld [vmem:[%s2758_s26 + $0x828] sm:$0xff]  ;;  %v330_v24 = vld [vmem:[%s2758_s26 + $0x840] sm:$0xff] }
  0x41   : > { %327 = vst [vmem:[%s2763_s27 + $0x408] sm:$0xff] %v326_v22  ;;  %v332_v25 = vld [vmem:[%s2758_s26 + $0x858] sm:$0xff]  ;;  %329 = vst [vmem:[%s2763_s27 + $0x414] sm:$0xff] %v328_v23  ;;  %v334_v26 = vld [vmem:[%s2758_s26 + $0x870] sm:$0xff] }
  0x42   : > { %331 = vst [vmem:[%s2763_s27 + $0x420] sm:$0xff] %v330_v24  ;;  %333 = vst [vmem:[%s2763_s27 + $0x42c] sm:$0xff] %v332_v25  ;;  %v336_v27 = vld [vmem:[%s2758_s26 + $0x888] sm:$0xff]  ;;  %v338_v28 = vld [vmem:[%s2758_s26 + $0x8a0] sm:$0xff] }
  0x43   : > { %335 = vst [vmem:[%s2763_s27 + $0x438] sm:$0xff] %v334_v26  ;;  %337 = vst [vmem:[%s2763_s27 + $0x444] sm:$0xff] %v336_v27  ;;  %v340_v29 = vld [vmem:[%s2758_s26 + $0x8b8] sm:$0xff]  ;;  %v342_v30 = vld [vmem:[%s2758_s26 + $0x8d0] sm:$0xff] }
  0x44   : > { %339 = vst [vmem:[%s2763_s27 + $0x450] sm:$0xff] %v338_v28  ;;  %v344_v31 = vld [vmem:[%s2758_s26 + $0x8e8] sm:$0xff]  ;;  %341 = vst [vmem:[%s2763_s27 + $0x45c] sm:$0xff] %v340_v29  ;;  %v2009_v33 = vld [vmem:[%s2758_s26 + $0x20] sm:$0xf] }
  0x45   : > { %343 = vst [vmem:[%s2763_s27 + $0x468] sm:$0xff] %v342_v30  ;;  %345 = vst [vmem:[%s2763_s27 + $0x474] sm:$0xff] %v344_v31  ;;  %v2007_v32 = vld [vmem:[%s2758_s26 + $0x8] sm:$0xf]  ;;  %v2011_v34 = vld [vmem:[%s2758_s26 + $0x38] sm:$0xf] }
  0x46   : > { %2008 = vst [vmem:[%s2763_s27 + $0x8] sm:$0xf] %v2007_v32  ;;  %2010 = vst [vmem:[%s2763_s27 + $0x14] sm:$0xf] %v2009_v33  ;;  %v2013_v35 = vld [vmem:[%s2758_s26 + $0x50] sm:$0xf] }
  0x47   : > { %2012 = vst [vmem:[%s2763_s27 + $0x20] sm:$0xf] %v2011_v34  ;;  %v2015_v36 = vld [vmem:[%s2758_s26 + $0x68] sm:$0xf]  ;;  %v2017_v37 = vld [vmem:[%s2758_s26 + $0x80] sm:$0xf] }
  0x48   : > { %2014 = vst [vmem:[%s2763_s27 + $0x2c] sm:$0xf] %v2013_v35  ;;  %2016 = vst [vmem:[%s2763_s27 + $0x38] sm:$0xf] %v2015_v36  ;;  %v2019_v38 = vld [vmem:[%s2758_s26 + $0x98] sm:$0xf] }
  0x49   : > { %2018 = vst [vmem:[%s2763_s27 + $0x44] sm:$0xf] %v2017_v37  ;;  %v2021_v39 = vld [vmem:[%s2758_s26 + $0xb0] sm:$0xf]  ;;  %v2023_v40 = vld [vmem:[%s2758_s26 + $0xc8] sm:$0xf] }
  0x4a   : > { %2020 = vst [vmem:[%s2763_s27 + $0x50] sm:$0xf] %v2019_v38  ;;  %2022 = vst [vmem:[%s2763_s27 + $0x5c] sm:$0xf] %v2021_v39  ;;  %v2025_v41 = vld [vmem:[%s2758_s26 + $0xe0] sm:$0xf] }
  0x4b   : > { %2024 = vst [vmem:[%s2763_s27 + $0x68] sm:$0xf] %v2023_v40  ;;  %v2027_v42 = vld [vmem:[%s2758_s26 + $0xf8] sm:$0xf]  ;;  %v2029_v43 = vld [vmem:[%s2758_s26 + $0x110] sm:$0xf] }
  0x4c   : > { %2026 = vst [vmem:[%s2763_s27 + $0x74] sm:$0xf] %v2025_v41  ;;  %2028 = vst [vmem:[%s2763_s27 + $0x80] sm:$0xf] %v2027_v42  ;;  %v2031_v44 = vld [vmem:[%s2758_s26 + $0x128] sm:$0xf] }
  0x4d   : > { %2030 = vst [vmem:[%s2763_s27 + $0x8c] sm:$0xf] %v2029_v43  ;;  %v2033_v45 = vld [vmem:[%s2758_s26 + $0x140] sm:$0xf]  ;;  %v2035_v46 = vld [vmem:[%s2758_s26 + $0x158] sm:$0xf] }
  0x4e   : > { %2032 = vst [vmem:[%s2763_s27 + $0x98] sm:$0xf] %v2031_v44  ;;  %2034 = vst [vmem:[%s2763_s27 + $0xa4] sm:$0xf] %v2033_v45  ;;  %v2037_v47 = vld [vmem:[%s2758_s26 + $0x170] sm:$0xf] }
  0x4f   : > { %2036 = vst [vmem:[%s2763_s27 + $0xb0] sm:$0xf] %v2035_v46  ;;  %v2039_v48 = vld [vmem:[%s2758_s26 + $0x188] sm:$0xf]  ;;  %v2041_v49 = vld [vmem:[%s2758_s26 + $0x1a0] sm:$0xf] }
  0x50   : > { %2038 = vst [vmem:[%s2763_s27 + $0xbc] sm:$0xf] %v2037_v47  ;;  %2040 = vst [vmem:[%s2763_s27 + $0xc8] sm:$0xf] %v2039_v48  ;;  %v2043_v50 = vld [vmem:[%s2758_s26 + $0x1b8] sm:$0xf] }
  0x51   : > { %2042 = vst [vmem:[%s2763_s27 + $0xd4] sm:$0xf] %v2041_v49  ;;  %v2045_v51 = vld [vmem:[%s2758_s26 + $0x1d0] sm:$0xf]  ;;  %v2047_v52 = vld [vmem:[%s2758_s26 + $0x1e8] sm:$0xf] }
  0x52   : > { %2044 = vst [vmem:[%s2763_s27 + $0xe0] sm:$0xf] %v2043_v50  ;;  %2046 = vst [vmem:[%s2763_s27 + $0xec] sm:$0xf] %v2045_v51  ;;  %v2049_v53 = vld [vmem:[%s2758_s26 + $0x200] sm:$0xf] }
  0x53   : > { %2048 = vst [vmem:[%s2763_s27 + $0xf8] sm:$0xf] %v2047_v52  ;;  %v2051_v54 = vld [vmem:[%s2758_s26 + $0x218] sm:$0xf]  ;;  %v2053_v55 = vld [vmem:[%s2758_s26 + $0x230] sm:$0xf] }
  0x54   : > { %2050 = vst [vmem:[%s2763_s27 + $0x104] sm:$0xf] %v2049_v53  ;;  %2052 = vst [vmem:[%s2763_s27 + $0x110] sm:$0xf] %v2051_v54  ;;  %v2055_v56 = vld [vmem:[%s2758_s26 + $0x248] sm:$0xf] }
  0x55   : > { %2054 = vst [vmem:[%s2763_s27 + $0x11c] sm:$0xf] %v2053_v55  ;;  %v2057_v57 = vld [vmem:[%s2758_s26 + $0x260] sm:$0xf]  ;;  %v2059_v58 = vld [vmem:[%s2758_s26 + $0x278] sm:$0xf] }
  0x56   : > { %2056 = vst [vmem:[%s2763_s27 + $0x128] sm:$0xf] %v2055_v56  ;;  %2058 = vst [vmem:[%s2763_s27 + $0x134] sm:$0xf] %v2057_v57  ;;  %v2061_v59 = vld [vmem:[%s2758_s26 + $0x290] sm:$0xf] }
  0x57   : > { %2060 = vst [vmem:[%s2763_s27 + $0x140] sm:$0xf] %v2059_v58  ;;  %v2063_v60 = vld [vmem:[%s2758_s26 + $0x2a8] sm:$0xf]  ;;  %v2065_v61 = vld [vmem:[%s2758_s26 + $0x2c0] sm:$0xf] }
  0x58   : > { %2062 = vst [vmem:[%s2763_s27 + $0x14c] sm:$0xf] %v2061_v59  ;;  %2064 = vst [vmem:[%s2763_s27 + $0x158] sm:$0xf] %v2063_v60  ;;  %v2067_v62 = vld [vmem:[%s2758_s26 + $0x2d8] sm:$0xf] }
  0x59   : > { %2066 = vst [vmem:[%s2763_s27 + $0x164] sm:$0xf] %v2065_v61  ;;  %v2069_v63 = vld [vmem:[%s2758_s26 + $0x2f0] sm:$0xf]  ;;  %v2071_v0 = vld [vmem:[%s2758_s26 + $0x308] sm:$0xf] }
  0x5a   : > { %2068 = vst [vmem:[%s2763_s27 + $0x170] sm:$0xf] %v2067_v62  ;;  %2070 = vst [vmem:[%s2763_s27 + $0x17c] sm:$0xf] %v2069_v63  ;;  %v2073_v1 = vld [vmem:[%s2758_s26 + $0x320] sm:$0xf] }
  0x5b   : > { %2072 = vst [vmem:[%s2763_s27 + $0x188] sm:$0xf] %v2071_v0  ;;  %v2075_v2 = vld [vmem:[%s2758_s26 + $0x338] sm:$0xf]  ;;  %v2077_v3 = vld [vmem:[%s2758_s26 + $0x350] sm:$0xf] }
  0x5c   : > { %2074 = vst [vmem:[%s2763_s27 + $0x194] sm:$0xf] %v2073_v1  ;;  %2076 = vst [vmem:[%s2763_s27 + $0x1a0] sm:$0xf] %v2075_v2  ;;  %v2079_v4 = vld [vmem:[%s2758_s26 + $0x368] sm:$0xf] }
  0x5d   : > { %2078 = vst [vmem:[%s2763_s27 + $0x1ac] sm:$0xf] %v2077_v3  ;;  %v2081_v5 = vld [vmem:[%s2758_s26 + $0x380] sm:$0xf]  ;;  %v2083_v6 = vld [vmem:[%s2758_s26 + $0x398] sm:$0xf] }
  0x5e   : > { %2080 = vst [vmem:[%s2763_s27 + $0x1b8] sm:$0xf] %v2079_v4  ;;  %2082 = vst [vmem:[%s2763_s27 + $0x1c4] sm:$0xf] %v2081_v5  ;;  %v2085_v7 = vld [vmem:[%s2758_s26 + $0x3b0] sm:$0xf] }
  0x5f   : > { %2084 = vst [vmem:[%s2763_s27 + $0x1d0] sm:$0xf] %v2083_v6  ;;  %v2087_v8 = vld [vmem:[%s2758_s26 + $0x3c8] sm:$0xf]  ;;  %v2089_v9 = vld [vmem:[%s2758_s26 + $0x3e0] sm:$0xf] }
  0x60   : > { %2086 = vst [vmem:[%s2763_s27 + $0x1dc] sm:$0xf] %v2085_v7  ;;  %2088 = vst [vmem:[%s2763_s27 + $0x1e8] sm:$0xf] %v2087_v8  ;;  %v2091_v10 = vld [vmem:[%s2758_s26 + $0x3f8] sm:$0xf] }
  0x61   : > { %2090 = vst [vmem:[%s2763_s27 + $0x1f4] sm:$0xf] %v2089_v9  ;;  %v2093_v11 = vld [vmem:[%s2758_s26 + $0x410] sm:$0xf]  ;;  %v2095_v12 = vld [vmem:[%s2758_s26 + $0x428] sm:$0xf] }
  0x62   : > { %2092 = vst [vmem:[%s2763_s27 + $0x200] sm:$0xf] %v2091_v10  ;;  %2094 = vst [vmem:[%s2763_s27 + $0x20c] sm:$0xf] %v2093_v11  ;;  %v2097_v13 = vld [vmem:[%s2758_s26 + $0x440] sm:$0xf] }
  0x63   : > { %2096 = vst [vmem:[%s2763_s27 + $0x218] sm:$0xf] %v2095_v12  ;;  %v2099_v14 = vld [vmem:[%s2758_s26 + $0x458] sm:$0xf]  ;;  %v2101_v15 = vld [vmem:[%s2758_s26 + $0x470] sm:$0xf] }
  0x64   : > { %2098 = vst [vmem:[%s2763_s27 + $0x224] sm:$0xf] %v2097_v13  ;;  %2100 = vst [vmem:[%s2763_s27 + $0x230] sm:$0xf] %v2099_v14  ;;  %v2103_v16 = vld [vmem:[%s2758_s26 + $0x488] sm:$0xf] }
  0x65   : > { %2102 = vst [vmem:[%s2763_s27 + $0x23c] sm:$0xf] %v2101_v15  ;;  %v2105_v17 = vld [vmem:[%s2758_s26 + $0x4a0] sm:$0xf]  ;;  %v2107_v18 = vld [vmem:[%s2758_s26 + $0x4b8] sm:$0xf] }
  0x66   : > { %2104 = vst [vmem:[%s2763_s27 + $0x248] sm:$0xf] %v2103_v16  ;;  %2106 = vst [vmem:[%s2763_s27 + $0x254] sm:$0xf] %v2105_v17  ;;  %v2109_v19 = vld [vmem:[%s2758_s26 + $0x4d0] sm:$0xf] }
  0x67   : > { %2108 = vst [vmem:[%s2763_s27 + $0x260] sm:$0xf] %v2107_v18  ;;  %v2111_v20 = vld [vmem:[%s2758_s26 + $0x4e8] sm:$0xf]  ;;  %v2113_v21 = vld [vmem:[%s2758_s26 + $0x500] sm:$0xf] }
  0x68   : > { %2110 = vst [vmem:[%s2763_s27 + $0x26c] sm:$0xf] %v2109_v19  ;;  %2112 = vst [vmem:[%s2763_s27 + $0x278] sm:$0xf] %v2111_v20  ;;  %v2115_v22 = vld [vmem:[%s2758_s26 + $0x518] sm:$0xf] }
  0x69   : > { %2114 = vst [vmem:[%s2763_s27 + $0x284] sm:$0xf] %v2113_v21  ;;  %v2117_v23 = vld [vmem:[%s2758_s26 + $0x530] sm:$0xf]  ;;  %v2119_v24 = vld [vmem:[%s2758_s26 + $0x548] sm:$0xf] }
  0x6a   : > { %2116 = vst [vmem:[%s2763_s27 + $0x290] sm:$0xf] %v2115_v22  ;;  %2118 = vst [vmem:[%s2763_s27 + $0x29c] sm:$0xf] %v2117_v23  ;;  %v2121_v25 = vld [vmem:[%s2758_s26 + $0x560] sm:$0xf] }
  0x6b   : > { %2120 = vst [vmem:[%s2763_s27 + $0x2a8] sm:$0xf] %v2119_v24  ;;  %v2123_v26 = vld [vmem:[%s2758_s26 + $0x578] sm:$0xf]  ;;  %v2125_v27 = vld [vmem:[%s2758_s26 + $0x590] sm:$0xf] }
  0x6c   : > { %2122 = vst [vmem:[%s2763_s27 + $0x2b4] sm:$0xf] %v2121_v25  ;;  %2124 = vst [vmem:[%s2763_s27 + $0x2c0] sm:$0xf] %v2123_v26  ;;  %v2127_v28 = vld [vmem:[%s2758_s26 + $0x5a8] sm:$0xf] }
  0x6d   : > { %2126 = vst [vmem:[%s2763_s27 + $0x2cc] sm:$0xf] %v2125_v27  ;;  %v2129_v29 = vld [vmem:[%s2758_s26 + $0x5c0] sm:$0xf]  ;;  %v2131_v30 = vld [vmem:[%s2758_s26 + $0x5d8] sm:$0xf] }
  0x6e   : > { %2128 = vst [vmem:[%s2763_s27 + $0x2d8] sm:$0xf] %v2127_v28  ;;  %2130 = vst [vmem:[%s2763_s27 + $0x2e4] sm:$0xf] %v2129_v29  ;;  %v2133_v31 = vld [vmem:[%s2758_s26 + $0x5f0] sm:$0xf] }
  0x6f   : > { %2132 = vst [vmem:[%s2763_s27 + $0x2f0] sm:$0xf] %v2131_v30  ;;  %v2135_v32 = vld [vmem:[%s2758_s26 + $0x608] sm:$0xf]  ;;  %v2137_v33 = vld [vmem:[%s2758_s26 + $0x620] sm:$0xf] }
  0x70   : > { %2134 = vst [vmem:[%s2763_s27 + $0x2fc] sm:$0xf] %v2133_v31  ;;  %2136 = vst [vmem:[%s2763_s27 + $0x308] sm:$0xf] %v2135_v32  ;;  %v2139_v34 = vld [vmem:[%s2758_s26 + $0x638] sm:$0xf] }
  0x71   : > { %2138 = vst [vmem:[%s2763_s27 + $0x314] sm:$0xf] %v2137_v33  ;;  %v2141_v35 = vld [vmem:[%s2758_s26 + $0x650] sm:$0xf]  ;;  %v2143_v36 = vld [vmem:[%s2758_s26 + $0x668] sm:$0xf] }
  0x72   : > { %2140 = vst [vmem:[%s2763_s27 + $0x320] sm:$0xf] %v2139_v34  ;;  %2142 = vst [vmem:[%s2763_s27 + $0x32c] sm:$0xf] %v2141_v35  ;;  %v2145_v37 = vld [vmem:[%s2758_s26 + $0x680] sm:$0xf] }
  0x73   : > { %2144 = vst [vmem:[%s2763_s27 + $0x338] sm:$0xf] %v2143_v36  ;;  %v2147_v38 = vld [vmem:[%s2758_s26 + $0x698] sm:$0xf]  ;;  %v2149_v39 = vld [vmem:[%s2758_s26 + $0x6b0] sm:$0xf] }
  0x74   : > { %2146 = vst [vmem:[%s2763_s27 + $0x344] sm:$0xf] %v2145_v37  ;;  %2148 = vst [vmem:[%s2763_s27 + $0x350] sm:$0xf] %v2147_v38  ;;  %v2151_v40 = vld [vmem:[%s2758_s26 + $0x6c8] sm:$0xf] }
  0x75   : > { %2150 = vst [vmem:[%s2763_s27 + $0x35c] sm:$0xf] %v2149_v39  ;;  %v2153_v41 = vld [vmem:[%s2758_s26 + $0x6e0] sm:$0xf]  ;;  %v2155_v42 = vld [vmem:[%s2758_s26 + $0x6f8] sm:$0xf] }
  0x76   : > { %2152 = vst [vmem:[%s2763_s27 + $0x368] sm:$0xf] %v2151_v40  ;;  %2154 = vst [vmem:[%s2763_s27 + $0x374] sm:$0xf] %v2153_v41  ;;  %v2157_v43 = vld [vmem:[%s2758_s26 + $0x710] sm:$0xf] }
  0x77   : > { %2156 = vst [vmem:[%s2763_s27 + $0x380] sm:$0xf] %v2155_v42  ;;  %v2159_v44 = vld [vmem:[%s2758_s26 + $0x728] sm:$0xf]  ;;  %v2161_v45 = vld [vmem:[%s2758_s26 + $0x740] sm:$0xf] }
  0x78   : > { %2158 = vst [vmem:[%s2763_s27 + $0x38c] sm:$0xf] %v2157_v43  ;;  %2160 = vst [vmem:[%s2763_s27 + $0x398] sm:$0xf] %v2159_v44  ;;  %v2163_v46 = vld [vmem:[%s2758_s26 + $0x758] sm:$0xf] }
  0x79   : > { %2162 = vst [vmem:[%s2763_s27 + $0x3a4] sm:$0xf] %v2161_v45  ;;  %v2165_v47 = vld [vmem:[%s2758_s26 + $0x770] sm:$0xf]  ;;  %v2167_v48 = vld [vmem:[%s2758_s26 + $0x788] sm:$0xf] }
  0x7a   : > { %2164 = vst [vmem:[%s2763_s27 + $0x3b0] sm:$0xf] %v2163_v46  ;;  %2166 = vst [vmem:[%s2763_s27 + $0x3bc] sm:$0xf] %v2165_v47  ;;  %v2169_v49 = vld [vmem:[%s2758_s26 + $0x7a0] sm:$0xf] }
  0x7b   : > { %2168 = vst [vmem:[%s2763_s27 + $0x3c8] sm:$0xf] %v2167_v48  ;;  %v2171_v50 = vld [vmem:[%s2758_s26 + $0x7b8] sm:$0xf]  ;;  %v2173_v51 = vld [vmem:[%s2758_s26 + $0x7d0] sm:$0xf] }
  0x7c   : > { %2170 = vst [vmem:[%s2763_s27 + $0x3d4] sm:$0xf] %v2169_v49  ;;  %2172 = vst [vmem:[%s2763_s27 + $0x3e0] sm:$0xf] %v2171_v50  ;;  %v2175_v52 = vld [vmem:[%s2758_s26 + $0x7e8] sm:$0xf] }
  0x7d   : > { %2174 = vst [vmem:[%s2763_s27 + $0x3ec] sm:$0xf] %v2173_v51  ;;  %v2177_v53 = vld [vmem:[%s2758_s26 + $0x800] sm:$0xf]  ;;  %v2179_v54 = vld [vmem:[%s2758_s26 + $0x818] sm:$0xf] }
  0x7e   : > { %2176 = vst [vmem:[%s2763_s27 + $0x3f8] sm:$0xf] %v2175_v52  ;;  %2178 = vst [vmem:[%s2763_s27 + $0x404] sm:$0xf] %v2177_v53  ;;  %v2181_v55 = vld [vmem:[%s2758_s26 + $0x830] sm:$0xf] }
  0x7f   : > { %2180 = vst [vmem:[%s2763_s27 + $0x410] sm:$0xf] %v2179_v54  ;;  %v2183_v56 = vld [vmem:[%s2758_s26 + $0x848] sm:$0xf]  ;;  %v2185_v57 = vld [vmem:[%s2758_s26 + $0x860] sm:$0xf] }
  0x80   : > { %2182 = vst [vmem:[%s2763_s27 + $0x41c] sm:$0xf] %v2181_v55  ;;  %2184 = vst [vmem:[%s2763_s27 + $0x428] sm:$0xf] %v2183_v56  ;;  %v2187_v58 = vld [vmem:[%s2758_s26 + $0x878] sm:$0xf] }
  0x81   : > { %2186 = vst [vmem:[%s2763_s27 + $0x434] sm:$0xf] %v2185_v57  ;;  %v2189_v59 = vld [vmem:[%s2758_s26 + $0x890] sm:$0xf]  ;;  %v2191_v60 = vld [vmem:[%s2758_s26 + $0x8a8] sm:$0xf] }
  0x82   : > { %2188 = vst [vmem:[%s2763_s27 + $0x440] sm:$0xf] %v2187_v58  ;;  %2190 = vst [vmem:[%s2763_s27 + $0x44c] sm:$0xf] %v2189_v59  ;;  %v2193_v61 = vld [vmem:[%s2758_s26 + $0x8c0] sm:$0xf] }
  0x83   : > { %2192 = vst [vmem:[%s2763_s27 + $0x458] sm:$0xf] %v2191_v60  ;;  %v2195_v62 = vld [vmem:[%s2758_s26 + $0x8d8] sm:$0xf]  ;;  %v2197_v63 = vld [vmem:[%s2758_s26 + $0x8f0] sm:$0xf] }
  0x84   : > { %2194 = vst [vmem:[%s2763_s27 + $0x464] sm:$0xf] %v2193_v61  ;;  %2196 = vst [vmem:[%s2763_s27 + $0x470] sm:$0xf] %v2195_v62 }
  0x85   : > { %2198 = vst [vmem:[%s2763_s27 + $0x47c] sm:$0xf] %v2197_v63 }
  0x86 PF: > { %p2199_p7 = scmp.ge.s32.totalorder %s2695_s14, 1  ;;  %p557_p8 = scmp.lt.s32.totalorder %s2695_s14, 3 }
  0x88   : > { %p558_p9 = pnand %p2199_p7, %p557_p8 }
  0x89   : > { %s564_s28 = sand.u32 (!%p558_p9), 1, %s2687_s12   ;;  %v3154_v0 = vld [vmem:[%s3357_s0 + $0x4] ss:$24 sps:$4 sm:$0xff] (!%p558_p9)   ;;  %s591_s22 = smul.u32 (!%p558_p9), 3, %s2733_s15 }
  0x8a   : > { %561 = sbr.rel (%p558_p9) target bundleno = 533 (0x215), region = 54  ;;  %v3159_v1 = vld [vmem:[%s3357_s0 + $0xc] ss:$24 sps:$4 sm:$0xff] (!%p558_p9)   ;;  %1643 = vmatprep.mubr.bf16.mxu1 (!%p558_p9), %v3154_v0 }
  0x8b   : > { %s2446_s29 = smul.u32 (!%p558_p9), 1152, %s564_s28  ;;  %1686 = vmatprep.mubr.bf16.mxu0 (!%p558_p9), %v3159_v1  ;;  %p592_p10 = scmp.lt.s32.totalorder (!%p558_p9), %s591_s22, 5 }
  0x8c   : > { %s2447_s26 = smul.u32 (!%p558_p9), 24, %s564_s28 }
  0x8d   : > { %s3162_s7 = scalar_lea.vmem (!%p558_p9), [#allocation2], %s2446_s29 }
  0x8e   : > { %v2472_v2 = vld [vmem:[%s3162_s7 + $0x4] ss:$12 sps:$4 sm:$0xff] (!%p558_p9)   ;;  %v2476_v4 = vld [vmem:[%s3162_s7] ss:$12 sps:$4 sm:$0xff] (!%p558_p9)   ;;  %v2478_v6 = vld [vmem:[%s3162_s7 + $0x1c] ss:$12 sps:$4 sm:$0xff] (!%p558_p9)  }
  0x8f   : > { %v2474_v3 = vld [vmem:[%s3162_s7 + $0x184] ss:$12 sps:$4 sm:$0xff] (!%p558_p9)   ;;  %1611 = vmatprep.subr.bf16.mxu1 (!%p558_p9), %v2472_v2  ;;  %v2477_v5 = vld [vmem:[%s3162_s7 + $0x180] ss:$12 sps:$4 sm:$0xff] (!%p558_p9)   ;;  %v2480_v7 = vld [vmem:[%s3162_s7 + $0x19c] ss:$12 sps:$4 sm:$0xff] (!%p558_p9)  }
  0x90   : > { %1654 = vmatprep.subr.bf16.mxu0 (!%p558_p9), %v2474_v3  ;;  %1612 = vmatpush1.bf16.msra.mxu1 (!%p558_p9), %v2476_v4  ;;  %v2482_v8 = vld [vmem:[%s3162_s7 + $0x18] ss:$12 sps:$4 sm:$0xff] (!%p558_p9)   ;;  %v2484_v10 = vld [vmem:[%s3162_s7 + $0x34] ss:$12 sps:$4 sm:$0xff] (!%p558_p9)   ;;  %v2488_v12 = vld [vmem:[%s3162_s7 + $0x30] ss:$12 sps:$4 sm:$0xff] (!%p558_p9)  }
  0x91   : > { %1655 = vmatpush1.bf16.msra.mxu0 %v2477_v5  ;;  %1613 = vmatprep.subr.bf16.mxu1 %v2478_v6  ;;  %v2483_v9 = vld [vmem:[%s3162_s7 + $0x198] ss:$12 sps:$4 sm:$0xff]   ;;  %v2486_v11 = vld [vmem:[%s3162_s7 + $0x1b4] ss:$12 sps:$4 sm:$0xff]   ;;  %v2489_v13 = vld [vmem:[%s3162_s7 + $0x1b0] ss:$12 sps:$4 sm:$0xff]  }
  0x92   : > { %1656 = vmatprep.subr.bf16.mxu0 %v2480_v7  ;;  %v2490_v14 = vld [vmem:[%s3162_s7 + $0x4c] ss:$12 sps:$4 sm:$0xff]   ;;  %v2494_v16 = vld [vmem:[%s3162_s7 + $0x48] ss:$12 sps:$4 sm:$0xff]   ;;  %v2496_v18 = vld [vmem:[%s3162_s7 + $0x64] ss:$12 sps:$4 sm:$0xff]  }
  0x93   : > { %v2492_v15 = vld [vmem:[%s3162_s7 + $0x1cc] ss:$12 sps:$4 sm:$0xff]   ;;  %v2495_v17 = vld [vmem:[%s3162_s7 + $0x1c8] ss:$12 sps:$4 sm:$0xff]   ;;  %v2498_v19 = vld [vmem:[%s3162_s7 + $0x1e4] ss:$12 sps:$4 sm:$0xff]  }
  0x94   : > { %1614 = vmatpush1.bf16.msra.mxu1 %v2482_v8  ;;  %v2500_v20 = vld [vmem:[%s3162_s7 + $0x60] ss:$12 sps:$4 sm:$0xff]   ;;  %v2502_v22 = vld [vmem:[%s3162_s7 + $0x7c] ss:$12 sps:$4 sm:$0xff]   ;;  %v2506_v24 = vld [vmem:[%s3162_s7 + $0x78] ss:$12 sps:$4 sm:$0xff]  }
  0x95   : > { %1657 = vmatpush1.bf16.msra.mxu0 %v2483_v9  ;;  %1615 = vmatprep.subr.bf16.mxu1 %v2484_v10  ;;  %v2501_v21 = vld [vmem:[%s3162_s7 + $0x1e0] ss:$12 sps:$4 sm:$0xff]   ;;  %v2504_v23 = vld [vmem:[%s3162_s7 + $0x1fc] ss:$12 sps:$4 sm:$0xff]   ;;  %v2507_v25 = vld [vmem:[%s3162_s7 + $0x1f8] ss:$12 sps:$4 sm:$0xff]  }
  0x96   : > { %1658 = vmatprep.subr.bf16.mxu0 %v2486_v11  ;;  %v2508_v26 = vld [vmem:[%s3162_s7 + $0x94] ss:$12 sps:$4 sm:$0xff]   ;;  %v2512_v28 = vld [vmem:[%s3162_s7 + $0x90] ss:$12 sps:$4 sm:$0xff]   ;;  %v2514_v30 = vld [vmem:[%s3162_s7 + $0xac] ss:$12 sps:$4 sm:$0xff]  }
  0x97   : > { %v2510_v27 = vld [vmem:[%s3162_s7 + $0x214] ss:$12 sps:$4 sm:$0xff]   ;;  %v2513_v29 = vld [vmem:[%s3162_s7 + $0x210] ss:$12 sps:$4 sm:$0xff]   ;;  %v2516_v31 = vld [vmem:[%s3162_s7 + $0x22c] ss:$12 sps:$4 sm:$0xff]  }
  0x98   : > { %1616 = vmatpush1.bf16.msra.mxu1 %v2488_v12  ;;  %v2518_v32 = vld [vmem:[%s3162_s7 + $0xa8] ss:$12 sps:$4 sm:$0xff]   ;;  %v2520_v34 = vld [vmem:[%s3162_s7 + $0xc4] ss:$12 sps:$4 sm:$0xff]   ;;  %v2524_v36 = vld [vmem:[%s3162_s7 + $0xc0] ss:$12 sps:$4 sm:$0xff]  }
  0x99   : > { %1659 = vmatpush1.bf16.msra.mxu0 %v2489_v13  ;;  %1617 = vmatprep.subr.bf16.mxu1 %v2490_v14  ;;  %v2519_v33 = vld [vmem:[%s3162_s7 + $0x228] ss:$12 sps:$4 sm:$0xff]   ;;  %v2522_v35 = vld [vmem:[%s3162_s7 + $0x244] ss:$12 sps:$4 sm:$0xff]   ;;  %v2525_v37 = vld [vmem:[%s3162_s7 + $0x240] ss:$12 sps:$4 sm:$0xff]  }
  0x9a   : > { %1660 = vmatprep.subr.bf16.mxu0 %v2492_v15  ;;  %v2526_v38 = vld [vmem:[%s3162_s7 + $0xdc] ss:$12 sps:$4 sm:$0xff]   ;;  %v2530_v40 = vld [vmem:[%s3162_s7 + $0xd8] ss:$12 sps:$4 sm:$0xff]   ;;  %v2532_v42 = vld [vmem:[%s3162_s7 + $0xf4] ss:$12 sps:$4 sm:$0xff]  }
  0x9b   : > { %v2528_v39 = vld [vmem:[%s3162_s7 + $0x25c] ss:$12 sps:$4 sm:$0xff]   ;;  %v2531_v41 = vld [vmem:[%s3162_s7 + $0x258] ss:$12 sps:$4 sm:$0xff]   ;;  %v2534_v43 = vld [vmem:[%s3162_s7 + $0x274] ss:$12 sps:$4 sm:$0xff]  }
  0x9c   : > { %1618 = vmatpush1.bf16.msra.mxu1 %v2494_v16  ;;  %v2536_v44 = vld [vmem:[%s3162_s7 + $0xf0] ss:$12 sps:$4 sm:$0xff]   ;;  %v2538_v46 = vld [vmem:[%s3162_s7 + $0x10c] ss:$12 sps:$4 sm:$0xff]   ;;  %v2542_v48 = vld [vmem:[%s3162_s7 + $0x108] ss:$12 sps:$4 sm:$0xff]  }
  0x9d   : > { %1661 = vmatpush1.bf16.msra.mxu0 %v2495_v17  ;;  %1619 = vmatprep.subr.bf16.mxu1 %v2496_v18  ;;  %v2537_v45 = vld [vmem:[%s3162_s7 + $0x270] ss:$12 sps:$4 sm:$0xff]   ;;  %v2540_v47 = vld [vmem:[%s3162_s7 + $0x28c] ss:$12 sps:$4 sm:$0xff]   ;;  %v2543_v49 = vld [vmem:[%s3162_s7 + $0x288] ss:$12 sps:$4 sm:$0xff]  }
  0x9e   : > { %1662 = vmatprep.subr.bf16.mxu0 %v2498_v19  ;;  %v2544_v50 = vld [vmem:[%s3162_s7 + $0x124] ss:$12 sps:$4 sm:$0xff]   ;;  %v2548_v52 = vld [vmem:[%s3162_s7 + $0x120] ss:$12 sps:$4 sm:$0xff]   ;;  %v2550_v54 = vld [vmem:[%s3162_s7 + $0x13c] ss:$12 sps:$4 sm:$0xff]  }
  0x9f   : > { %v2546_v51 = vld [vmem:[%s3162_s7 + $0x2a4] ss:$12 sps:$4 sm:$0xff]   ;;  %v2549_v53 = vld [vmem:[%s3162_s7 + $0x2a0] ss:$12 sps:$4 sm:$0xff]   ;;  %v2552_v55 = vld [vmem:[%s3162_s7 + $0x2bc] ss:$12 sps:$4 sm:$0xff]  }
  0xa0   : > { %1620 = vmatpush1.bf16.msra.mxu1 %v2500_v20  ;;  %v2554_v56 = vld [vmem:[%s3162_s7 + $0x138] ss:$12 sps:$4 sm:$0xff]   ;;  %v2556_v58 = vld [vmem:[%s3162_s7 + $0x154] ss:$12 sps:$4 sm:$0xff]   ;;  %v2560_v60 = vld [vmem:[%s3162_s7 + $0x150] ss:$12 sps:$4 sm:$0xff]  }
  0xa1   : > { %1663 = vmatpush1.bf16.msra.mxu0 %v2501_v21  ;;  %1621 = vmatprep.subr.bf16.mxu1 %v2502_v22  ;;  %v2555_v57 = vld [vmem:[%s3162_s7 + $0x2b8] ss:$12 sps:$4 sm:$0xff]   ;;  %v2558_v59 = vld [vmem:[%s3162_s7 + $0x2d4] ss:$12 sps:$4 sm:$0xff]   ;;  %v2561_v61 = vld [vmem:[%s3162_s7 + $0x2d0] ss:$12 sps:$4 sm:$0xff]  }
  0xa2   : > { %1664 = vmatprep.subr.bf16.mxu0 %v2504_v23  ;;  %v2562_v62 = vld [vmem:[%s3162_s7 + $0x16c] ss:$12 sps:$4 sm:$0xff]   ;;  %v2566_v2 = vld [vmem:[%s3162_s7 + $0x168] ss:$12 sps:$4 sm:$0xff]   ;;  %v2576_v4 = vld [vmem:[%s3162_s7 + $0x304] ss:$12 sps:$4 sm:$0xff]  }
  0xa3   : > { %v2564_v63 = vld [vmem:[%s3162_s7 + $0x2ec] ss:$12 sps:$4 sm:$0xff]   ;;  %v2567_v3 = vld [vmem:[%s3162_s7 + $0x2e8] ss:$12 sps:$4 sm:$0xff]   ;;  %v2584_v16 = vld [vmem:[%s3162_s7 + $0x330] ss:$12 sps:$4 sm:$0xff]  }
  0xa4   : > { %1622 = vmatpush1.bf16.msra.mxu1 %v2506_v24  ;;  %v3233_v5 = vld [vmem:[%s3357_s0] ss:$24 sps:$4 sm:$0xff]   ;;  %v2577_v6 = vld [vmem:[%s3162_s7 + $0xc8] ss:$12 sps:$4 sm:$0xff]   ;;  %v2592_v19 = vld [vmem:[%s3162_s7 + $0x110] ss:$12 sps:$4 sm:$0xff]  }
  0xa5   : > { %1665 = vmatpush1.bf16.msra.mxu0 %v2507_v25  ;;  %1623 = vmatprep.subr.bf16.mxu1 %v2508_v26  ;;  %v3239_v7 = vld [vmem:[%s3357_s0 + $0x8] ss:$24 sps:$4 sm:$0xff]   ;;  %v2579_v12 = vld [vmem:[%s3162_s7 + $0x318] ss:$12 sps:$4 sm:$0xff]   ;;  %v2593_v21 = vld [vmem:[%s3162_s7 + $0x50] ss:$12 sps:$4 sm:$0xff]  }
  0xa6   : > { %1666 = vmatprep.subr.bf16.mxu0 %v2510_v27  ;;  %v2574_v8 = vld [vmem:[%s3162_s7 + $0x300] ss:$12 sps:$4 sm:$0xff]   ;;  %v2578_v9 = vld [vmem:[%s3162_s7 + $0x8] ss:$12 sps:$4 sm:$0xff]   ;;  %v2587_v15 = vld [vmem:[%s3162_s7 + $0xf8] ss:$12 sps:$4 sm:$0xff]  }
  0xa7   : > { %v2581_v10 = vld [vmem:[%s3162_s7 + $0x31c] ss:$12 sps:$4 sm:$0xff]   ;;  %v2582_v11 = vld [vmem:[%s3162_s7 + $0xe0] ss:$12 sps:$4 sm:$0xff]   ;;  %v2588_v17 = vld [vmem:[%s3162_s7 + $0x38] ss:$12 sps:$4 sm:$0xff]  }
  0xa8   : > { %1624 = vmatpush1.bf16.msra.mxu1 %v2512_v28  ;;  %v2583_v13 = vld [vmem:[%s3162_s7 + $0x20] ss:$12 sps:$4 sm:$0xff]   ;;  %v2589_v20 = vld [vmem:[%s3162_s7 + $0x348] ss:$12 sps:$4 sm:$0xff]   ;;  %v2599_v27 = vld [vmem:[%s3162_s7 + $0x378] ss:$12 sps:$4 sm:$0xff]  }
  0xa9   : > { %1667 = vmatpush1.bf16.msra.mxu0 %v2513_v29  ;;  %1625 = vmatprep.subr.bf16.mxu1 %v2514_v30  ;;  %v2586_v14 = vld [vmem:[%s3162_s7 + $0x334] ss:$12 sps:$4 sm:$0xff]   ;;  %v2591_v18 = vld [vmem:[%s3162_s7 + $0x34c] ss:$12 sps:$4 sm:$0xff]   ;;  %v2601_v25 = vld [vmem:[%s3162_s7 + $0x37c] ss:$12 sps:$4 sm:$0xff]  }
  0xaa   : > { %1668 = vmatprep.subr.bf16.mxu0 %v2516_v31  ;;  %v2597_v22 = vld [vmem:[%s3162_s7 + $0x128] ss:$12 sps:$4 sm:$0xff]   ;;  %v2594_v23 = vld [vmem:[%s3162_s7 + $0x360] ss:$12 sps:$4 sm:$0xff]   ;;  %v2607_v30 = vld [vmem:[%s3162_s7 + $0x158] ss:$12 sps:$4 sm:$0xff]  }
  0xab   : > { %v2598_v24 = vld [vmem:[%s3162_s7 + $0x68] ss:$12 sps:$4 sm:$0xff]   ;;  %v2602_v26 = vld [vmem:[%s3162_s7 + $0x140] ss:$12 sps:$4 sm:$0xff]   ;;  %v2604_v31 = vld [vmem:[%s3162_s7 + $0x390] ss:$12 sps:$4 sm:$0xff]  }
  0xac   : > { %1626 = vmatpush1.bf16.msra.mxu1 %v2518_v32  ;;  %v2603_v28 = vld [vmem:[%s3162_s7 + $0x80] ss:$12 sps:$4 sm:$0xff]   ;;  %v2608_v32 = vld [vmem:[%s3162_s7 + $0x98] ss:$12 sps:$4 sm:$0xff]   ;;  %s3366_s22 = smov (!%p592_p10, %s591_s22), 5  ;;  %s589_s12 = scalar_lea.vmem [#allocation3], %s2447_s26 }
  0xad   : > { %1669 = vmatpush1.bf16.msra.mxu0 %v2519_v33  ;;  %1627 = vmatprep.subr.bf16.mxu1 %v2520_v34  ;;  %v2606_v29 = vld [vmem:[%s3162_s7 + $0x394] ss:$12 sps:$4 sm:$0xff]   ;;  %v2611_v33 = vld [vmem:[%s3162_s7 + $0x3ac] ss:$12 sps:$4 sm:$0xff]   ;;  %v2612_v34 = vld [vmem:[%s3162_s7 + $0x170] ss:$12 sps:$4 sm:$0xff]   ;;  %s594_s25 = scalar_lea.vmem %s3359_s2, %s3366_s22 }
  0xae   : > { %1670 = vmatprep.subr.bf16.mxu0 %v2522_v35  ;;  %v2609_v35 = vld [vmem:[%s3162_s7 + $0x3a8] ss:$12 sps:$4 sm:$0xff]   ;;  %s2366_s27 = smul.u32 (%p2748_p5), 12, %s2733_s15 }
  0xb0   : > { %1628 = vmatpush1.bf16.msra.mxu1 %v2524_v36  ;;  %v2613_v36 = vld [vmem:[%s3162_s7 + $0xb0] ss:$12 sps:$4 sm:$0xff]   ;;  %s1896_s30 = scalar_lea.vmem (%p2748_p5), %s3360_s3, %s2366_s27 }
  0xb1   : > { %1671 = vmatpush1.bf16.msra.mxu0 %v2525_v37  ;;  %1629 = vmatprep.subr.bf16.mxu1 %v2526_v38  ;;  %v2616_v37 = vld [vmem:[%s3162_s7 + $0x3c4] ss:$12 sps:$4 sm:$0xff]   ;;  %v2617_v38 = vld [vmem:[%s3162_s7 + $0x248] ss:$12 sps:$4 sm:$0xff]  }
  0xb2   : > { %1672 = vmatprep.subr.bf16.mxu0 %v2528_v39  ;;  %v2614_v39 = vld [vmem:[%s3162_s7 + $0x3c0] ss:$12 sps:$4 sm:$0xff]  }
  0xb4   : > { %1630 = vmatpush1.bf16.msra.mxu1 %v2530_v40  ;;  %v2618_v40 = vld [vmem:[%s3162_s7 + $0x188] ss:$12 sps:$4 sm:$0xff]  }
  0xb5   : > { %1673 = vmatpush1.bf16.msra.mxu0 %v2531_v41  ;;  %1631 = vmatprep.subr.bf16.mxu1 %v2532_v42  ;;  %v2621_v41 = vld [vmem:[%s3162_s7 + $0x3dc] ss:$12 sps:$4 sm:$0xff]   ;;  %v3282_v42 = vld [vmem:[%s3357_s0 + $0x14] ss:$24 sps:$4 sm:$0xff]  }
  0xb6   : > { %1674 = vmatprep.subr.bf16.mxu0 %v2534_v43  ;;  %v2622_v43 = vld [vmem:[%s3162_s7 + $0x260] ss:$12 sps:$4 sm:$0xff]  }
  0xb8   : > { %1632 = vmatpush1.bf16.msra.mxu1 %v2536_v44  ;;  %v2619_v44 = vld [vmem:[%s3162_s7 + $0x3d8] ss:$12 sps:$4 sm:$0xff]  }
  0xb9   : > { %1675 = vmatpush1.bf16.msra.mxu0 %v2537_v45  ;;  %1633 = vmatprep.subr.bf16.mxu1 %v2538_v46  ;;  %v2623_v45 = vld [vmem:[%s3162_s7 + $0x1a0] ss:$12 sps:$4 sm:$0xff]  }
  0xba   : > { %1676 = vmatprep.subr.bf16.mxu0 %v2540_v47  ;;  %v2626_v46 = vld [vmem:[%s3162_s7 + $0x3f4] ss:$12 sps:$4 sm:$0xff]   ;;  %v2627_v47 = vld [vmem:[%s3162_s7 + $0x278] ss:$12 sps:$4 sm:$0xff]  }
  0xbc   : > { %1634 = vmatpush1.bf16.msra.mxu1 %v2542_v48  ;;  %v2624_v48 = vld [vmem:[%s3162_s7 + $0x3f0] ss:$12 sps:$4 sm:$0xff]  }
  0xbd   : > { %1677 = vmatpush1.bf16.msra.mxu0 %v2543_v49  ;;  %1635 = vmatprep.subr.bf16.mxu1 %v2544_v50  ;;  %v2628_v49 = vld [vmem:[%s3162_s7 + $0x1b8] ss:$12 sps:$4 sm:$0xff]  }
  0xbe   : > { %1678 = vmatprep.subr.bf16.mxu0 %v2546_v51  ;;  %v2631_v50 = vld [vmem:[%s3162_s7 + $0x40c] ss:$12 sps:$4 sm:$0xff]   ;;  %v2632_v51 = vld [vmem:[%s3162_s7 + $0x290] ss:$12 sps:$4 sm:$0xff]  }
  0xc0   : > { %1636 = vmatpush1.bf16.msra.mxu1 %v2548_v52  ;;  %v2629_v52 = vld [vmem:[%s3162_s7 + $0x408] ss:$12 sps:$4 sm:$0xff]  }
  0xc1   : > { %1679 = vmatpush1.bf16.msra.mxu0 %v2549_v53  ;;  %1637 = vmatprep.subr.bf16.mxu1 %v2550_v54  ;;  %v2633_v53 = vld [vmem:[%s3162_s7 + $0x1d0] ss:$12 sps:$4 sm:$0xff]  }
  0xc2   : > { %1680 = vmatprep.subr.bf16.mxu0 %v2552_v55  ;;  %v2636_v54 = vld [vmem:[%s3162_s7 + $0x424] ss:$12 sps:$4 sm:$0xff]   ;;  %v2634_v55 = vld [vmem:[%s3162_s7 + $0x420] ss:$12 sps:$4 sm:$0xff]  }
  0xc4   : > { %1638 = vmatpush1.bf16.msra.mxu1 %v2554_v56  ;;  %v2638_v56 = vld [vmem:[%s3162_s7 + $0x1e8] ss:$12 sps:$4 sm:$0xff]  }
  0xc5   : > { %1681 = vmatpush1.bf16.msra.mxu0 %v2555_v57  ;;  %1639 = vmatprep.subr.bf16.mxu1 %v2556_v58  ;;  %v2641_v57 = vld [vmem:[%s3162_s7 + $0x43c] ss:$12 sps:$4 sm:$0xff]   ;;  %v2642_v58 = vld [vmem:[%s3162_s7 + $0x2c0] ss:$12 sps:$4 sm:$0xff]  }
  0xc6   : > { %1682 = vmatprep.subr.bf16.mxu0 %v2558_v59  ;;  %v2639_v59 = vld [vmem:[%s3162_s7 + $0x438] ss:$12 sps:$4 sm:$0xff]  }
  0xc8   : > { %1640 = vmatpush1.bf16.msra.mxu1 %v2560_v60  ;;  %v2643_v60 = vld [vmem:[%s3162_s7 + $0x200] ss:$12 sps:$4 sm:$0xff]  }
  0xc9   : > { %1683 = vmatpush1.bf16.msra.mxu0 %v2561_v61  ;;  %1641 = vmatprep.subr.bf16.mxu1 %v2562_v62  ;;  %v2646_v61 = vld [vmem:[%s3162_s7 + $0x454] ss:$12 sps:$4 sm:$0xff]   ;;  %v2647_v62 = vld [vmem:[%s3162_s7 + $0x2d8] ss:$12 sps:$4 sm:$0xff]  }
  0xca   : > { %1684 = vmatprep.subr.bf16.mxu0 %v2564_v63  ;;  %v2644_v63 = vld [vmem:[%s3162_s7 + $0x450] ss:$12 sps:$4 sm:$0xff]  }
  0xcc   : > { %1642 = vmatpush1.bf16.msra.mxu1 %v2566_v2  ;;  %v2648_v2 = vld [vmem:[%s3162_s7 + $0x218] ss:$12 sps:$4 sm:$0xff]  }
  0xcd   : > { %1685 = vmatpush1.bf16.msra.mxu0 %v2567_v3  ;;  %2367 = vmatprep.subr.bf16.mxu1 %v2577_v6  ;;  %v2651_v3 = vld [vmem:[%s3162_s7 + $0x46c] ss:$12 sps:$4 sm:$0xff]   ;;  %v2653_v6 = vld [vmem:[%s3162_s7 + $0x230] ss:$12 sps:$4 sm:$0xff]  }
  0xce   : > { %1697 = vmatprep.subr.bf16.mxu0 %v2576_v4  ;;  %v2652_v4 = vld [vmem:[%s3162_s7 + $0x2f0] ss:$12 sps:$4 sm:$0xff]  }
  0xcf   : > { %1644 = vmatmul.mubr.bf16.vlgmr.msra.gmra.mrb[0].mxu1 %v3233_v5 }
  0xd0   : > { %1687 = vmatmul.mubr.bf16.vlgmr.msra.gmra.mrb[0].mxu0 %v3239_v7  ;;  %2368 = vmatpush3.bf16.msra.mxu1 %v2578_v9  ;;  %v2654_v9 = vld [vmem:[%s3357_s0 + $0x10] ss:$24 sps:$4 sm:$0xff]  }
  0xd1   : > { %1698 = vmatpush1.bf16.msra.mxu0 %v2574_v8  ;;  %2369 = vmatprep.subr.bf16.mxu1 %v2582_v11  ;;  %v2657_v8 = vld [vmem:[%s3162_s7 + $0x3c8] ss:$12 sps:$4 sm:$0xff]   ;;  %v2659_v11 = vld [vmem:[%s3162_s7 + $0x3e0] ss:$12 sps:$4 sm:$0xff]  }
  0xd2   : > { %1699 = vmatprep.subr.bf16.mxu0 %v2581_v10  ;;  %1772 = vmatprep.mubr.bf16.mxu1 %v3154_v0  ;;  %v2596_v0 = vld [vmem:[%s3162_s7 + $0x364] ss:$12 sps:$4 sm:$0xff]   ;;  %v2658_v10 = vld [vmem:[%s3162_s7 + $0x308] ss:$12 sps:$4 sm:$0xff]  }
  0xd3   : > { %1729 = vmatprep.mubr.bf16.mxu0 %v3282_v42 }
  0xd4   : > { %2370 = vmatpush3.bf16.msra.mxu1 %v2583_v13  ;;  %v2661_v13 = vld [vmem:[%s3162_s7 + $0x3f8] ss:$12 sps:$4 sm:$0xff]  }
  0xd5   : > { %1700 = vmatpush1.bf16.msra.mxu0 %v2579_v12  ;;  %2371 = vmatprep.subr.bf16.mxu1 %v2587_v15  ;;  %v2660_v12 = vld [vmem:[%s3162_s7 + $0x320] ss:$12 sps:$4 sm:$0xff]   ;;  %v2663_v15 = vld [vmem:[%s3162_s7 + $0x410] ss:$12 sps:$4 sm:$0xff]  }
  0xd6   : > { %1701 = vmatprep.subr.bf16.mxu0 %v2586_v14  ;;  %v2662_v14 = vld [vmem:[%s3162_s7 + $0x338] ss:$12 sps:$4 sm:$0xff]  }
  0xd8   : > { %2372 = vmatpush3.bf16.msra.mxu1 %v2588_v17  ;;  %v2666_v17 = vld [vmem:[%s3162_s7 + $0x368] ss:$12 sps:$4 sm:$0xff]  }
  0xd9   : > { %1702 = vmatpush1.bf16.msra.mxu0 %v2584_v16  ;;  %2373 = vmatprep.subr.bf16.mxu1 %v2592_v19  ;;  %v2664_v16 = vld [vmem:[%s3162_s7 + $0x350] ss:$12 sps:$4 sm:$0xff]   ;;  %v2668_v19 = vld [vmem:[%s3162_s7 + $0x380] ss:$12 sps:$4 sm:$0xff]  }
  0xda   : > { %1703 = vmatprep.subr.bf16.mxu0 %v2591_v18  ;;  %v2667_v18 = vld [vmem:[%s3162_s7 + $0x440] ss:$12 sps:$4 sm:$0xff]  }
  0xdc   : > { %2374 = vmatpush3.bf16.msra.mxu1 %v2593_v21  ;;  %v2670_v21 = vld [vmem:[%s3162_s7 + $0x398] ss:$12 sps:$4 sm:$0xff]  }
  0xdd   : > { %1704 = vmatpush1.bf16.msra.mxu0 %v2589_v20  ;;  %2375 = vmatprep.subr.bf16.mxu1 %v2597_v22  ;;  %v2669_v20 = vld [vmem:[%s3162_s7 + $0x458] ss:$12 sps:$4 sm:$0xff]   ;;  %v2672_v22 = vld [vmem:[%s3162_s7 + $0x3b0] ss:$12 sps:$4 sm:$0xff]  }
  0xde   : > { %1705 = vmatprep.subr.bf16.mxu0 %v2596_v0  ;;  %v2671_v0 = vld [vmem:[%s3162_s7 + $0x470] ss:$12 sps:$4 sm:$0xff]  }
  0xe0   : > { %2376 = vmatpush3.bf16.msra.mxu1 %v2598_v24 }
  0xe1   : > { %1706 = vmatpush1.bf16.msra.mxu0 %v2594_v23  ;;  %2377 = vmatprep.subr.bf16.mxu1 %v2602_v26 }
  0xe2   : > { %1707 = vmatprep.subr.bf16.mxu0 %v2601_v25 }
  0xe4   : > { %2378 = vmatpush3.bf16.msra.mxu1 %v2603_v28 }
  0xe5   : > { %1708 = vmatpush1.bf16.msra.mxu0 %v2599_v27  ;;  %2379 = vmatprep.subr.bf16.mxu1 %v2607_v30 }
  0xe6   : > { %1709 = vmatprep.subr.bf16.mxu0 %v2606_v29 }
  0xe8   : > { %2380 = vmatpush3.bf16.msra.mxu1 %v2608_v32 }
  0xe9   : > { %1710 = vmatpush1.bf16.msra.mxu0 %v2604_v31  ;;  %2381 = vmatprep.subr.bf16.mxu1 %v2612_v34 }
  0xea   : > { %1711 = vmatprep.subr.bf16.mxu0 %v2611_v33  ;;  %v798_v33 = vlaneseq }
  0xec   : > { %2382 = vmatpush3.bf16.msra.mxu1 %v2613_v36  ;;  %v799_v34 = vshrl.u32 %v798_v33, 7  ;;  %v796_v36 = vld [vmem:[%s594_s25] sm:$0x7] }
  0xed   : > { %1712 = vmatpush1.bf16.msra.mxu0 %v2609_v35  ;;  %2389 = vmatprep.subr.bf16.mxu1 %v2617_v38 }
  0xee   : > { %1713 = vmatprep.subr.bf16.mxu0 %v2616_v37  ;;  %v800_v35 = vsub.s32 0, %v799_v34  ;;  %v804_v37 = vsub.s32 1, %v799_v34  ;;  %v808_v38 = vsub.s32 2, %v799_v34 }
  0xef   : > { %1773 = vmatmul.mubr.bf16.vlgmr.msra.gmra.mrb[4].mxu1 %v3233_v5  ;;  %v2649_v5 = vld [vmem:[%s3162_s7 + $0x468] ss:$12 sps:$4 sm:$0xff]  }
  0xf0   : > { %2390 = vmatpush3.bf16.msra.mxu1 %v2618_v40  ;;  %1813 = vmatprep.mubr.bf16.mxu1 %v3159_v1  ;;  %v2637_v1 = vld [vmem:[%s3162_s7 + $0x2a8] ss:$12 sps:$4 sm:$0xff]   ;;  %v805_v40 = vrot.slane %v796_v36, %v804_v37 }
  0xf1   : > { %1714 = vmatpush1.bf16.msra.mxu0 %v2614_v39  ;;  %2391 = vmatprep.subr.bf16.mxu1 %v2622_v43  ;;  %v801_v39 = vrot.slane %v796_v36, %v800_v35 }
  0xf2   : > { %1715 = vmatprep.subr.bf16.mxu0 %v2621_v41  ;;  %v809_v41 = vrot.slane %v796_v36, %v808_v38 }
  0xf4   : > { %2392 = vmatpush3.bf16.msra.mxu1 %v2623_v45 }
  0xf5   : > { %1716 = vmatpush1.bf16.msra.mxu0 %v2619_v44  ;;  %2393 = vmatprep.subr.bf16.mxu1 %v2627_v47 }
  0xf6   : > { %1717 = vmatprep.subr.bf16.mxu0 %v2626_v46 }
  0xf8   : > { %2394 = vmatpush3.bf16.msra.mxu1 %v2628_v49 }
  0xf9   : > { %1718 = vmatpush1.bf16.msra.mxu0 %v2624_v48  ;;  %2395 = vmatprep.subr.bf16.mxu1 %v2632_v51 }
  0xfa   : > { %1719 = vmatprep.subr.bf16.mxu0 %v2631_v50 }
  0xfc   : > { %2396 = vmatpush3.bf16.msra.mxu1 %v2633_v53 }
  0xfd   : > { %1720 = vmatpush1.bf16.msra.mxu0 %v2629_v52  ;;  %2397 = vmatprep.subr.bf16.mxu1 %v2637_v1 }
  0xfe   : > { %1721 = vmatprep.subr.bf16.mxu0 %v2636_v54 }
 0x100   : > { %2398 = vmatpush3.bf16.msra.mxu1 %v2638_v56 }
 0x101   : > { %1722 = vmatpush1.bf16.msra.mxu0 %v2634_v55  ;;  %2399 = vmatprep.subr.bf16.mxu1 %v2642_v58 }
 0x102   : > { %1723 = vmatprep.subr.bf16.mxu0 %v2641_v57 }
 0x104   : > { %2400 = vmatpush3.bf16.msra.mxu1 %v2643_v60 }
 0x105   : > { %1724 = vmatpush1.bf16.msra.mxu0 %v2639_v59  ;;  %2401 = vmatprep.subr.bf16.mxu1 %v2647_v62 }
 0x106   : > { %1725 = vmatprep.subr.bf16.mxu0 %v2646_v61 }
 0x108   : > { %2402 = vmatpush3.bf16.msra.mxu1 %v2648_v2 }
 0x109   : > { %1726 = vmatpush1.bf16.msra.mxu0 %v2644_v63  ;;  %2403 = vmatprep.subr.bf16.mxu1 %v2652_v4 }
 0x10a   : > { %1727 = vmatprep.subr.bf16.mxu0 %v2651_v3 }
 0x10c   : > { %2404 = vmatpush3.bf16.msra.mxu1 %v2653_v6 }
 0x10d   : > { %1728 = vmatpush1.bf16.msra.mxu0 %v2649_v5  ;;  %2411 = vmatprep.subr.bf16.mxu1 %v2657_v8 }
 0x10f   : > { %1814 = vmatmul.mubr.bf16.vlgmr.msra.gmra.mrb[8].mxu1 %v3239_v7  ;;  %v2665_v7 = vld [vmem:[%s3162_s7 + $0x428] ss:$12 sps:$4 sm:$0xff]  }
 0x110   : > { %1730 = vmatmul.mubr.bf16.vlgmr.msra.gmra.mrb[0].mxu0 %v2654_v9  ;;  %2412 = vmatpush3.bf16.msra.mxu1 %v2658_v10 }
 0x111   : > { %1854 = vmatprep.mubr.bf16.mxu1 %v3282_v42  ;;  %2413 = vmatprep.subr.bf16.mxu1 %v2659_v11 }
 0x114   : > { %2414 = vmatpush3.bf16.msra.mxu1 %v2660_v12 }
 0x115   : > { %2415 = vmatprep.subr.bf16.mxu1 %v2661_v13 }
 0x118   : > { %2416 = vmatpush3.bf16.msra.mxu1 %v2662_v14 }
 0x119   : > { %2417 = vmatprep.subr.bf16.mxu1 %v2663_v15 }
 0x11c   : > { %2418 = vmatpush3.bf16.msra.mxu1 %v2664_v16 }
 0x11d   : > { %2419 = vmatprep.subr.bf16.mxu1 %v2665_v7 }
 0x120   : > { %2420 = vmatpush3.bf16.msra.mxu1 %v2666_v17 }
 0x121   : > { %2421 = vmatprep.subr.bf16.mxu1 %v2667_v18 }
 0x124   : > { %2422 = vmatpush3.bf16.msra.mxu1 %v2668_v19 }
 0x125   : > { %2423 = vmatprep.subr.bf16.mxu1 %v2669_v20 }
 0x128   : > { %2424 = vmatpush3.bf16.msra.mxu1 %v2670_v21 }
 0x129   : > { %2425 = vmatprep.subr.bf16.mxu1 %v2671_v0 }
 0x12c   : > { %2426 = vmatpush3.bf16.msra.mxu1 %v2672_v22 }
 0x12f   : > { %1855 = vmatmul.mubr.bf16.vlgmr.msra.gmra.mrb[12].mxu1 %v2654_v9 }
 0x1a2   : > { %v1645_v23 = vpop.f32.mrb[0].mxu1 }
 0x1a3   : > { %v1647_v24 = vpop.f32.mrb[1].mxu1  ;;  %v1646_v42 = vadd.f32 %v1645_v23, %v801_v39 }
 0x1a4   : > { %v1649_v25 = vpop.f32.mrb[2].mxu1  ;;  %v1648_v43 = vadd.f32 %v1647_v24, %v805_v40 }
 0x1a5   : > { %v1651_v26 = vpop.f32.mrb[3].mxu1  ;;  %v1650_v46 = vadd.f32 %v1649_v25, %v801_v39 }
 0x1a6   : > { %v1652_v50 = vadd.f32 %v1651_v26, %v805_v40 }
 0x1c2   : > { %v2383_v27 = vpop.f32.mrb[4].mxu1 }
 0x1c3   : > { %v2384_v28 = vpop.f32.mrb[5].mxu1 }
 0x1c4   : > { %v2385_v29 = vadd.f32 %v2384_v28, %v2383_v27  ;;  %v2386_v30 = vpop.f32.mrb[6].mxu1 }
 0x1c5   : > { %v2387_v31 = vpop.f32.mrb[7].mxu1 }
 0x1c6   : > { %v2388_v32 = vadd.f32 %v2387_v31, %v2386_v30  ;;  %v1775_v51 = vadd.f32 %v2385_v29, %v809_v41 }
 0x1c8   : > { %v1778_v55 = vadd.f32 %v2388_v32, %v809_v41 }
 0x1e2   : > { %v2405_v45 = vpop.f32.mrb[8].mxu1 }
 0x1e3   : > { %v1731_v44 = vpop.f32.mrb[0].mxu0  ;;  %v2406_v49 = vpop.f32.mrb[9].mxu1 }
 0x1e4   : > { %v2434_v47 = vadd.f32 %v1731_v44, %v1646_v42  ;;  %v1733_v48 = vpop.f32.mrb[1].mxu0  ;;  %v2407_v53 = vadd.f32 %v2406_v49, %v2405_v45  ;;  %v2408_v1 = vpop.f32.mrb[10].mxu1 }
 0x1e5   : > { %v2436_v52 = vadd.f32 %v1733_v48, %v1648_v43  ;;  %v1735_v54 = vpop.f32.mrb[2].mxu0  ;;  %v2409_v58 = vpop.f32.mrb[11].mxu1 }
 0x1e6   : > { %v2438_v56 = vadd.f32 %v1735_v54, %v1650_v46  ;;  %v1737_v57 = vpop.f32.mrb[3].mxu0  ;;  %v1816_v60 = vadd.f32 %v2407_v53, %v1775_v51  ;;  %v2410_v62 = vadd.f32 %v2409_v58, %v2408_v1 }
 0x1e7   : > { %v2362_v59 = vpack.c.bf16 %v2436_v52, %v2434_v47  ;;  %v2440_v61 = vadd.f32 %v1737_v57, %v1652_v50 }
 0x1e8   : > { %v1819_v2 = vadd.f32 %v2410_v62, %v1778_v55 }
 0x1e9   : > { %1883 = vst [vmem:[%s589_s12] sm:$0xff] %v2362_v59  ;;  %v2364_v63 = vpack.c.bf16 %v2440_v61, %v2438_v56 }
 0x1eb   : > { %1885 = vst [vmem:[%s589_s12 + $0xc] sm:$0xff] %v2364_v63 }
 0x1f0   : > { %v1911_v14 = vld [vmem:[%s589_s12] sm:$0xff] (%p2748_p5) }
 0x1f1   : > { %1912 = vst [vmem:[%s1896_s30] sm:$0xff] (%p2748_p5), %v1911_v14 }
 0x1f2   : > { %v1913_v15 = vld [vmem:[%s589_s12 + $0xc] sm:$0xff] (%p2748_p5) }
 0x1f3   : > { %1914 = vst [vmem:[%s1896_s30 + $0x18] sm:$0xff] (%p2748_p5), %v1913_v15 }
 0x202   : > { %v2427_v3 = vpop.f32.mrb[12].mxu1 }
 0x203   : > { %v2428_v4 = vpop.f32.mrb[13].mxu1 }
 0x204   : > { %v2429_v5 = vadd.f32 %v2428_v4, %v2427_v3  ;;  %v2430_v6 = vpop.f32.mrb[14].mxu1 }
 0x205   : > { %v2431_v8 = vpop.f32.mrb[15].mxu1 }
 0x206   : > { %v1857_v9 = vadd.f32 %v2429_v5, %v1816_v60  ;;  %v2432_v10 = vadd.f32 %v2431_v8, %v2430_v6  ;;  %1893 = sbr.rel (!%p2748_p5) target bundleno = 533 (0x215), region = 62 }
 0x208   : > { %v2363_v11 = vpack.c.bf16 %v1857_v9, %v1857_v9  ;;  %v1860_v12 = vadd.f32 %v2432_v10, %v1819_v2 }
 0x20a   : > { %1884 = vst [vmem:[%s589_s12 + $0x8] sm:$0xf] %v2363_v11  ;;  %v2365_v13 = vpack.c.bf16 %v1860_v12, %v1860_v12 }
 0x20c   : > { %1886 = vst [vmem:[%s589_s12 + $0x14] sm:$0xf] %v2365_v13 }
 0x211   : > { %v2355_v16 = vld [vmem:[%s589_s12 + $0x8] sm:$0xf] }
 0x212   : > { %2356 = vst [vmem:[%s1896_s30 + $0x8] sm:$0xf] %v2355_v16 }
 0x213   : > { %v2357_v7 = vld [vmem:[%s589_s12 + $0x14] sm:$0xf] }
 0x214   : > { %2358 = vst [vmem:[%s1896_s30 + $0x20] sm:$0xf] %v2357_v7 }
 0x215 PF: > { %p10_p11 = scmp.ge.s32.totalorder %s2736_s16, 4   ;;  %s3362_s12 = smov %s2691_s13 }
 0x216   : > { %s3363_s13 = smov %s2746_s19  ;;  %s3364_s14 = smov %s2736_s16 }
 0x217   :  { %12 = sbr.rel (!%p10_p11) target bundleno = 2 (0x2), region = 134 }

// kernel: bert_classifier_forward.21
= control target key start
LH: loop header
LB: loop body
LE: loop exit
PB: predicated region body
PF: predicated region fallthrough
CT: control target
= control target key end

     0   :  { %s2717_s12 = smov 0   ;;  %s2719_s13 = smov 0   ;;  %s3357_s0 = inlined_call_operand.vmem [shape: bf16[16,768], index: 0, kind: input, shape index: {}]   ;;  %s3358_s1 = inlined_call_operand.vmem [shape: bf16[768,2304], index: 1, kind: input, shape index: {}]   ;;  %s3359_s2 = inlined_call_operand.vmem [shape: f32[1,2304], index: 2, kind: input, shape index: {}]   ;;  %s3360_s3 = inlined_call_operand.vmem [shape: bf16[16,2304], index: 3, kind: output, shape index: {}]  }
   0x1   :  { %s2721_s14 = smov 0  }
   0x2 LB: > { %s2733_s15 = sadd.s32 4294967295, %s2695_s14   ;;  %s2736_s16 = sadd.s32 1, %s2695_s14   ;;  %s2695_s14 = sphi %s2721_s14, %s3364_s14   ;;  %s2691_s13 = sphi %s2719_s13, %s3363_s13   ;;  %s2687_s12 = sphi %s2717_s12, %s3362_s12  }
   0x3   : > { %s38_s17 = ssub.s32 %s2695_s14, %s2736_s16  ;;  %s41_s18 = sadd.s32 1, %s2691_s13 }
   0x4   : > { %p39_p0 = scmp.eq.s32.totalorder %s38_s17, 0  ;;  %p48_p1 = scmp.ne.s32.totalorder %s2691_s13, %s2687_s12 }
   0x5   : > { %p49_p2 = scmp.eq.s32.totalorder %s2695_s14, 0  ;;  %p104_p3 = scmp.eq.s32.totalorder %s2733_s15, 5 }
   0x6   : > { %s2746_s19 = scalar_select %p39_p0, %s2691_s13, %s41_s18  }
   0x7   : > { %p50_p4 = por %p49_p2, %p48_p1  ;;  %p2748_p5 = por %p104_p3, %p48_p1 }
   0x8   : > { %p2005_p6 = scmp.ge.s32.totalorder %s2695_s14, 6 }
   0xa   : > { %129 = sbr.rel (%p2005_p6) target bundleno = 134 (0x86), region = 20 }
  0x11   : > { %132 = sbr.rel (!%p50_p4) target bundleno = 134 (0x86), region = 24  ;;  %s134_s21 = sand.u32 (%p50_p4), 1, %s2691_s13  }
  0x12   : > { %s2361_s22 = smul.u32 (%p50_p4), 12, %s2695_s14 }
  0x13   : > { %s2445_s23 = smul.u32 (%p50_p4), 1152, %s134_s21 }
  0x14   : > { %s2758_s26 = scalar_lea.vmem (%p50_p4), %s3358_s1, %s2361_s22 }
  0x15   : > { %v154_v0 = vld [vmem:[%s2758_s26] sm:$0xff] (%p50_p4)  ;;  %v156_v1 = vld [vmem:[%s2758_s26 + $0x48] sm:$0xff] (%p50_p4)  ;;  %v158_v2 = vld [vmem:[%s2758_s26 + $0x90] sm:$0xff] (%p50_p4)  ;;  %s2763_s27 = scalar_lea.vmem (%p50_p4), [#allocation2], %s2445_s23 }
  0x16   : > { %155 = vst [vmem:[%s2763_s27] sm:$0xff] (%p50_p4), %v154_v0  ;;  %157 = vst [vmem:[%s2763_s27 + $0xc] sm:$0xff] (%p50_p4), %v156_v1  ;;  %v160_v3 = vld [vmem:[%s2758_s26 + $0xd8] sm:$0xff] (%p50_p4)  ;;  %v162_v4 = vld [vmem:[%s2758_s26 + $0x120] sm:$0xff] (%p50_p4) }
  0x17   : > { %159 = vst [vmem:[%s2763_s27 + $0x18] sm:$0xff] (%p50_p4), %v158_v2  ;;  %v164_v5 = vld [vmem:[%s2758_s26 + $0x168] sm:$0xff] (%p50_p4)  ;;  %161 = vst [vmem:[%s2763_s27 + $0x24] sm:$0xff] (%p50_p4), %v160_v3  ;;  %v166_v6 = vld [vmem:[%s2758_s26 + $0x1b0] sm:$0xff] (%p50_p4) }
  0x18   : > { %163 = vst [vmem:[%s2763_s27 + $0x30] sm:$0xff] %v162_v4  ;;  %165 = vst [vmem:[%s2763_s27 + $0x3c] sm:$0xff] %v164_v5  ;;  %v168_v7 = vld [vmem:[%s2758_s26 + $0x1f8] sm:$0xff]  ;;  %v170_v8 = vld [vmem:[%s2758_s26 + $0x240] sm:$0xff] }
  0x19   : > { %167 = vst [vmem:[%s2763_s27 + $0x48] sm:$0xff] %v166_v6  ;;  %169 = vst [vmem:[%s2763_s27 + $0x54] sm:$0xff] %v168_v7  ;;  %v172_v9 = vld [vmem:[%s2758_s26 + $0x288] sm:$0xff]  ;;  %v174_v10 = vld [vmem:[%s2758_s26 + $0x2d0] sm:$0xff] }
  0x1a   : > { %171 = vst [vmem:[%s2763_s27 + $0x60] sm:$0xff] %v170_v8  ;;  %v176_v11 = vld [vmem:[%s2758_s26 + $0x318] sm:$0xff]  ;;  %173 = vst [vmem:[%s2763_s27 + $0x6c] sm:$0xff] %v172_v9  ;;  %v178_v12 = vld [vmem:[%s2758_s26 + $0x360] sm:$0xff] }
  0x1b   : > { %175 = vst [vmem:[%s2763_s27 + $0x78] sm:$0xff] %v174_v10  ;;  %177 = vst [vmem:[%s2763_s27 + $0x84] sm:$0xff] %v176_v11  ;;  %v180_v13 = vld [vmem:[%s2758_s26 + $0x3a8] sm:$0xff]  ;;  %v182_v14 = vld [vmem:[%s2758_s26 + $0x3f0] sm:$0xff] }
  0x1c   : > { %179 = vst [vmem:[%s2763_s27 + $0x90] sm:$0xff] %v178_v12  ;;  %181 = vst [vmem:[%s2763_s27 + $0x9c] sm:$0xff] %v180_v13  ;;  %v184_v15 = vld [vmem:[%s2758_s26 + $0x438] sm:$0xff]  ;;  %v186_v16 = vld [vmem:[%s2758_s26 + $0x480] sm:$0xff] }
  0x1d   : > { %183 = vst [vmem:[%s2763_s27 + $0xa8] sm:$0xff] %v182_v14  ;;  %v188_v17 = vld [vmem:[%s2758_s26 + $0x4c8] sm:$0xff]  ;;  %185 = vst [vmem:[%s2763_s27 + $0xb4] sm:$0xff] %v184_v15  ;;  %v190_v18 = vld [vmem:[%s2758_s26 + $0x510] sm:$0xff] }
  0x1e   : > { %187 = vst [vmem:[%s2763_s27 + $0xc0] sm:$0xff] %v186_v16  ;;  %189 = vst [vmem:[%s2763_s27 + $0xcc] sm:$0xff] %v188_v17  ;;  %v192_v19 = vld [vmem:[%s2758_s26 + $0x558] sm:$0xff]  ;;  %v194_v20 = vld [vmem:[%s2758_s26 + $0x5a0] sm:$0xff] }
  0x1f   : > { %191 = vst [vmem:[%s2763_s27 + $0xd8] sm:$0xff] %v190_v18  ;;  %193 = vst [vmem:[%s2763_s27 + $0xe4] sm:$0xff] %v192_v19  ;;  %v196_v21 = vld [vmem:[%s2758_s26 + $0x5e8] sm:$0xff]  ;;  %v198_v22 = vld [vmem:[%s2758_s26 + $0x630] sm:$0xff] }
  0x20   : > { %195 = vst [vmem:[%s2763_s27 + $0xf0] sm:$0xff] %v194_v20  ;;  %v200_v23 = vld [vmem:[%s2758_s26 + $0x678] sm:$0xff]  ;;  %197 = vst [vmem:[%s2763_s27 + $0xfc] sm:$0xff] %v196_v21  ;;  %v202_v24 = vld [vmem:[%s2758_s26 + $0x6c0] sm:$0xff] }
  0x21   : > { %199 = vst [vmem:[%s2763_s27 + $0x108] sm:$0xff] %v198_v22  ;;  %201 = vst [vmem:[%s2763_s27 + $0x114] sm:$0xff] %v200_v23  ;;  %v204_v25 = vld [vmem:[%s2758_s26 + $0x708] sm:$0xff]  ;;  %v206_v26 = vld [vmem:[%s2758_s26 + $0x750] sm:$0xff] }
  0x22   : > { %203 = vst [vmem:[%s2763_s27 + $0x120] sm:$0xff] %v202_v24  ;;  %205 = vst [vmem:[%s2763_s27 + $0x12c] sm:$0xff] %v204_v25  ;;  %v208_v27 = vld [vmem:[%s2758_s26 + $0x798] sm:$0xff]  ;;  %v210_v28 = vld [vmem:[%s2758_s26 + $0x7e0] sm:$0xff] }
  0x23   : > { %207 = vst [vmem:[%s2763_s27 + $0x138] sm:$0xff] %v206_v26  ;;  %v212_v29 = vld [vmem:[%s2758_s26 + $0x828] sm:$0xff]  ;;  %209 = vst [vmem:[%s2763_s27 + $0x144] sm:$0xff] %v208_v27  ;;  %v214_v30 = vld [vmem:[%s2758_s26 + $0x870] sm:$0xff] }
  0x24   : > { %211 = vst [vmem:[%s2763_s27 + $0x150] sm:$0xff] %v210_v28  ;;  %213 = vst [vmem:[%s2763_s27 + $0x15c] sm:$0xff] %v212_v29  ;;  %v216_v31 = vld [vmem:[%s2758_s26 + $0x8b8] sm:$0xff]  ;;  %v218_v32 = vld [vmem:[%s2758_s26 + $0x900] sm:$0xff] }
  0x25   : > { %215 = vst [vmem:[%s2763_s27 + $0x168] sm:$0xff] %v214_v30  ;;  %217 = vst [vmem:[%s2763_s27 + $0x174] sm:$0xff] %v216_v31  ;;  %v220_v33 = vld [vmem:[%s2758_s26 + $0x948] sm:$0xff]  ;;  %v222_v34 = vld [vmem:[%s2758_s26 + $0x990] sm:$0xff] }
  0x26   : > { %219 = vst [vmem:[%s2763_s27 + $0x180] sm:$0xff] %v218_v32  ;;  %v224_v35 = vld [vmem:[%s2758_s26 + $0x9d8] sm:$0xff]  ;;  %221 = vst [vmem:[%s2763_s27 + $0x18c] sm:$0xff] %v220_v33  ;;  %v226_v36 = vld [vmem:[%s2758_s26 + $0xa20] sm:$0xff] }
  0x27   : > { %223 = vst [vmem:[%s2763_s27 + $0x198] sm:$0xff] %v222_v34  ;;  %225 = vst [vmem:[%s2763_s27 + $0x1a4] sm:$0xff] %v224_v35  ;;  %v228_v37 = vld [vmem:[%s2758_s26 + $0xa68] sm:$0xff]  ;;  %v230_v38 = vld [vmem:[%s2758_s26 + $0xab0] sm:$0xff] }
  0x28   : > { %227 = vst [vmem:[%s2763_s27 + $0x1b0] sm:$0xff] %v226_v36  ;;  %229 = vst [vmem:[%s2763_s27 + $0x1bc] sm:$0xff] %v228_v37  ;;  %v232_v39 = vld [vmem:[%s2758_s26 + $0xaf8] sm:$0xff]  ;;  %v234_v40 = vld [vmem:[%s2758_s26 + $0xb40] sm:$0xff] }
  0x29   : > { %231 = vst [vmem:[%s2763_s27 + $0x1c8] sm:$0xff] %v230_v38  ;;  %v236_v41 = vld [vmem:[%s2758_s26 + $0xb88] sm:$0xff]  ;;  %233 = vst [vmem:[%s2763_s27 + $0x1d4] sm:$0xff] %v232_v39  ;;  %v238_v42 = vld [vmem:[%s2758_s26 + $0xbd0] sm:$0xff] }
  0x2a   : > { %235 = vst [vmem:[%s2763_s27 + $0x1e0] sm:$0xff] %v234_v40  ;;  %237 = vst [vmem:[%s2763_s27 + $0x1ec] sm:$0xff] %v236_v41  ;;  %v240_v43 = vld [vmem:[%s2758_s26 + $0xc18] sm:$0xff]  ;;  %v242_v44 = vld [vmem:[%s2758_s26 + $0xc60] sm:$0xff] }
  0x2b   : > { %239 = vst [vmem:[%s2763_s27 + $0x1f8] sm:$0xff] %v238_v42  ;;  %241 = vst [vmem:[%s2763_s27 + $0x204] sm:$0xff] %v240_v43  ;;  %v244_v45 = vld [vmem:[%s2758_s26 + $0xca8] sm:$0xff]  ;;  %v246_v46 = vld [vmem:[%s2758_s26 + $0xcf0] sm:$0xff] }
  0x2c   : > { %243 = vst [vmem:[%s2763_s27 + $0x210] sm:$0xff] %v242_v44  ;;  %v248_v47 = vld [vmem:[%s2758_s26 + $0xd38] sm:$0xff]  ;;  %245 = vst [vmem:[%s2763_s27 + $0x21c] sm:$0xff] %v244_v45  ;;  %v250_v48 = vld [vmem:[%s2758_s26 + $0xd80] sm:$0xff] }
  0x2d   : > { %247 = vst [vmem:[%s2763_s27 + $0x228] sm:$0xff] %v246_v46  ;;  %249 = vst [vmem:[%s2763_s27 + $0x234] sm:$0xff] %v248_v47  ;;  %v252_v49 = vld [vmem:[%s2758_s26 + $0xdc8] sm:$0xff]  ;;  %v254_v50 = vld [vmem:[%s2758_s26 + $0xe10] sm:$0xff] }
  0x2e   : > { %251 = vst [vmem:[%s2763_s27 + $0x240] sm:$0xff] %v250_v48  ;;  %253 = vst [vmem:[%s2763_s27 + $0x24c] sm:$0xff] %v252_v49  ;;  %v256_v51 = vld [vmem:[%s2758_s26 + $0xe58] sm:$0xff]  ;;  %v258_v52 = vld [vmem:[%s2758_s26 + $0xea0] sm:$0xff] }
  0x2f   : > { %255 = vst [vmem:[%s2763_s27 + $0x258] sm:$0xff] %v254_v50  ;;  %v260_v53 = vld [vmem:[%s2758_s26 + $0xee8] sm:$0xff]  ;;  %257 = vst [vmem:[%s2763_s27 + $0x264] sm:$0xff] %v256_v51  ;;  %v262_v54 = vld [vmem:[%s2758_s26 + $0xf30] sm:$0xff] }
  0x30   : > { %259 = vst [vmem:[%s2763_s27 + $0x270] sm:$0xff] %v258_v52  ;;  %261 = vst [vmem:[%s2763_s27 + $0x27c] sm:$0xff] %v260_v53  ;;  %v264_v55 = vld [vmem:[%s2758_s26 + $0xf78] sm:$0xff]  ;;  %v266_v56 = vld [vmem:[%s2758_s26 + $0xfc0] sm:$0xff] }
  0x31   : > { %263 = vst [vmem:[%s2763_s27 + $0x288] sm:$0xff] %v262_v54  ;;  %265 = vst [vmem:[%s2763_s27 + $0x294] sm:$0xff] %v264_v55  ;;  %v268_v57 = vld [vmem:[%s2758_s26 + $0x1008] sm:$0xff]  ;;  %v270_v58 = vld [vmem:[%s2758_s26 + $0x1050] sm:$0xff] }
  0x32   : > { %267 = vst [vmem:[%s2763_s27 + $0x2a0] sm:$0xff] %v266_v56  ;;  %v272_v59 = vld [vmem:[%s2758_s26 + $0x1098] sm:$0xff]  ;;  %269 = vst [vmem:[%s2763_s27 + $0x2ac] sm:$0xff] %v268_v57  ;;  %v274_v60 = vld [vmem:[%s2758_s26 + $0x10e0] sm:$0xff] }
  0x33   : > { %271 = vst [vmem:[%s2763_s27 + $0x2b8] sm:$0xff] %v270_v58  ;;  %273 = vst [vmem:[%s2763_s27 + $0x2c4] sm:$0xff] %v272_v59  ;;  %v276_v61 = vld [vmem:[%s2758_s26 + $0x1128] sm:$0xff]  ;;  %v278_v62 = vld [vmem:[%s2758_s26 + $0x1170] sm:$0xff] }
  0x34   : > { %275 = vst [vmem:[%s2763_s27 + $0x2d0] sm:$0xff] %v274_v60  ;;  %277 = vst [vmem:[%s2763_s27 + $0x2dc] sm:$0xff] %v276_v61  ;;  %v280_v63 = vld [vmem:[%s2758_s26 + $0x11b8] sm:$0xff]  ;;  %v282_v0 = vld [vmem:[%s2758_s26 + $0x1200] sm:$0xff] }
  0x35   : > { %279 = vst [vmem:[%s2763_s27 + $0x2e8] sm:$0xff] %v278_v62  ;;  %v284_v1 = vld [vmem:[%s2758_s26 + $0x1248] sm:$0xff]  ;;  %281 = vst [vmem:[%s2763_s27 + $0x2f4] sm:$0xff] %v280_v63  ;;  %v286_v2 = vld [vmem:[%s2758_s26 + $0x1290] sm:$0xff] }
  0x36   : > { %283 = vst [vmem:[%s2763_s27 + $0x300] sm:$0xff] %v282_v0  ;;  %285 = vst [vmem:[%s2763_s27 + $0x30c] sm:$0xff] %v284_v1  ;;  %v288_v3 = vld [vmem:[%s2758_s26 + $0x12d8] sm:$0xff]  ;;  %v290_v4 = vld [vmem:[%s2758_s26 + $0x1320] sm:$0xff] }
  0x37   : > { %287 = vst [vmem:[%s2763_s27 + $0x318] sm:$0xff] %v286_v2  ;;  %289 = vst [vmem:[%s2763_s27 + $0x324] sm:$0xff] %v288_v3  ;;  %v292_v5 = vld [vmem:[%s2758_s26 + $0x1368] sm:$0xff]  ;;  %v294_v6 = vld [vmem:[%s2758_s26 + $0x13b0] sm:$0xff] }
  0x38   : > { %291 = vst [vmem:[%s2763_s27 + $0x330] sm:$0xff] %v290_v4  ;;  %v296_v7 = vld [vmem:[%s2758_s26 + $0x13f8] sm:$0xff]  ;;  %293 = vst [vmem:[%s2763_s27 + $0x33c] sm:$0xff] %v292_v5  ;;  %v298_v8 = vld [vmem:[%s2758_s26 + $0x1440] sm:$0xff] }
  0x39   : > { %295 = vst [vmem:[%s2763_s27 + $0x348] sm:$0xff] %v294_v6  ;;  %297 = vst [vmem:[%s2763_s27 + $0x354] sm:$0xff] %v296_v7  ;;  %v300_v9 = vld [vmem:[%s2758_s26 + $0x1488] sm:$0xff]  ;;  %v302_v10 = vld [vmem:[%s2758_s26 + $0x14d0] sm:$0xff] }
  0x3a   : > { %299 = vst [vmem:[%s2763_s27 + $0x360] sm:$0xff] %v298_v8  ;;  %301 = vst [vmem:[%s2763_s27 + $0x36c] sm:$0xff] %v300_v9  ;;  %v304_v11 = vld [vmem:[%s2758_s26 + $0x1518] sm:$0xff]  ;;  %v306_v12 = vld [vmem:[%s2758_s26 + $0x1560] sm:$0xff] }
  0x3b   : > { %303 = vst [vmem:[%s2763_s27 + $0x378] sm:$0xff] %v302_v10  ;;  %v308_v13 = vld [vmem:[%s2758_s26 + $0x15a8] sm:$0xff]  ;;  %305 = vst [vmem:[%s2763_s27 + $0x384] sm:$0xff] %v304_v11  ;;  %v310_v14 = vld [vmem:[%s2758_s26 + $0x15f0] sm:$0xff] }
  0x3c   : > { %307 = vst [vmem:[%s2763_s27 + $0x390] sm:$0xff] %v306_v12  ;;  %309 = vst [vmem:[%s2763_s27 + $0x39c] sm:$0xff] %v308_v13  ;;  %v312_v15 = vld [vmem:[%s2758_s26 + $0x1638] sm:$0xff]  ;;  %v314_v16 = vld [vmem:[%s2758_s26 + $0x1680] sm:$0xff] }
  0x3d   : > { %311 = vst [vmem:[%s2763_s27 + $0x3a8] sm:$0xff] %v310_v14  ;;  %313 = vst [vmem:[%s2763_s27 + $0x3b4] sm:$0xff] %v312_v15  ;;  %v316_v17 = vld [vmem:[%s2758_s26 + $0x16c8] sm:$0xff]  ;;  %v318_v18 = vld [vmem:[%s2758_s26 + $0x1710] sm:$0xff] }
  0x3e   : > { %315 = vst [vmem:[%s2763_s27 + $0x3c0] sm:$0xff] %v314_v16  ;;  %v320_v19 = vld [vmem:[%s2758_s26 + $0x1758] sm:$0xff]  ;;  %317 = vst [vmem:[%s2763_s27 + $0x3cc] sm:$0xff] %v316_v17  ;;  %v322_v20 = vld [vmem:[%s2758_s26 + $0x17a0] sm:$0xff] }
  0x3f   : > { %319 = vst [vmem:[%s2763_s27 + $0x3d8] sm:$0xff] %v318_v18  ;;  %321 = vst [vmem:[%s2763_s27 + $0x3e4] sm:$0xff] %v320_v19  ;;  %v324_v21 = vld [vmem:[%s2758_s26 + $0x17e8] sm:$0xff]  ;;  %v326_v22 = vld [vmem:[%s2758_s26 + $0x1830] sm:$0xff] }
  0x40   : > { %323 = vst [vmem:[%s2763_s27 + $0x3f0] sm:$0xff] %v322_v20  ;;  %325 = vst [vmem:[%s2763_s27 + $0x3fc] sm:$0xff] %v324_v21  ;;  %v328_v23 = vld [vmem:[%s2758_s26 + $0x1878] sm:$0xff]  ;;  %v330_v24 = vld [vmem:[%s2758_s26 + $0x18c0] sm:$0xff] }
  0x41   : > { %327 = vst [vmem:[%s2763_s27 + $0x408] sm:$0xff] %v326_v22  ;;  %v332_v25 = vld [vmem:[%s2758_s26 + $0x1908] sm:$0xff]  ;;  %329 = vst [vmem:[%s2763_s27 + $0x414] sm:$0xff] %v328_v23  ;;  %v334_v26 = vld [vmem:[%s2758_s26 + $0x1950] sm:$0xff] }
  0x42   : > { %331 = vst [vmem:[%s2763_s27 + $0x420] sm:$0xff] %v330_v24  ;;  %333 = vst [vmem:[%s2763_s27 + $0x42c] sm:$0xff] %v332_v25  ;;  %v336_v27 = vld [vmem:[%s2758_s26 + $0x1998] sm:$0xff]  ;;  %v338_v28 = vld [vmem:[%s2758_s26 + $0x19e0] sm:$0xff] }
  0x43   : > { %335 = vst [vmem:[%s2763_s27 + $0x438] sm:$0xff] %v334_v26  ;;  %337 = vst [vmem:[%s2763_s27 + $0x444] sm:$0xff] %v336_v27  ;;  %v340_v29 = vld [vmem:[%s2758_s26 + $0x1a28] sm:$0xff]  ;;  %v342_v30 = vld [vmem:[%s2758_s26 + $0x1a70] sm:$0xff] }
  0x44   : > { %339 = vst [vmem:[%s2763_s27 + $0x450] sm:$0xff] %v338_v28  ;;  %v344_v31 = vld [vmem:[%s2758_s26 + $0x1ab8] sm:$0xff]  ;;  %341 = vst [vmem:[%s2763_s27 + $0x45c] sm:$0xff] %v340_v29  ;;  %v2007_v32 = vld [vmem:[%s2758_s26 + $0x8] sm:$0xf] }
  0x45   : > { %343 = vst [vmem:[%s2763_s27 + $0x468] sm:$0xff] %v342_v30  ;;  %345 = vst [vmem:[%s2763_s27 + $0x474] sm:$0xff] %v344_v31  ;;  %v2009_v33 = vld [vmem:[%s2758_s26 + $0x50] sm:$0xf]  ;;  %v2011_v34 = vld [vmem:[%s2758_s26 + $0x98] sm:$0xf] }
  0x46   : > { %2008 = vst [vmem:[%s2763_s27 + $0x8] sm:$0xf] %v2007_v32  ;;  %2010 = vst [vmem:[%s2763_s27 + $0x14] sm:$0xf] %v2009_v33  ;;  %v2013_v35 = vld [vmem:[%s2758_s26 + $0xe0] sm:$0xf] }
  0x47   : > { %2012 = vst [vmem:[%s2763_s27 + $0x20] sm:$0xf] %v2011_v34  ;;  %v2015_v36 = vld [vmem:[%s2758_s26 + $0x128] sm:$0xf]  ;;  %v2017_v37 = vld [vmem:[%s2758_s26 + $0x170] sm:$0xf] }
  0x48   : > { %2014 = vst [vmem:[%s2763_s27 + $0x2c] sm:$0xf] %v2013_v35  ;;  %2016 = vst [vmem:[%s2763_s27 + $0x38] sm:$0xf] %v2015_v36  ;;  %v2019_v38 = vld [vmem:[%s2758_s26 + $0x1b8] sm:$0xf] }
  0x49   : > { %2018 = vst [vmem:[%s2763_s27 + $0x44] sm:$0xf] %v2017_v37  ;;  %v2021_v39 = vld [vmem:[%s2758_s26 + $0x200] sm:$0xf]  ;;  %v2023_v40 = vld [vmem:[%s2758_s26 + $0x248] sm:$0xf] }
  0x4a   : > { %2020 = vst [vmem:[%s2763_s27 + $0x50] sm:$0xf] %v2019_v38  ;;  %2022 = vst [vmem:[%s2763_s27 + $0x5c] sm:$0xf] %v2021_v39  ;;  %v2025_v41 = vld [vmem:[%s2758_s26 + $0x290] sm:$0xf] }
  0x4b   : > { %2024 = vst [vmem:[%s2763_s27 + $0x68] sm:$0xf] %v2023_v40  ;;  %v2027_v42 = vld [vmem:[%s2758_s26 + $0x2d8] sm:$0xf]  ;;  %v2029_v43 = vld [vmem:[%s2758_s26 + $0x320] sm:$0xf] }
  0x4c   : > { %2026 = vst [vmem:[%s2763_s27 + $0x74] sm:$0xf] %v2025_v41  ;;  %2028 = vst [vmem:[%s2763_s27 + $0x80] sm:$0xf] %v2027_v42  ;;  %v2031_v44 = vld [vmem:[%s2758_s26 + $0x368] sm:$0xf] }
  0x4d   : > { %2030 = vst [vmem:[%s2763_s27 + $0x8c] sm:$0xf] %v2029_v43  ;;  %v2033_v45 = vld [vmem:[%s2758_s26 + $0x3b0] sm:$0xf]  ;;  %v2035_v46 = vld [vmem:[%s2758_s26 + $0x3f8] sm:$0xf] }
  0x4e   : > { %2032 = vst [vmem:[%s2763_s27 + $0x98] sm:$0xf] %v2031_v44  ;;  %2034 = vst [vmem:[%s2763_s27 + $0xa4] sm:$0xf] %v2033_v45  ;;  %v2037_v47 = vld [vmem:[%s2758_s26 + $0x440] sm:$0xf] }
  0x4f   : > { %2036 = vst [vmem:[%s2763_s27 + $0xb0] sm:$0xf] %v2035_v46  ;;  %v2039_v48 = vld [vmem:[%s2758_s26 + $0x488] sm:$0xf]  ;;  %v2041_v49 = vld [vmem:[%s2758_s26 + $0x4d0] sm:$0xf] }
  0x50   : > { %2038 = vst [vmem:[%s2763_s27 + $0xbc] sm:$0xf] %v2037_v47  ;;  %2040 = vst [vmem:[%s2763_s27 + $0xc8] sm:$0xf] %v2039_v48  ;;  %v2043_v50 = vld [vmem:[%s2758_s26 + $0x518] sm:$0xf] }
  0x51   : > { %2042 = vst [vmem:[%s2763_s27 + $0xd4] sm:$0xf] %v2041_v49  ;;  %v2045_v51 = vld [vmem:[%s2758_s26 + $0x560] sm:$0xf]  ;;  %v2047_v52 = vld [vmem:[%s2758_s26 + $0x5a8] sm:$0xf] }
  0x52   : > { %2044 = vst [vmem:[%s2763_s27 + $0xe0] sm:$0xf] %v2043_v50  ;;  %2046 = vst [vmem:[%s2763_s27 + $0xec] sm:$0xf] %v2045_v51  ;;  %v2049_v53 = vld [vmem:[%s2758_s26 + $0x5f0] sm:$0xf] }
  0x53   : > { %2048 = vst [vmem:[%s2763_s27 + $0xf8] sm:$0xf] %v2047_v52  ;;  %v2051_v54 = vld [vmem:[%s2758_s26 + $0x638] sm:$0xf]  ;;  %v2053_v55 = vld [vmem:[%s2758_s26 + $0x680] sm:$0xf] }
  0x54   : > { %2050 = vst [vmem:[%s2763_s27 + $0x104] sm:$0xf] %v2049_v53  ;;  %2052 = vst [vmem:[%s2763_s27 + $0x110] sm:$0xf] %v2051_v54  ;;  %v2055_v56 = vld [vmem:[%s2758_s26 + $0x6c8] sm:$0xf] }
  0x55   : > { %2054 = vst [vmem:[%s2763_s27 + $0x11c] sm:$0xf] %v2053_v55  ;;  %v2057_v57 = vld [vmem:[%s2758_s26 + $0x710] sm:$0xf]  ;;  %v2059_v58 = vld [vmem:[%s2758_s26 + $0x758] sm:$0xf] }
  0x56   : > { %2056 = vst [vmem:[%s2763_s27 + $0x128] sm:$0xf] %v2055_v56  ;;  %2058 = vst [vmem:[%s2763_s27 + $0x134] sm:$0xf] %v2057_v57  ;;  %v2061_v59 = vld [vmem:[%s2758_s26 + $0x7a0] sm:$0xf] }
  0x57   : > { %2060 = vst [vmem:[%s2763_s27 + $0x140] sm:$0xf] %v2059_v58  ;;  %v2063_v60 = vld [vmem:[%s2758_s26 + $0x7e8] sm:$0xf]  ;;  %v2065_v61 = vld [vmem:[%s2758_s26 + $0x830] sm:$0xf] }
  0x58   : > { %2062 = vst [vmem:[%s2763_s27 + $0x14c] sm:$0xf] %v2061_v59  ;;  %2064 = vst [vmem:[%s2763_s27 + $0x158] sm:$0xf] %v2063_v60  ;;  %v2067_v62 = vld [vmem:[%s2758_s26 + $0x878] sm:$0xf] }
  0x59   : > { %2066 = vst [vmem:[%s2763_s27 + $0x164] sm:$0xf] %v2065_v61  ;;  %v2069_v63 = vld [vmem:[%s2758_s26 + $0x8c0] sm:$0xf]  ;;  %v2071_v0 = vld [vmem:[%s2758_s26 + $0x908] sm:$0xf] }
  0x5a   : > { %2068 = vst [vmem:[%s2763_s27 + $0x170] sm:$0xf] %v2067_v62  ;;  %2070 = vst [vmem:[%s2763_s27 + $0x17c] sm:$0xf] %v2069_v63  ;;  %v2073_v1 = vld [vmem:[%s2758_s26 + $0x950] sm:$0xf] }
  0x5b   : > { %2072 = vst [vmem:[%s2763_s27 + $0x188] sm:$0xf] %v2071_v0  ;;  %v2075_v2 = vld [vmem:[%s2758_s26 + $0x998] sm:$0xf]  ;;  %v2077_v3 = vld [vmem:[%s2758_s26 + $0x9e0] sm:$0xf] }
  0x5c   : > { %2074 = vst [vmem:[%s2763_s27 + $0x194] sm:$0xf] %v2073_v1  ;;  %2076 = vst [vmem:[%s2763_s27 + $0x1a0] sm:$0xf] %v2075_v2  ;;  %v2079_v4 = vld [vmem:[%s2758_s26 + $0xa28] sm:$0xf] }
  0x5d   : > { %2078 = vst [vmem:[%s2763_s27 + $0x1ac] sm:$0xf] %v2077_v3  ;;  %v2081_v5 = vld [vmem:[%s2758_s26 + $0xa70] sm:$0xf]  ;;  %v2083_v6 = vld [vmem:[%s2758_s26 + $0xab8] sm:$0xf] }
  0x5e   : > { %2080 = vst [vmem:[%s2763_s27 + $0x1b8] sm:$0xf] %v2079_v4  ;;  %2082 = vst [vmem:[%s2763_s27 + $0x1c4] sm:$0xf] %v2081_v5  ;;  %v2085_v7 = vld [vmem:[%s2758_s26 + $0xb00] sm:$0xf] }
  0x5f   : > { %2084 = vst [vmem:[%s2763_s27 + $0x1d0] sm:$0xf] %v2083_v6  ;;  %v2087_v8 = vld [vmem:[%s2758_s26 + $0xb48] sm:$0xf]  ;;  %v2089_v9 = vld [vmem:[%s2758_s26 + $0xb90] sm:$0xf] }
  0x60   : > { %2086 = vst [vmem:[%s2763_s27 + $0x1dc] sm:$0xf] %v2085_v7  ;;  %2088 = vst [vmem:[%s2763_s27 + $0x1e8] sm:$0xf] %v2087_v8  ;;  %v2091_v10 = vld [vmem:[%s2758_s26 + $0xbd8] sm:$0xf] }
  0x61   : > { %2090 = vst [vmem:[%s2763_s27 + $0x1f4] sm:$0xf] %v2089_v9  ;;  %v2093_v11 = vld [vmem:[%s2758_s26 + $0xc20] sm:$0xf]  ;;  %v2095_v12 = vld [vmem:[%s2758_s26 + $0xc68] sm:$0xf] }
  0x62   : > { %2092 = vst [vmem:[%s2763_s27 + $0x200] sm:$0xf] %v2091_v10  ;;  %2094 = vst [vmem:[%s2763_s27 + $0x20c] sm:$0xf] %v2093_v11  ;;  %v2097_v13 = vld [vmem:[%s2758_s26 + $0xcb0] sm:$0xf] }
  0x63   : > { %2096 = vst [vmem:[%s2763_s27 + $0x218] sm:$0xf] %v2095_v12  ;;  %v2099_v14 = vld [vmem:[%s2758_s26 + $0xcf8] sm:$0xf]  ;;  %v2101_v15 = vld [vmem:[%s2758_s26 + $0xd40] sm:$0xf] }
  0x64   : > { %2098 = vst [vmem:[%s2763_s27 + $0x224] sm:$0xf] %v2097_v13  ;;  %2100 = vst [vmem:[%s2763_s27 + $0x230] sm:$0xf] %v2099_v14  ;;  %v2103_v16 = vld [vmem:[%s2758_s26 + $0xd88] sm:$0xf] }
  0x65   : > { %2102 = vst [vmem:[%s2763_s27 + $0x23c] sm:$0xf] %v2101_v15  ;;  %v2105_v17 = vld [vmem:[%s2758_s26 + $0xdd0] sm:$0xf]  ;;  %v2107_v18 = vld [vmem:[%s2758_s26 + $0xe18] sm:$0xf] }
  0x66   : > { %2104 = vst [vmem:[%s2763_s27 + $0x248] sm:$0xf] %v2103_v16  ;;  %2106 = vst [vmem:[%s2763_s27 + $0x254] sm:$0xf] %v2105_v17  ;;  %v2109_v19 = vld [vmem:[%s2758_s26 + $0xe60] sm:$0xf] }
  0x67   : > { %2108 = vst [vmem:[%s2763_s27 + $0x260] sm:$0xf] %v2107_v18  ;;  %v2111_v20 = vld [vmem:[%s2758_s26 + $0xea8] sm:$0xf]  ;;  %v2113_v21 = vld [vmem:[%s2758_s26 + $0xef0] sm:$0xf] }
  0x68   : > { %2110 = vst [vmem:[%s2763_s27 + $0x26c] sm:$0xf] %v2109_v19  ;;  %2112 = vst [vmem:[%s2763_s27 + $0x278] sm:$0xf] %v2111_v20  ;;  %v2115_v22 = vld [vmem:[%s2758_s26 + $0xf38] sm:$0xf] }
  0x69   : > { %2114 = vst [vmem:[%s2763_s27 + $0x284] sm:$0xf] %v2113_v21  ;;  %v2117_v23 = vld [vmem:[%s2758_s26 + $0xf80] sm:$0xf]  ;;  %v2119_v24 = vld [vmem:[%s2758_s26 + $0xfc8] sm:$0xf] }
  0x6a   : > { %2116 = vst [vmem:[%s2763_s27 + $0x290] sm:$0xf] %v2115_v22  ;;  %2118 = vst [vmem:[%s2763_s27 + $0x29c] sm:$0xf] %v2117_v23  ;;  %v2121_v25 = vld [vmem:[%s2758_s26 + $0x1010] sm:$0xf] }
  0x6b   : > { %2120 = vst [vmem:[%s2763_s27 + $0x2a8] sm:$0xf] %v2119_v24  ;;  %v2123_v26 = vld [vmem:[%s2758_s26 + $0x1058] sm:$0xf]  ;;  %v2125_v27 = vld [vmem:[%s2758_s26 + $0x10a0] sm:$0xf] }
  0x6c   : > { %2122 = vst [vmem:[%s2763_s27 + $0x2b4] sm:$0xf] %v2121_v25  ;;  %2124 = vst [vmem:[%s2763_s27 + $0x2c0] sm:$0xf] %v2123_v26  ;;  %v2127_v28 = vld [vmem:[%s2758_s26 + $0x10e8] sm:$0xf] }
  0x6d   : > { %2126 = vst [vmem:[%s2763_s27 + $0x2cc] sm:$0xf] %v2125_v27  ;;  %v2129_v29 = vld [vmem:[%s2758_s26 + $0x1130] sm:$0xf]  ;;  %v2131_v30 = vld [vmem:[%s2758_s26 + $0x1178] sm:$0xf] }
  0x6e   : > { %2128 = vst [vmem:[%s2763_s27 + $0x2d8] sm:$0xf] %v2127_v28  ;;  %2130 = vst [vmem:[%s2763_s27 + $0x2e4] sm:$0xf] %v2129_v29  ;;  %v2133_v31 = vld [vmem:[%s2758_s26 + $0x11c0] sm:$0xf] }
  0x6f   : > { %2132 = vst [vmem:[%s2763_s27 + $0x2f0] sm:$0xf] %v2131_v30  ;;  %v2135_v32 = vld [vmem:[%s2758_s26 + $0x1208] sm:$0xf]  ;;  %v2137_v33 = vld [vmem:[%s2758_s26 + $0x1250] sm:$0xf] }
  0x70   : > { %2134 = vst [vmem:[%s2763_s27 + $0x2fc] sm:$0xf] %v2133_v31  ;;  %2136 = vst [vmem:[%s2763_s27 + $0x308] sm:$0xf] %v2135_v32  ;;  %v2139_v34 = vld [vmem:[%s2758_s26 + $0x1298] sm:$0xf] }
  0x71   : > { %2138 = vst [vmem:[%s2763_s27 + $0x314] sm:$0xf] %v2137_v33  ;;  %v2141_v35 = vld [vmem:[%s2758_s26 + $0x12e0] sm:$0xf]  ;;  %v2143_v36 = vld [vmem:[%s2758_s26 + $0x1328] sm:$0xf] }
  0x72   : > { %2140 = vst [vmem:[%s2763_s27 + $0x320] sm:$0xf] %v2139_v34  ;;  %2142 = vst [vmem:[%s2763_s27 + $0x32c] sm:$0xf] %v2141_v35  ;;  %v2145_v37 = vld [vmem:[%s2758_s26 + $0x1370] sm:$0xf] }
  0x73   : > { %2144 = vst [vmem:[%s2763_s27 + $0x338] sm:$0xf] %v2143_v36  ;;  %v2147_v38 = vld [vmem:[%s2758_s26 + $0x13b8] sm:$0xf]  ;;  %v2149_v39 = vld [vmem:[%s2758_s26 + $0x1400] sm:$0xf] }
  0x74   : > { %2146 = vst [vmem:[%s2763_s27 + $0x344] sm:$0xf] %v2145_v37  ;;  %2148 = vst [vmem:[%s2763_s27 + $0x350] sm:$0xf] %v2147_v38  ;;  %v2151_v40 = vld [vmem:[%s2758_s26 + $0x1448] sm:$0xf] }
  0x75   : > { %2150 = vst [vmem:[%s2763_s27 + $0x35c] sm:$0xf] %v2149_v39  ;;  %v2153_v41 = vld [vmem:[%s2758_s26 + $0x1490] sm:$0xf]  ;;  %v2155_v42 = vld [vmem:[%s2758_s26 + $0x14d8] sm:$0xf] }
  0x76   : > { %2152 = vst [vmem:[%s2763_s27 + $0x368] sm:$0xf] %v2151_v40  ;;  %2154 = vst [vmem:[%s2763_s27 + $0x374] sm:$0xf] %v2153_v41  ;;  %v2157_v43 = vld [vmem:[%s2758_s26 + $0x1520] sm:$0xf] }
  0x77   : > { %2156 = vst [vmem:[%s2763_s27 + $0x380] sm:$0xf] %v2155_v42  ;;  %v2159_v44 = vld [vmem:[%s2758_s26 + $0x1568] sm:$0xf]  ;;  %v2161_v45 = vld [vmem:[%s2758_s26 + $0x15b0] sm:$0xf] }
  0x78   : > { %2158 = vst [vmem:[%s2763_s27 + $0x38c] sm:$0xf] %v2157_v43  ;;  %2160 = vst [vmem:[%s2763_s27 + $0x398] sm:$0xf] %v2159_v44  ;;  %v2163_v46 = vld [vmem:[%s2758_s26 + $0x15f8] sm:$0xf] }
  0x79   : > { %2162 = vst [vmem:[%s2763_s27 + $0x3a4] sm:$0xf] %v2161_v45  ;;  %v2165_v47 = vld [vmem:[%s2758_s26 + $0x1640] sm:$0xf]  ;;  %v2167_v48 = vld [vmem:[%s2758_s26 + $0x1688] sm:$0xf] }
  0x7a   : > { %2164 = vst [vmem:[%s2763_s27 + $0x3b0] sm:$0xf] %v2163_v46  ;;  %2166 = vst [vmem:[%s2763_s27 + $0x3bc] sm:$0xf] %v2165_v47  ;;  %v2169_v49 = vld [vmem:[%s2758_s26 + $0x16d0] sm:$0xf] }
  0x7b   : > { %2168 = vst [vmem:[%s2763_s27 + $0x3c8] sm:$0xf] %v2167_v48  ;;  %v2171_v50 = vld [vmem:[%s2758_s26 + $0x1718] sm:$0xf]  ;;  %v2173_v51 = vld [vmem:[%s2758_s26 + $0x1760] sm:$0xf] }
  0x7c   : > { %2170 = vst [vmem:[%s2763_s27 + $0x3d4] sm:$0xf] %v2169_v49  ;;  %2172 = vst [vmem:[%s2763_s27 + $0x3e0] sm:$0xf] %v2171_v50  ;;  %v2175_v52 = vld [vmem:[%s2758_s26 + $0x17a8] sm:$0xf] }
  0x7d   : > { %2174 = vst [vmem:[%s2763_s27 + $0x3ec] sm:$0xf] %v2173_v51  ;;  %v2177_v53 = vld [vmem:[%s2758_s26 + $0x17f0] sm:$0xf]  ;;  %v2179_v54 = vld [vmem:[%s2758_s26 + $0x1838] sm:$0xf] }
  0x7e   : > { %2176 = vst [vmem:[%s2763_s27 + $0x3f8] sm:$0xf] %v2175_v52  ;;  %2178 = vst [vmem:[%s2763_s27 + $0x404] sm:$0xf] %v2177_v53  ;;  %v2181_v55 = vld [vmem:[%s2758_s26 + $0x1880] sm:$0xf] }
  0x7f   : > { %2180 = vst [vmem:[%s2763_s27 + $0x410] sm:$0xf] %v2179_v54  ;;  %v2183_v56 = vld [vmem:[%s2758_s26 + $0x18c8] sm:$0xf]  ;;  %v2185_v57 = vld [vmem:[%s2758_s26 + $0x1910] sm:$0xf] }
  0x80   : > { %2182 = vst [vmem:[%s2763_s27 + $0x41c] sm:$0xf] %v2181_v55  ;;  %2184 = vst [vmem:[%s2763_s27 + $0x428] sm:$0xf] %v2183_v56  ;;  %v2187_v58 = vld [vmem:[%s2758_s26 + $0x1958] sm:$0xf] }
  0x81   : > { %2186 = vst [vmem:[%s2763_s27 + $0x434] sm:$0xf] %v2185_v57  ;;  %v2189_v59 = vld [vmem:[%s2758_s26 + $0x19a0] sm:$0xf]  ;;  %v2191_v60 = vld [vmem:[%s2758_s26 + $0x19e8] sm:$0xf] }
  0x82   : > { %2188 = vst [vmem:[%s2763_s27 + $0x440] sm:$0xf] %v2187_v58  ;;  %2190 = vst [vmem:[%s2763_s27 + $0x44c] sm:$0xf] %v2189_v59  ;;  %v2193_v61 = vld [vmem:[%s2758_s26 + $0x1a30] sm:$0xf] }
  0x83   : > { %2192 = vst [vmem:[%s2763_s27 + $0x458] sm:$0xf] %v2191_v60  ;;  %v2195_v62 = vld [vmem:[%s2758_s26 + $0x1a78] sm:$0xf]  ;;  %v2197_v63 = vld [vmem:[%s2758_s26 + $0x1ac0] sm:$0xf] }
  0x84   : > { %2194 = vst [vmem:[%s2763_s27 + $0x464] sm:$0xf] %v2193_v61  ;;  %2196 = vst [vmem:[%s2763_s27 + $0x470] sm:$0xf] %v2195_v62 }
  0x85   : > { %2198 = vst [vmem:[%s2763_s27 + $0x47c] sm:$0xf] %v2197_v63 }
  0x86 PF: > { %p2199_p7 = scmp.ge.s32.totalorder %s2695_s14, 1  ;;  %p557_p8 = scmp.lt.s32.totalorder %s2695_s14, 7 }
  0x88   : > { %p558_p9 = pnand %p2199_p7, %p557_p8 }
  0x89   : > { %s564_s28 = sand.u32 (!%p558_p9), 1, %s2687_s12   ;;  %v3154_v0 = vld [vmem:[%s3357_s0 + $0x4] ss:$24 sps:$4 sm:$0xff] (!%p558_p9)   ;;  %s591_s22 = smul.u32 (!%p558_p9), 3, %s2733_s15 }
  0x8a   : > { %561 = sbr.rel (%p558_p9) target bundleno = 533 (0x215), region = 54  ;;  %v3159_v1 = vld [vmem:[%s3357_s0 + $0xc] ss:$24 sps:$4 sm:$0xff] (!%p558_p9)   ;;  %1643 = vmatprep.mubr.bf16.mxu1 (!%p558_p9), %v3154_v0 }
  0x8b   : > { %s2446_s29 = smul.u32 (!%p558_p9), 1152, %s564_s28  ;;  %1686 = vmatprep.mubr.bf16.mxu0 (!%p558_p9), %v3159_v1  ;;  %p592_p10 = scmp.lt.s32.totalorder (!%p558_p9), %s591_s22, 17 }
  0x8c   : > { %s2447_s26 = smul.u32 (!%p558_p9), 24, %s564_s28 }
  0x8d   : > { %s3162_s7 = scalar_lea.vmem (!%p558_p9), [#allocation2], %s2446_s29 }
  0x8e   : > { %v2472_v2 = vld [vmem:[%s3162_s7 + $0x4] ss:$12 sps:$4 sm:$0xff] (!%p558_p9)   ;;  %v2476_v4 = vld [vmem:[%s3162_s7] ss:$12 sps:$4 sm:$0xff] (!%p558_p9)   ;;  %v2478_v6 = vld [vmem:[%s3162_s7 + $0x1c] ss:$12 sps:$4 sm:$0xff] (!%p558_p9)  }
  0x8f   : > { %v2474_v3 = vld [vmem:[%s3162_s7 + $0x184] ss:$12 sps:$4 sm:$0xff] (!%p558_p9)   ;;  %1611 = vmatprep.subr.bf16.mxu1 (!%p558_p9), %v2472_v2  ;;  %v2477_v5 = vld [vmem:[%s3162_s7 + $0x180] ss:$12 sps:$4 sm:$0xff] (!%p558_p9)   ;;  %v2480_v7 = vld [vmem:[%s3162_s7 + $0x19c] ss:$12 sps:$4 sm:$0xff] (!%p558_p9)  }
  0x90   : > { %1654 = vmatprep.subr.bf16.mxu0 (!%p558_p9), %v2474_v3  ;;  %1612 = vmatpush1.bf16.msra.mxu1 (!%p558_p9), %v2476_v4  ;;  %v2482_v8 = vld [vmem:[%s3162_s7 + $0x18] ss:$12 sps:$4 sm:$0xff] (!%p558_p9)   ;;  %v2484_v10 = vld [vmem:[%s3162_s7 + $0x34] ss:$12 sps:$4 sm:$0xff] (!%p558_p9)   ;;  %v2488_v12 = vld [vmem:[%s3162_s7 + $0x30] ss:$12 sps:$4 sm:$0xff] (!%p558_p9)  }
  0x91   : > { %1655 = vmatpush1.bf16.msra.mxu0 %v2477_v5  ;;  %1613 = vmatprep.subr.bf16.mxu1 %v2478_v6  ;;  %v2483_v9 = vld [vmem:[%s3162_s7 + $0x198] ss:$12 sps:$4 sm:$0xff]   ;;  %v2486_v11 = vld [vmem:[%s3162_s7 + $0x1b4] ss:$12 sps:$4 sm:$0xff]   ;;  %v2489_v13 = vld [vmem:[%s3162_s7 + $0x1b0] ss:$12 sps:$4 sm:$0xff]  }
  0x92   : > { %1656 = vmatprep.subr.bf16.mxu0 %v2480_v7  ;;  %v2490_v14 = vld [vmem:[%s3162_s7 + $0x4c] ss:$12 sps:$4 sm:$0xff]   ;;  %v2494_v16 = vld [vmem:[%s3162_s7 + $0x48] ss:$12 sps:$4 sm:$0xff]   ;;  %v2496_v18 = vld [vmem:[%s3162_s7 + $0x64] ss:$12 sps:$4 sm:$0xff]  }
  0x93   : > { %v2492_v15 = vld [vmem:[%s3162_s7 + $0x1cc] ss:$12 sps:$4 sm:$0xff]   ;;  %v2495_v17 = vld [vmem:[%s3162_s7 + $0x1c8] ss:$12 sps:$4 sm:$0xff]   ;;  %v2498_v19 = vld [vmem:[%s3162_s7 + $0x1e4] ss:$12 sps:$4 sm:$0xff]  }
  0x94   : > { %1614 = vmatpush1.bf16.msra.mxu1 %v2482_v8  ;;  %v2500_v20 = vld [vmem:[%s3162_s7 + $0x60] ss:$12 sps:$4 sm:$0xff]   ;;  %v2502_v22 = vld [vmem:[%s3162_s7 + $0x7c] ss:$12 sps:$4 sm:$0xff]   ;;  %v2506_v24 = vld [vmem:[%s3162_s7 + $0x78] ss:$12 sps:$4 sm:$0xff]  }
  0x95   : > { %1657 = vmatpush1.bf16.msra.mxu0 %v2483_v9  ;;  %1615 = vmatprep.subr.bf16.mxu1 %v2484_v10  ;;  %v2501_v21 = vld [vmem:[%s3162_s7 + $0x1e0] ss:$12 sps:$4 sm:$0xff]   ;;  %v2504_v23 = vld [vmem:[%s3162_s7 + $0x1fc] ss:$12 sps:$4 sm:$0xff]   ;;  %v2507_v25 = vld [vmem:[%s3162_s7 + $0x1f8] ss:$12 sps:$4 sm:$0xff]  }
  0x96   : > { %1658 = vmatprep.subr.bf16.mxu0 %v2486_v11  ;;  %v2508_v26 = vld [vmem:[%s3162_s7 + $0x94] ss:$12 sps:$4 sm:$0xff]   ;;  %v2512_v28 = vld [vmem:[%s3162_s7 + $0x90] ss:$12 sps:$4 sm:$0xff]   ;;  %v2514_v30 = vld [vmem:[%s3162_s7 + $0xac] ss:$12 sps:$4 sm:$0xff]  }
  0x97   : > { %v2510_v27 = vld [vmem:[%s3162_s7 + $0x214] ss:$12 sps:$4 sm:$0xff]   ;;  %v2513_v29 = vld [vmem:[%s3162_s7 + $0x210] ss:$12 sps:$4 sm:$0xff]   ;;  %v2516_v31 = vld [vmem:[%s3162_s7 + $0x22c] ss:$12 sps:$4 sm:$0xff]  }
  0x98   : > { %1616 = vmatpush1.bf16.msra.mxu1 %v2488_v12  ;;  %v2518_v32 = vld [vmem:[%s3162_s7 + $0xa8] ss:$12 sps:$4 sm:$0xff]   ;;  %v2520_v34 = vld [vmem:[%s3162_s7 + $0xc4] ss:$12 sps:$4 sm:$0xff]   ;;  %v2524_v36 = vld [vmem:[%s3162_s7 + $0xc0] ss:$12 sps:$4 sm:$0xff]  }
  0x99   : > { %1659 = vmatpush1.bf16.msra.mxu0 %v2489_v13  ;;  %1617 = vmatprep.subr.bf16.mxu1 %v2490_v14  ;;  %v2519_v33 = vld [vmem:[%s3162_s7 + $0x228] ss:$12 sps:$4 sm:$0xff]   ;;  %v2522_v35 = vld [vmem:[%s3162_s7 + $0x244] ss:$12 sps:$4 sm:$0xff]   ;;  %v2525_v37 = vld [vmem:[%s3162_s7 + $0x240] ss:$12 sps:$4 sm:$0xff]  }
  0x9a   : > { %1660 = vmatprep.subr.bf16.mxu0 %v2492_v15  ;;  %v2526_v38 = vld [vmem:[%s3162_s7 + $0xdc] ss:$12 sps:$4 sm:$0xff]   ;;  %v2530_v40 = vld [vmem:[%s3162_s7 + $0xd8] ss:$12 sps:$4 sm:$0xff]   ;;  %v2532_v42 = vld [vmem:[%s3162_s7 + $0xf4] ss:$12 sps:$4 sm:$0xff]  }
  0x9b   : > { %v2528_v39 = vld [vmem:[%s3162_s7 + $0x25c] ss:$12 sps:$4 sm:$0xff]   ;;  %v2531_v41 = vld [vmem:[%s3162_s7 + $0x258] ss:$12 sps:$4 sm:$0xff]   ;;  %v2534_v43 = vld [vmem:[%s3162_s7 + $0x274] ss:$12 sps:$4 sm:$0xff]  }
  0x9c   : > { %1618 = vmatpush1.bf16.msra.mxu1 %v2494_v16  ;;  %v2536_v44 = vld [vmem:[%s3162_s7 + $0xf0] ss:$12 sps:$4 sm:$0xff]   ;;  %v2538_v46 = vld [vmem:[%s3162_s7 + $0x10c] ss:$12 sps:$4 sm:$0xff]   ;;  %v2542_v48 = vld [vmem:[%s3162_s7 + $0x108] ss:$12 sps:$4 sm:$0xff]  }
  0x9d   : > { %1661 = vmatpush1.bf16.msra.mxu0 %v2495_v17  ;;  %1619 = vmatprep.subr.bf16.mxu1 %v2496_v18  ;;  %v2537_v45 = vld [vmem:[%s3162_s7 + $0x270] ss:$12 sps:$4 sm:$0xff]   ;;  %v2540_v47 = vld [vmem:[%s3162_s7 + $0x28c] ss:$12 sps:$4 sm:$0xff]   ;;  %v2543_v49 = vld [vmem:[%s3162_s7 + $0x288] ss:$12 sps:$4 sm:$0xff]  }
  0x9e   : > { %1662 = vmatprep.subr.bf16.mxu0 %v2498_v19  ;;  %v2544_v50 = vld [vmem:[%s3162_s7 + $0x124] ss:$12 sps:$4 sm:$0xff]   ;;  %v2548_v52 = vld [vmem:[%s3162_s7 + $0x120] ss:$12 sps:$4 sm:$0xff]   ;;  %v2550_v54 = vld [vmem:[%s3162_s7 + $0x13c] ss:$12 sps:$4 sm:$0xff]  }
  0x9f   : > { %v2546_v51 = vld [vmem:[%s3162_s7 + $0x2a4] ss:$12 sps:$4 sm:$0xff]   ;;  %v2549_v53 = vld [vmem:[%s3162_s7 + $0x2a0] ss:$12 sps:$4 sm:$0xff]   ;;  %v2552_v55 = vld [vmem:[%s3162_s7 + $0x2bc] ss:$12 sps:$4 sm:$0xff]  }
  0xa0   : > { %1620 = vmatpush1.bf16.msra.mxu1 %v2500_v20  ;;  %v2554_v56 = vld [vmem:[%s3162_s7 + $0x138] ss:$12 sps:$4 sm:$0xff]   ;;  %v2556_v58 = vld [vmem:[%s3162_s7 + $0x154] ss:$12 sps:$4 sm:$0xff]   ;;  %v2560_v60 = vld [vmem:[%s3162_s7 + $0x150] ss:$12 sps:$4 sm:$0xff]  }
  0xa1   : > { %1663 = vmatpush1.bf16.msra.mxu0 %v2501_v21  ;;  %1621 = vmatprep.subr.bf16.mxu1 %v2502_v22  ;;  %v2555_v57 = vld [vmem:[%s3162_s7 + $0x2b8] ss:$12 sps:$4 sm:$0xff]   ;;  %v2558_v59 = vld [vmem:[%s3162_s7 + $0x2d4] ss:$12 sps:$4 sm:$0xff]   ;;  %v2561_v61 = vld [vmem:[%s3162_s7 + $0x2d0] ss:$12 sps:$4 sm:$0xff]  }
  0xa2   : > { %1664 = vmatprep.subr.bf16.mxu0 %v2504_v23  ;;  %v2562_v62 = vld [vmem:[%s3162_s7 + $0x16c] ss:$12 sps:$4 sm:$0xff]   ;;  %v2566_v2 = vld [vmem:[%s3162_s7 + $0x168] ss:$12 sps:$4 sm:$0xff]   ;;  %v2576_v4 = vld [vmem:[%s3162_s7 + $0x304] ss:$12 sps:$4 sm:$0xff]  }
  0xa3   : > { %v2564_v63 = vld [vmem:[%s3162_s7 + $0x2ec] ss:$12 sps:$4 sm:$0xff]   ;;  %v2567_v3 = vld [vmem:[%s3162_s7 + $0x2e8] ss:$12 sps:$4 sm:$0xff]   ;;  %v2584_v16 = vld [vmem:[%s3162_s7 + $0x330] ss:$12 sps:$4 sm:$0xff]  }
  0xa4   : > { %1622 = vmatpush1.bf16.msra.mxu1 %v2506_v24  ;;  %v3233_v5 = vld [vmem:[%s3357_s0] ss:$24 sps:$4 sm:$0xff]   ;;  %v2577_v6 = vld [vmem:[%s3162_s7 + $0xc8] ss:$12 sps:$4 sm:$0xff]   ;;  %v2592_v19 = vld [vmem:[%s3162_s7 + $0x110] ss:$12 sps:$4 sm:$0xff]  }
  0xa5   : > { %1665 = vmatpush1.bf16.msra.mxu0 %v2507_v25  ;;  %1623 = vmatprep.subr.bf16.mxu1 %v2508_v26  ;;  %v3239_v7 = vld [vmem:[%s3357_s0 + $0x8] ss:$24 sps:$4 sm:$0xff]   ;;  %v2579_v12 = vld [vmem:[%s3162_s7 + $0x318] ss:$12 sps:$4 sm:$0xff]   ;;  %v2593_v21 = vld [vmem:[%s3162_s7 + $0x50] ss:$12 sps:$4 sm:$0xff]  }
  0xa6   : > { %1666 = vmatprep.subr.bf16.mxu0 %v2510_v27  ;;  %v2574_v8 = vld [vmem:[%s3162_s7 + $0x300] ss:$12 sps:$4 sm:$0xff]   ;;  %v2578_v9 = vld [vmem:[%s3162_s7 + $0x8] ss:$12 sps:$4 sm:$0xff]   ;;  %v2587_v15 = vld [vmem:[%s3162_s7 + $0xf8] ss:$12 sps:$4 sm:$0xff]  }
  0xa7   : > { %v2581_v10 = vld [vmem:[%s3162_s7 + $0x31c] ss:$12 sps:$4 sm:$0xff]   ;;  %v2582_v11 = vld [vmem:[%s3162_s7 + $0xe0] ss:$12 sps:$4 sm:$0xff]   ;;  %v2588_v17 = vld [vmem:[%s3162_s7 + $0x38] ss:$12 sps:$4 sm:$0xff]  }
  0xa8   : > { %1624 = vmatpush1.bf16.msra.mxu1 %v2512_v28  ;;  %v2583_v13 = vld [vmem:[%s3162_s7 + $0x20] ss:$12 sps:$4 sm:$0xff]   ;;  %v2589_v20 = vld [vmem:[%s3162_s7 + $0x348] ss:$12 sps:$4 sm:$0xff]   ;;  %v2599_v27 = vld [vmem:[%s3162_s7 + $0x378] ss:$12 sps:$4 sm:$0xff]  }
  0xa9   : > { %1667 = vmatpush1.bf16.msra.mxu0 %v2513_v29  ;;  %1625 = vmatprep.subr.bf16.mxu1 %v2514_v30  ;;  %v2586_v14 = vld [vmem:[%s3162_s7 + $0x334] ss:$12 sps:$4 sm:$0xff]   ;;  %v2591_v18 = vld [vmem:[%s3162_s7 + $0x34c] ss:$12 sps:$4 sm:$0xff]   ;;  %v2601_v25 = vld [vmem:[%s3162_s7 + $0x37c] ss:$12 sps:$4 sm:$0xff]  }
  0xaa   : > { %1668 = vmatprep.subr.bf16.mxu0 %v2516_v31  ;;  %v2597_v22 = vld [vmem:[%s3162_s7 + $0x128] ss:$12 sps:$4 sm:$0xff]   ;;  %v2594_v23 = vld [vmem:[%s3162_s7 + $0x360] ss:$12 sps:$4 sm:$0xff]   ;;  %v2607_v30 = vld [vmem:[%s3162_s7 + $0x158] ss:$12 sps:$4 sm:$0xff]  }
  0xab   : > { %v2598_v24 = vld [vmem:[%s3162_s7 + $0x68] ss:$12 sps:$4 sm:$0xff]   ;;  %v2602_v26 = vld [vmem:[%s3162_s7 + $0x140] ss:$12 sps:$4 sm:$0xff]   ;;  %v2604_v31 = vld [vmem:[%s3162_s7 + $0x390] ss:$12 sps:$4 sm:$0xff]  }
  0xac   : > { %1626 = vmatpush1.bf16.msra.mxu1 %v2518_v32  ;;  %v2603_v28 = vld [vmem:[%s3162_s7 + $0x80] ss:$12 sps:$4 sm:$0xff]   ;;  %v2608_v32 = vld [vmem:[%s3162_s7 + $0x98] ss:$12 sps:$4 sm:$0xff]   ;;  %s3366_s22 = smov (!%p592_p10, %s591_s22), 17  ;;  %s589_s12 = scalar_lea.vmem [#allocation3], %s2447_s26 }
  0xad   : > { %1669 = vmatpush1.bf16.msra.mxu0 %v2519_v33  ;;  %1627 = vmatprep.subr.bf16.mxu1 %v2520_v34  ;;  %v2606_v29 = vld [vmem:[%s3162_s7 + $0x394] ss:$12 sps:$4 sm:$0xff]   ;;  %v2611_v33 = vld [vmem:[%s3162_s7 + $0x3ac] ss:$12 sps:$4 sm:$0xff]   ;;  %v2612_v34 = vld [vmem:[%s3162_s7 + $0x170] ss:$12 sps:$4 sm:$0xff]   ;;  %s594_s25 = scalar_lea.vmem %s3359_s2, %s3366_s22 }
  0xae   : > { %1670 = vmatprep.subr.bf16.mxu0 %v2522_v35  ;;  %v2609_v35 = vld [vmem:[%s3162_s7 + $0x3a8] ss:$12 sps:$4 sm:$0xff]   ;;  %s2366_s27 = smul.u32 (%p2748_p5), 12, %s2733_s15 }
  0xb0   : > { %1628 = vmatpush1.bf16.msra.mxu1 %v2524_v36  ;;  %v2613_v36 = vld [vmem:[%s3162_s7 + $0xb0] ss:$12 sps:$4 sm:$0xff]   ;;  %s1896_s30 = scalar_lea.vmem (%p2748_p5), %s3360_s3, %s2366_s27 }
  0xb1   : > { %1671 = vmatpush1.bf16.msra.mxu0 %v2525_v37  ;;  %1629 = vmatprep.subr.bf16.mxu1 %v2526_v38  ;;  %v2616_v37 = vld [vmem:[%s3162_s7 + $0x3c4] ss:$12 sps:$4 sm:$0xff]   ;;  %v2617_v38 = vld [vmem:[%s3162_s7 + $0x248] ss:$12 sps:$4 sm:$0xff]  }
  0xb2   : > { %1672 = vmatprep.subr.bf16.mxu0 %v2528_v39  ;;  %v2614_v39 = vld [vmem:[%s3162_s7 + $0x3c0] ss:$12 sps:$4 sm:$0xff]  }
  0xb4   : > { %1630 = vmatpush1.bf16.msra.mxu1 %v2530_v40  ;;  %v2618_v40 = vld [vmem:[%s3162_s7 + $0x188] ss:$12 sps:$4 sm:$0xff]  }
  0xb5   : > { %1673 = vmatpush1.bf16.msra.mxu0 %v2531_v41  ;;  %1631 = vmatprep.subr.bf16.mxu1 %v2532_v42  ;;  %v2621_v41 = vld [vmem:[%s3162_s7 + $0x3dc] ss:$12 sps:$4 sm:$0xff]   ;;  %v3282_v42 = vld [vmem:[%s3357_s0 + $0x14] ss:$24 sps:$4 sm:$0xff]  }
  0xb6   : > { %1674 = vmatprep.subr.bf16.mxu0 %v2534_v43  ;;  %v2622_v43 = vld [vmem:[%s3162_s7 + $0x260] ss:$12 sps:$4 sm:$0xff]  }
  0xb8   : > { %1632 = vmatpush1.bf16.msra.mxu1 %v2536_v44  ;;  %v2619_v44 = vld [vmem:[%s3162_s7 + $0x3d8] ss:$12 sps:$4 sm:$0xff]  }
  0xb9   : > { %1675 = vmatpush1.bf16.msra.mxu0 %v2537_v45  ;;  %1633 = vmatprep.subr.bf16.mxu1 %v2538_v46  ;;  %v2623_v45 = vld [vmem:[%s3162_s7 + $0x1a0] ss:$12 sps:$4 sm:$0xff]  }
  0xba   : > { %1676 = vmatprep.subr.bf16.mxu0 %v2540_v47  ;;  %v2626_v46 = vld [vmem:[%s3162_s7 + $0x3f4] ss:$12 sps:$4 sm:$0xff]   ;;  %v2627_v47 = vld [vmem:[%s3162_s7 + $0x278] ss:$12 sps:$4 sm:$0xff]  }
  0xbc   : > { %1634 = vmatpush1.bf16.msra.mxu1 %v2542_v48  ;;  %v2624_v48 = vld [vmem:[%s3162_s7 + $0x3f0] ss:$12 sps:$4 sm:$0xff]  }
  0xbd   : > { %1677 = vmatpush1.bf16.msra.mxu0 %v2543_v49  ;;  %1635 = vmatprep.subr.bf16.mxu1 %v2544_v50  ;;  %v2628_v49 = vld [vmem:[%s3162_s7 + $0x1b8] ss:$12 sps:$4 sm:$0xff]  }
  0xbe   : > { %1678 = vmatprep.subr.bf16.mxu0 %v2546_v51  ;;  %v2631_v50 = vld [vmem:[%s3162_s7 + $0x40c] ss:$12 sps:$4 sm:$0xff]   ;;  %v2632_v51 = vld [vmem:[%s3162_s7 + $0x290] ss:$12 sps:$4 sm:$0xff]  }
  0xc0   : > { %1636 = vmatpush1.bf16.msra.mxu1 %v2548_v52  ;;  %v2629_v52 = vld [vmem:[%s3162_s7 + $0x408] ss:$12 sps:$4 sm:$0xff]  }
  0xc1   : > { %1679 = vmatpush1.bf16.msra.mxu0 %v2549_v53  ;;  %1637 = vmatprep.subr.bf16.mxu1 %v2550_v54  ;;  %v2633_v53 = vld [vmem:[%s3162_s7 + $0x1d0] ss:$12 sps:$4 sm:$0xff]  }
  0xc2   : > { %1680 = vmatprep.subr.bf16.mxu0 %v2552_v55  ;;  %v2636_v54 = vld [vmem:[%s3162_s7 + $0x424] ss:$12 sps:$4 sm:$0xff]   ;;  %v2634_v55 = vld [vmem:[%s3162_s7 + $0x420] ss:$12 sps:$4 sm:$0xff]  }
  0xc4   : > { %1638 = vmatpush1.bf16.msra.mxu1 %v2554_v56  ;;  %v2638_v56 = vld [vmem:[%s3162_s7 + $0x1e8] ss:$12 sps:$4 sm:$0xff]  }
  0xc5   : > { %1681 = vmatpush1.bf16.msra.mxu0 %v2555_v57  ;;  %1639 = vmatprep.subr.bf16.mxu1 %v2556_v58  ;;  %v2641_v57 = vld [vmem:[%s3162_s7 + $0x43c] ss:$12 sps:$4 sm:$0xff]   ;;  %v2642_v58 = vld [vmem:[%s3162_s7 + $0x2c0] ss:$12 sps:$4 sm:$0xff]  }
  0xc6   : > { %1682 = vmatprep.subr.bf16.mxu0 %v2558_v59  ;;  %v2639_v59 = vld [vmem:[%s3162_s7 + $0x438] ss:$12 sps:$4 sm:$0xff]  }
  0xc8   : > { %1640 = vmatpush1.bf16.msra.mxu1 %v2560_v60  ;;  %v2643_v60 = vld [vmem:[%s3162_s7 + $0x200] ss:$12 sps:$4 sm:$0xff]  }
  0xc9   : > { %1683 = vmatpush1.bf16.msra.mxu0 %v2561_v61  ;;  %1641 = vmatprep.subr.bf16.mxu1 %v2562_v62  ;;  %v2646_v61 = vld [vmem:[%s3162_s7 + $0x454] ss:$12 sps:$4 sm:$0xff]   ;;  %v2647_v62 = vld [vmem:[%s3162_s7 + $0x2d8] ss:$12 sps:$4 sm:$0xff]  }
  0xca   : > { %1684 = vmatprep.subr.bf16.mxu0 %v2564_v63  ;;  %v2644_v63 = vld [vmem:[%s3162_s7 + $0x450] ss:$12 sps:$4 sm:$0xff]  }
  0xcc   : > { %1642 = vmatpush1.bf16.msra.mxu1 %v2566_v2  ;;  %v2648_v2 = vld [vmem:[%s3162_s7 + $0x218] ss:$12 sps:$4 sm:$0xff]  }
  0xcd   : > { %1685 = vmatpush1.bf16.msra.mxu0 %v2567_v3  ;;  %2367 = vmatprep.subr.bf16.mxu1 %v2577_v6  ;;  %v2651_v3 = vld [vmem:[%s3162_s7 + $0x46c] ss:$12 sps:$4 sm:$0xff]   ;;  %v2653_v6 = vld [vmem:[%s3162_s7 + $0x230] ss:$12 sps:$4 sm:$0xff]  }
  0xce   : > { %1697 = vmatprep.subr.bf16.mxu0 %v2576_v4  ;;  %v2652_v4 = vld [vmem:[%s3162_s7 + $0x2f0] ss:$12 sps:$4 sm:$0xff]  }
  0xcf   : > { %1644 = vmatmul.mubr.bf16.vlgmr.msra.gmra.mrb[0].mxu1 %v3233_v5 }
  0xd0   : > { %1687 = vmatmul.mubr.bf16.vlgmr.msra.gmra.mrb[0].mxu0 %v3239_v7  ;;  %2368 = vmatpush3.bf16.msra.mxu1 %v2578_v9  ;;  %v2654_v9 = vld [vmem:[%s3357_s0 + $0x10] ss:$24 sps:$4 sm:$0xff]  }
  0xd1   : > { %1698 = vmatpush1.bf16.msra.mxu0 %v2574_v8  ;;  %2369 = vmatprep.subr.bf16.mxu1 %v2582_v11  ;;  %v2657_v8 = vld [vmem:[%s3162_s7 + $0x3c8] ss:$12 sps:$4 sm:$0xff]   ;;  %v2659_v11 = vld [vmem:[%s3162_s7 + $0x3e0] ss:$12 sps:$4 sm:$0xff]  }
  0xd2   : > { %1699 = vmatprep.subr.bf16.mxu0 %v2581_v10  ;;  %1772 = vmatprep.mubr.bf16.mxu1 %v3154_v0  ;;  %v2596_v0 = vld [vmem:[%s3162_s7 + $0x364] ss:$12 sps:$4 sm:$0xff]   ;;  %v2658_v10 = vld [vmem:[%s3162_s7 + $0x308] ss:$12 sps:$4 sm:$0xff]  }
  0xd3   : > { %1729 = vmatprep.mubr.bf16.mxu0 %v3282_v42 }
  0xd4   : > { %2370 = vmatpush3.bf16.msra.mxu1 %v2583_v13  ;;  %v2661_v13 = vld [vmem:[%s3162_s7 + $0x3f8] ss:$12 sps:$4 sm:$0xff]  }
  0xd5   : > { %1700 = vmatpush1.bf16.msra.mxu0 %v2579_v12  ;;  %2371 = vmatprep.subr.bf16.mxu1 %v2587_v15  ;;  %v2660_v12 = vld [vmem:[%s3162_s7 + $0x320] ss:$12 sps:$4 sm:$0xff]   ;;  %v2663_v15 = vld [vmem:[%s3162_s7 + $0x410] ss:$12 sps:$4 sm:$0xff]  }
  0xd6   : > { %1701 = vmatprep.subr.bf16.mxu0 %v2586_v14  ;;  %v2662_v14 = vld [vmem:[%s3162_s7 + $0x338] ss:$12 sps:$4 sm:$0xff]  }
  0xd8   : > { %2372 = vmatpush3.bf16.msra.mxu1 %v2588_v17  ;;  %v2666_v17 = vld [vmem:[%s3162_s7 + $0x368] ss:$12 sps:$4 sm:$0xff]  }
  0xd9   : > { %1702 = vmatpush1.bf16.msra.mxu0 %v2584_v16  ;;  %2373 = vmatprep.subr.bf16.mxu1 %v2592_v19  ;;  %v2664_v16 = vld [vmem:[%s3162_s7 + $0x350] ss:$12 sps:$4 sm:$0xff]   ;;  %v2668_v19 = vld [vmem:[%s3162_s7 + $0x380] ss:$12 sps:$4 sm:$0xff]  }
  0xda   : > { %1703 = vmatprep.subr.bf16.mxu0 %v2591_v18  ;;  %v2667_v18 = vld [vmem:[%s3162_s7 + $0x440] ss:$12 sps:$4 sm:$0xff]  }
  0xdc   : > { %2374 = vmatpush3.bf16.msra.mxu1 %v2593_v21  ;;  %v2670_v21 = vld [vmem:[%s3162_s7 + $0x398] ss:$12 sps:$4 sm:$0xff]  }
  0xdd   : > { %1704 = vmatpush1.bf16.msra.mxu0 %v2589_v20  ;;  %2375 = vmatprep.subr.bf16.mxu1 %v2597_v22  ;;  %v2669_v20 = vld [vmem:[%s3162_s7 + $0x458] ss:$12 sps:$4 sm:$0xff]   ;;  %v2672_v22 = vld [vmem:[%s3162_s7 + $0x3b0] ss:$12 sps:$4 sm:$0xff]  }
  0xde   : > { %1705 = vmatprep.subr.bf16.mxu0 %v2596_v0  ;;  %v2671_v0 = vld [vmem:[%s3162_s7 + $0x470] ss:$12 sps:$4 sm:$0xff]  }
  0xe0   : > { %2376 = vmatpush3.bf16.msra.mxu1 %v2598_v24 }
  0xe1   : > { %1706 = vmatpush1.bf16.msra.mxu0 %v2594_v23  ;;  %2377 = vmatprep.subr.bf16.mxu1 %v2602_v26 }
  0xe2   : > { %1707 = vmatprep.subr.bf16.mxu0 %v2601_v25 }
  0xe4   : > { %2378 = vmatpush3.bf16.msra.mxu1 %v2603_v28 }
  0xe5   : > { %1708 = vmatpush1.bf16.msra.mxu0 %v2599_v27  ;;  %2379 = vmatprep.subr.bf16.mxu1 %v2607_v30 }
  0xe6   : > { %1709 = vmatprep.subr.bf16.mxu0 %v2606_v29 }
  0xe8   : > { %2380 = vmatpush3.bf16.msra.mxu1 %v2608_v32 }
  0xe9   : > { %1710 = vmatpush1.bf16.msra.mxu0 %v2604_v31  ;;  %2381 = vmatprep.subr.bf16.mxu1 %v2612_v34 }
  0xea   : > { %1711 = vmatprep.subr.bf16.mxu0 %v2611_v33  ;;  %v798_v33 = vlaneseq }
  0xec   : > { %2382 = vmatpush3.bf16.msra.mxu1 %v2613_v36  ;;  %v799_v34 = vshrl.u32 %v798_v33, 7  ;;  %v796_v36 = vld [vmem:[%s594_s25] sm:$0x7] }
  0xed   : > { %1712 = vmatpush1.bf16.msra.mxu0 %v2609_v35  ;;  %2389 = vmatprep.subr.bf16.mxu1 %v2617_v38 }
  0xee   : > { %1713 = vmatprep.subr.bf16.mxu0 %v2616_v37  ;;  %v800_v35 = vsub.s32 0, %v799_v34  ;;  %v804_v37 = vsub.s32 1, %v799_v34  ;;  %v808_v38 = vsub.s32 2, %v799_v34 }
  0xef   : > { %1773 = vmatmul.mubr.bf16.vlgmr.msra.gmra.mrb[4].mxu1 %v3233_v5  ;;  %v2649_v5 = vld [vmem:[%s3162_s7 + $0x468] ss:$12 sps:$4 sm:$0xff]  }
  0xf0   : > { %2390 = vmatpush3.bf16.msra.mxu1 %v2618_v40  ;;  %1813 = vmatprep.mubr.bf16.mxu1 %v3159_v1  ;;  %v2637_v1 = vld [vmem:[%s3162_s7 + $0x2a8] ss:$12 sps:$4 sm:$0xff]   ;;  %v805_v40 = vrot.slane %v796_v36, %v804_v37 }
  0xf1   : > { %1714 = vmatpush1.bf16.msra.mxu0 %v2614_v39  ;;  %2391 = vmatprep.subr.bf16.mxu1 %v2622_v43  ;;  %v801_v39 = vrot.slane %v796_v36, %v800_v35 }
  0xf2   : > { %1715 = vmatprep.subr.bf16.mxu0 %v2621_v41  ;;  %v809_v41 = vrot.slane %v796_v36, %v808_v38 }
  0xf4   : > { %2392 = vmatpush3.bf16.msra.mxu1 %v2623_v45 }
  0xf5   : > { %1716 = vmatpush1.bf16.msra.mxu0 %v2619_v44  ;;  %2393 = vmatprep.subr.bf16.mxu1 %v2627_v47 }
  0xf6   : > { %1717 = vmatprep.subr.bf16.mxu0 %v2626_v46 }
  0xf8   : > { %2394 = vmatpush3.bf16.msra.mxu1 %v2628_v49 }
  0xf9   : > { %1718 = vmatpush1.bf16.msra.mxu0 %v2624_v48  ;;  %2395 = vmatprep.subr.bf16.mxu1 %v2632_v51 }
  0xfa   : > { %1719 = vmatprep.subr.bf16.mxu0 %v2631_v50 }
  0xfc   : > { %2396 = vmatpush3.bf16.msra.mxu1 %v2633_v53 }
  0xfd   : > { %1720 = vmatpush1.bf16.msra.mxu0 %v2629_v52  ;;  %2397 = vmatprep.subr.bf16.mxu1 %v2637_v1 }
  0xfe   : > { %1721 = vmatprep.subr.bf16.mxu0 %v2636_v54 }
 0x100   : > { %2398 = vmatpush3.bf16.msra.mxu1 %v2638_v56 }
 0x101   : > { %1722 = vmatpush1.bf16.msra.mxu0 %v2634_v55  ;;  %2399 = vmatprep.subr.bf16.mxu1 %v2642_v58 }
 0x102   : > { %1723 = vmatprep.subr.bf16.mxu0 %v2641_v57 }
 0x104   : > { %2400 = vmatpush3.bf16.msra.mxu1 %v2643_v60 }
 0x105   : > { %1724 = vmatpush1.bf16.msra.mxu0 %v2639_v59  ;;  %2401 = vmatprep.subr.bf16.mxu1 %v2647_v62 }
 0x106   : > { %1725 = vmatprep.subr.bf16.mxu0 %v2646_v61 }
 0x108   : > { %2402 = vmatpush3.bf16.msra.mxu1 %v2648_v2 }
 0x109   : > { %1726 = vmatpush1.bf16.msra.mxu0 %v2644_v63  ;;  %2403 = vmatprep.subr.bf16.mxu1 %v2652_v4 }
 0x10a   : > { %1727 = vmatprep.subr.bf16.mxu0 %v2651_v3 }
 0x10c   : > { %2404 = vmatpush3.bf16.msra.mxu1 %v2653_v6 }
 0x10d   : > { %1728 = vmatpush1.bf16.msra.mxu0 %v2649_v5  ;;  %2411 = vmatprep.subr.bf16.mxu1 %v2657_v8 }
 0x10f   : > { %1814 = vmatmul.mubr.bf16.vlgmr.msra.gmra.mrb[8].mxu1 %v3239_v7  ;;  %v2665_v7 = vld [vmem:[%s3162_s7 + $0x428] ss:$12 sps:$4 sm:$0xff]  }
 0x110   : > { %1730 = vmatmul.mubr.bf16.vlgmr.msra.gmra.mrb[0].mxu0 %v2654_v9  ;;  %2412 = vmatpush3.bf16.msra.mxu1 %v2658_v10 }
 0x111   : > { %1854 = vmatprep.mubr.bf16.mxu1 %v3282_v42  ;;  %2413 = vmatprep.subr.bf16.mxu1 %v2659_v11 }
 0x114   : > { %2414 = vmatpush3.bf16.msra.mxu1 %v2660_v12 }
 0x115   : > { %2415 = vmatprep.subr.bf16.mxu1 %v2661_v13 }
 0x118   : > { %2416 = vmatpush3.bf16.msra.mxu1 %v2662_v14 }
 0x119   : > { %2417 = vmatprep.subr.bf16.mxu1 %v2663_v15 }
 0x11c   : > { %2418 = vmatpush3.bf16.msra.mxu1 %v2664_v16 }
 0x11d   : > { %2419 = vmatprep.subr.bf16.mxu1 %v2665_v7 }
 0x120   : > { %2420 = vmatpush3.bf16.msra.mxu1 %v2666_v17 }
 0x121   : > { %2421 = vmatprep.subr.bf16.mxu1 %v2667_v18 }
 0x124   : > { %2422 = vmatpush3.bf16.msra.mxu1 %v2668_v19 }
 0x125   : > { %2423 = vmatprep.subr.bf16.mxu1 %v2669_v20 }
 0x128   : > { %2424 = vmatpush3.bf16.msra.mxu1 %v2670_v21 }
 0x129   : > { %2425 = vmatprep.subr.bf16.mxu1 %v2671_v0 }
 0x12c   : > { %2426 = vmatpush3.bf16.msra.mxu1 %v2672_v22 }
 0x12f   : > { %1855 = vmatmul.mubr.bf16.vlgmr.msra.gmra.mrb[12].mxu1 %v2654_v9 }
 0x1a2   : > { %v1645_v23 = vpop.f32.mrb[0].mxu1 }
 0x1a3   : > { %v1647_v24 = vpop.f32.mrb[1].mxu1  ;;  %v1646_v42 = vadd.f32 %v1645_v23, %v801_v39 }
 0x1a4   : > { %v1649_v25 = vpop.f32.mrb[2].mxu1  ;;  %v1648_v43 = vadd.f32 %v1647_v24, %v805_v40 }
 0x1a5   : > { %v1651_v26 = vpop.f32.mrb[3].mxu1  ;;  %v1650_v46 = vadd.f32 %v1649_v25, %v801_v39 }
 0x1a6   : > { %v1652_v50 = vadd.f32 %v1651_v26, %v805_v40 }
 0x1c2   : > { %v2383_v27 = vpop.f32.mrb[4].mxu1 }
 0x1c3   : > { %v2384_v28 = vpop.f32.mrb[5].mxu1 }
 0x1c4   : > { %v2385_v29 = vadd.f32 %v2384_v28, %v2383_v27  ;;  %v2386_v30 = vpop.f32.mrb[6].mxu1 }
 0x1c5   : > { %v2387_v31 = vpop.f32.mrb[7].mxu1 }
 0x1c6   : > { %v2388_v32 = vadd.f32 %v2387_v31, %v2386_v30  ;;  %v1775_v51 = vadd.f32 %v2385_v29, %v809_v41 }
 0x1c8   : > { %v1778_v55 = vadd.f32 %v2388_v32, %v809_v41 }
 0x1e2   : > { %v2405_v45 = vpop.f32.mrb[8].mxu1 }
 0x1e3   : > { %v1731_v44 = vpop.f32.mrb[0].mxu0  ;;  %v2406_v49 = vpop.f32.mrb[9].mxu1 }
 0x1e4   : > { %v2434_v47 = vadd.f32 %v1731_v44, %v1646_v42  ;;  %v1733_v48 = vpop.f32.mrb[1].mxu0  ;;  %v2407_v53 = vadd.f32 %v2406_v49, %v2405_v45  ;;  %v2408_v1 = vpop.f32.mrb[10].mxu1 }
 0x1e5   : > { %v2436_v52 = vadd.f32 %v1733_v48, %v1648_v43  ;;  %v1735_v54 = vpop.f32.mrb[2].mxu0  ;;  %v2409_v58 = vpop.f32.mrb[11].mxu1 }
 0x1e6   : > { %v2438_v56 = vadd.f32 %v1735_v54, %v1650_v46  ;;  %v1737_v57 = vpop.f32.mrb[3].mxu0  ;;  %v1816_v60 = vadd.f32 %v2407_v53, %v1775_v51  ;;  %v2410_v62 = vadd.f32 %v2409_v58, %v2408_v1 }
 0x1e7   : > { %v2362_v59 = vpack.c.bf16 %v2436_v52, %v2434_v47  ;;  %v2440_v61 = vadd.f32 %v1737_v57, %v1652_v50 }
 0x1e8   : > { %v1819_v2 = vadd.f32 %v2410_v62, %v1778_v55 }
 0x1e9   : > { %1883 = vst [vmem:[%s589_s12] sm:$0xff] %v2362_v59  ;;  %v2364_v63 = vpack.c.bf16 %v2440_v61, %v2438_v56 }
 0x1eb   : > { %1885 = vst [vmem:[%s589_s12 + $0xc] sm:$0xff] %v2364_v63 }
 0x1f0   : > { %v1911_v14 = vld [vmem:[%s589_s12] sm:$0xff] (%p2748_p5) }
 0x1f1   : > { %1912 = vst [vmem:[%s1896_s30] sm:$0xff] (%p2748_p5), %v1911_v14 }
 0x1f2   : > { %v1913_v15 = vld [vmem:[%s589_s12 + $0xc] sm:$0xff] (%p2748_p5) }
 0x1f3   : > { %1914 = vst [vmem:[%s1896_s30 + $0x48] sm:$0xff] (%p2748_p5), %v1913_v15 }
 0x202   : > { %v2427_v3 = vpop.f32.mrb[12].mxu1 }
 0x203   : > { %v2428_v4 = vpop.f32.mrb[13].mxu1 }
 0x204   : > { %v2429_v5 = vadd.f32 %v2428_v4, %v2427_v3  ;;  %v2430_v6 = vpop.f32.mrb[14].mxu1 }
 0x205   : > { %v2431_v8 = vpop.f32.mrb[15].mxu1 }
 0x206   : > { %v1857_v9 = vadd.f32 %v2429_v5, %v1816_v60  ;;  %v2432_v10 = vadd.f32 %v2431_v8, %v2430_v6  ;;  %1893 = sbr.rel (!%p2748_p5) target bundleno = 533 (0x215), region = 62 }
 0x208   : > { %v2363_v11 = vpack.c.bf16 %v1857_v9, %v1857_v9  ;;  %v1860_v12 = vadd.f32 %v2432_v10, %v1819_v2 }
 0x20a   : > { %1884 = vst [vmem:[%s589_s12 + $0x8] sm:$0xf] %v2363_v11  ;;  %v2365_v13 = vpack.c.bf16 %v1860_v12, %v1860_v12 }
 0x20c   : > { %1886 = vst [vmem:[%s589_s12 + $0x14] sm:$0xf] %v2365_v13 }
 0x211   : > { %v2355_v16 = vld [vmem:[%s589_s12 + $0x8] sm:$0xf] }
 0x212   : > { %2356 = vst [vmem:[%s1896_s30 + $0x8] sm:$0xf] %v2355_v16 }
 0x213   : > { %v2357_v7 = vld [vmem:[%s589_s12 + $0x14] sm:$0xf] }
 0x214   : > { %2358 = vst [vmem:[%s1896_s30 + $0x50] sm:$0xf] %v2357_v7 }
 0x215 PF: > { %p10_p11 = scmp.ge.s32.totalorder %s2736_s16, 8   ;;  %s3362_s12 = smov %s2691_s13 }
 0x216   : > { %s3363_s13 = smov %s2746_s19  ;;  %s3364_s14 = smov %s2736_s16 }
 0x217   :  { %12 = sbr.rel (!%p10_p11) target bundleno = 2 (0x2), region = 134 }

// kernel: bert_classifier_forward.25
= control target key start
LH: loop header
LB: loop body
LE: loop exit
PB: predicated region body
PF: predicated region fallthrough
CT: control target
= control target key end

     0   :  { %s4956_s18 = smov 0   ;;  %s4958_s19 = smov 0   ;;  %s5908_s0 = inlined_call_operand.vmem [shape: bf16[16,768], index: 0, kind: input, shape index: {}]   ;;  %s5909_s1 = inlined_call_operand.vmem [shape: bf16[768,3072], index: 1, kind: input, shape index: {}]   ;;  %s5910_s2 = inlined_call_operand.vmem [shape: f32[1,3072], index: 2, kind: input, shape index: {}]   ;;  %s5911_s3 = inlined_call_operand.vmem [shape: bf16[3072,768], index: 3, kind: input, shape index: {}]   ;;  %s5912_s4 = inlined_call_operand.vmem [shape: f32[1,768], index: 4, kind: input, shape index: {}]   ;;  %s5913_s5 = inlined_call_operand.vmem [shape: bf16[16,768], index: 5, kind: output, shape index: {}]  }
   0x1   :  { %s4960_s20 = smov 0  }
   0x2 LB: > { %s4972_s21 = sadd.s32 4294967295, %s4923_s20   ;;  %s4975_s22 = sadd.s32 1, %s4923_s20   ;;  %s4923_s20 = sphi %s4960_s20, %s5916_s20   ;;  %s4919_s19 = sphi %s4958_s19, %s5915_s19   ;;  %s4915_s18 = sphi %s4956_s18, %s5914_s18  }
   0x3   : > { %s40_s23 = ssub.s32 %s4923_s20, %s4975_s22  ;;  %s43_s24 = sadd.s32 1, %s4919_s19 }
   0x4   : > { %p41_p0 = scmp.eq.s32.totalorder %s40_s23, 0  ;;  %p50_p1 = scmp.ne.s32.totalorder %s4919_s19, %s4915_s18 }
   0x5   : > { %p51_p2 = scmp.eq.s32.totalorder %s4923_s20, 0  ;;  %p3822_p4 = scmp.ge.s32.totalorder %s4923_s20, 6 }
   0x6   : > { %s4984_s25 = scalar_select %p41_p0, %s4919_s19, %s43_s24  }
   0x7   : > { %p52_p3 = por %p51_p2, %p50_p1  ;;  %176 = sbr.rel (%p3822_p4) target bundleno = 114 (0x72), region = 24 }
   0xe   : > { %179 = sbr.rel (!%p52_p3) target bundleno = 114 (0x72), region = 28  ;;  %s181_s26 = sand.u32 (%p52_p3), 1, %s4919_s19  }
   0xf   : > { %s4229_s27 = sshll.u32 (%p52_p3), %s4923_s20, 4  ;;  %s4272_s28 = smul.u32 (%p52_p3), 1536, %s181_s26 }
  0x10   : > { %s4992_s6 = scalar_lea.vmem (%p52_p3), %s5909_s1, %s4229_s27 }
  0x11   : > { %v199_v0 = vld [vmem:[%s4992_s6] sm:$0xff] (%p52_p3)  ;;  %v201_v1 = vld [vmem:[%s4992_s6 + $0x8] sm:$0xff] (%p52_p3)  ;;  %s5000_s7 = scalar_lea.vmem (%p52_p3), [#allocation3], %s4272_s28 }
  0x12   : > { %v203_v2 = vld [vmem:[%s4992_s6 + $0x60] sm:$0xff] (%p52_p3)  ;;  %v205_v3 = vld [vmem:[%s4992_s6 + $0x68] sm:$0xff] (%p52_p3)  ;;  %200 = vst [vmem:[%s5000_s7] sm:$0xff] (%p52_p3), %v199_v0  ;;  %202 = vst [vmem:[%s5000_s7 + $0x8] sm:$0xff] (%p52_p3), %v201_v1 }
  0x13   : > { %v207_v4 = vld [vmem:[%s4992_s6 + $0xc0] sm:$0xff] (%p52_p3)  ;;  %v209_v5 = vld [vmem:[%s4992_s6 + $0xc8] sm:$0xff] (%p52_p3)  ;;  %204 = vst [vmem:[%s5000_s7 + $0x10] sm:$0xff] (%p52_p3), %v203_v2  ;;  %206 = vst [vmem:[%s5000_s7 + $0x18] sm:$0xff] (%p52_p3), %v205_v3 }
  0x14   : > { %208 = vst [vmem:[%s5000_s7 + $0x20] sm:$0xff] (%p52_p3), %v207_v4  ;;  %210 = vst [vmem:[%s5000_s7 + $0x28] sm:$0xff] (%p52_p3), %v209_v5  ;;  %v211_v6 = vld [vmem:[%s4992_s6 + $0x120] sm:$0xff] (%p52_p3)  ;;  %v213_v7 = vld [vmem:[%s4992_s6 + $0x128] sm:$0xff] (%p52_p3) }
  0x15   : > { %v215_v8 = vld [vmem:[%s4992_s6 + $0x180] sm:$0xff]  ;;  %212 = vst [vmem:[%s5000_s7 + $0x30] sm:$0xff] %v211_v6  ;;  %214 = vst [vmem:[%s5000_s7 + $0x38] sm:$0xff] %v213_v7  ;;  %v217_v9 = vld [vmem:[%s4992_s6 + $0x188] sm:$0xff] }
  0x16   : > { %216 = vst [vmem:[%s5000_s7 + $0x40] sm:$0xff] %v215_v8  ;;  %v219_v10 = vld [vmem:[%s4992_s6 + $0x1e0] sm:$0xff]  ;;  %v221_v11 = vld [vmem:[%s4992_s6 + $0x1e8] sm:$0xff]  ;;  %218 = vst [vmem:[%s5000_s7 + $0x48] sm:$0xff] %v217_v9 }
  0x17   : > { %220 = vst [vmem:[%s5000_s7 + $0x50] sm:$0xff] %v219_v10  ;;  %222 = vst [vmem:[%s5000_s7 + $0x58] sm:$0xff] %v221_v11  ;;  %v223_v12 = vld [vmem:[%s4992_s6 + $0x240] sm:$0xff]  ;;  %v225_v13 = vld [vmem:[%s4992_s6 + $0x248] sm:$0xff] }
  0x18   : > { %v227_v14 = vld [vmem:[%s4992_s6 + $0x2a0] sm:$0xff]  ;;  %224 = vst [vmem:[%s5000_s7 + $0x60] sm:$0xff] %v223_v12  ;;  %226 = vst [vmem:[%s5000_s7 + $0x68] sm:$0xff] %v225_v13  ;;  %v229_v15 = vld [vmem:[%s4992_s6 + $0x2a8] sm:$0xff] }
  0x19   : > { %228 = vst [vmem:[%s5000_s7 + $0x70] sm:$0xff] %v227_v14  ;;  %v231_v16 = vld [vmem:[%s4992_s6 + $0x300] sm:$0xff]  ;;  %v233_v17 = vld [vmem:[%s4992_s6 + $0x308] sm:$0xff]  ;;  %230 = vst [vmem:[%s5000_s7 + $0x78] sm:$0xff] %v229_v15 }
  0x1a   : > { %232 = vst [vmem:[%s5000_s7 + $0x80] sm:$0xff] %v231_v16  ;;  %234 = vst [vmem:[%s5000_s7 + $0x88] sm:$0xff] %v233_v17  ;;  %v235_v18 = vld [vmem:[%s4992_s6 + $0x360] sm:$0xff]  ;;  %v237_v19 = vld [vmem:[%s4992_s6 + $0x368] sm:$0xff] }
  0x1b   : > { %v239_v20 = vld [vmem:[%s4992_s6 + $0x3c0] sm:$0xff]  ;;  %236 = vst [vmem:[%s5000_s7 + $0x90] sm:$0xff] %v235_v18  ;;  %238 = vst [vmem:[%s5000_s7 + $0x98] sm:$0xff] %v237_v19  ;;  %v241_v21 = vld [vmem:[%s4992_s6 + $0x3c8] sm:$0xff] }
  0x1c   : > { %240 = vst [vmem:[%s5000_s7 + $0xa0] sm:$0xff] %v239_v20  ;;  %v243_v22 = vld [vmem:[%s4992_s6 + $0x420] sm:$0xff]  ;;  %v245_v23 = vld [vmem:[%s4992_s6 + $0x428] sm:$0xff]  ;;  %242 = vst [vmem:[%s5000_s7 + $0xa8] sm:$0xff] %v241_v21 }
  0x1d   : > { %244 = vst [vmem:[%s5000_s7 + $0xb0] sm:$0xff] %v243_v22  ;;  %246 = vst [vmem:[%s5000_s7 + $0xb8] sm:$0xff] %v245_v23  ;;  %v247_v24 = vld [vmem:[%s4992_s6 + $0x480] sm:$0xff]  ;;  %v249_v25 = vld [vmem:[%s4992_s6 + $0x488] sm:$0xff] }
  0x1e   : > { %v251_v26 = vld [vmem:[%s4992_s6 + $0x4e0] sm:$0xff]  ;;  %248 = vst [vmem:[%s5000_s7 + $0xc0] sm:$0xff] %v247_v24  ;;  %250 = vst [vmem:[%s5000_s7 + $0xc8] sm:$0xff] %v249_v25  ;;  %v253_v27 = vld [vmem:[%s4992_s6 + $0x4e8] sm:$0xff] }
  0x1f   : > { %252 = vst [vmem:[%s5000_s7 + $0xd0] sm:$0xff] %v251_v26  ;;  %v255_v28 = vld [vmem:[%s4992_s6 + $0x540] sm:$0xff]  ;;  %v257_v29 = vld [vmem:[%s4992_s6 + $0x548] sm:$0xff]  ;;  %254 = vst [vmem:[%s5000_s7 + $0xd8] sm:$0xff] %v253_v27 }
  0x20   : > { %256 = vst [vmem:[%s5000_s7 + $0xe0] sm:$0xff] %v255_v28  ;;  %258 = vst [vmem:[%s5000_s7 + $0xe8] sm:$0xff] %v257_v29  ;;  %v259_v30 = vld [vmem:[%s4992_s6 + $0x5a0] sm:$0xff]  ;;  %v261_v31 = vld [vmem:[%s4992_s6 + $0x5a8] sm:$0xff] }
  0x21   : > { %v263_v32 = vld [vmem:[%s4992_s6 + $0x600] sm:$0xff]  ;;  %260 = vst [vmem:[%s5000_s7 + $0xf0] sm:$0xff] %v259_v30  ;;  %262 = vst [vmem:[%s5000_s7 + $0xf8] sm:$0xff] %v261_v31  ;;  %v265_v33 = vld [vmem:[%s4992_s6 + $0x608] sm:$0xff] }
  0x22   : > { %264 = vst [vmem:[%s5000_s7 + $0x100] sm:$0xff] %v263_v32  ;;  %v267_v34 = vld [vmem:[%s4992_s6 + $0x660] sm:$0xff]  ;;  %v269_v35 = vld [vmem:[%s4992_s6 + $0x668] sm:$0xff]  ;;  %266 = vst [vmem:[%s5000_s7 + $0x108] sm:$0xff] %v265_v33 }
  0x23   : > { %268 = vst [vmem:[%s5000_s7 + $0x110] sm:$0xff] %v267_v34  ;;  %270 = vst [vmem:[%s5000_s7 + $0x118] sm:$0xff] %v269_v35  ;;  %v271_v36 = vld [vmem:[%s4992_s6 + $0x6c0] sm:$0xff]  ;;  %v273_v37 = vld [vmem:[%s4992_s6 + $0x6c8] sm:$0xff] }
  0x24   : > { %v275_v38 = vld [vmem:[%s4992_s6 + $0x720] sm:$0xff]  ;;  %272 = vst [vmem:[%s5000_s7 + $0x120] sm:$0xff] %v271_v36  ;;  %274 = vst [vmem:[%s5000_s7 + $0x128] sm:$0xff] %v273_v37  ;;  %v277_v39 = vld [vmem:[%s4992_s6 + $0x728] sm:$0xff] }
  0x25   : > { %276 = vst [vmem:[%s5000_s7 + $0x130] sm:$0xff] %v275_v38  ;;  %v279_v40 = vld [vmem:[%s4992_s6 + $0x780] sm:$0xff]  ;;  %v281_v41 = vld [vmem:[%s4992_s6 + $0x788] sm:$0xff]  ;;  %278 = vst [vmem:[%s5000_s7 + $0x138] sm:$0xff] %v277_v39 }
  0x26   : > { %280 = vst [vmem:[%s5000_s7 + $0x140] sm:$0xff] %v279_v40  ;;  %282 = vst [vmem:[%s5000_s7 + $0x148] sm:$0xff] %v281_v41  ;;  %v283_v42 = vld [vmem:[%s4992_s6 + $0x7e0] sm:$0xff]  ;;  %v285_v43 = vld [vmem:[%s4992_s6 + $0x7e8] sm:$0xff] }
  0x27   : > { %v287_v44 = vld [vmem:[%s4992_s6 + $0x840] sm:$0xff]  ;;  %284 = vst [vmem:[%s5000_s7 + $0x150] sm:$0xff] %v283_v42  ;;  %286 = vst [vmem:[%s5000_s7 + $0x158] sm:$0xff] %v285_v43  ;;  %v289_v45 = vld [vmem:[%s4992_s6 + $0x848] sm:$0xff] }
  0x28   : > { %288 = vst [vmem:[%s5000_s7 + $0x160] sm:$0xff] %v287_v44  ;;  %v291_v46 = vld [vmem:[%s4992_s6 + $0x8a0] sm:$0xff]  ;;  %v293_v47 = vld [vmem:[%s4992_s6 + $0x8a8] sm:$0xff]  ;;  %290 = vst [vmem:[%s5000_s7 + $0x168] sm:$0xff] %v289_v45 }
  0x29   : > { %292 = vst [vmem:[%s5000_s7 + $0x170] sm:$0xff] %v291_v46  ;;  %294 = vst [vmem:[%s5000_s7 + $0x178] sm:$0xff] %v293_v47  ;;  %v295_v48 = vld [vmem:[%s4992_s6 + $0x900] sm:$0xff]  ;;  %v297_v49 = vld [vmem:[%s4992_s6 + $0x908] sm:$0xff] }
  0x2a   : > { %v299_v50 = vld [vmem:[%s4992_s6 + $0x960] sm:$0xff]  ;;  %296 = vst [vmem:[%s5000_s7 + $0x180] sm:$0xff] %v295_v48  ;;  %298 = vst [vmem:[%s5000_s7 + $0x188] sm:$0xff] %v297_v49  ;;  %v301_v51 = vld [vmem:[%s4992_s6 + $0x968] sm:$0xff] }
  0x2b   : > { %300 = vst [vmem:[%s5000_s7 + $0x190] sm:$0xff] %v299_v50  ;;  %v303_v52 = vld [vmem:[%s4992_s6 + $0x9c0] sm:$0xff]  ;;  %v305_v53 = vld [vmem:[%s4992_s6 + $0x9c8] sm:$0xff]  ;;  %302 = vst [vmem:[%s5000_s7 + $0x198] sm:$0xff] %v301_v51 }
  0x2c   : > { %304 = vst [vmem:[%s5000_s7 + $0x1a0] sm:$0xff] %v303_v52  ;;  %306 = vst [vmem:[%s5000_s7 + $0x1a8] sm:$0xff] %v305_v53  ;;  %v307_v54 = vld [vmem:[%s4992_s6 + $0xa20] sm:$0xff]  ;;  %v309_v55 = vld [vmem:[%s4992_s6 + $0xa28] sm:$0xff] }
  0x2d   : > { %v311_v56 = vld [vmem:[%s4992_s6 + $0xa80] sm:$0xff]  ;;  %308 = vst [vmem:[%s5000_s7 + $0x1b0] sm:$0xff] %v307_v54  ;;  %310 = vst [vmem:[%s5000_s7 + $0x1b8] sm:$0xff] %v309_v55  ;;  %v313_v57 = vld [vmem:[%s4992_s6 + $0xa88] sm:$0xff] }
  0x2e   : > { %312 = vst [vmem:[%s5000_s7 + $0x1c0] sm:$0xff] %v311_v56  ;;  %v315_v58 = vld [vmem:[%s4992_s6 + $0xae0] sm:$0xff]  ;;  %v317_v59 = vld [vmem:[%s4992_s6 + $0xae8] sm:$0xff]  ;;  %314 = vst [vmem:[%s5000_s7 + $0x1c8] sm:$0xff] %v313_v57 }
  0x2f   : > { %316 = vst [vmem:[%s5000_s7 + $0x1d0] sm:$0xff] %v315_v58  ;;  %318 = vst [vmem:[%s5000_s7 + $0x1d8] sm:$0xff] %v317_v59  ;;  %v319_v60 = vld [vmem:[%s4992_s6 + $0xb40] sm:$0xff]  ;;  %v321_v61 = vld [vmem:[%s4992_s6 + $0xb48] sm:$0xff] }
  0x30   : > { %v323_v62 = vld [vmem:[%s4992_s6 + $0xba0] sm:$0xff]  ;;  %320 = vst [vmem:[%s5000_s7 + $0x1e0] sm:$0xff] %v319_v60  ;;  %322 = vst [vmem:[%s5000_s7 + $0x1e8] sm:$0xff] %v321_v61  ;;  %v325_v63 = vld [vmem:[%s4992_s6 + $0xba8] sm:$0xff] }
  0x31   : > { %324 = vst [vmem:[%s5000_s7 + $0x1f0] sm:$0xff] %v323_v62  ;;  %v327_v0 = vld [vmem:[%s4992_s6 + $0xc00] sm:$0xff]  ;;  %v329_v1 = vld [vmem:[%s4992_s6 + $0xc08] sm:$0xff]  ;;  %326 = vst [vmem:[%s5000_s7 + $0x1f8] sm:$0xff] %v325_v63 }
  0x32   : > { %328 = vst [vmem:[%s5000_s7 + $0x200] sm:$0xff] %v327_v0  ;;  %330 = vst [vmem:[%s5000_s7 + $0x208] sm:$0xff] %v329_v1  ;;  %v331_v2 = vld [vmem:[%s4992_s6 + $0xc60] sm:$0xff]  ;;  %v333_v3 = vld [vmem:[%s4992_s6 + $0xc68] sm:$0xff] }
  0x33   : > { %v335_v4 = vld [vmem:[%s4992_s6 + $0xcc0] sm:$0xff]  ;;  %332 = vst [vmem:[%s5000_s7 + $0x210] sm:$0xff] %v331_v2  ;;  %334 = vst [vmem:[%s5000_s7 + $0x218] sm:$0xff] %v333_v3  ;;  %v337_v5 = vld [vmem:[%s4992_s6 + $0xcc8] sm:$0xff] }
  0x34   : > { %336 = vst [vmem:[%s5000_s7 + $0x220] sm:$0xff] %v335_v4  ;;  %v339_v6 = vld [vmem:[%s4992_s6 + $0xd20] sm:$0xff]  ;;  %v341_v7 = vld [vmem:[%s4992_s6 + $0xd28] sm:$0xff]  ;;  %338 = vst [vmem:[%s5000_s7 + $0x228] sm:$0xff] %v337_v5 }
  0x35   : > { %340 = vst [vmem:[%s5000_s7 + $0x230] sm:$0xff] %v339_v6  ;;  %342 = vst [vmem:[%s5000_s7 + $0x238] sm:$0xff] %v341_v7  ;;  %v343_v8 = vld [vmem:[%s4992_s6 + $0xd80] sm:$0xff]  ;;  %v345_v9 = vld [vmem:[%s4992_s6 + $0xd88] sm:$0xff] }
  0x36   : > { %v347_v10 = vld [vmem:[%s4992_s6 + $0xde0] sm:$0xff]  ;;  %344 = vst [vmem:[%s5000_s7 + $0x240] sm:$0xff] %v343_v8  ;;  %346 = vst [vmem:[%s5000_s7 + $0x248] sm:$0xff] %v345_v9  ;;  %v349_v11 = vld [vmem:[%s4992_s6 + $0xde8] sm:$0xff] }
  0x37   : > { %348 = vst [vmem:[%s5000_s7 + $0x250] sm:$0xff] %v347_v10  ;;  %v351_v12 = vld [vmem:[%s4992_s6 + $0xe40] sm:$0xff]  ;;  %v353_v13 = vld [vmem:[%s4992_s6 + $0xe48] sm:$0xff]  ;;  %350 = vst [vmem:[%s5000_s7 + $0x258] sm:$0xff] %v349_v11 }
  0x38   : > { %352 = vst [vmem:[%s5000_s7 + $0x260] sm:$0xff] %v351_v12  ;;  %354 = vst [vmem:[%s5000_s7 + $0x268] sm:$0xff] %v353_v13  ;;  %v355_v14 = vld [vmem:[%s4992_s6 + $0xea0] sm:$0xff]  ;;  %v357_v15 = vld [vmem:[%s4992_s6 + $0xea8] sm:$0xff] }
  0x39   : > { %v359_v16 = vld [vmem:[%s4992_s6 + $0xf00] sm:$0xff]  ;;  %356 = vst [vmem:[%s5000_s7 + $0x270] sm:$0xff] %v355_v14  ;;  %358 = vst [vmem:[%s5000_s7 + $0x278] sm:$0xff] %v357_v15  ;;  %v361_v17 = vld [vmem:[%s4992_s6 + $0xf08] sm:$0xff] }
  0x3a   : > { %360 = vst [vmem:[%s5000_s7 + $0x280] sm:$0xff] %v359_v16  ;;  %v363_v18 = vld [vmem:[%s4992_s6 + $0xf60] sm:$0xff]  ;;  %v365_v19 = vld [vmem:[%s4992_s6 + $0xf68] sm:$0xff]  ;;  %362 = vst [vmem:[%s5000_s7 + $0x288] sm:$0xff] %v361_v17 }
  0x3b   : > { %364 = vst [vmem:[%s5000_s7 + $0x290] sm:$0xff] %v363_v18  ;;  %366 = vst [vmem:[%s5000_s7 + $0x298] sm:$0xff] %v365_v19  ;;  %v367_v20 = vld [vmem:[%s4992_s6 + $0xfc0] sm:$0xff]  ;;  %v369_v21 = vld [vmem:[%s4992_s6 + $0xfc8] sm:$0xff] }
  0x3c   : > { %v371_v22 = vld [vmem:[%s4992_s6 + $0x1020] sm:$0xff]  ;;  %368 = vst [vmem:[%s5000_s7 + $0x2a0] sm:$0xff] %v367_v20  ;;  %370 = vst [vmem:[%s5000_s7 + $0x2a8] sm:$0xff] %v369_v21  ;;  %v373_v23 = vld [vmem:[%s4992_s6 + $0x1028] sm:$0xff] }
  0x3d   : > { %372 = vst [vmem:[%s5000_s7 + $0x2b0] sm:$0xff] %v371_v22  ;;  %v375_v24 = vld [vmem:[%s4992_s6 + $0x1080] sm:$0xff]  ;;  %v377_v25 = vld [vmem:[%s4992_s6 + $0x1088] sm:$0xff]  ;;  %374 = vst [vmem:[%s5000_s7 + $0x2b8] sm:$0xff] %v373_v23 }
  0x3e   : > { %376 = vst [vmem:[%s5000_s7 + $0x2c0] sm:$0xff] %v375_v24  ;;  %378 = vst [vmem:[%s5000_s7 + $0x2c8] sm:$0xff] %v377_v25  ;;  %v379_v26 = vld [vmem:[%s4992_s6 + $0x10e0] sm:$0xff]  ;;  %v381_v27 = vld [vmem:[%s4992_s6 + $0x10e8] sm:$0xff] }
  0x3f   : > { %v383_v28 = vld [vmem:[%s4992_s6 + $0x1140] sm:$0xff]  ;;  %380 = vst [vmem:[%s5000_s7 + $0x2d0] sm:$0xff] %v379_v26  ;;  %382 = vst [vmem:[%s5000_s7 + $0x2d8] sm:$0xff] %v381_v27  ;;  %v385_v29 = vld [vmem:[%s4992_s6 + $0x1148] sm:$0xff] }
  0x40   : > { %384 = vst [vmem:[%s5000_s7 + $0x2e0] sm:$0xff] %v383_v28  ;;  %v387_v30 = vld [vmem:[%s4992_s6 + $0x11a0] sm:$0xff]  ;;  %v389_v31 = vld [vmem:[%s4992_s6 + $0x11a8] sm:$0xff]  ;;  %386 = vst [vmem:[%s5000_s7 + $0x2e8] sm:$0xff] %v385_v29 }
  0x41   : > { %388 = vst [vmem:[%s5000_s7 + $0x2f0] sm:$0xff] %v387_v30  ;;  %390 = vst [vmem:[%s5000_s7 + $0x2f8] sm:$0xff] %v389_v31  ;;  %v391_v32 = vld [vmem:[%s4992_s6 + $0x1200] sm:$0xff]  ;;  %v393_v33 = vld [vmem:[%s4992_s6 + $0x1208] sm:$0xff] }
  0x42   : > { %v395_v34 = vld [vmem:[%s4992_s6 + $0x1260] sm:$0xff]  ;;  %392 = vst [vmem:[%s5000_s7 + $0x300] sm:$0xff] %v391_v32  ;;  %394 = vst [vmem:[%s5000_s7 + $0x308] sm:$0xff] %v393_v33  ;;  %v397_v35 = vld [vmem:[%s4992_s6 + $0x1268] sm:$0xff] }
  0x43   : > { %396 = vst [vmem:[%s5000_s7 + $0x310] sm:$0xff] %v395_v34  ;;  %v399_v36 = vld [vmem:[%s4992_s6 + $0x12c0] sm:$0xff]  ;;  %v401_v37 = vld [vmem:[%s4992_s6 + $0x12c8] sm:$0xff]  ;;  %398 = vst [vmem:[%s5000_s7 + $0x318] sm:$0xff] %v397_v35 }
  0x44   : > { %400 = vst [vmem:[%s5000_s7 + $0x320] sm:$0xff] %v399_v36  ;;  %402 = vst [vmem:[%s5000_s7 + $0x328] sm:$0xff] %v401_v37  ;;  %v403_v38 = vld [vmem:[%s4992_s6 + $0x1320] sm:$0xff]  ;;  %v405_v39 = vld [vmem:[%s4992_s6 + $0x1328] sm:$0xff] }
  0x45   : > { %v407_v40 = vld [vmem:[%s4992_s6 + $0x1380] sm:$0xff]  ;;  %404 = vst [vmem:[%s5000_s7 + $0x330] sm:$0xff] %v403_v38  ;;  %406 = vst [vmem:[%s5000_s7 + $0x338] sm:$0xff] %v405_v39  ;;  %v409_v41 = vld [vmem:[%s4992_s6 + $0x1388] sm:$0xff] }
  0x46   : > { %408 = vst [vmem:[%s5000_s7 + $0x340] sm:$0xff] %v407_v40  ;;  %v411_v42 = vld [vmem:[%s4992_s6 + $0x13e0] sm:$0xff]  ;;  %v413_v43 = vld [vmem:[%s4992_s6 + $0x13e8] sm:$0xff]  ;;  %410 = vst [vmem:[%s5000_s7 + $0x348] sm:$0xff] %v409_v41 }
  0x47   : > { %412 = vst [vmem:[%s5000_s7 + $0x350] sm:$0xff] %v411_v42  ;;  %414 = vst [vmem:[%s5000_s7 + $0x358] sm:$0xff] %v413_v43  ;;  %v415_v44 = vld [vmem:[%s4992_s6 + $0x1440] sm:$0xff]  ;;  %v417_v45 = vld [vmem:[%s4992_s6 + $0x1448] sm:$0xff] }
  0x48   : > { %v419_v46 = vld [vmem:[%s4992_s6 + $0x14a0] sm:$0xff]  ;;  %416 = vst [vmem:[%s5000_s7 + $0x360] sm:$0xff] %v415_v44  ;;  %418 = vst [vmem:[%s5000_s7 + $0x368] sm:$0xff] %v417_v45  ;;  %v421_v47 = vld [vmem:[%s4992_s6 + $0x14a8] sm:$0xff] }
  0x49   : > { %420 = vst [vmem:[%s5000_s7 + $0x370] sm:$0xff] %v419_v46  ;;  %v423_v48 = vld [vmem:[%s4992_s6 + $0x1500] sm:$0xff]  ;;  %v425_v49 = vld [vmem:[%s4992_s6 + $0x1508] sm:$0xff]  ;;  %422 = vst [vmem:[%s5000_s7 + $0x378] sm:$0xff] %v421_v47 }
  0x4a   : > { %424 = vst [vmem:[%s5000_s7 + $0x380] sm:$0xff] %v423_v48  ;;  %426 = vst [vmem:[%s5000_s7 + $0x388] sm:$0xff] %v425_v49  ;;  %v427_v50 = vld [vmem:[%s4992_s6 + $0x1560] sm:$0xff]  ;;  %v429_v51 = vld [vmem:[%s4992_s6 + $0x1568] sm:$0xff] }
  0x4b   : > { %v431_v52 = vld [vmem:[%s4992_s6 + $0x15c0] sm:$0xff]  ;;  %428 = vst [vmem:[%s5000_s7 + $0x390] sm:$0xff] %v427_v50  ;;  %430 = vst [vmem:[%s5000_s7 + $0x398] sm:$0xff] %v429_v51  ;;  %v433_v53 = vld [vmem:[%s4992_s6 + $0x15c8] sm:$0xff] }
  0x4c   : > { %432 = vst [vmem:[%s5000_s7 + $0x3a0] sm:$0xff] %v431_v52  ;;  %v435_v54 = vld [vmem:[%s4992_s6 + $0x1620] sm:$0xff]  ;;  %v437_v55 = vld [vmem:[%s4992_s6 + $0x1628] sm:$0xff]  ;;  %434 = vst [vmem:[%s5000_s7 + $0x3a8] sm:$0xff] %v433_v53 }
  0x4d   : > { %436 = vst [vmem:[%s5000_s7 + $0x3b0] sm:$0xff] %v435_v54  ;;  %438 = vst [vmem:[%s5000_s7 + $0x3b8] sm:$0xff] %v437_v55  ;;  %v439_v56 = vld [vmem:[%s4992_s6 + $0x1680] sm:$0xff]  ;;  %v441_v57 = vld [vmem:[%s4992_s6 + $0x1688] sm:$0xff] }
  0x4e   : > { %v443_v58 = vld [vmem:[%s4992_s6 + $0x16e0] sm:$0xff]  ;;  %440 = vst [vmem:[%s5000_s7 + $0x3c0] sm:$0xff] %v439_v56  ;;  %442 = vst [vmem:[%s5000_s7 + $0x3c8] sm:$0xff] %v441_v57  ;;  %v445_v59 = vld [vmem:[%s4992_s6 + $0x16e8] sm:$0xff] }
  0x4f   : > { %444 = vst [vmem:[%s5000_s7 + $0x3d0] sm:$0xff] %v443_v58  ;;  %v447_v60 = vld [vmem:[%s4992_s6 + $0x1740] sm:$0xff]  ;;  %v449_v61 = vld [vmem:[%s4992_s6 + $0x1748] sm:$0xff]  ;;  %446 = vst [vmem:[%s5000_s7 + $0x3d8] sm:$0xff] %v445_v59 }
  0x50   : > { %448 = vst [vmem:[%s5000_s7 + $0x3e0] sm:$0xff] %v447_v60  ;;  %450 = vst [vmem:[%s5000_s7 + $0x3e8] sm:$0xff] %v449_v61  ;;  %v451_v62 = vld [vmem:[%s4992_s6 + $0x17a0] sm:$0xff]  ;;  %v453_v63 = vld [vmem:[%s4992_s6 + $0x17a8] sm:$0xff] }
  0x51   : > { %v455_v0 = vld [vmem:[%s4992_s6 + $0x1800] sm:$0xff]  ;;  %452 = vst [vmem:[%s5000_s7 + $0x3f0] sm:$0xff] %v451_v62  ;;  %454 = vst [vmem:[%s5000_s7 + $0x3f8] sm:$0xff] %v453_v63  ;;  %v457_v1 = vld [vmem:[%s4992_s6 + $0x1808] sm:$0xff] }
  0x52   : > { %456 = vst [vmem:[%s5000_s7 + $0x400] sm:$0xff] %v455_v0  ;;  %v459_v2 = vld [vmem:[%s4992_s6 + $0x1860] sm:$0xff]  ;;  %v461_v3 = vld [vmem:[%s4992_s6 + $0x1868] sm:$0xff]  ;;  %458 = vst [vmem:[%s5000_s7 + $0x408] sm:$0xff] %v457_v1 }
  0x53   : > { %460 = vst [vmem:[%s5000_s7 + $0x410] sm:$0xff] %v459_v2  ;;  %462 = vst [vmem:[%s5000_s7 + $0x418] sm:$0xff] %v461_v3  ;;  %v463_v4 = vld [vmem:[%s4992_s6 + $0x18c0] sm:$0xff]  ;;  %v465_v5 = vld [vmem:[%s4992_s6 + $0x18c8] sm:$0xff] }
  0x54   : > { %v467_v6 = vld [vmem:[%s4992_s6 + $0x1920] sm:$0xff]  ;;  %464 = vst [vmem:[%s5000_s7 + $0x420] sm:$0xff] %v463_v4  ;;  %466 = vst [vmem:[%s5000_s7 + $0x428] sm:$0xff] %v465_v5  ;;  %v469_v7 = vld [vmem:[%s4992_s6 + $0x1928] sm:$0xff] }
  0x55   : > { %468 = vst [vmem:[%s5000_s7 + $0x430] sm:$0xff] %v467_v6  ;;  %v471_v8 = vld [vmem:[%s4992_s6 + $0x1980] sm:$0xff]  ;;  %v473_v9 = vld [vmem:[%s4992_s6 + $0x1988] sm:$0xff]  ;;  %470 = vst [vmem:[%s5000_s7 + $0x438] sm:$0xff] %v469_v7 }
  0x56   : > { %472 = vst [vmem:[%s5000_s7 + $0x440] sm:$0xff] %v471_v8  ;;  %474 = vst [vmem:[%s5000_s7 + $0x448] sm:$0xff] %v473_v9  ;;  %v475_v10 = vld [vmem:[%s4992_s6 + $0x19e0] sm:$0xff]  ;;  %v477_v11 = vld [vmem:[%s4992_s6 + $0x19e8] sm:$0xff] }
  0x57   : > { %v479_v12 = vld [vmem:[%s4992_s6 + $0x1a40] sm:$0xff]  ;;  %476 = vst [vmem:[%s5000_s7 + $0x450] sm:$0xff] %v475_v10  ;;  %478 = vst [vmem:[%s5000_s7 + $0x458] sm:$0xff] %v477_v11  ;;  %v481_v13 = vld [vmem:[%s4992_s6 + $0x1a48] sm:$0xff] }
  0x58   : > { %480 = vst [vmem:[%s5000_s7 + $0x460] sm:$0xff] %v479_v12  ;;  %v483_v14 = vld [vmem:[%s4992_s6 + $0x1aa0] sm:$0xff]  ;;  %v485_v15 = vld [vmem:[%s4992_s6 + $0x1aa8] sm:$0xff]  ;;  %482 = vst [vmem:[%s5000_s7 + $0x468] sm:$0xff] %v481_v13 }
  0x59   : > { %484 = vst [vmem:[%s5000_s7 + $0x470] sm:$0xff] %v483_v14  ;;  %486 = vst [vmem:[%s5000_s7 + $0x478] sm:$0xff] %v485_v15  ;;  %v487_v16 = vld [vmem:[%s4992_s6 + $0x1b00] sm:$0xff]  ;;  %v489_v17 = vld [vmem:[%s4992_s6 + $0x1b08] sm:$0xff] }
  0x5a   : > { %v491_v18 = vld [vmem:[%s4992_s6 + $0x1b60] sm:$0xff]  ;;  %488 = vst [vmem:[%s5000_s7 + $0x480] sm:$0xff] %v487_v16  ;;  %490 = vst [vmem:[%s5000_s7 + $0x488] sm:$0xff] %v489_v17  ;;  %v493_v19 = vld [vmem:[%s4992_s6 + $0x1b68] sm:$0xff] }
  0x5b   : > { %492 = vst [vmem:[%s5000_s7 + $0x490] sm:$0xff] %v491_v18  ;;  %v495_v20 = vld [vmem:[%s4992_s6 + $0x1bc0] sm:$0xff]  ;;  %v497_v21 = vld [vmem:[%s4992_s6 + $0x1bc8] sm:$0xff]  ;;  %494 = vst [vmem:[%s5000_s7 + $0x498] sm:$0xff] %v493_v19 }
  0x5c   : > { %496 = vst [vmem:[%s5000_s7 + $0x4a0] sm:$0xff] %v495_v20  ;;  %498 = vst [vmem:[%s5000_s7 + $0x4a8] sm:$0xff] %v497_v21  ;;  %v499_v22 = vld [vmem:[%s4992_s6 + $0x1c20] sm:$0xff]  ;;  %v501_v23 = vld [vmem:[%s4992_s6 + $0x1c28] sm:$0xff] }
  0x5d   : > { %v503_v24 = vld [vmem:[%s4992_s6 + $0x1c80] sm:$0xff]  ;;  %500 = vst [vmem:[%s5000_s7 + $0x4b0] sm:$0xff] %v499_v22  ;;  %502 = vst [vmem:[%s5000_s7 + $0x4b8] sm:$0xff] %v501_v23  ;;  %v505_v25 = vld [vmem:[%s4992_s6 + $0x1c88] sm:$0xff] }
  0x5e   : > { %504 = vst [vmem:[%s5000_s7 + $0x4c0] sm:$0xff] %v503_v24  ;;  %v507_v26 = vld [vmem:[%s4992_s6 + $0x1ce0] sm:$0xff]  ;;  %v509_v27 = vld [vmem:[%s4992_s6 + $0x1ce8] sm:$0xff]  ;;  %506 = vst [vmem:[%s5000_s7 + $0x4c8] sm:$0xff] %v505_v25 }
  0x5f   : > { %508 = vst [vmem:[%s5000_s7 + $0x4d0] sm:$0xff] %v507_v26  ;;  %510 = vst [vmem:[%s5000_s7 + $0x4d8] sm:$0xff] %v509_v27  ;;  %v511_v28 = vld [vmem:[%s4992_s6 + $0x1d40] sm:$0xff]  ;;  %v513_v29 = vld [vmem:[%s4992_s6 + $0x1d48] sm:$0xff] }
  0x60   : > { %v515_v30 = vld [vmem:[%s4992_s6 + $0x1da0] sm:$0xff]  ;;  %512 = vst [vmem:[%s5000_s7 + $0x4e0] sm:$0xff] %v511_v28  ;;  %514 = vst [vmem:[%s5000_s7 + $0x4e8] sm:$0xff] %v513_v29  ;;  %v517_v31 = vld [vmem:[%s4992_s6 + $0x1da8] sm:$0xff] }
  0x61   : > { %516 = vst [vmem:[%s5000_s7 + $0x4f0] sm:$0xff] %v515_v30  ;;  %v519_v32 = vld [vmem:[%s4992_s6 + $0x1e00] sm:$0xff]  ;;  %v521_v33 = vld [vmem:[%s4992_s6 + $0x1e08] sm:$0xff]  ;;  %518 = vst [vmem:[%s5000_s7 + $0x4f8] sm:$0xff] %v517_v31 }
  0x62   : > { %520 = vst [vmem:[%s5000_s7 + $0x500] sm:$0xff] %v519_v32  ;;  %522 = vst [vmem:[%s5000_s7 + $0x508] sm:$0xff] %v521_v33  ;;  %v523_v34 = vld [vmem:[%s4992_s6 + $0x1e60] sm:$0xff]  ;;  %v525_v35 = vld [vmem:[%s4992_s6 + $0x1e68] sm:$0xff] }
  0x63   : > { %v527_v36 = vld [vmem:[%s4992_s6 + $0x1ec0] sm:$0xff]  ;;  %524 = vst [vmem:[%s5000_s7 + $0x510] sm:$0xff] %v523_v34  ;;  %526 = vst [vmem:[%s5000_s7 + $0x518] sm:$0xff] %v525_v35  ;;  %v529_v37 = vld [vmem:[%s4992_s6 + $0x1ec8] sm:$0xff] }
  0x64   : > { %528 = vst [vmem:[%s5000_s7 + $0x520] sm:$0xff] %v527_v36  ;;  %v531_v38 = vld [vmem:[%s4992_s6 + $0x1f20] sm:$0xff]  ;;  %v533_v39 = vld [vmem:[%s4992_s6 + $0x1f28] sm:$0xff]  ;;  %530 = vst [vmem:[%s5000_s7 + $0x528] sm:$0xff] %v529_v37 }
  0x65   : > { %532 = vst [vmem:[%s5000_s7 + $0x530] sm:$0xff] %v531_v38  ;;  %534 = vst [vmem:[%s5000_s7 + $0x538] sm:$0xff] %v533_v39  ;;  %v535_v40 = vld [vmem:[%s4992_s6 + $0x1f80] sm:$0xff]  ;;  %v537_v41 = vld [vmem:[%s4992_s6 + $0x1f88] sm:$0xff] }
  0x66   : > { %v539_v42 = vld [vmem:[%s4992_s6 + $0x1fe0] sm:$0xff]  ;;  %536 = vst [vmem:[%s5000_s7 + $0x540] sm:$0xff] %v535_v40  ;;  %538 = vst [vmem:[%s5000_s7 + $0x548] sm:$0xff] %v537_v41  ;;  %v541_v43 = vld [vmem:[%s4992_s6 + $0x1fe8] sm:$0xff] }
  0x67   : > { %540 = vst [vmem:[%s5000_s7 + $0x550] sm:$0xff] %v539_v42  ;;  %v543_v44 = vld [vmem:[%s4992_s6 + $0x2040] sm:$0xff]  ;;  %v545_v45 = vld [vmem:[%s4992_s6 + $0x2048] sm:$0xff]  ;;  %542 = vst [vmem:[%s5000_s7 + $0x558] sm:$0xff] %v541_v43 }
  0x68   : > { %544 = vst [vmem:[%s5000_s7 + $0x560] sm:$0xff] %v543_v44  ;;  %546 = vst [vmem:[%s5000_s7 + $0x568] sm:$0xff] %v545_v45  ;;  %v547_v46 = vld [vmem:[%s4992_s6 + $0x20a0] sm:$0xff]  ;;  %v549_v47 = vld [vmem:[%s4992_s6 + $0x20a8] sm:$0xff] }
  0x69   : > { %v551_v48 = vld [vmem:[%s4992_s6 + $0x2100] sm:$0xff]  ;;  %548 = vst [vmem:[%s5000_s7 + $0x570] sm:$0xff] %v547_v46  ;;  %550 = vst [vmem:[%s5000_s7 + $0x578] sm:$0xff] %v549_v47  ;;  %v553_v49 = vld [vmem:[%s4992_s6 + $0x2108] sm:$0xff] }
  0x6a   : > { %552 = vst [vmem:[%s5000_s7 + $0x580] sm:$0xff] %v551_v48  ;;  %v555_v50 = vld [vmem:[%s4992_s6 + $0x2160] sm:$0xff]  ;;  %v557_v51 = vld [vmem:[%s4992_s6 + $0x2168] sm:$0xff]  ;;  %554 = vst [vmem:[%s5000_s7 + $0x588] sm:$0xff] %v553_v49 }
  0x6b   : > { %556 = vst [vmem:[%s5000_s7 + $0x590] sm:$0xff] %v555_v50  ;;  %558 = vst [vmem:[%s5000_s7 + $0x598] sm:$0xff] %v557_v51  ;;  %v559_v52 = vld [vmem:[%s4992_s6 + $0x21c0] sm:$0xff]  ;;  %v561_v53 = vld [vmem:[%s4992_s6 + $0x21c8] sm:$0xff] }
  0x6c   : > { %v563_v54 = vld [vmem:[%s4992_s6 + $0x2220] sm:$0xff]  ;;  %560 = vst [vmem:[%s5000_s7 + $0x5a0] sm:$0xff] %v559_v52  ;;  %562 = vst [vmem:[%s5000_s7 + $0x5a8] sm:$0xff] %v561_v53  ;;  %v565_v55 = vld [vmem:[%s4992_s6 + $0x2228] sm:$0xff] }
  0x6d   : > { %564 = vst [vmem:[%s5000_s7 + $0x5b0] sm:$0xff] %v563_v54  ;;  %v567_v56 = vld [vmem:[%s4992_s6 + $0x2280] sm:$0xff]  ;;  %v569_v57 = vld [vmem:[%s4992_s6 + $0x2288] sm:$0xff]  ;;  %566 = vst [vmem:[%s5000_s7 + $0x5b8] sm:$0xff] %v565_v55 }
  0x6e   : > { %568 = vst [vmem:[%s5000_s7 + $0x5c0] sm:$0xff] %v567_v56  ;;  %570 = vst [vmem:[%s5000_s7 + $0x5c8] sm:$0xff] %v569_v57  ;;  %v571_v58 = vld [vmem:[%s4992_s6 + $0x22e0] sm:$0xff]  ;;  %v573_v59 = vld [vmem:[%s4992_s6 + $0x22e8] sm:$0xff] }
  0x6f   : > { %v575_v60 = vld [vmem:[%s4992_s6 + $0x2340] sm:$0xff]  ;;  %572 = vst [vmem:[%s5000_s7 + $0x5d0] sm:$0xff] %v571_v58  ;;  %574 = vst [vmem:[%s5000_s7 + $0x5d8] sm:$0xff] %v573_v59  ;;  %v577_v61 = vld [vmem:[%s4992_s6 + $0x2348] sm:$0xff] }
  0x70   : > { %576 = vst [vmem:[%s5000_s7 + $0x5e0] sm:$0xff] %v575_v60  ;;  %v579_v62 = vld [vmem:[%s4992_s6 + $0x23a0] sm:$0xff]  ;;  %v581_v63 = vld [vmem:[%s4992_s6 + $0x23a8] sm:$0xff]  ;;  %578 = vst [vmem:[%s5000_s7 + $0x5e8] sm:$0xff] %v577_v61 }
  0x71   : > { %580 = vst [vmem:[%s5000_s7 + $0x5f0] sm:$0xff] %v579_v62  ;;  %582 = vst [vmem:[%s5000_s7 + $0x5f8] sm:$0xff] %v581_v63 }
  0x72 PF: > { %p3825_p5 = scmp.ge.s32.totalorder %s4923_s20, 1  ;;  %p605_p6 = scmp.lt.s32.totalorder %s4923_s20, 7 }
  0x74   : > { %p606_p7 = pnand %p3825_p5, %p605_p6 }
  0x75   : > { %s612_s8 = sand.u32 (!%p606_p7), 1, %s4915_s18   ;;  %s3826_s9 = sshll.u32 (!%p606_p7), %s4972_s21, 2 }
  0x76   : > { %609 = sbr.rel (%p606_p7) target bundleno = 994 (0x3e2), region = 59  ;;  %p646_p8 = scmp.lt.s32.totalorder (!%p606_p7), %s3826_s9, 23 }
  0x77   : > { %s4273_s10 = smul.u32 (!%p606_p7), 1536, %s612_s8  ;;  %s3827_s11 = sshll.u32 (!%p606_p7), %s4972_s21, 6 }
  0x78   : > { %p651_p9 = scmp.lt.s32.totalorder (!%p606_p7), %s3827_s11, 383  ;;  %p3829_p10 = scmp.ne.s32.totalorder (!%p606_p7), %s4972_s21, 0 }
  0x79   : > { %s5396_s18 = scalar_lea.vmem (!%p606_p7), [#allocation3], %s4273_s10 }
  0x7d   : > { %s5918_s9 = smov (!%p646_p8, %s3826_s9), 23  ;;  %s5920_s11 = smov (!%p651_p9, %s3827_s11), 383 }
  0x7e   : > { %s648_s14 = scalar_lea.vmem %s5910_s2, %s5918_s9  ;;  %s4274_s15 = smul.u32 24, %s5920_s11  ;;  %v4925_v0 = vmov (!%p3829_p10), 0.0  }
  0x7f   : > { %660 = sbr.rel (%p3829_p10) target bundleno = 134 (0x86), region = 67  ;;  %661 = vst [vmem:[#allocation2] sm:$0xff] (!%p3829_p10), %v4925_v0  ;;  %662 = vst [vmem:[#allocation2 + $0x8] sm:$0xff] (!%p3829_p10), %v4925_v0 }
  0x80   : > { %s5394_s20 = scalar_lea.vmem %s5911_s3, %s4274_s15  ;;  %663 = vst [vmem:[#allocation2 + $0x10] sm:$0xff] (!%p3829_p10), %v4925_v0  ;;  %664 = vst [vmem:[#allocation2 + $0x18] sm:$0xff] (!%p3829_p10), %v4925_v0 }
  0x81   : > { %665 = vst [vmem:[#allocation2 + $0x20] sm:$0xff] (!%p3829_p10), %v4925_v0  ;;  %666 = vst [vmem:[#allocation2 + $0x28] sm:$0xff] (!%p3829_p10), %v4925_v0 }
  0x82   : > { %667 = vst [vmem:[#allocation2 + $0x30] sm:$0xff] (!%p3829_p10), %v4925_v0  ;;  %668 = vst [vmem:[#allocation2 + $0x38] sm:$0xff] (!%p3829_p10), %v4925_v0 }
  0x83   : > { %669 = vst [vmem:[#allocation2 + $0x40] sm:$0xff] (!%p3829_p10), %v4925_v0  ;;  %670 = vst [vmem:[#allocation2 + $0x48] sm:$0xff] (!%p3829_p10), %v4925_v0 }
  0x84   : > { %671 = vst [vmem:[#allocation2 + $0x50] sm:$0xff] (!%p3829_p10), %v4925_v0  ;;  %672 = vst [vmem:[#allocation2 + $0x58] sm:$0xff] (!%p3829_p10), %v4925_v0 }
  0x86 PF: > { %v4300_v1 = vld [vmem:[%s5396_s18 + $0x4] ss:$16 sps:$4 sm:$0xff]   ;;  %v4304_v3 = vld [vmem:[%s5396_s18] ss:$16 sps:$4 sm:$0xff]   ;;  %p4220_p11 = scmp.ne.s32.totalorder %s4972_s21, 5 }
  0x87   : > { %v4302_v2 = vld [vmem:[%s5396_s18 + $0x204] ss:$16 sps:$4 sm:$0xff]   ;;  %1883 = vmatprep.subr.bf16.mxu1 %v4300_v1  ;;  %v4305_v4 = vld [vmem:[%s5396_s18 + $0x200] ss:$16 sps:$4 sm:$0xff]  }
  0x88   : > { %1926 = vmatprep.subr.bf16.mxu0 %v4302_v2  ;;  %v4306_v5 = vld [vmem:[%s5396_s18 + $0x24] ss:$16 sps:$4 sm:$0xff]   ;;  %1884 = vmatpush1.bf16.msra.mxu1 %v4304_v3  ;;  %v4310_v7 = vld [vmem:[%s5396_s18 + $0x20] ss:$16 sps:$4 sm:$0xff]  }
  0x89   : > { %1927 = vmatpush1.bf16.msra.mxu0 %v4305_v4  ;;  %v4308_v6 = vld [vmem:[%s5396_s18 + $0x224] ss:$16 sps:$4 sm:$0xff]   ;;  %1885 = vmatprep.subr.bf16.mxu1 %v4306_v5  ;;  %v4311_v8 = vld [vmem:[%s5396_s18 + $0x220] ss:$16 sps:$4 sm:$0xff]   ;;  %v4407_v4 = vld [vmem:[%s5396_s18 + $0xc] ss:$16 sps:$4 sm:$0xff]  }
  0x8a   : > { %1928 = vmatprep.subr.bf16.mxu0 %v4308_v6  ;;  %v4312_v9 = vld [vmem:[%s5396_s18 + $0x44] ss:$16 sps:$4 sm:$0xff]   ;;  %v4316_v11 = vld [vmem:[%s5396_s18 + $0x40] ss:$16 sps:$4 sm:$0xff]  }
  0x8b   : > { %v4314_v10 = vld [vmem:[%s5396_s18 + $0x244] ss:$16 sps:$4 sm:$0xff]   ;;  %v4317_v12 = vld [vmem:[%s5396_s18 + $0x240] ss:$16 sps:$4 sm:$0xff]  }
  0x8c   : > { %1886 = vmatpush1.bf16.msra.mxu1 %v4310_v7  ;;  %v4318_v13 = vld [vmem:[%s5396_s18 + $0x64] ss:$16 sps:$4 sm:$0xff]   ;;  %v4322_v15 = vld [vmem:[%s5396_s18 + $0x60] ss:$16 sps:$4 sm:$0xff]  }
  0x8d   : > { %1929 = vmatpush1.bf16.msra.mxu0 %v4311_v8  ;;  %1887 = vmatprep.subr.bf16.mxu1 %v4312_v9  ;;  %v4320_v14 = vld [vmem:[%s5396_s18 + $0x264] ss:$16 sps:$4 sm:$0xff]   ;;  %v4323_v16 = vld [vmem:[%s5396_s18 + $0x260] ss:$16 sps:$4 sm:$0xff]   ;;  %v4405_v8 = vld [vmem:[%s5396_s18 + $0x8] ss:$16 sps:$4 sm:$0xff]  }
  0x8e   : > { %1930 = vmatprep.subr.bf16.mxu0 %v4314_v10  ;;  %v4324_v17 = vld [vmem:[%s5396_s18 + $0x84] ss:$16 sps:$4 sm:$0xff]   ;;  %v4328_v19 = vld [vmem:[%s5396_s18 + $0x80] ss:$16 sps:$4 sm:$0xff]   ;;  %v4413_v10 = vld [vmem:[%s5396_s18 + $0x2c] ss:$16 sps:$4 sm:$0xff]  }
  0x8f   : > { %v4326_v18 = vld [vmem:[%s5396_s18 + $0x284] ss:$16 sps:$4 sm:$0xff]   ;;  %v4329_v20 = vld [vmem:[%s5396_s18 + $0x280] ss:$16 sps:$4 sm:$0xff]  }
  0x90   : > { %1888 = vmatpush1.bf16.msra.mxu1 %v4316_v11  ;;  %v4330_v21 = vld [vmem:[%s5396_s18 + $0xa4] ss:$16 sps:$4 sm:$0xff]   ;;  %v4334_v23 = vld [vmem:[%s5396_s18 + $0xa0] ss:$16 sps:$4 sm:$0xff]  }
  0x91   : > { %1931 = vmatpush1.bf16.msra.mxu0 %v4317_v12  ;;  %1889 = vmatprep.subr.bf16.mxu1 %v4318_v13  ;;  %v4332_v22 = vld [vmem:[%s5396_s18 + $0x2a4] ss:$16 sps:$4 sm:$0xff]   ;;  %v4335_v24 = vld [vmem:[%s5396_s18 + $0x2a0] ss:$16 sps:$4 sm:$0xff]   ;;  %v4411_v12 = vld [vmem:[%s5396_s18 + $0x28] ss:$16 sps:$4 sm:$0xff]  }
  0x92   : > { %1932 = vmatprep.subr.bf16.mxu0 %v4320_v14  ;;  %v4336_v25 = vld [vmem:[%s5396_s18 + $0xc4] ss:$16 sps:$4 sm:$0xff]   ;;  %v4340_v27 = vld [vmem:[%s5396_s18 + $0xc0] ss:$16 sps:$4 sm:$0xff]   ;;  %v4419_v14 = vld [vmem:[%s5396_s18 + $0x4c] ss:$16 sps:$4 sm:$0xff]  }
  0x93   : > { %v4338_v26 = vld [vmem:[%s5396_s18 + $0x2c4] ss:$16 sps:$4 sm:$0xff]   ;;  %v4341_v28 = vld [vmem:[%s5396_s18 + $0x2c0] ss:$16 sps:$4 sm:$0xff]  }
  0x94   : > { %1890 = vmatpush1.bf16.msra.mxu1 %v4322_v15  ;;  %v4342_v29 = vld [vmem:[%s5396_s18 + $0xe4] ss:$16 sps:$4 sm:$0xff]   ;;  %v4346_v31 = vld [vmem:[%s5396_s18 + $0xe0] ss:$16 sps:$4 sm:$0xff]  }
  0x95   : > { %1933 = vmatpush1.bf16.msra.mxu0 %v4323_v16  ;;  %1891 = vmatprep.subr.bf16.mxu1 %v4324_v17  ;;  %v4344_v30 = vld [vmem:[%s5396_s18 + $0x2e4] ss:$16 sps:$4 sm:$0xff]   ;;  %v4347_v32 = vld [vmem:[%s5396_s18 + $0x2e0] ss:$16 sps:$4 sm:$0xff]   ;;  %v4417_v16 = vld [vmem:[%s5396_s18 + $0x48] ss:$16 sps:$4 sm:$0xff]  }
  0x96   : > { %1934 = vmatprep.subr.bf16.mxu0 %v4326_v18  ;;  %v4348_v33 = vld [vmem:[%s5396_s18 + $0x104] ss:$16 sps:$4 sm:$0xff]   ;;  %v4352_v35 = vld [vmem:[%s5396_s18 + $0x100] ss:$16 sps:$4 sm:$0xff]   ;;  %v4425_v18 = vld [vmem:[%s5396_s18 + $0x6c] ss:$16 sps:$4 sm:$0xff]  }
  0x97   : > { %v4350_v34 = vld [vmem:[%s5396_s18 + $0x304] ss:$16 sps:$4 sm:$0xff]   ;;  %v4353_v36 = vld [vmem:[%s5396_s18 + $0x300] ss:$16 sps:$4 sm:$0xff]  }
  0x98   : > { %1892 = vmatpush1.bf16.msra.mxu1 %v4328_v19  ;;  %v4354_v37 = vld [vmem:[%s5396_s18 + $0x124] ss:$16 sps:$4 sm:$0xff]   ;;  %v4358_v39 = vld [vmem:[%s5396_s18 + $0x120] ss:$16 sps:$4 sm:$0xff]  }
  0x99   : > { %1935 = vmatpush1.bf16.msra.mxu0 %v4329_v20  ;;  %1893 = vmatprep.subr.bf16.mxu1 %v4330_v21  ;;  %v4356_v38 = vld [vmem:[%s5396_s18 + $0x324] ss:$16 sps:$4 sm:$0xff]   ;;  %v4359_v40 = vld [vmem:[%s5396_s18 + $0x320] ss:$16 sps:$4 sm:$0xff]   ;;  %v4423_v20 = vld [vmem:[%s5396_s18 + $0x68] ss:$16 sps:$4 sm:$0xff]  }
  0x9a   : > { %1936 = vmatprep.subr.bf16.mxu0 %v4332_v22  ;;  %v4360_v41 = vld [vmem:[%s5396_s18 + $0x144] ss:$16 sps:$4 sm:$0xff]   ;;  %v4364_v43 = vld [vmem:[%s5396_s18 + $0x140] ss:$16 sps:$4 sm:$0xff]   ;;  %v4431_v22 = vld [vmem:[%s5396_s18 + $0x8c] ss:$16 sps:$4 sm:$0xff]  }
  0x9b   : > { %v4362_v42 = vld [vmem:[%s5396_s18 + $0x344] ss:$16 sps:$4 sm:$0xff]   ;;  %v4365_v44 = vld [vmem:[%s5396_s18 + $0x340] ss:$16 sps:$4 sm:$0xff]  }
  0x9c   : > { %1894 = vmatpush1.bf16.msra.mxu1 %v4334_v23  ;;  %v4366_v45 = vld [vmem:[%s5396_s18 + $0x164] ss:$16 sps:$4 sm:$0xff]   ;;  %v4370_v47 = vld [vmem:[%s5396_s18 + $0x160] ss:$16 sps:$4 sm:$0xff]  }
  0x9d   : > { %1937 = vmatpush1.bf16.msra.mxu0 %v4335_v24  ;;  %1895 = vmatprep.subr.bf16.mxu1 %v4336_v25  ;;  %v4368_v46 = vld [vmem:[%s5396_s18 + $0x364] ss:$16 sps:$4 sm:$0xff]   ;;  %v4371_v48 = vld [vmem:[%s5396_s18 + $0x360] ss:$16 sps:$4 sm:$0xff]   ;;  %v4429_v24 = vld [vmem:[%s5396_s18 + $0x88] ss:$16 sps:$4 sm:$0xff]  }
  0x9e   : > { %1938 = vmatprep.subr.bf16.mxu0 %v4338_v26  ;;  %v4372_v49 = vld [vmem:[%s5396_s18 + $0x184] ss:$16 sps:$4 sm:$0xff]   ;;  %v4376_v53 = vld [vmem:[%s5396_s18 + $0x180] ss:$16 sps:$4 sm:$0xff]   ;;  %v4437_v26 = vld [vmem:[%s5396_s18 + $0xac] ss:$16 sps:$4 sm:$0xff]  }
  0x9f   : > { %v4398_v50 = vld [vmem:[%s5908_s0 + $0x4] ss:$24 sps:$4 sm:$0xff]   ;;  %v4377_v54 = vld [vmem:[%s5396_s18 + $0x380] ss:$16 sps:$4 sm:$0xff]  }
  0xa0   : > { %1896 = vmatpush1.bf16.msra.mxu1 %v4340_v27  ;;  %v4374_v51 = vld [vmem:[%s5396_s18 + $0x384] ss:$16 sps:$4 sm:$0xff]   ;;  %1915 = vmatprep.mubr.bf16.mxu1 %v4398_v50  ;;  %v4382_v57 = vld [vmem:[%s5396_s18 + $0x1a0] ss:$16 sps:$4 sm:$0xff]  }
  0xa1   : > { %1939 = vmatpush1.bf16.msra.mxu0 %v4341_v28  ;;  %1897 = vmatprep.subr.bf16.mxu1 %v4342_v29  ;;  %v5455_v52 = vld [vmem:[%s5908_s0 + $0xc] ss:$24 sps:$4 sm:$0xff]   ;;  %v4383_v58 = vld [vmem:[%s5396_s18 + $0x3a0] ss:$16 sps:$4 sm:$0xff]   ;;  %v4435_v28 = vld [vmem:[%s5396_s18 + $0xa8] ss:$16 sps:$4 sm:$0xff]  }
  0xa2   : > { %1940 = vmatprep.subr.bf16.mxu0 %v4344_v30  ;;  %1958 = vmatprep.mubr.bf16.mxu0 %v5455_v52  ;;  %v4378_v55 = vld [vmem:[%s5396_s18 + $0x1a4] ss:$16 sps:$4 sm:$0xff]   ;;  %v4388_v61 = vld [vmem:[%s5396_s18 + $0x1c0] ss:$16 sps:$4 sm:$0xff]   ;;  %v4443_v30 = vld [vmem:[%s5396_s18 + $0xcc] ss:$16 sps:$4 sm:$0xff]  }
  0xa3   : > { %v4380_v56 = vld [vmem:[%s5396_s18 + $0x3a4] ss:$16 sps:$4 sm:$0xff]   ;;  %v4389_v62 = vld [vmem:[%s5396_s18 + $0x3c0] ss:$16 sps:$4 sm:$0xff]  }
  0xa4   : > { %1898 = vmatpush1.bf16.msra.mxu1 %v4346_v31  ;;  %v4384_v59 = vld [vmem:[%s5396_s18 + $0x1c4] ss:$16 sps:$4 sm:$0xff]   ;;  %v4394_v1 = vld [vmem:[%s5396_s18 + $0x1e0] ss:$16 sps:$4 sm:$0xff]  }
  0xa5   : > { %1941 = vmatpush1.bf16.msra.mxu0 %v4347_v32  ;;  %1899 = vmatprep.subr.bf16.mxu1 %v4348_v33  ;;  %v4386_v60 = vld [vmem:[%s5396_s18 + $0x3c4] ss:$16 sps:$4 sm:$0xff]   ;;  %v4395_v2 = vld [vmem:[%s5396_s18 + $0x3e0] ss:$16 sps:$4 sm:$0xff]   ;;  %v4441_v32 = vld [vmem:[%s5396_s18 + $0xc8] ss:$16 sps:$4 sm:$0xff]  }
  0xa6   : > { %1942 = vmatprep.subr.bf16.mxu0 %v4350_v34  ;;  %v4390_v63 = vld [vmem:[%s5396_s18 + $0x1e4] ss:$16 sps:$4 sm:$0xff]   ;;  %v5477_v5 = vld [vmem:[%s5908_s0] ss:$24 sps:$4 sm:$0xff]   ;;  %v4449_v34 = vld [vmem:[%s5396_s18 + $0xec] ss:$16 sps:$4 sm:$0xff]  }
  0xa7   : > { %v4392_v0 = vld [vmem:[%s5396_s18 + $0x3e4] ss:$16 sps:$4 sm:$0xff]   ;;  %v5482_v6 = vld [vmem:[%s5908_s0 + $0x8] ss:$24 sps:$4 sm:$0xff]  }
  0xa8   : > { %1900 = vmatpush1.bf16.msra.mxu1 %v4352_v35  ;;  %v4404_v3 = vld [vmem:[%s5396_s18 + $0x404] ss:$16 sps:$4 sm:$0xff]   ;;  %v4402_v7 = vld [vmem:[%s5396_s18 + $0x400] ss:$16 sps:$4 sm:$0xff]  }
  0xa9   : > { %1943 = vmatpush1.bf16.msra.mxu0 %v4353_v36  ;;  %1901 = vmatprep.subr.bf16.mxu1 %v4354_v37  ;;  %v4410_v9 = vld [vmem:[%s5396_s18 + $0x424] ss:$16 sps:$4 sm:$0xff]   ;;  %v4408_v11 = vld [vmem:[%s5396_s18 + $0x420] ss:$16 sps:$4 sm:$0xff]   ;;  %v4447_v37 = vld [vmem:[%s5396_s18 + $0xe8] ss:$16 sps:$4 sm:$0xff]  }
  0xaa   : > { %1944 = vmatprep.subr.bf16.mxu0 %v4356_v38  ;;  %v4416_v13 = vld [vmem:[%s5396_s18 + $0x444] ss:$16 sps:$4 sm:$0xff]   ;;  %v4414_v15 = vld [vmem:[%s5396_s18 + $0x440] ss:$16 sps:$4 sm:$0xff]  }
  0xab   : > { %v4422_v17 = vld [vmem:[%s5396_s18 + $0x464] ss:$16 sps:$4 sm:$0xff]   ;;  %v4420_v19 = vld [vmem:[%s5396_s18 + $0x460] ss:$16 sps:$4 sm:$0xff]  }
  0xac   : > { %1902 = vmatpush1.bf16.msra.mxu1 %v4358_v39  ;;  %v4428_v21 = vld [vmem:[%s5396_s18 + $0x484] ss:$16 sps:$4 sm:$0xff]   ;;  %v4426_v23 = vld [vmem:[%s5396_s18 + $0x480] ss:$16 sps:$4 sm:$0xff]   ;;  %v4455_v39 = vld [vmem:[%s5396_s18 + $0x10c] ss:$16 sps:$4 sm:$0xff]  }
  0xad   : > { %1945 = vmatpush1.bf16.msra.mxu0 %v4359_v40  ;;  %1903 = vmatprep.subr.bf16.mxu1 %v4360_v41  ;;  %v4434_v25 = vld [vmem:[%s5396_s18 + $0x4a4] ss:$16 sps:$4 sm:$0xff]   ;;  %v4432_v27 = vld [vmem:[%s5396_s18 + $0x4a0] ss:$16 sps:$4 sm:$0xff]   ;;  %v4453_v41 = vld [vmem:[%s5396_s18 + $0x108] ss:$16 sps:$4 sm:$0xff]  }
  0xae   : > { %1946 = vmatprep.subr.bf16.mxu0 %v4362_v42  ;;  %v4440_v29 = vld [vmem:[%s5396_s18 + $0x4c4] ss:$16 sps:$4 sm:$0xff]   ;;  %v4438_v31 = vld [vmem:[%s5396_s18 + $0x4c0] ss:$16 sps:$4 sm:$0xff]  }
  0xaf   : > { %v4446_v33 = vld [vmem:[%s5396_s18 + $0x4e4] ss:$16 sps:$4 sm:$0xff]   ;;  %v4444_v36 = vld [vmem:[%s5396_s18 + $0x4e0] ss:$16 sps:$4 sm:$0xff]  }
  0xb0   : > { %1904 = vmatpush1.bf16.msra.mxu1 %v4364_v43  ;;  %v5517_v35 = vld [vmem:[%s5908_s0 + $0x14] ss:$24 sps:$4 sm:$0xff]   ;;  %v4450_v40 = vld [vmem:[%s5396_s18 + $0x500] ss:$16 sps:$4 sm:$0xff]  }
  0xb1   : > { %1947 = vmatpush1.bf16.msra.mxu0 %v4365_v44  ;;  %1905 = vmatprep.subr.bf16.mxu1 %v4366_v45  ;;  %v4452_v38 = vld [vmem:[%s5396_s18 + $0x504] ss:$16 sps:$4 sm:$0xff]   ;;  %v4461_v43 = vld [vmem:[%s5396_s18 + $0x12c] ss:$16 sps:$4 sm:$0xff]   ;;  %v4456_v44 = vld [vmem:[%s5396_s18 + $0x520] ss:$16 sps:$4 sm:$0xff]  }
  0xb2   : > { %1948 = vmatprep.subr.bf16.mxu0 %v4368_v46  ;;  %v4458_v42 = vld [vmem:[%s5396_s18 + $0x524] ss:$16 sps:$4 sm:$0xff]   ;;  %v4459_v45 = vld [vmem:[%s5396_s18 + $0x128] ss:$16 sps:$4 sm:$0xff]  }
  0xb3   : > { %v4464_v46 = vld [vmem:[%s5396_s18 + $0x544] ss:$16 sps:$4 sm:$0xff]  }
  0xb4   : > { %1906 = vmatpush1.bf16.msra.mxu1 %v4370_v47  ;;  %v4467_v47 = vld [vmem:[%s5396_s18 + $0x14c] ss:$16 sps:$4 sm:$0xff]  }
  0xb5   : > { %1949 = vmatpush1.bf16.msra.mxu0 %v4371_v48  ;;  %1907 = vmatprep.subr.bf16.mxu1 %v4372_v49  ;;  %v4462_v48 = vld [vmem:[%s5396_s18 + $0x540] ss:$16 sps:$4 sm:$0xff]   ;;  %v4465_v49 = vld [vmem:[%s5396_s18 + $0x148] ss:$16 sps:$4 sm:$0xff]  }
  0xb6   : > { %1950 = vmatprep.subr.bf16.mxu0 %v4374_v51  ;;  %v4473_v51 = vld [vmem:[%s5396_s18 + $0x16c] ss:$16 sps:$4 sm:$0xff]  }
  0xb8   : > { %1908 = vmatpush1.bf16.msra.mxu1 %v4376_v53  ;;  %v4468_v53 = vld [vmem:[%s5396_s18 + $0x560] ss:$16 sps:$4 sm:$0xff]  }
  0xb9   : > { %1951 = vmatpush1.bf16.msra.mxu0 %v4377_v54  ;;  %1909 = vmatprep.subr.bf16.mxu1 %v4378_v55  ;;  %v4471_v54 = vld [vmem:[%s5396_s18 + $0x168] ss:$16 sps:$4 sm:$0xff]   ;;  %v4476_v55 = vld [vmem:[%s5396_s18 + $0x584] ss:$16 sps:$4 sm:$0xff]  }
  0xba   : > { %1952 = vmatprep.subr.bf16.mxu0 %v4380_v56  ;;  %v4479_v56 = vld [vmem:[%s5396_s18 + $0x18c] ss:$16 sps:$4 sm:$0xff]  }
  0xbc   : > { %1910 = vmatpush1.bf16.msra.mxu1 %v4382_v57  ;;  %v4474_v57 = vld [vmem:[%s5396_s18 + $0x580] ss:$16 sps:$4 sm:$0xff]  }
  0xbd   : > { %1953 = vmatpush1.bf16.msra.mxu0 %v4383_v58  ;;  %1911 = vmatprep.subr.bf16.mxu1 %v4384_v59  ;;  %v4477_v58 = vld [vmem:[%s5396_s18 + $0x188] ss:$16 sps:$4 sm:$0xff]   ;;  %v4482_v59 = vld [vmem:[%s5396_s18 + $0x5a4] ss:$16 sps:$4 sm:$0xff]  }
  0xbe   : > { %1954 = vmatprep.subr.bf16.mxu0 %v4386_v60  ;;  %v4485_v60 = vld [vmem:[%s5396_s18 + $0x1ac] ss:$16 sps:$4 sm:$0xff]  }
  0xc0   : > { %1912 = vmatpush1.bf16.msra.mxu1 %v4388_v61  ;;  %v4480_v61 = vld [vmem:[%s5396_s18 + $0x5a0] ss:$16 sps:$4 sm:$0xff]  }
  0xc1   : > { %1955 = vmatpush1.bf16.msra.mxu0 %v4389_v62  ;;  %1913 = vmatprep.subr.bf16.mxu1 %v4390_v63  ;;  %v4483_v62 = vld [vmem:[%s5396_s18 + $0x1a8] ss:$16 sps:$4 sm:$0xff]   ;;  %v4488_v63 = vld [vmem:[%s5396_s18 + $0x5c4] ss:$16 sps:$4 sm:$0xff]  }
  0xc2   : > { %1956 = vmatprep.subr.bf16.mxu0 %v4392_v0  ;;  %v4491_v0 = vld [vmem:[%s5396_s18 + $0x1cc] ss:$16 sps:$4 sm:$0xff]  }
  0xc4   : > { %1914 = vmatpush1.bf16.msra.mxu1 %v4394_v1  ;;  %v4486_v1 = vld [vmem:[%s5396_s18 + $0x5c0] ss:$16 sps:$4 sm:$0xff]  }
  0xc5   : > { %1957 = vmatpush1.bf16.msra.mxu0 %v4395_v2  ;;  %2012 = vmatprep.subr.bf16.mxu1 %v4407_v4  ;;  %v4489_v2 = vld [vmem:[%s5396_s18 + $0x1c8] ss:$16 sps:$4 sm:$0xff]   ;;  %v4497_v4 = vld [vmem:[%s5396_s18 + $0x1ec] ss:$16 sps:$4 sm:$0xff]  }
  0xc6   : > { %1969 = vmatprep.subr.bf16.mxu0 %v4404_v3  ;;  %v4494_v3 = vld [vmem:[%s5396_s18 + $0x5e4] ss:$16 sps:$4 sm:$0xff]  }
  0xc7   : > { %1916 = vmatmul.mubr.bf16.vlgmr.msra.gmra.mrb[0].mxu1 %v5477_v5 }
  0xc8   : > { %1959 = vmatmul.mubr.bf16.vlgmr.msra.gmra.mrb[0].mxu0 %v5482_v6  ;;  %2013 = vmatpush1.bf16.msra.mxu1 %v4405_v8  ;;  %v4495_v8 = vld [vmem:[%s5396_s18 + $0x1e8] ss:$16 sps:$4 sm:$0xff]  }
  0xc9   : > { %1970 = vmatpush1.bf16.msra.mxu0 %v4402_v7  ;;  %2014 = vmatprep.subr.bf16.mxu1 %v4413_v10  ;;  %v4492_v7 = vld [vmem:[%s5396_s18 + $0x5e0] ss:$16 sps:$4 sm:$0xff]  }
  0xca   : > { %1971 = vmatprep.subr.bf16.mxu0 %v4410_v9  ;;  %2044 = vmatprep.mubr.bf16.mxu1 %v4398_v50  ;;  %v4470_v50 = vld [vmem:[%s5396_s18 + $0x564] ss:$16 sps:$4 sm:$0xff]   ;;  %v4503_v9 = vld [vmem:[%s5396_s18 + $0x20c] ss:$16 sps:$4 sm:$0xff]   ;;  %v5558_v10 = vld [vmem:[%s5908_s0 + $0x10] ss:$24 sps:$4 sm:$0xff]  }
  0xcb   : > { %2001 = vmatprep.mubr.bf16.mxu0 %v5517_v35 }
  0xcc   : > { %2015 = vmatpush1.bf16.msra.mxu1 %v4411_v12  ;;  %v4506_v12 = vld [vmem:[%s5396_s18 + $0x22c] ss:$16 sps:$4 sm:$0xff]  }
  0xcd   : > { %1972 = vmatpush1.bf16.msra.mxu0 %v4408_v11  ;;  %2016 = vmatprep.subr.bf16.mxu1 %v4419_v14  ;;  %v4501_v11 = vld [vmem:[%s5396_s18 + $0x208] ss:$16 sps:$4 sm:$0xff]   ;;  %v4509_v14 = vld [vmem:[%s5396_s18 + $0x24c] ss:$16 sps:$4 sm:$0xff]  }
  0xce   : > { %1973 = vmatprep.subr.bf16.mxu0 %v4416_v13  ;;  %v4504_v13 = vld [vmem:[%s5396_s18 + $0x228] ss:$16 sps:$4 sm:$0xff]  }
  0xd0   : > { %2017 = vmatpush1.bf16.msra.mxu1 %v4417_v16  ;;  %v4512_v16 = vld [vmem:[%s5396_s18 + $0x26c] ss:$16 sps:$4 sm:$0xff]  }
  0xd1   : > { %1974 = vmatpush1.bf16.msra.mxu0 %v4414_v15  ;;  %2018 = vmatprep.subr.bf16.mxu1 %v4425_v18  ;;  %v4507_v15 = vld [vmem:[%s5396_s18 + $0x248] ss:$16 sps:$4 sm:$0xff]   ;;  %v4515_v18 = vld [vmem:[%s5396_s18 + $0x28c] ss:$16 sps:$4 sm:$0xff]  }
  0xd2   : > { %1975 = vmatprep.subr.bf16.mxu0 %v4422_v17  ;;  %v4510_v17 = vld [vmem:[%s5396_s18 + $0x268] ss:$16 sps:$4 sm:$0xff]  }
  0xd4   : > { %2019 = vmatpush1.bf16.msra.mxu1 %v4423_v20  ;;  %v4521_v20 = vld [vmem:[%s5396_s18 + $0x2cc] ss:$16 sps:$4 sm:$0xff]  }
  0xd5   : > { %1976 = vmatpush1.bf16.msra.mxu0 %v4420_v19  ;;  %2020 = vmatprep.subr.bf16.mxu1 %v4431_v22  ;;  %v4518_v19 = vld [vmem:[%s5396_s18 + $0x2ac] ss:$16 sps:$4 sm:$0xff]  }
  0xd6   : > { %1977 = vmatprep.subr.bf16.mxu0 %v4428_v21  ;;  %v4519_v21 = vld [vmem:[%s5396_s18 + $0x2c8] ss:$16 sps:$4 sm:$0xff]   ;;  %v4524_v22 = vld [vmem:[%s5396_s18 + $0x2ec] ss:$16 sps:$4 sm:$0xff]  }
  0xd8   : > { %2021 = vmatpush1.bf16.msra.mxu1 %v4429_v24  ;;  %v4599_v24 = vld [vmem:[%s5394_s20 + $0x4] ss:$24 sps:$4 sm:$0xff]  }
  0xd9   : > { %1978 = vmatpush1.bf16.msra.mxu0 %v4426_v23  ;;  %2022 = vmatprep.subr.bf16.mxu1 %v4437_v26  ;;  %v4597_v23 = vld [vmem:[%s5394_s20] ss:$24 sps:$4 sm:$0xff]  }
  0xda   : > { %1979 = vmatprep.subr.bf16.mxu0 %v4434_v25  ;;  %v4605_v25 = vld [vmem:[%s5394_s20 + $0x34] ss:$24 sps:$4 sm:$0xff]   ;;  %v4522_v26 = vld [vmem:[%s5396_s18 + $0x2e8] ss:$16 sps:$4 sm:$0xff]  }
  0xdc   : > { %2023 = vmatpush1.bf16.msra.mxu1 %v4435_v28  ;;  %v4603_v28 = vld [vmem:[%s5394_s20 + $0x30] ss:$24 sps:$4 sm:$0xff]  }
  0xdd   : > { %1980 = vmatpush1.bf16.msra.mxu0 %v4432_v27  ;;  %2024 = vmatprep.subr.bf16.mxu1 %v4443_v30  ;;  %v4527_v27 = vld [vmem:[%s5396_s18 + $0x30c] ss:$16 sps:$4 sm:$0xff]   ;;  %v4525_v30 = vld [vmem:[%s5396_s18 + $0x308] ss:$16 sps:$4 sm:$0xff]  }
  0xde   : > { %1981 = vmatprep.subr.bf16.mxu0 %v4440_v29  ;;  %v4611_v29 = vld [vmem:[%s5394_s20 + $0x64] ss:$24 sps:$4 sm:$0xff]  }
  0xe0   : > { %2025 = vmatpush1.bf16.msra.mxu1 %v4441_v32  ;;  %v4609_v32 = vld [vmem:[%s5394_s20 + $0x60] ss:$24 sps:$4 sm:$0xff]  }
  0xe1   : > { %1982 = vmatpush1.bf16.msra.mxu0 %v4438_v31  ;;  %2026 = vmatprep.subr.bf16.mxu1 %v4449_v34  ;;  %v4530_v31 = vld [vmem:[%s5396_s18 + $0x32c] ss:$16 sps:$4 sm:$0xff]   ;;  %v4528_v34 = vld [vmem:[%s5396_s18 + $0x328] ss:$16 sps:$4 sm:$0xff]  }
  0xe2   : > { %1983 = vmatprep.subr.bf16.mxu0 %v4446_v33  ;;  %v4617_v33 = vld [vmem:[%s5394_s20 + $0x94] ss:$24 sps:$4 sm:$0xff]  }
  0xe4   : > { %2027 = vmatpush1.bf16.msra.mxu1 %v4447_v37  ;;  %v4615_v37 = vld [vmem:[%s5394_s20 + $0x90] ss:$24 sps:$4 sm:$0xff]  }
  0xe5   : > { %1984 = vmatpush1.bf16.msra.mxu0 %v4444_v36  ;;  %2028 = vmatprep.subr.bf16.mxu1 %v4455_v39  ;;  %v4533_v36 = vld [vmem:[%s5396_s18 + $0x34c] ss:$16 sps:$4 sm:$0xff]   ;;  %v4531_v39 = vld [vmem:[%s5396_s18 + $0x348] ss:$16 sps:$4 sm:$0xff]  }
  0xe6   : > { %1985 = vmatprep.subr.bf16.mxu0 %v4452_v38  ;;  %v4623_v38 = vld [vmem:[%s5394_s20 + $0xc4] ss:$24 sps:$4 sm:$0xff]  }
  0xe8   : > { %2029 = vmatpush1.bf16.msra.mxu1 %v4453_v41  ;;  %v4621_v41 = vld [vmem:[%s5394_s20 + $0xc0] ss:$24 sps:$4 sm:$0xff]  }
  0xe9   : > { %1986 = vmatpush1.bf16.msra.mxu0 %v4450_v40  ;;  %2030 = vmatprep.subr.bf16.mxu1 %v4461_v43  ;;  %v4536_v40 = vld [vmem:[%s5396_s18 + $0x36c] ss:$16 sps:$4 sm:$0xff]   ;;  %v4534_v43 = vld [vmem:[%s5396_s18 + $0x368] ss:$16 sps:$4 sm:$0xff]  }
  0xea   : > { %1987 = vmatprep.subr.bf16.mxu0 %v4458_v42  ;;  %v4629_v42 = vld [vmem:[%s5394_s20 + $0xf4] ss:$24 sps:$4 sm:$0xff]  }
  0xec   : > { %2031 = vmatpush1.bf16.msra.mxu1 %v4459_v45  ;;  %v4627_v45 = vld [vmem:[%s5394_s20 + $0xf0] ss:$24 sps:$4 sm:$0xff]  }
  0xed   : > { %1988 = vmatpush1.bf16.msra.mxu0 %v4456_v44  ;;  %2032 = vmatprep.subr.bf16.mxu1 %v4467_v47  ;;  %v4539_v44 = vld [vmem:[%s5396_s18 + $0x38c] ss:$16 sps:$4 sm:$0xff]   ;;  %v4537_v47 = vld [vmem:[%s5396_s18 + $0x388] ss:$16 sps:$4 sm:$0xff]  }
  0xee   : > { %1989 = vmatprep.subr.bf16.mxu0 %v4464_v46  ;;  %v4635_v46 = vld [vmem:[%s5394_s20 + $0x124] ss:$24 sps:$4 sm:$0xff]  }
  0xf0   : > { %2033 = vmatpush1.bf16.msra.mxu1 %v4465_v49  ;;  %v4633_v49 = vld [vmem:[%s5394_s20 + $0x120] ss:$24 sps:$4 sm:$0xff]  }
  0xf1   : > { %1990 = vmatpush1.bf16.msra.mxu0 %v4462_v48  ;;  %2034 = vmatprep.subr.bf16.mxu1 %v4473_v51  ;;  %v4542_v48 = vld [vmem:[%s5396_s18 + $0x3ac] ss:$16 sps:$4 sm:$0xff]   ;;  %v4540_v51 = vld [vmem:[%s5396_s18 + $0x3a8] ss:$16 sps:$4 sm:$0xff]  }
  0xf2   : > { %1991 = vmatprep.subr.bf16.mxu0 %v4470_v50  ;;  %v4641_v50 = vld [vmem:[%s5394_s20 + $0x154] ss:$24 sps:$4 sm:$0xff]  }
  0xf4   : > { %2035 = vmatpush1.bf16.msra.mxu1 %v4471_v54  ;;  %v4639_v54 = vld [vmem:[%s5394_s20 + $0x150] ss:$24 sps:$4 sm:$0xff]  }
  0xf5   : > { %1992 = vmatpush1.bf16.msra.mxu0 %v4468_v53  ;;  %2036 = vmatprep.subr.bf16.mxu1 %v4479_v56  ;;  %v4545_v53 = vld [vmem:[%s5396_s18 + $0x3cc] ss:$16 sps:$4 sm:$0xff]  }
  0xf6   : > { %1993 = vmatprep.subr.bf16.mxu0 %v4476_v55  ;;  %v4543_v55 = vld [vmem:[%s5396_s18 + $0x3c8] ss:$16 sps:$4 sm:$0xff]   ;;  %v4548_v56 = vld [vmem:[%s5396_s18 + $0x3ec] ss:$16 sps:$4 sm:$0xff]  }
  0xf8   : > { %2037 = vmatpush1.bf16.msra.mxu1 %v4477_v58  ;;  %v4551_v58 = vld [vmem:[%s5396_s18 + $0x40c] ss:$16 sps:$4 sm:$0xff]  }
  0xf9   : > { %1994 = vmatpush1.bf16.msra.mxu0 %v4474_v57  ;;  %2038 = vmatprep.subr.bf16.mxu1 %v4485_v60  ;;  %v4546_v57 = vld [vmem:[%s5396_s18 + $0x3e8] ss:$16 sps:$4 sm:$0xff]   ;;  %v4554_v60 = vld [vmem:[%s5396_s18 + $0x42c] ss:$16 sps:$4 sm:$0xff]  }
  0xfa   : > { %1995 = vmatprep.subr.bf16.mxu0 %v4482_v59  ;;  %v4549_v59 = vld [vmem:[%s5396_s18 + $0x408] ss:$16 sps:$4 sm:$0xff]  }
  0xfc   : > { %2039 = vmatpush1.bf16.msra.mxu1 %v4483_v62  ;;  %v4557_v62 = vld [vmem:[%s5396_s18 + $0x44c] ss:$16 sps:$4 sm:$0xff]  }
  0xfd   : > { %1996 = vmatpush1.bf16.msra.mxu0 %v4480_v61  ;;  %2040 = vmatprep.subr.bf16.mxu1 %v4491_v0  ;;  %v4552_v61 = vld [vmem:[%s5396_s18 + $0x428] ss:$16 sps:$4 sm:$0xff]   ;;  %v4560_v0 = vld [vmem:[%s5396_s18 + $0x46c] ss:$16 sps:$4 sm:$0xff]  }
  0xfe   : > { %1997 = vmatprep.subr.bf16.mxu0 %v4488_v63  ;;  %v4555_v63 = vld [vmem:[%s5396_s18 + $0x448] ss:$16 sps:$4 sm:$0xff]  }
 0x100   : > { %2041 = vmatpush1.bf16.msra.mxu1 %v4489_v2  ;;  %v4563_v2 = vld [vmem:[%s5396_s18 + $0x48c] ss:$16 sps:$4 sm:$0xff]  }
 0x101   : > { %1998 = vmatpush1.bf16.msra.mxu0 %v4486_v1  ;;  %2042 = vmatprep.subr.bf16.mxu1 %v4497_v4  ;;  %v4558_v1 = vld [vmem:[%s5396_s18 + $0x468] ss:$16 sps:$4 sm:$0xff]   ;;  %v4569_v4 = vld [vmem:[%s5396_s18 + $0x4cc] ss:$16 sps:$4 sm:$0xff]  }
 0x102   : > { %1999 = vmatprep.subr.bf16.mxu0 %v4494_v3  ;;  %v4564_v3 = vld [vmem:[%s5396_s18 + $0x4a8] ss:$16 sps:$4 sm:$0xff]  }
 0x104   : > { %2043 = vmatpush1.bf16.msra.mxu1 %v4495_v8  ;;  %v4645_v8 = vld [vmem:[%s5394_s20 + $0x180] ss:$24 sps:$4 sm:$0xff]  }
 0x105   : > { %2000 = vmatpush1.bf16.msra.mxu0 %v4492_v7  ;;  %2055 = vmatprep.subr.bf16.mxu1 %v4503_v9  ;;  %v4647_v7 = vld [vmem:[%s5394_s20 + $0x184] ss:$24 sps:$4 sm:$0xff]   ;;  %v4567_v9 = vld [vmem:[%s5396_s18 + $0x4c8] ss:$16 sps:$4 sm:$0xff]  }
 0x106   : > { %3381 = vmatprep.subr.bf16.mxu0 %v4599_v24  ;;  %v4677_v24 = vld [vmem:[%s5394_s20 + $0x274] ss:$24 sps:$4 sm:$0xff]  }
 0x107   : > { %2045 = vmatmul.mubr.bf16.vlgmr.msra.gmra.mrb[4].mxu1 %v5477_v5  ;;  %v4513_v5 = vld [vmem:[%s5396_s18 + $0x288] ss:$16 sps:$4 sm:$0xff]  }
 0x108   : > { %2002 = vmatmul.mubr.bf16.vlgmr.msra.gmra.mrb[0].mxu0 %v5558_v10  ;;  %2056 = vmatpush1.bf16.msra.mxu1 %v4501_v11  ;;  %v4572_v11 = vld [vmem:[%s5396_s18 + $0x4ec] ss:$16 sps:$4 sm:$0xff]  }
 0x109   : > { %2087 = vmatprep.mubr.bf16.mxu1 %v5455_v52  ;;  %2057 = vmatprep.subr.bf16.mxu1 %v4506_v12  ;;  %v4516_v52 = vld [vmem:[%s5396_s18 + $0x2a8] ss:$16 sps:$4 sm:$0xff]   ;;  %v4653_v12 = vld [vmem:[%s5394_s20 + $0x1b4] ss:$24 sps:$4 sm:$0xff]  }
 0x10a   : > { %3382 = vmatpush1.bf16.msra.mxu0 %v4597_v23  ;;  %v4671_v23 = vld [vmem:[%s5394_s20 + $0x244] ss:$24 sps:$4 sm:$0xff]  }
 0x10b   : > { %3383 = vmatprep.subr.bf16.mxu0 %v4605_v25  ;;  %v4579_v25 = vld [vmem:[%s5396_s18 + $0x548] ss:$16 sps:$4 sm:$0xff]  }
 0x10c   : > { %2058 = vmatpush1.bf16.msra.mxu1 %v4504_v13  ;;  %v4651_v13 = vld [vmem:[%s5394_s20 + $0x1b0] ss:$24 sps:$4 sm:$0xff]  }
 0x10d   : > { %2059 = vmatprep.subr.bf16.mxu1 %v4509_v14  ;;  %v4570_v14 = vld [vmem:[%s5396_s18 + $0x4e8] ss:$16 sps:$4 sm:$0xff]  }
 0x10e   : > { %3384 = vmatpush1.bf16.msra.mxu0 %v4603_v28  ;;  %v4683_v28 = vld [vmem:[%s5394_s20 + $0x2a4] ss:$24 sps:$4 sm:$0xff]  }
 0x10f   : > { %3385 = vmatprep.subr.bf16.mxu0 %v4611_v29  ;;  %v4582_v29 = vld [vmem:[%s5396_s18 + $0x568] ss:$16 sps:$4 sm:$0xff]  }
 0x110   : > { %2060 = vmatpush1.bf16.msra.mxu1 %v4507_v15  ;;  %v4575_v15 = vld [vmem:[%s5396_s18 + $0x50c] ss:$16 sps:$4 sm:$0xff]  }
 0x111   : > { %2061 = vmatprep.subr.bf16.mxu1 %v4512_v16  ;;  %v4659_v16 = vld [vmem:[%s5394_s20 + $0x1e4] ss:$24 sps:$4 sm:$0xff]  }
 0x112   : > { %3386 = vmatpush1.bf16.msra.mxu0 %v4609_v32  ;;  %v4689_v32 = vld [vmem:[%s5394_s20 + $0x2d4] ss:$24 sps:$4 sm:$0xff]  }
 0x113   : > { %3387 = vmatprep.subr.bf16.mxu0 %v4617_v33  ;;  %v4585_v33 = vld [vmem:[%s5396_s18 + $0x588] ss:$16 sps:$4 sm:$0xff]  }
 0x114   : > { %2062 = vmatpush1.bf16.msra.mxu1 %v4510_v17  ;;  %v4657_v17 = vld [vmem:[%s5394_s20 + $0x1e0] ss:$24 sps:$4 sm:$0xff]  }
 0x115   : > { %2063 = vmatprep.subr.bf16.mxu1 %v4515_v18  ;;  %v4573_v18 = vld [vmem:[%s5396_s18 + $0x508] ss:$16 sps:$4 sm:$0xff]  }
 0x116   : > { %3388 = vmatpush1.bf16.msra.mxu0 %v4615_v37  ;;  %v4588_v37 = vld [vmem:[%s5396_s18 + $0x5a8] ss:$16 sps:$4 sm:$0xff]  }
 0x117   : > { %3389 = vmatprep.subr.bf16.mxu0 %v4623_v38  ;;  %v4593_v38 = vld [vmem:[%s5396_s18 + $0x5cc] ss:$16 sps:$4 sm:$0xff]  }
 0x118   : > { %2064 = vmatpush1.bf16.msra.mxu1 %v4513_v5  ;;  %v4578_v5 = vld [vmem:[%s5396_s18 + $0x52c] ss:$16 sps:$4 sm:$0xff]  }
 0x119   : > { %2065 = vmatprep.subr.bf16.mxu1 %v4518_v19  ;;  %v4665_v19 = vld [vmem:[%s5394_s20 + $0x214] ss:$24 sps:$4 sm:$0xff]  }
 0x11a   : > { %3390 = vmatpush1.bf16.msra.mxu0 %v4621_v41  ;;  %v4596_v41 = vld [vmem:[%s5396_s18 + $0x5ec] ss:$16 sps:$4 sm:$0xff]  }
 0x11b   : > { %3391 = vmatprep.subr.bf16.mxu0 %v4629_v42  ;;  %v4594_v42 = vld [vmem:[%s5396_s18 + $0x5e8] ss:$16 sps:$4 sm:$0xff]  }
 0x11c   : > { %2066 = vmatpush1.bf16.msra.mxu1 %v4516_v52  ;;  %v4663_v52 = vld [vmem:[%s5394_s20 + $0x210] ss:$24 sps:$4 sm:$0xff]  }
 0x11d   : > { %2067 = vmatprep.subr.bf16.mxu1 %v4521_v20  ;;  %v4576_v20 = vld [vmem:[%s5396_s18 + $0x528] ss:$16 sps:$4 sm:$0xff]  }
 0x11e   : > { %3392 = vmatpush1.bf16.msra.mxu0 %v4627_v45  ;;  %v4608_v45 = vld [vmem:[%s5394_s20 + $0x3c] ss:$24 sps:$4 sm:$0xff]  }
 0x11f   : > { %3393 = vmatprep.subr.bf16.mxu0 %v4635_v46  ;;  %v4606_v46 = vld [vmem:[%s5394_s20 + $0x38] ss:$24 sps:$4 sm:$0xff]  }
 0x120   : > { %2068 = vmatpush1.bf16.msra.mxu1 %v4519_v21  ;;  %v4581_v21 = vld [vmem:[%s5396_s18 + $0x54c] ss:$16 sps:$4 sm:$0xff]  }
 0x121   : > { %2069 = vmatprep.subr.bf16.mxu1 %v4524_v22  ;;  %v4669_v22 = vld [vmem:[%s5394_s20 + $0x240] ss:$24 sps:$4 sm:$0xff]  }
 0x122   : > { %3394 = vmatpush1.bf16.msra.mxu0 %v4633_v49  ;;  %v4620_v49 = vld [vmem:[%s5394_s20 + $0x9c] ss:$24 sps:$4 sm:$0xff]  }
 0x123   : > { %3395 = vmatprep.subr.bf16.mxu0 %v4641_v50  ;;  %v4618_v50 = vld [vmem:[%s5394_s20 + $0x98] ss:$24 sps:$4 sm:$0xff]  }
 0x124   : > { %2070 = vmatpush1.bf16.msra.mxu1 %v4522_v26  ;;  %v4584_v26 = vld [vmem:[%s5396_s18 + $0x56c] ss:$16 sps:$4 sm:$0xff]  }
 0x125   : > { %2071 = vmatprep.subr.bf16.mxu1 %v4527_v27  ;;  %v4675_v27 = vld [vmem:[%s5394_s20 + $0x270] ss:$24 sps:$4 sm:$0xff]  }
 0x126   : > { %3396 = vmatpush1.bf16.msra.mxu0 %v4639_v54  ;;  %v4630_v54 = vld [vmem:[%s5394_s20 + $0xf8] ss:$24 sps:$4 sm:$0xff]  }
 0x127   : > { %3397 = vmatprep.subr.bf16.mxu0 %v4647_v7  ;;  %v4674_v7 = vld [vmem:[%s5394_s20 + $0x24c] ss:$24 sps:$4 sm:$0xff]  }
 0x128   : > { %2072 = vmatpush1.bf16.msra.mxu1 %v4525_v30  ;;  %v4587_v30 = vld [vmem:[%s5396_s18 + $0x58c] ss:$16 sps:$4 sm:$0xff]  }
 0x129   : > { %2073 = vmatprep.subr.bf16.mxu1 %v4530_v31  ;;  %v4681_v31 = vld [vmem:[%s5394_s20 + $0x2a0] ss:$24 sps:$4 sm:$0xff]  }
 0x12a   : > { %3398 = vmatpush1.bf16.msra.mxu0 %v4645_v8  ;;  %v4672_v8 = vld [vmem:[%s5394_s20 + $0x248] ss:$24 sps:$4 sm:$0xff]  }
 0x12b   : > { %3399 = vmatprep.subr.bf16.mxu0 %v4653_v12  ;;  %v4686_v12 = vld [vmem:[%s5394_s20 + $0x2ac] ss:$24 sps:$4 sm:$0xff]  }
 0x12c   : > { %2074 = vmatpush1.bf16.msra.mxu1 %v4528_v34  ;;  %v4590_v34 = vld [vmem:[%s5396_s18 + $0x5ac] ss:$16 sps:$4 sm:$0xff]  }
 0x12d   : > { %2075 = vmatprep.subr.bf16.mxu1 %v4533_v36  ;;  %v4687_v36 = vld [vmem:[%s5394_s20 + $0x2d0] ss:$24 sps:$4 sm:$0xff]  }
 0x12e   : > { %3400 = vmatpush1.bf16.msra.mxu0 %v4651_v13  ;;  %v4684_v13 = vld [vmem:[%s5394_s20 + $0x2a8] ss:$24 sps:$4 sm:$0xff]  }
 0x12f   : > { %3401 = vmatprep.subr.bf16.mxu0 %v4659_v16  ;;  %v4698_v16 = vld [vmem:[%s5394_s20 + $0x30c] ss:$24 sps:$4 sm:$0xff]  }
 0x130   : > { %2076 = vmatpush1.bf16.msra.mxu1 %v4531_v39  ;;  %v4591_v39 = vld [vmem:[%s5396_s18 + $0x5c8] ss:$16 sps:$4 sm:$0xff]  }
 0x131   : > { %2077 = vmatprep.subr.bf16.mxu1 %v4536_v40  ;;  %v4695_v40 = vld [vmem:[%s5394_s20 + $0x304] ss:$24 sps:$4 sm:$0xff]  }
 0x132   : > { %3402 = vmatpush1.bf16.msra.mxu0 %v4657_v17  ;;  %v873_v17 = vlaneseq }
 0x133   : > { %3403 = vmatprep.subr.bf16.mxu0 %v4665_v19  ;;  %v5703_v19 = vld [vmem:[%s648_s14] sm:$0xf] }
 0x134   : > { %2078 = vmatpush1.bf16.msra.mxu1 %v4534_v43  ;;  %v4602_v43 = vld [vmem:[%s5394_s20 + $0xc] ss:$24 sps:$4 sm:$0xff]  }
 0x135   : > { %2079 = vmatprep.subr.bf16.mxu1 %v4539_v44  ;;  %v4600_v44 = vld [vmem:[%s5394_s20 + $0x8] ss:$24 sps:$4 sm:$0xff]  }
 0x136   : > { %3404 = vmatpush1.bf16.msra.mxu0 %v4663_v52 }
 0x137   : > { %3405 = vmatprep.subr.bf16.mxu0 %v4671_v23 }
 0x138   : > { %2080 = vmatpush1.bf16.msra.mxu1 %v4537_v47  ;;  %v4614_v47 = vld [vmem:[%s5394_s20 + $0x6c] ss:$24 sps:$4 sm:$0xff]  }
 0x139   : > { %2081 = vmatprep.subr.bf16.mxu1 %v4542_v48  ;;  %v4612_v48 = vld [vmem:[%s5394_s20 + $0x68] ss:$24 sps:$4 sm:$0xff]  }
 0x13a   : > { %3406 = vmatpush1.bf16.msra.mxu0 %v4669_v22 }
 0x13b   : > { %3407 = vmatprep.subr.bf16.mxu0 %v4677_v24 }
 0x13c   : > { %2082 = vmatpush1.bf16.msra.mxu1 %v4540_v51  ;;  %v4626_v51 = vld [vmem:[%s5394_s20 + $0xcc] ss:$24 sps:$4 sm:$0xff]  }
 0x13d   : > { %2083 = vmatprep.subr.bf16.mxu1 %v4545_v53  ;;  %v4624_v53 = vld [vmem:[%s5394_s20 + $0xc8] ss:$24 sps:$4 sm:$0xff]  }
 0x13e   : > { %3408 = vmatpush1.bf16.msra.mxu0 %v4675_v27 }
 0x13f   : > { %3409 = vmatprep.subr.bf16.mxu0 %v4683_v28 }
 0x140   : > { %2084 = vmatpush1.bf16.msra.mxu1 %v4543_v55  ;;  %v4638_v55 = vld [vmem:[%s5394_s20 + $0x12c] ss:$24 sps:$4 sm:$0xff]  }
 0x141   : > { %2085 = vmatprep.subr.bf16.mxu1 %v4548_v56 }
 0x142   : > { %3410 = vmatpush1.bf16.msra.mxu0 %v4681_v31 }
 0x143   : > { %3411 = vmatprep.subr.bf16.mxu0 %v4689_v32 }
 0x144   : > { %2086 = vmatpush1.bf16.msra.mxu1 %v4546_v57 }
 0x145   : > { %2098 = vmatprep.subr.bf16.mxu1 %v4551_v58 }
 0x146   : > { %3412 = vmatpush1.bf16.msra.mxu0 %v4687_v36 }
 0x147   : > { %2088 = vmatmul.mubr.bf16.vlgmr.msra.gmra.mrb[4].mxu1 %v5482_v6  ;;  %v4561_v6 = vld [vmem:[%s5396_s18 + $0x488] ss:$16 sps:$4 sm:$0xff]   ;;  %3424 = vmatprep.subr.bf16.mxu0 %v4695_v40 }
 0x148   : > { %2099 = vmatpush1.bf16.msra.mxu1 %v4549_v59  ;;  %2130 = vmatprep.mubr.bf16.mxu1 %v5517_v35  ;;  %v4566_v35 = vld [vmem:[%s5396_s18 + $0x4ac] ss:$16 sps:$4 sm:$0xff]   ;;  %v4636_v59 = vld [vmem:[%s5394_s20 + $0x128] ss:$24 sps:$4 sm:$0xff]  }
 0x149   : > { %2100 = vmatprep.subr.bf16.mxu1 %v4554_v60 }
 0x14c   : > { %2101 = vmatpush1.bf16.msra.mxu1 %v4552_v61  ;;  %v4644_v61 = vld [vmem:[%s5394_s20 + $0x15c] ss:$24 sps:$4 sm:$0xff]  }
 0x14d   : > { %2102 = vmatprep.subr.bf16.mxu1 %v4557_v62  ;;  %v4642_v62 = vld [vmem:[%s5394_s20 + $0x158] ss:$24 sps:$4 sm:$0xff]  }
 0x150   : > { %2103 = vmatpush1.bf16.msra.mxu1 %v4555_v63  ;;  %v4650_v63 = vld [vmem:[%s5394_s20 + $0x18c] ss:$24 sps:$4 sm:$0xff]  }
 0x151   : > { %2104 = vmatprep.subr.bf16.mxu1 %v4560_v0  ;;  %v4648_v0 = vld [vmem:[%s5394_s20 + $0x188] ss:$24 sps:$4 sm:$0xff]  }
 0x154   : > { %2105 = vmatpush1.bf16.msra.mxu1 %v4558_v1  ;;  %v4656_v1 = vld [vmem:[%s5394_s20 + $0x1bc] ss:$24 sps:$4 sm:$0xff]  }
 0x155   : > { %2106 = vmatprep.subr.bf16.mxu1 %v4563_v2  ;;  %v4654_v2 = vld [vmem:[%s5394_s20 + $0x1b8] ss:$24 sps:$4 sm:$0xff]  }
 0x158   : > { %2107 = vmatpush1.bf16.msra.mxu1 %v4561_v6  ;;  %v4662_v6 = vld [vmem:[%s5394_s20 + $0x1ec] ss:$24 sps:$4 sm:$0xff]  }
 0x159   : > { %2108 = vmatprep.subr.bf16.mxu1 %v4566_v35  ;;  %v4660_v35 = vld [vmem:[%s5394_s20 + $0x1e8] ss:$24 sps:$4 sm:$0xff]  }
 0x15c   : > { %2109 = vmatpush1.bf16.msra.mxu1 %v4564_v3  ;;  %v4668_v3 = vld [vmem:[%s5394_s20 + $0x21c] ss:$24 sps:$4 sm:$0xff]  }
 0x15d   : > { %2110 = vmatprep.subr.bf16.mxu1 %v4569_v4  ;;  %v4666_v4 = vld [vmem:[%s5394_s20 + $0x218] ss:$24 sps:$4 sm:$0xff]  }
 0x160   : > { %2111 = vmatpush1.bf16.msra.mxu1 %v4567_v9  ;;  %v4680_v9 = vld [vmem:[%s5394_s20 + $0x27c] ss:$24 sps:$4 sm:$0xff]  }
 0x161   : > { %2112 = vmatprep.subr.bf16.mxu1 %v4572_v11  ;;  %v4678_v11 = vld [vmem:[%s5394_s20 + $0x278] ss:$24 sps:$4 sm:$0xff]  }
 0x164   : > { %2113 = vmatpush1.bf16.msra.mxu1 %v4570_v14  ;;  %v4692_v14 = vld [vmem:[%s5394_s20 + $0x2dc] ss:$24 sps:$4 sm:$0xff]  }
 0x165   : > { %2114 = vmatprep.subr.bf16.mxu1 %v4575_v15  ;;  %v4690_v15 = vld [vmem:[%s5394_s20 + $0x2d8] ss:$24 sps:$4 sm:$0xff]  }
 0x168   : > { %2115 = vmatpush1.bf16.msra.mxu1 %v4573_v18  ;;  %v5695_v18 = vshrl.u32 %v873_v17, 7  ;;  %v4710_v17 = vld [vmem:[%s5394_s20 + $0x36c] ss:$24 sps:$4 sm:$0xff]  }
 0x169   : > { %2116 = vmatprep.subr.bf16.mxu1 %v4578_v5 }
 0x16a   : > { %v875_v5 = vsub.s32 0, %v5695_v18  ;;  %v879_v52 = vsub.s32 1, %v5695_v18 }
 0x16c   : > { %2117 = vmatpush1.bf16.msra.mxu1 %v4576_v20  ;;  %v876_v20 = vrot.slane %v5703_v19, %v875_v5 }
 0x16d   : > { %2118 = vmatprep.subr.bf16.mxu1 %v4581_v21  ;;  %v880_v21 = vrot.slane %v5703_v19, %v879_v52 }
 0x170   : > { %2119 = vmatpush1.bf16.msra.mxu1 %v4579_v25 }
 0x171   : > { %2120 = vmatprep.subr.bf16.mxu1 %v4584_v26 }
 0x174   : > { %2121 = vmatpush1.bf16.msra.mxu1 %v4582_v29 }
 0x175   : > { %2122 = vmatprep.subr.bf16.mxu1 %v4587_v30 }
 0x178   : > { %2123 = vmatpush1.bf16.msra.mxu1 %v4585_v33 }
 0x179   : > { %2124 = vmatprep.subr.bf16.mxu1 %v4590_v34 }
 0x17c   : > { %2125 = vmatpush1.bf16.msra.mxu1 %v4588_v37 }
 0x17d   : > { %2126 = vmatprep.subr.bf16.mxu1 %v4593_v38 }
 0x180   : > { %2127 = vmatpush1.bf16.msra.mxu1 %v4591_v39 }
 0x181   : > { %2128 = vmatprep.subr.bf16.mxu1 %v4596_v41 }
 0x184   : > { %2129 = vmatpush1.bf16.msra.mxu1 %v4594_v42 }
 0x185   : > { %3467 = vmatprep.subr.bf16.mxu1 %v4602_v43 }
 0x187   : > { %2131 = vmatmul.mubr.bf16.vlgmr.msra.gmra.mrb[4].mxu1 %v5558_v10  ;;  %v4632_v10 = vld [vmem:[%s5394_s20 + $0xfc] ss:$24 sps:$4 sm:$0xff]  }
 0x188   : > { %3468 = vmatpush1.bf16.msra.mxu1 %v4600_v44 }
 0x189   : > { %3469 = vmatprep.subr.bf16.mxu1 %v4608_v45 }
 0x18c   : > { %3470 = vmatpush1.bf16.msra.mxu1 %v4606_v46 }
 0x18d   : > { %3471 = vmatprep.subr.bf16.mxu1 %v4614_v47 }
 0x190   : > { %3472 = vmatpush1.bf16.msra.mxu1 %v4612_v48 }
 0x191   : > { %3473 = vmatprep.subr.bf16.mxu1 %v4620_v49 }
 0x194   : > { %3474 = vmatpush1.bf16.msra.mxu1 %v4618_v50 }
 0x195   : > { %3475 = vmatprep.subr.bf16.mxu1 %v4626_v51 }
 0x198   : > { %3476 = vmatpush1.bf16.msra.mxu1 %v4624_v53 }
 0x199   : > { %3477 = vmatprep.subr.bf16.mxu1 %v4632_v10 }
 0x19a   : > { %v1917_v56 = vpop.f32.mrb[0].mxu1 }
 0x19b   : > { %v1919_v57 = vpop.f32.mrb[1].mxu1  ;;  %v1918_v22 = vadd.f32 %v1917_v56, %v876_v20 }
 0x19c   : > { %v1921_v58 = vpop.f32.mrb[2].mxu1  ;;  %3478 = vmatpush1.bf16.msra.mxu1 %v4630_v54  ;;  %v1920_v23 = vadd.f32 %v1919_v57, %v880_v21 }
 0x19d   : > { %v1923_v60 = vpop.f32.mrb[3].mxu1  ;;  %3479 = vmatprep.subr.bf16.mxu1 %v4638_v55  ;;  %v1922_v25 = vadd.f32 %v1921_v58, %v876_v20  ;;  %v4705_v20 = vld [vmem:[%s5394_s20 + $0x360] ss:$24 sps:$4 sm:$0xff]  }
 0x19e   : > { %v1924_v28 = vadd.f32 %v1923_v60, %v880_v21  ;;  %v4708_v21 = vld [vmem:[%s5394_s20 + $0x368] ss:$24 sps:$4 sm:$0xff]  }
 0x1a0   : > { %3480 = vmatpush1.bf16.msra.mxu1 %v4636_v59 }
 0x1a1   : > { %3481 = vmatprep.subr.bf16.mxu1 %v4644_v61 }
 0x1a4   : > { %3482 = vmatpush1.bf16.msra.mxu1 %v4642_v62 }
 0x1a5   : > { %3483 = vmatprep.subr.bf16.mxu1 %v4650_v63 }
 0x1a8   : > { %3484 = vmatpush1.bf16.msra.mxu1 %v4648_v0 }
 0x1a9   : > { %3485 = vmatprep.subr.bf16.mxu1 %v4656_v1 }
 0x1ac   : > { %3486 = vmatpush1.bf16.msra.mxu1 %v4654_v2 }
 0x1ad   : > { %3487 = vmatprep.subr.bf16.mxu1 %v4662_v6 }
 0x1b0   : > { %3488 = vmatpush1.bf16.msra.mxu1 %v4660_v35 }
 0x1b1   : > { %3489 = vmatprep.subr.bf16.mxu1 %v4668_v3 }
 0x1b4   : > { %3490 = vmatpush1.bf16.msra.mxu1 %v4666_v4 }
 0x1b5   : > { %3491 = vmatprep.subr.bf16.mxu1 %v4674_v7 }
 0x1b8   : > { %3492 = vmatpush1.bf16.msra.mxu1 %v4672_v8 }
 0x1b9   : > { %3493 = vmatprep.subr.bf16.mxu1 %v4680_v9  ;;  %v4693_v9 = vld [vmem:[%s5394_s20 + $0x300] ss:$24 sps:$4 sm:$0xff]  }
 0x1bc   : > { %3494 = vmatpush1.bf16.msra.mxu1 %v4678_v11  ;;  %v4696_v11 = vld [vmem:[%s5394_s20 + $0x308] ss:$24 sps:$4 sm:$0xff]  }
 0x1bd   : > { %3495 = vmatprep.subr.bf16.mxu1 %v4686_v12  ;;  %v4701_v12 = vld [vmem:[%s5394_s20 + $0x334] ss:$24 sps:$4 sm:$0xff]  }
 0x1c0   : > { %3496 = vmatpush1.bf16.msra.mxu1 %v4684_v13  ;;  %v4704_v13 = vld [vmem:[%s5394_s20 + $0x33c] ss:$24 sps:$4 sm:$0xff]  }
 0x1c1   : > { %3497 = vmatprep.subr.bf16.mxu1 %v4692_v14  ;;  %v4699_v14 = vld [vmem:[%s5394_s20 + $0x330] ss:$24 sps:$4 sm:$0xff]  }
 0x1c4   : > { %3498 = vmatpush1.bf16.msra.mxu1 %v4690_v15  ;;  %v4702_v15 = vld [vmem:[%s5394_s20 + $0x338] ss:$24 sps:$4 sm:$0xff]  }
 0x1c5   : > { %3510 = vmatprep.subr.bf16.mxu1 %v4698_v16  ;;  %v4707_v16 = vld [vmem:[%s5394_s20 + $0x364] ss:$24 sps:$4 sm:$0xff]  }
 0x1db   : > { %v2003_v24 = vpop.f32.mrb[0].mxu0 }
 0x1dc   : > { %v4237_v26 = vadd.f32 %v2003_v24, %v1918_v22  ;;  %v2005_v27 = vpop.f32.mrb[1].mxu0  ;;  %v4713_v22 = vld [vmem:[%s5394_s20 + $0x394] ss:$24 sps:$4 sm:$0xff]   ;;  %v4711_v24 = vld [vmem:[%s5394_s20 + $0x390] ss:$24 sps:$4 sm:$0xff]  }
 0x1dd   : > { %v4239_v29 = vadd.f32 %v2005_v27, %v1920_v23  ;;  %v2007_v30 = vpop.f32.mrb[2].mxu0  ;;  %v4716_v23 = vld [vmem:[%s5394_s20 + $0x39c] ss:$24 sps:$4 sm:$0xff]   ;;  %v4722_v27 = vld [vmem:[%s5394_s20 + $0x3cc] ss:$24 sps:$4 sm:$0xff]  }
 0x1de   : > { %v2149_v31 = vmul.f32 0.044715, %v4237_v26  ;;  %v4241_v32 = vadd.f32 %v2007_v30, %v1922_v25  ;;  %v2009_v33 = vpop.f32.mrb[3].mxu0  ;;  %v2141_v61 = vmul.f32 0.5, %v4237_v26  ;;  %v4714_v25 = vld [vmem:[%s5394_s20 + $0x398] ss:$24 sps:$4 sm:$0xff]  }
 0x1df   : > { %v2150_v34 = vmul.f32 0.044715, %v4239_v29  ;;  %v4243_v36 = vadd.f32 %v2009_v33, %v1924_v28  ;;  %v2142_v0 = vmul.f32 0.5, %v4239_v29  ;;  %v4717_v28 = vld [vmem:[%s5394_s20 + $0x3c0] ss:$24 sps:$4 sm:$0xff]  }
 0x1e0   : > { %v2157_v37 = vmul.f32 %v4237_v26, %v2149_v31  ;;  %v2153_v38 = vmul.f32 0.044715, %v4241_v32  ;;  %v2145_v62 = vmul.f32 0.5, %v4241_v32  ;;  %v4725_v30 = vld [vmem:[%s5394_s20 + $0x3f4] ss:$24 sps:$4 sm:$0xff]  }
 0x1e1   : > { %v2158_v39 = vmul.f32 %v4239_v29, %v2150_v34  ;;  %v2154_v40 = vmul.f32 0.044715, %v4243_v36  ;;  %v2146_v1 = vmul.f32 0.5, %v4243_v36  ;;  %v4728_v31 = vld [vmem:[%s5394_s20 + $0x3fc] ss:$24 sps:$4 sm:$0xff]  }
 0x1e2   : > { %v2165_v41 = vmul.f32 %v4237_v26, %v2157_v37  ;;  %v2161_v42 = vmul.f32 %v4241_v32, %v2153_v38  ;;  %v4726_v33 = vld [vmem:[%s5394_s20 + $0x3f8] ss:$24 sps:$4 sm:$0xff]   ;;  %v4731_v34 = vld [vmem:[%s5394_s20 + $0x424] ss:$24 sps:$4 sm:$0xff]   ;;  %v4732_v38 = vld [vmem:[%s5394_s20 + $0x428] ss:$24 sps:$4 sm:$0xff]  }
 0x1e3   : > { %v2166_v43 = vmul.f32 %v4239_v29, %v2158_v39  ;;  %v2162_v44 = vmul.f32 %v4243_v36, %v2154_v40  ;;  %v4729_v37 = vld [vmem:[%s5394_s20 + $0x420] ss:$24 sps:$4 sm:$0xff]   ;;  %v4737_v39 = vld [vmem:[%s5394_s20 + $0x454] ss:$24 sps:$4 sm:$0xff]  }
 0x1e4   : > { %v2173_v45 = vadd.f32 %v4237_v26, %v2165_v41  ;;  %v2169_v46 = vmul.f32 %v4241_v32, %v2161_v42  ;;  %v4719_v26 = vld [vmem:[%s5394_s20 + $0x3c4] ss:$24 sps:$4 sm:$0xff]   ;;  %v4735_v41 = vld [vmem:[%s5394_s20 + $0x450] ss:$24 sps:$4 sm:$0xff]  }
 0x1e5   : > { %v2170_v47 = vmul.f32 %v4243_v36, %v2162_v44  ;;  %v2174_v48 = vadd.f32 %v4239_v29, %v2166_v43  ;;  %v4720_v29 = vld [vmem:[%s5394_s20 + $0x3c8] ss:$24 sps:$4 sm:$0xff]   ;;  %v4740_v40 = vld [vmem:[%s5394_s20 + $0x45c] ss:$24 sps:$4 sm:$0xff]   ;;  %v4738_v42 = vld [vmem:[%s5394_s20 + $0x458] ss:$24 sps:$4 sm:$0xff]  }
 0x1e6   : > { %v2181_v49 = vmul.f32 0.7978846, %v2173_v45  ;;  %v2177_v50 = vadd.f32 %v4241_v32, %v2169_v46  ;;  %v4723_v32 = vld [vmem:[%s5394_s20 + $0x3f0] ss:$24 sps:$4 sm:$0xff]   ;;  %v4743_v43 = vld [vmem:[%s5394_s20 + $0x484] ss:$24 sps:$4 sm:$0xff]  }
 0x1e7   : > { %v2178_v51 = vadd.f32 %v4243_v36, %v2170_v47  ;;  %v2182_v53 = vmul.f32 0.7978846, %v2174_v48  ;;  %v4734_v36 = vld [vmem:[%s5394_s20 + $0x42c] ss:$24 sps:$4 sm:$0xff]   ;;  %v4741_v45 = vld [vmem:[%s5394_s20 + $0x480] ss:$24 sps:$4 sm:$0xff]  }
 0x1e8   : > { %4885 = vtanh.f32 %v2181_v49  ;;  %v2185_v10 = vmul.f32 0.7978846, %v2177_v50  ;;  %v4746_v44 = vld [vmem:[%s5394_s20 + $0x48c] ss:$24 sps:$4 sm:$0xff]   ;;  %v4744_v46 = vld [vmem:[%s5394_s20 + $0x488] ss:$24 sps:$4 sm:$0xff]  }
 0x1e9   : > { %v2186_v54 = vmul.f32 0.7978846, %v2178_v51  ;;  %4887 = vtanh.f32 %v2182_v53  ;;  %v4749_v47 = vld [vmem:[%s5394_s20 + $0x4b4] ss:$24 sps:$4 sm:$0xff]   ;;  %v4747_v49 = vld [vmem:[%s5394_s20 + $0x4b0] ss:$24 sps:$4 sm:$0xff]  }
 0x1ea   : > { %4889 = vtanh.f32 %v2185_v10  ;;  %v4752_v48 = vld [vmem:[%s5394_s20 + $0x4bc] ss:$24 sps:$4 sm:$0xff]   ;;  %v4750_v50 = vld [vmem:[%s5394_s20 + $0x4b8] ss:$24 sps:$4 sm:$0xff]   ;;  %v4758_v53 = vld [vmem:[%s5394_s20 + $0x4ec] ss:$24 sps:$4 sm:$0xff]  }
 0x1eb   : > { %4891 = vtanh.f32 %v2186_v54  ;;  %v4755_v51 = vld [vmem:[%s5394_s20 + $0x4e4] ss:$24 sps:$4 sm:$0xff]   ;;  %v4753_v10 = vld [vmem:[%s5394_s20 + $0x4e0] ss:$24 sps:$4 sm:$0xff]  }
 0x1ec   : > { %v4756_v54 = vld [vmem:[%s5394_s20 + $0x4e8] ss:$24 sps:$4 sm:$0xff]  }
 0x1f2   : > { %v4886_v55 = vpop.eup %4885 }
 0x1f3   : > { %v4888_v56 = vpop.eup %4887  ;;  %v2197_v57 = vadd.f32 1.0, %v4886_v55  ;;  %v4761_v55 = vld [vmem:[%s5394_s20 + $0x514] ss:$24 sps:$4 sm:$0xff]  }
 0x1f4   : > { %v4890_v58 = vpop.eup %4889  ;;  %v2198_v59 = vadd.f32 1.0, %v4888_v56  ;;  %v4764_v56 = vld [vmem:[%s5394_s20 + $0x51c] ss:$24 sps:$4 sm:$0xff]  }
 0x1f5   : > { %v4892_v60 = vpop.eup %4891  ;;  %v2201_v63 = vadd.f32 1.0, %v4890_v58  ;;  %v2205_v6 = vmul.f32 %v2197_v57, %v2141_v61  ;;  %v4759_v57 = vld [vmem:[%s5394_s20 + $0x510] ss:$24 sps:$4 sm:$0xff]   ;;  %v4765_v61 = vld [vmem:[%s5394_s20 + $0x540] ss:$24 sps:$4 sm:$0xff]  }
 0x1f6   : > { %v2202_v2 = vadd.f32 1.0, %v4892_v60  ;;  %v2206_v3 = vmul.f32 %v2198_v59, %v2142_v0  ;;  %v4762_v58 = vld [vmem:[%s5394_s20 + $0x518] ss:$24 sps:$4 sm:$0xff]   ;;  %v4767_v59 = vld [vmem:[%s5394_s20 + $0x544] ss:$24 sps:$4 sm:$0xff]  }
 0x1f7   : > { %v2209_v35 = vmul.f32 %v2201_v63, %v2145_v62  ;;  %v4770_v60 = vld [vmem:[%s5394_s20 + $0x54c] ss:$24 sps:$4 sm:$0xff]   ;;  %v4768_v62 = vld [vmem:[%s5394_s20 + $0x548] ss:$24 sps:$4 sm:$0xff]   ;;  %v4776_v0 = vld [vmem:[%s5394_s20 + $0x57c] ss:$24 sps:$4 sm:$0xff]  }
 0x1f8   : > { %v2210_v4 = vmul.f32 %v2202_v2, %v2146_v1  ;;  %v4773_v63 = vld [vmem:[%s5394_s20 + $0x574] ss:$24 sps:$4 sm:$0xff]   ;;  %v4771_v1 = vld [vmem:[%s5394_s20 + $0x570] ss:$24 sps:$4 sm:$0xff]  }
 0x1f9   : > { %v5712_v7 = vpack.c.bf16 %v2209_v35, %v2205_v6  ;;  %v4774_v2 = vld [vmem:[%s5394_s20 + $0x578] ss:$24 sps:$4 sm:$0xff]   ;;  %v4779_v6 = vld [vmem:[%s5394_s20 + $0x5a4] ss:$24 sps:$4 sm:$0xff]  }
 0x1fa   : > { %v5714_v8 = vpack.c.bf16 %v2210_v4, %v2206_v3  ;;  %v4782_v35 = vld [vmem:[%s5394_s20 + $0x5ac] ss:$24 sps:$4 sm:$0xff]   ;;  %v4777_v3 = vld [vmem:[%s5394_s20 + $0x5a0] ss:$24 sps:$4 sm:$0xff]  }
 0x1fb   : > { %v4780_v4 = vld [vmem:[%s5394_s20 + $0x5a8] ss:$24 sps:$4 sm:$0xff]  }
 0x1fc   : > { %3413 = vmatprep.mubr.bf16.mxu0 %v5714_v8  ;;  %3499 = vmatprep.mubr.bf16.mxu1 %v5714_v8 }
 0x1fd   : > { %3414 = vmatmul.mubr.bf16.vlgmr.msra.gmra.mrb[4].mxu0 %v5712_v7  ;;  %3500 = vmatmul.mubr.bf16.vlgmr.msra.gmra.mrb[8].mxu1 %v5712_v7 }
 0x1fe   : > { %3425 = vmatpush1.bf16.msra.mxu0 %v4693_v9  ;;  %3511 = vmatpush1.bf16.msra.mxu1 %v4696_v11  ;;  %v4785_v9 = vld [vmem:[%s5394_s20 + $0x5d4] ss:$24 sps:$4 sm:$0xff]  }
 0x1ff   : > { %3426 = vmatprep.subr.bf16.mxu0 %v4701_v12  ;;  %3512 = vmatprep.subr.bf16.mxu1 %v4704_v13  ;;  %v4788_v11 = vld [vmem:[%s5394_s20 + $0x5dc] ss:$24 sps:$4 sm:$0xff]   ;;  %v4783_v12 = vld [vmem:[%s5394_s20 + $0x5d0] ss:$24 sps:$4 sm:$0xff]  }
 0x200   : > { %v4786_v13 = vld [vmem:[%s5394_s20 + $0x5d8] ss:$24 sps:$4 sm:$0xff]  }
 0x202   : > { %3427 = vmatpush1.bf16.msra.mxu0 %v4699_v14  ;;  %3513 = vmatpush1.bf16.msra.mxu1 %v4702_v15  ;;  %v4791_v14 = vld [vmem:[%s5394_s20 + $0x14] ss:$24 sps:$4 sm:$0xff]   ;;  %v883_v15 = vsub.s32 2, %v5695_v18 }
 0x203   : > { %3428 = vmatprep.subr.bf16.mxu0 %v4707_v16  ;;  %3514 = vmatprep.subr.bf16.mxu1 %v4710_v17  ;;  %v887_v16 = vsub.s32 3, %v5695_v18 }
 0x204   : > { %v884_v17 = vrot.slane %v5703_v19, %v883_v15 }
 0x206   : > { %3429 = vmatpush1.bf16.msra.mxu0 %v4705_v20  ;;  %3515 = vmatpush1.bf16.msra.mxu1 %v4708_v21  ;;  %v888_v20 = vrot.slane %v5703_v19, %v887_v16 }
 0x207   : > { %3430 = vmatprep.subr.bf16.mxu0 %v4713_v22  ;;  %3516 = vmatprep.subr.bf16.mxu1 %v4716_v23 }
 0x20a   : > { %3431 = vmatpush1.bf16.msra.mxu0 %v4711_v24  ;;  %3517 = vmatpush1.bf16.msra.mxu1 %v4714_v25 }
 0x20b   : > { %3432 = vmatprep.subr.bf16.mxu0 %v4719_v26  ;;  %3518 = vmatprep.subr.bf16.mxu1 %v4722_v27 }
 0x20e   : > { %3433 = vmatpush1.bf16.msra.mxu0 %v4717_v28  ;;  %3519 = vmatpush1.bf16.msra.mxu1 %v4720_v29 }
 0x20f   : > { %3434 = vmatprep.subr.bf16.mxu0 %v4725_v30  ;;  %3520 = vmatprep.subr.bf16.mxu1 %v4728_v31 }
 0x212   : > { %3435 = vmatpush1.bf16.msra.mxu0 %v4723_v32  ;;  %3521 = vmatpush1.bf16.msra.mxu1 %v4726_v33 }
 0x213   : > { %3436 = vmatprep.subr.bf16.mxu0 %v4731_v34  ;;  %3522 = vmatprep.subr.bf16.mxu1 %v4734_v36 }
 0x216   : > { %3437 = vmatpush1.bf16.msra.mxu0 %v4729_v37  ;;  %3523 = vmatpush1.bf16.msra.mxu1 %v4732_v38 }
 0x217   : > { %3438 = vmatprep.subr.bf16.mxu0 %v4737_v39  ;;  %3524 = vmatprep.subr.bf16.mxu1 %v4740_v40 }
 0x21a   : > { %3439 = vmatpush1.bf16.msra.mxu0 %v4735_v41  ;;  %3525 = vmatpush1.bf16.msra.mxu1 %v4738_v42 }
 0x21b   : > { %3440 = vmatprep.subr.bf16.mxu0 %v4743_v43  ;;  %3526 = vmatprep.subr.bf16.mxu1 %v4746_v44 }
 0x21e   : > { %3441 = vmatpush1.bf16.msra.mxu0 %v4741_v45  ;;  %3527 = vmatpush1.bf16.msra.mxu1 %v4744_v46 }
 0x21f   : > { %3442 = vmatprep.subr.bf16.mxu0 %v4749_v47  ;;  %3528 = vmatprep.subr.bf16.mxu1 %v4752_v48 }
 0x222   : > { %3443 = vmatpush1.bf16.msra.mxu0 %v4747_v49  ;;  %3529 = vmatpush1.bf16.msra.mxu1 %v4750_v50 }
 0x223   : > { %3444 = vmatprep.subr.bf16.mxu0 %v4755_v51  ;;  %3530 = vmatprep.subr.bf16.mxu1 %v4758_v53 }
 0x226   : > { %3445 = vmatpush1.bf16.msra.mxu0 %v4753_v10  ;;  %3531 = vmatpush1.bf16.msra.mxu1 %v4756_v54 }
 0x227   : > { %3446 = vmatprep.subr.bf16.mxu0 %v4761_v55  ;;  %3532 = vmatprep.subr.bf16.mxu1 %v4764_v56 }
 0x22a   : > { %3447 = vmatpush1.bf16.msra.mxu0 %v4759_v57  ;;  %3533 = vmatpush1.bf16.msra.mxu1 %v4762_v58 }
 0x22b   : > { %3448 = vmatprep.subr.bf16.mxu0 %v4767_v59  ;;  %3534 = vmatprep.subr.bf16.mxu1 %v4770_v60 }
 0x22e   : > { %3449 = vmatpush1.bf16.msra.mxu0 %v4765_v61  ;;  %3535 = vmatpush1.bf16.msra.mxu1 %v4768_v62 }
 0x22f   : > { %3450 = vmatprep.subr.bf16.mxu0 %v4773_v63  ;;  %3536 = vmatprep.subr.bf16.mxu1 %v4776_v0 }
 0x232   : > { %3451 = vmatpush1.bf16.msra.mxu0 %v4771_v1  ;;  %3537 = vmatpush1.bf16.msra.mxu1 %v4774_v2 }
 0x233   : > { %3452 = vmatprep.subr.bf16.mxu0 %v4779_v6  ;;  %3538 = vmatprep.subr.bf16.mxu1 %v4782_v35  ;;  %v4789_v6 = vld [vmem:[%s5394_s20 + $0x10] ss:$24 sps:$4 sm:$0xff]   ;;  %v4794_v35 = vld [vmem:[%s5394_s20 + $0x44] ss:$24 sps:$4 sm:$0xff]  }
 0x236   : > { %3453 = vmatpush1.bf16.msra.mxu0 %v4777_v3  ;;  %3539 = vmatpush1.bf16.msra.mxu1 %v4780_v4  ;;  %v4792_v3 = vld [vmem:[%s5394_s20 + $0x40] ss:$24 sps:$4 sm:$0xff]   ;;  %v4797_v4 = vld [vmem:[%s5394_s20 + $0x74] ss:$24 sps:$4 sm:$0xff]  }
 0x237   : > { %3454 = vmatprep.subr.bf16.mxu0 %v4785_v9  ;;  %3540 = vmatprep.subr.bf16.mxu1 %v4788_v11  ;;  %v4795_v9 = vld [vmem:[%s5394_s20 + $0x70] ss:$24 sps:$4 sm:$0xff]   ;;  %v4800_v11 = vld [vmem:[%s5394_s20 + $0xa4] ss:$24 sps:$4 sm:$0xff]  }
 0x23a   : > { %3455 = vmatpush1.bf16.msra.mxu0 %v4783_v12  ;;  %3541 = vmatpush1.bf16.msra.mxu1 %v4786_v13  ;;  %v4798_v12 = vld [vmem:[%s5394_s20 + $0xa0] ss:$24 sps:$4 sm:$0xff]   ;;  %v4803_v13 = vld [vmem:[%s5394_s20 + $0xd4] ss:$24 sps:$4 sm:$0xff]  }
 0x23b   : > { %3553 = vmatprep.subr.bf16.mxu0 %v4791_v14  ;;  %v4801_v14 = vld [vmem:[%s5394_s20 + $0xd0] ss:$24 sps:$4 sm:$0xff]  }
 0x25a   : > { %v2132_v21 = vpop.f32.mrb[4].mxu1 }
 0x25b   : > { %v4244_v22 = vadd.f32 %v2132_v21, %v884_v17  ;;  %v2134_v23 = vpop.f32.mrb[5].mxu1  ;;  %v4807_v21 = vld [vmem:[%s5394_s20 + $0x130] ss:$24 sps:$4 sm:$0xff]  }
 0x25c   : > { %v4245_v24 = vadd.f32 %v2134_v23, %v888_v20  ;;  %v2136_v25 = vpop.f32.mrb[6].mxu1  ;;  %v4810_v23 = vld [vmem:[%s5394_s20 + $0x160] ss:$24 sps:$4 sm:$0xff]  }
 0x25d   : > { %v2151_v26 = vmul.f32 0.044715, %v4244_v22  ;;  %v4246_v27 = vadd.f32 %v2136_v25, %v884_v17  ;;  %v2138_v28 = vpop.f32.mrb[7].mxu1  ;;  %v2143_v55 = vmul.f32 0.5, %v4244_v22  ;;  %v4804_v17 = vld [vmem:[%s5394_s20 + $0x100] ss:$24 sps:$4 sm:$0xff]  }
 0x25e   : > { %v2152_v29 = vmul.f32 0.044715, %v4245_v24  ;;  %v4247_v30 = vadd.f32 %v2138_v28, %v888_v20  ;;  %v2144_v58 = vmul.f32 0.5, %v4245_v24  ;;  %v4809_v20 = vld [vmem:[%s5394_s20 + $0x134] ss:$24 sps:$4 sm:$0xff]  }
 0x25f   : > { %v2159_v31 = vmul.f32 %v4244_v22, %v2151_v26  ;;  %v2155_v32 = vmul.f32 0.044715, %v4246_v27  ;;  %v2147_v56 = vmul.f32 0.5, %v4246_v27  ;;  %v4813_v25 = vld [vmem:[%s5394_s20 + $0x190] ss:$24 sps:$4 sm:$0xff]  }
 0x260   : > { %v2160_v33 = vmul.f32 %v4245_v24, %v2152_v29  ;;  %v2156_v34 = vmul.f32 0.044715, %v4247_v30  ;;  %v2148_v59 = vmul.f32 0.5, %v4247_v30  ;;  %v4818_v26 = vld [vmem:[%s5394_s20 + $0x1c4] ss:$24 sps:$4 sm:$0xff]  }
 0x261   : > { %v2167_v36 = vmul.f32 %v4244_v22, %v2159_v31  ;;  %v2163_v37 = vmul.f32 %v4246_v27, %v2155_v32  ;;  %v4821_v28 = vld [vmem:[%s5394_s20 + $0x1f4] ss:$24 sps:$4 sm:$0xff]   ;;  %v4819_v29 = vld [vmem:[%s5394_s20 + $0x1f0] ss:$24 sps:$4 sm:$0xff]   ;;  %v4822_v31 = vld [vmem:[%s5394_s20 + $0x220] ss:$24 sps:$4 sm:$0xff]  }
 0x262   : > { %v2168_v38 = vmul.f32 %v4245_v24, %v2160_v33  ;;  %v2164_v39 = vmul.f32 %v4247_v30, %v2156_v34  ;;  %v4827_v32 = vld [vmem:[%s5394_s20 + $0x254] ss:$24 sps:$4 sm:$0xff]   ;;  %v4825_v33 = vld [vmem:[%s5394_s20 + $0x250] ss:$24 sps:$4 sm:$0xff]   ;;  %v4830_v34 = vld [vmem:[%s5394_s20 + $0x284] ss:$24 sps:$4 sm:$0xff]  }
 0x263   : > { %v2175_v40 = vadd.f32 %v4244_v22, %v2167_v36  ;;  %v2171_v19 = vmul.f32 %v4246_v27, %v2163_v37  ;;  %v4812_v22 = vld [vmem:[%s5394_s20 + $0x164] ss:$24 sps:$4 sm:$0xff]   ;;  %v4828_v36 = vld [vmem:[%s5394_s20 + $0x280] ss:$24 sps:$4 sm:$0xff]   ;;  %v4833_v37 = vld [vmem:[%s5394_s20 + $0x2b4] ss:$24 sps:$4 sm:$0xff]  }
 0x264   : > { %v2172_v41 = vmul.f32 %v4247_v30, %v2164_v39  ;;  %v2176_v42 = vadd.f32 %v4245_v24, %v2168_v38  ;;  %v4815_v24 = vld [vmem:[%s5394_s20 + $0x194] ss:$24 sps:$4 sm:$0xff]   ;;  %v4831_v38 = vld [vmem:[%s5394_s20 + $0x2b0] ss:$24 sps:$4 sm:$0xff]   ;;  %v4836_v39 = vld [vmem:[%s5394_s20 + $0x2e4] ss:$24 sps:$4 sm:$0xff]  }
 0x265   : > { %v2183_v43 = vmul.f32 0.7978846, %v2175_v40  ;;  %v2179_v44 = vadd.f32 %v4246_v27, %v2171_v19  ;;  %v4816_v27 = vld [vmem:[%s5394_s20 + $0x1c0] ss:$24 sps:$4 sm:$0xff]   ;;  %v4839_v19 = vld [vmem:[%s5394_s20 + $0x314] ss:$24 sps:$4 sm:$0xff]  }
 0x266   : > { %v2180_v45 = vadd.f32 %v4247_v30, %v2172_v41  ;;  %v2184_v46 = vmul.f32 0.7978846, %v2176_v42  ;;  %v4824_v30 = vld [vmem:[%s5394_s20 + $0x224] ss:$24 sps:$4 sm:$0xff]   ;;  %v4834_v40 = vld [vmem:[%s5394_s20 + $0x2e0] ss:$24 sps:$4 sm:$0xff]  }
 0x267   : > { %4893 = vtanh.f32 %v2183_v43  ;;  %v2187_v47 = vmul.f32 0.7978846, %v2179_v44  ;;  %v4837_v41 = vld [vmem:[%s5394_s20 + $0x310] ss:$24 sps:$4 sm:$0xff]   ;;  %v4842_v42 = vld [vmem:[%s5394_s20 + $0x344] ss:$24 sps:$4 sm:$0xff]  }
 0x268   : > { %v2188_v48 = vmul.f32 0.7978846, %v2180_v45  ;;  %4895 = vtanh.f32 %v2184_v46  ;;  %v4840_v43 = vld [vmem:[%s5394_s20 + $0x340] ss:$24 sps:$4 sm:$0xff]   ;;  %v4845_v44 = vld [vmem:[%s5394_s20 + $0x374] ss:$24 sps:$4 sm:$0xff]  }
 0x269   : > { %4897 = vtanh.f32 %v2187_v47  ;;  %v4843_v45 = vld [vmem:[%s5394_s20 + $0x370] ss:$24 sps:$4 sm:$0xff]   ;;  %v4848_v46 = vld [vmem:[%s5394_s20 + $0x3a4] ss:$24 sps:$4 sm:$0xff]   ;;  %v4846_v47 = vld [vmem:[%s5394_s20 + $0x3a0] ss:$24 sps:$4 sm:$0xff]  }
 0x26a   : > { %4899 = vtanh.f32 %v2188_v48  ;;  %v4849_v48 = vld [vmem:[%s5394_s20 + $0x3d0] ss:$24 sps:$4 sm:$0xff]  }
 0x271   : > { %v4894_v49 = vpop.eup %4893 }
 0x272   : > { %v4896_v50 = vpop.eup %4895  ;;  %v2199_v51 = vadd.f32 1.0, %v4894_v49  ;;  %v4854_v49 = vld [vmem:[%s5394_s20 + $0x404] ss:$24 sps:$4 sm:$0xff]  }
 0x273   : > { %v4898_v53 = vpop.eup %4897  ;;  %v2200_v10 = vadd.f32 1.0, %v4896_v50  ;;  %v4852_v50 = vld [vmem:[%s5394_s20 + $0x400] ss:$24 sps:$4 sm:$0xff]  }
 0x274   : > { %v4900_v54 = vpop.eup %4899  ;;  %v2203_v57 = vadd.f32 1.0, %v4898_v53  ;;  %v2207_v61 = vmul.f32 %v2199_v51, %v2143_v55  ;;  %v4857_v51 = vld [vmem:[%s5394_s20 + $0x434] ss:$24 sps:$4 sm:$0xff]   ;;  %v4855_v53 = vld [vmem:[%s5394_s20 + $0x430] ss:$24 sps:$4 sm:$0xff]  }
 0x275   : > { %v2204_v60 = vadd.f32 1.0, %v4900_v54  ;;  %v2208_v63 = vmul.f32 %v2200_v10, %v2144_v58  ;;  %v4860_v10 = vld [vmem:[%s5394_s20 + $0x464] ss:$24 sps:$4 sm:$0xff]   ;;  %v4858_v54 = vld [vmem:[%s5394_s20 + $0x460] ss:$24 sps:$4 sm:$0xff]  }
 0x276   : > { %v2211_v62 = vmul.f32 %v2203_v57, %v2147_v56  ;;  %v4863_v55 = vld [vmem:[%s5394_s20 + $0x494] ss:$24 sps:$4 sm:$0xff]   ;;  %v4861_v56 = vld [vmem:[%s5394_s20 + $0x490] ss:$24 sps:$4 sm:$0xff]   ;;  %v4866_v57 = vld [vmem:[%s5394_s20 + $0x4c4] ss:$24 sps:$4 sm:$0xff]  }
 0x277   : > { %v2212_v0 = vmul.f32 %v2204_v60, %v2148_v59  ;;  %v4864_v58 = vld [vmem:[%s5394_s20 + $0x4c0] ss:$24 sps:$4 sm:$0xff]   ;;  %v4869_v59 = vld [vmem:[%s5394_s20 + $0x4f4] ss:$24 sps:$4 sm:$0xff]   ;;  %v4867_v60 = vld [vmem:[%s5394_s20 + $0x4f0] ss:$24 sps:$4 sm:$0xff]  }
 0x278   : > { %v5791_v1 = vpack.c.bf16 %v2211_v62, %v2207_v61  ;;  %v4872_v61 = vld [vmem:[%s5394_s20 + $0x524] ss:$24 sps:$4 sm:$0xff]   ;;  %v4870_v62 = vld [vmem:[%s5394_s20 + $0x520] ss:$24 sps:$4 sm:$0xff]  }
 0x279   : > { %v5793_v2 = vpack.c.bf16 %v2212_v0, %v2208_v63  ;;  %v4875_v63 = vld [vmem:[%s5394_s20 + $0x554] ss:$24 sps:$4 sm:$0xff]   ;;  %v4873_v0 = vld [vmem:[%s5394_s20 + $0x550] ss:$24 sps:$4 sm:$0xff]  }
 0x27b   : > { %3456 = vmatprep.mubr.bf16.mxu0 %v5793_v2  ;;  %3542 = vmatprep.mubr.bf16.mxu1 %v5793_v2 }
 0x27c   : > { %3457 = vmatmul.mubr.bf16.vlgmr.msra.gmra.mrb[4].mxu0 %v5791_v1  ;;  %3543 = vmatmul.mubr.bf16.vlgmr.msra.gmra.mrb[8].mxu1 %v5791_v1 }
 0x27d   : > { %3554 = vmatpush1.bf16.msra.mxu0 %v4789_v6  ;;  %3585 = vmatprep.mubr.bf16.mxu0 %v5714_v8  ;;  %v4806_v8 = vld [vmem:[%s5394_s20 + $0x104] ss:$24 sps:$4 sm:$0xff]   ;;  %v4876_v6 = vld [vmem:[%s5394_s20 + $0x580] ss:$24 sps:$4 sm:$0xff]  }
 0x27e   : > { %3555 = vmatprep.subr.bf16.mxu0 %v4794_v35  ;;  %v4881_v35 = vld [vmem:[%s5394_s20 + $0x5b4] ss:$24 sps:$4 sm:$0xff]  }
 0x281   : > { %3556 = vmatpush1.bf16.msra.mxu0 %v4792_v3  ;;  %v4879_v3 = vld [vmem:[%s5394_s20 + $0x5b0] ss:$24 sps:$4 sm:$0xff]  }
 0x282   : > { %3557 = vmatprep.subr.bf16.mxu0 %v4797_v4  ;;  %v4884_v4 = vld [vmem:[%s5394_s20 + $0x5e4] ss:$24 sps:$4 sm:$0xff]  }
 0x285   : > { %3558 = vmatpush1.bf16.msra.mxu0 %v4795_v9  ;;  %v4882_v9 = vld [vmem:[%s5394_s20 + $0x5e0] ss:$24 sps:$4 sm:$0xff]  }
 0x286   : > { %3559 = vmatprep.subr.bf16.mxu0 %v4800_v11  ;;  %v2213_v11 = vld [vmem:[#allocation2] sm:$0xff] }
 0x289   : > { %3560 = vmatpush1.bf16.msra.mxu0 %v4798_v12  ;;  %v2215_v12 = vld [vmem:[#allocation2 + $0x10] sm:$0xff] }
 0x28a   : > { %3561 = vmatprep.subr.bf16.mxu0 %v4803_v13  ;;  %v2214_v13 = vld [vmem:[#allocation2 + $0x8] sm:$0xff] }
 0x28d   : > { %3562 = vmatpush1.bf16.msra.mxu0 %v4801_v14  ;;  %v2216_v14 = vld [vmem:[#allocation2 + $0x18] sm:$0xff] }
 0x28e   : > { %3563 = vmatprep.subr.bf16.mxu0 %v4806_v8 }
 0x291   : > { %3564 = vmatpush1.bf16.msra.mxu0 %v4804_v17 }
 0x292   : > { %3565 = vmatprep.subr.bf16.mxu0 %v4809_v20  ;;  %v2219_v20 = vld [vmem:[#allocation2 + $0x30] sm:$0xff] }
 0x295   : > { %3566 = vmatpush1.bf16.msra.mxu0 %v4807_v21  ;;  %v2221_v21 = vld [vmem:[#allocation2 + $0x40] sm:$0xff] }
 0x296   : > { %3567 = vmatprep.subr.bf16.mxu0 %v4812_v22 }
 0x299   : > { %3568 = vmatpush1.bf16.msra.mxu0 %v4810_v23 }
 0x29a   : > { %3569 = vmatprep.subr.bf16.mxu0 %v4815_v24 }
 0x29d   : > { %3570 = vmatpush1.bf16.msra.mxu0 %v4813_v25 }
 0x29e   : > { %3571 = vmatprep.subr.bf16.mxu0 %v4818_v26  ;;  %v2220_v26 = vld [vmem:[#allocation2 + $0x38] sm:$0xff] }
 0x2a1   : > { %3572 = vmatpush1.bf16.msra.mxu0 %v4816_v27  ;;  %v2222_v27 = vld [vmem:[#allocation2 + $0x48] sm:$0xff] }
 0x2a2   : > { %3573 = vmatprep.subr.bf16.mxu0 %v4821_v28 }
 0x2a5   : > { %3574 = vmatpush1.bf16.msra.mxu0 %v4819_v29 }
 0x2a6   : > { %3575 = vmatprep.subr.bf16.mxu0 %v4824_v30 }
 0x2a9   : > { %3576 = vmatpush1.bf16.msra.mxu0 %v4822_v31 }
 0x2aa   : > { %3577 = vmatprep.subr.bf16.mxu0 %v4827_v32 }
 0x2ad   : > { %3578 = vmatpush1.bf16.msra.mxu0 %v4825_v33 }
 0x2ae   : > { %3579 = vmatprep.subr.bf16.mxu0 %v4830_v34 }
 0x2b1   : > { %3580 = vmatpush1.bf16.msra.mxu0 %v4828_v36 }
 0x2b2   : > { %3581 = vmatprep.subr.bf16.mxu0 %v4833_v37 }
 0x2b5   : > { %3582 = vmatpush1.bf16.msra.mxu0 %v4831_v38  ;;  %v2217_v38 = vld [vmem:[#allocation2 + $0x20] sm:$0xff] }
 0x2b6   : > { %3583 = vmatprep.subr.bf16.mxu0 %v4836_v39  ;;  %v2218_v39 = vld [vmem:[#allocation2 + $0x28] sm:$0xff] }
 0x2b9   : > { %3584 = vmatpush1.bf16.msra.mxu0 %v4834_v40 }
 0x2ba   : > { %3596 = vmatprep.subr.bf16.mxu0 %v4839_v19  ;;  %v2223_v19 = vld [vmem:[#allocation2 + $0x50] sm:$0xff] }
 0x2bc   : > { %3586 = vmatmul.mubr.bf16.vlgmr.msra.gmra.mrb[8].mxu0 %v5712_v7  ;;  %v4851_v7 = vld [vmem:[%s5394_s20 + $0x3d4] ss:$24 sps:$4 sm:$0xff]  }
 0x2bd   : > { %3597 = vmatpush1.bf16.msra.mxu0 %v4837_v41  ;;  %3628 = vmatprep.mubr.bf16.mxu0 %v5793_v2  ;;  %v4878_v2 = vld [vmem:[%s5394_s20 + $0x584] ss:$24 sps:$4 sm:$0xff]  }
 0x2be   : > { %3598 = vmatprep.subr.bf16.mxu0 %v4842_v42 }
 0x2c1   : > { %3599 = vmatpush1.bf16.msra.mxu0 %v4840_v43  ;;  %v2224_v43 = vld [vmem:[#allocation2 + $0x58] sm:$0xff] }
 0x2c2   : > { %3600 = vmatprep.subr.bf16.mxu0 %v4845_v44 }
 0x2c5   : > { %3601 = vmatpush1.bf16.msra.mxu0 %v4843_v45 }
 0x2c6   : > { %3602 = vmatprep.subr.bf16.mxu0 %v4848_v46 }
 0x2c9   : > { %3603 = vmatpush1.bf16.msra.mxu0 %v4846_v47 }
 0x2ca   : > { %3604 = vmatprep.subr.bf16.mxu0 %v4851_v7 }
 0x2cd   : > { %3605 = vmatpush1.bf16.msra.mxu0 %v4849_v48 }
 0x2ce   : > { %3606 = vmatprep.subr.bf16.mxu0 %v4854_v49 }
 0x2d1   : > { %3607 = vmatpush1.bf16.msra.mxu0 %v4852_v50  ;;  %v3679_v50 = vld [vmem:[%s5912_s4] sm:$0x3f] (!%p4220_p11) }
 0x2d2   : > { %3608 = vmatprep.subr.bf16.mxu0 %v4857_v51  ;;  %v3699_v51 = vsub.s32 (!%p4220_p11), 4, %v5695_v18 }
 0x2d5   : > { %3609 = vmatpush1.bf16.msra.mxu0 %v4855_v53  ;;  %v3703_v53 = vsub.s32 (!%p4220_p11), 5, %v5695_v18 }
 0x2d6   : > { %3610 = vmatprep.subr.bf16.mxu0 %v4860_v10  ;;  %v3684_v10 = vrot.slane (!%p4220_p11), %v3679_v50, %v875_v5 }
 0x2d9   : > { %3611 = vmatpush1.bf16.msra.mxu0 %v4858_v54  ;;  %v3688_v54 = vrot.slane (!%p4220_p11), %v3679_v50, %v879_v52 }
 0x2da   : > { %3612 = vmatprep.subr.bf16.mxu0 %v4863_v55 }
 0x2dd   : > { %3613 = vmatpush1.bf16.msra.mxu0 %v4861_v56 }
 0x2de   : > { %3614 = vmatprep.subr.bf16.mxu0 %v4866_v57  ;;  %v3692_v57 = vrot.slane (!%p4220_p11), %v3679_v50, %v883_v15 }
 0x2e1   : > { %3615 = vmatpush1.bf16.msra.mxu0 %v4864_v58  ;;  %v3696_v58 = vrot.slane (!%p4220_p11), %v3679_v50, %v887_v16 }
 0x2e2   : > { %3616 = vmatprep.subr.bf16.mxu0 %v4869_v59 }
 0x2e5   : > { %3617 = vmatpush1.bf16.msra.mxu0 %v4867_v60 }
 0x2e6   : > { %3618 = vmatprep.subr.bf16.mxu0 %v4872_v61  ;;  %v3700_v61 = vrot.slane (!%p4220_p11), %v3679_v50, %v3699_v51 }
 0x2e9   : > { %3619 = vmatpush1.bf16.msra.mxu0 %v4870_v62  ;;  %v3704_v62 = vrot.slane (!%p4220_p11), %v3679_v50, %v3703_v53 }
 0x2ea   : > { %3620 = vmatprep.subr.bf16.mxu0 %v4875_v63 }
 0x2ed   : > { %3621 = vmatpush1.bf16.msra.mxu0 %v4873_v0 }
 0x2ee   : > { %3622 = vmatprep.subr.bf16.mxu0 %v4878_v2 }
 0x2f1   : > { %3623 = vmatpush1.bf16.msra.mxu0 %v4876_v6 }
 0x2f2   : > { %3624 = vmatprep.subr.bf16.mxu0 %v4881_v35 }
 0x2f5   : > { %3625 = vmatpush1.bf16.msra.mxu0 %v4879_v3 }
 0x2f6   : > { %3626 = vmatprep.subr.bf16.mxu0 %v4884_v4 }
 0x2f9   : > { %3627 = vmatpush1.bf16.msra.mxu0 %v4882_v9 }
 0x2fc   : > { %3629 = vmatmul.mubr.bf16.vlgmr.msra.gmra.mrb[8].mxu0 %v5791_v1 }
 0x34f   : > { %v3458_v8 = vpop.f32.mrb[4].mxu0  ;;  %v3544_v17 = vpop.f32.mrb[8].mxu1 }
 0x350   : > { %v3639_v22 = vadd.f32 %v3458_v8, %v2213_v11  ;;  %v3641_v23 = vadd.f32 %v3544_v17, %v2215_v12  ;;  %v3460_v24 = vpop.f32.mrb[5].mxu0  ;;  %v3546_v25 = vpop.f32.mrb[9].mxu1 }
 0x351   : > { %v3640_v28 = vadd.f32 %v3460_v24, %v2214_v13  ;;  %v3642_v29 = vadd.f32 %v3546_v25, %v2216_v14  ;;  %v3462_v30 = vpop.f32.mrb[6].mxu0  ;;  %v3548_v31 = vpop.f32.mrb[10].mxu1 }
 0x352   : > { %3651 = vst [vmem:[#allocation2] sm:$0xff] %v3639_v22  ;;  %3653 = vst [vmem:[#allocation2 + $0x10] sm:$0xff] %v3641_v23  ;;  %v3645_v1 = vadd.f32 %v3462_v30, %v2219_v20  ;;  %v3647_v32 = vadd.f32 %v3548_v31, %v2221_v21  ;;  %v3464_v33 = vpop.f32.mrb[7].mxu0  ;;  %v3550_v34 = vpop.f32.mrb[11].mxu1 }
 0x353   : > { %3652 = vst [vmem:[#allocation2 + $0x8] sm:$0xff] %v3640_v28  ;;  %3654 = vst [vmem:[#allocation2 + $0x18] sm:$0xff] %v3642_v29  ;;  %v3646_v36 = vadd.f32 %v3464_v33, %v2220_v26  ;;  %v3648_v37 = vadd.f32 %v3550_v34, %v2222_v27 }
 0x354   : > { %3657 = vst [vmem:[#allocation2 + $0x30] sm:$0xff] %v3645_v1  ;;  %3659 = vst [vmem:[#allocation2 + $0x40] sm:$0xff] %v3647_v32 }
 0x355   : > { %3658 = vst [vmem:[#allocation2 + $0x38] sm:$0xff] %v3646_v36  ;;  %3660 = vst [vmem:[#allocation2 + $0x48] sm:$0xff] %v3648_v37 }
 0x359   : > { %v3667_v48 = vld [vmem:[#allocation2] sm:$0xff] (!%p4220_p11)  ;;  %v3669_v55 = vld [vmem:[#allocation2 + $0x10] sm:$0xff] (!%p4220_p11) }
 0x35a   : > { %v3668_v49 = vld [vmem:[#allocation2 + $0x8] sm:$0xff] (!%p4220_p11)  ;;  %v3670_v56 = vld [vmem:[#allocation2 + $0x18] sm:$0xff] (!%p4220_p11)  ;;  %v3711_v2 = vadd.f32 (!%p4220_p11), %v3684_v10, %v3667_v48  ;;  %v3713_v5 = vadd.f32 (!%p4220_p11), %v3692_v57, %v3669_v55 }
 0x35b   : > { %v3673_v63 = vld [vmem:[#allocation2 + $0x30] sm:$0xff] (!%p4220_p11)  ;;  %v3712_v6 = vadd.f32 (!%p4220_p11), %v3688_v54, %v3668_v49  ;;  %v3714_v35 = vadd.f32 (!%p4220_p11), %v3696_v58, %v3670_v56  ;;  %v3675_v3 = vld [vmem:[#allocation2 + $0x40] sm:$0xff] (!%p4220_p11) }
 0x35c   : > { %v3674_v0 = vld [vmem:[#allocation2 + $0x38] sm:$0xff] (!%p4220_p11)  ;;  %v3676_v52 = vld [vmem:[#allocation2 + $0x48] sm:$0xff] (!%p4220_p11)  ;;  %v3717_v12 = vadd.f32 (!%p4220_p11), %v3684_v10, %v3673_v63  ;;  %v3719_v14 = vadd.f32 (!%p4220_p11), %v3692_v57, %v3675_v3 }
 0x35d   : > { %v3718_v15 = vadd.f32 (!%p4220_p11), %v3688_v54, %v3674_v0  ;;  %v4230_v18 = vpack.c.bf16 (!%p4220_p11), %v3712_v6, %v3711_v2  ;;  %v4231_v16 = vpack.c.bf16 (!%p4220_p11), %v3714_v35, %v3713_v5  ;;  %v3720_v8 = vadd.f32 (!%p4220_p11), %v3696_v58, %v3676_v52 }
 0x35f   : > { %v4233_v20 = vpack.c.bf16 (!%p4220_p11), %v3718_v15, %v3717_v12  ;;  %3759 = vst [vmem:[%s5913_s5] sm:$0xff] (!%p4220_p11), %v4230_v18  ;;  %3760 = vst [vmem:[%s5913_s5 + $0x8] sm:$0xff] (!%p4220_p11), %v4231_v16  ;;  %v4234_v23 = vpack.c.bf16 (!%p4220_p11), %v3720_v8, %v3719_v14 }
 0x361   : > { %3762 = vst [vmem:[%s5913_s5 + $0x18] sm:$0xff] (!%p4220_p11), %v4233_v20  ;;  %3763 = vst [vmem:[%s5913_s5 + $0x20] sm:$0xff] (!%p4220_p11), %v4234_v23 }
 0x3cf   : > { %v3630_v40 = vpop.f32.mrb[8].mxu0  ;;  %3666 = sbr.rel (%p4220_p11) target bundleno = 994 (0x3e2), region = 71 }
 0x3d0   : > { %v3643_v41 = vadd.f32 %v3630_v40, %v2217_v38  ;;  %v3632_v42 = vpop.f32.mrb[9].mxu0 }
 0x3d1   : > { %v3644_v44 = vadd.f32 %v3632_v42, %v2218_v39  ;;  %v3634_v45 = vpop.f32.mrb[10].mxu0 }
 0x3d2   : > { %3655 = vst [vmem:[#allocation2 + $0x20] sm:$0xff] %v3643_v41  ;;  %v3649_v46 = vadd.f32 %v3634_v45, %v2223_v19  ;;  %v3636_v47 = vpop.f32.mrb[11].mxu0 }
 0x3d3   : > { %3656 = vst [vmem:[#allocation2 + $0x28] sm:$0xff] %v3644_v44  ;;  %v3650_v7 = vadd.f32 %v3636_v47, %v2224_v43 }
 0x3d4   : > { %3661 = vst [vmem:[#allocation2 + $0x50] sm:$0xff] %v3649_v46 }
 0x3d5   : > { %3662 = vst [vmem:[#allocation2 + $0x58] sm:$0xff] %v3650_v7 }
 0x3d9   : > { %v3671_v59 = vld [vmem:[#allocation2 + $0x20] sm:$0xff] }
 0x3da   : > { %v3672_v60 = vld [vmem:[#allocation2 + $0x28] sm:$0xff]  ;;  %v3715_v9 = vadd.f32 %v3700_v61, %v3671_v59 }
 0x3db   : > { %v3677_v4 = vld [vmem:[#allocation2 + $0x50] sm:$0xff]  ;;  %v3716_v11 = vadd.f32 %v3704_v62, %v3672_v60 }
 0x3dc   : > { %v3678_v13 = vld [vmem:[#allocation2 + $0x58] sm:$0xff]  ;;  %v3721_v21 = vadd.f32 %v3700_v61, %v3677_v4 }
 0x3dd   : > { %v4232_v17 = vpack.c.bf16 %v3716_v11, %v3715_v9  ;;  %v3722_v22 = vadd.f32 %v3704_v62, %v3678_v13 }
 0x3df   : > { %3761 = vst [vmem:[%s5913_s5 + $0x10] sm:$0xff] %v4232_v17  ;;  %v4235_v24 = vpack.c.bf16 %v3722_v22, %v3721_v21 }
 0x3e1   : > { %3764 = vst [vmem:[%s5913_s5 + $0x28] sm:$0xff] %v4235_v24 }
 0x3e2 PF: > { %p12_p12 = scmp.ge.s32.totalorder %s4975_s22, 8   ;;  %s5914_s18 = smov %s4919_s19 }
 0x3e3   : > { %s5915_s19 = smov %s4984_s25  ;;  %s5916_s20 = smov %s4975_s22 }
 0x3e4   :  { %14 = sbr.rel (!%p12_p12) target bundleno = 2 (0x2), region = 108 }

// kernel: bert_classifier_forward.19
= control target key start
LH: loop header
LB: loop body
LE: loop exit
PB: predicated region body
PF: predicated region fallthrough
CT: control target
= control target key end

     0   :  { %10 = vsyncpa [#allocation5], 0  ;;  %s6044_s0 = inlined_call_operand.vmem [shape: bf16[16,768], index: 0, kind: input, shape index: {}]   ;;  %s6045_s1 = inlined_call_operand.vmem [shape: bf16[768,3072], index: 1, kind: input, shape index: {}]   ;;  %s6046_s2 = inlined_call_operand.vmem [shape: f32[1,3072], index: 2, kind: input, shape index: {}]   ;;  %s6047_s3 = inlined_call_operand.hbm [shape: bf16[3072,768], index: 3, kind: input, shape index: {}]   ;;  %s6048_s4 = inlined_call_operand.vmem [shape: f32[1,768], index: 4, kind: input, shape index: {}]   ;;  %s6049_s5 = inlined_call_operand.vmem [shape: bf16[16,768], index: 5, kind: output, shape index: {}]  }
   0x1   :  { %12 = vsyncpa [#allocation5 + $0x1], 0  ;;  %s5041_s18 = smov 0   ;;  %s5043_s19 = smov 0  }
   0x2   :  { %s5045_s20 = smov 0   ;;  %s5047_s21 = smov 0  }
   0x3 LB: > { %s5060_s22 = sadd.s32 4294967295, %s5005_s21   ;;  %s5063_s23 = sadd.s32 1, %s5005_s21   ;;  %s5005_s21 = sphi %s5047_s21, %s6055_s21   ;;  %s5001_s20 = sphi %s5045_s20, %s6054_s20   ;;  %s4997_s19 = sphi %s5043_s19, %s6053_s19   ;;  %s4993_s18 = sphi %s5041_s18, %s6052_s18  }
   0x4   : > { %s43_s24 = ssub.s32 %s5005_s21, %s5063_s23  ;;  %s46_s25 = sadd.s32 1, %s5001_s20 }
   0x5   : > { %p44_p0 = scmp.eq.s32.totalorder %s43_s24, 0  ;;  %p53_p1 = scmp.ne.s32.totalorder %s5001_s20, %s4997_s19 }
   0x6   : > { %p54_p2 = scmp.eq.s32.totalorder %s5005_s21, 0  ;;  %p111_p3 = scmp.ne.s32.totalorder %s4997_s19, %s4993_s18 }
   0x7   : > { %s5073_s26 = scalar_select %p44_p0, %s5001_s20, %s46_s25  }
   0x8   : > { %p5075_p4 = por %p54_p2, %p53_p1  ;;  %p112_p5 = scmp.eq.s32.totalorder %s5060_s22, 0 }
   0x9   : > { %p3850_p7 = scmp.ge.s32.totalorder %s5005_s21, 6 }
   0xa   : > { %p5080_p6 = por %p112_p5, %p111_p3 }
   0xb   : > { %179 = sbr.rel (%p3850_p7) target bundleno = 144 (0x90), region = 24 }
  0x12   : > { %182 = sbr.rel (!%p5075_p4) target bundleno = 118 (0x76), region = 28  ;;  %s184_s29 = sand.u32 (%p5075_p4), 1, %s5001_s20  }
  0x13   : > { %s4258_s30 = sshll.u32 (%p5075_p4), %s5005_s21, 4  ;;  %s4301_s6 = smul.u32 (%p5075_p4), 1536, %s184_s29 }
  0x14   : > { %s5092_s9 = scalar_lea.vmem (%p5075_p4), %s6045_s1, %s4258_s30 }
  0x15   : > { %v202_v0 = vld [vmem:[%s5092_s9] sm:$0xff] (%p5075_p4)  ;;  %v204_v1 = vld [vmem:[%s5092_s9 + $0x8] sm:$0xff] (%p5075_p4)  ;;  %s5100_s10 = scalar_lea.vmem (%p5075_p4), [#allocation3], %s4301_s6 }
  0x16   : > { %v206_v2 = vld [vmem:[%s5092_s9 + $0x60] sm:$0xff] (%p5075_p4)  ;;  %v208_v3 = vld [vmem:[%s5092_s9 + $0x68] sm:$0xff] (%p5075_p4)  ;;  %203 = vst [vmem:[%s5100_s10] sm:$0xff] (%p5075_p4), %v202_v0  ;;  %205 = vst [vmem:[%s5100_s10 + $0x8] sm:$0xff] (%p5075_p4), %v204_v1 }
  0x17   : > { %v210_v4 = vld [vmem:[%s5092_s9 + $0xc0] sm:$0xff] (%p5075_p4)  ;;  %v212_v5 = vld [vmem:[%s5092_s9 + $0xc8] sm:$0xff] (%p5075_p4)  ;;  %207 = vst [vmem:[%s5100_s10 + $0x10] sm:$0xff] (%p5075_p4), %v206_v2  ;;  %209 = vst [vmem:[%s5100_s10 + $0x18] sm:$0xff] (%p5075_p4), %v208_v3 }
  0x18   : > { %211 = vst [vmem:[%s5100_s10 + $0x20] sm:$0xff] (%p5075_p4), %v210_v4  ;;  %213 = vst [vmem:[%s5100_s10 + $0x28] sm:$0xff] (%p5075_p4), %v212_v5  ;;  %v214_v6 = vld [vmem:[%s5092_s9 + $0x120] sm:$0xff] (%p5075_p4)  ;;  %v216_v7 = vld [vmem:[%s5092_s9 + $0x128] sm:$0xff] (%p5075_p4) }
  0x19   : > { %v218_v8 = vld [vmem:[%s5092_s9 + $0x180] sm:$0xff]  ;;  %215 = vst [vmem:[%s5100_s10 + $0x30] sm:$0xff] %v214_v6  ;;  %217 = vst [vmem:[%s5100_s10 + $0x38] sm:$0xff] %v216_v7  ;;  %v220_v9 = vld [vmem:[%s5092_s9 + $0x188] sm:$0xff] }
  0x1a   : > { %219 = vst [vmem:[%s5100_s10 + $0x40] sm:$0xff] %v218_v8  ;;  %v222_v10 = vld [vmem:[%s5092_s9 + $0x1e0] sm:$0xff]  ;;  %v224_v11 = vld [vmem:[%s5092_s9 + $0x1e8] sm:$0xff]  ;;  %221 = vst [vmem:[%s5100_s10 + $0x48] sm:$0xff] %v220_v9 }
  0x1b   : > { %223 = vst [vmem:[%s5100_s10 + $0x50] sm:$0xff] %v222_v10  ;;  %225 = vst [vmem:[%s5100_s10 + $0x58] sm:$0xff] %v224_v11  ;;  %v226_v12 = vld [vmem:[%s5092_s9 + $0x240] sm:$0xff]  ;;  %v228_v13 = vld [vmem:[%s5092_s9 + $0x248] sm:$0xff] }
  0x1c   : > { %v230_v14 = vld [vmem:[%s5092_s9 + $0x2a0] sm:$0xff]  ;;  %227 = vst [vmem:[%s5100_s10 + $0x60] sm:$0xff] %v226_v12  ;;  %229 = vst [vmem:[%s5100_s10 + $0x68] sm:$0xff] %v228_v13  ;;  %v232_v15 = vld [vmem:[%s5092_s9 + $0x2a8] sm:$0xff] }
  0x1d   : > { %231 = vst [vmem:[%s5100_s10 + $0x70] sm:$0xff] %v230_v14  ;;  %v234_v16 = vld [vmem:[%s5092_s9 + $0x300] sm:$0xff]  ;;  %v236_v17 = vld [vmem:[%s5092_s9 + $0x308] sm:$0xff]  ;;  %233 = vst [vmem:[%s5100_s10 + $0x78] sm:$0xff] %v232_v15 }
  0x1e   : > { %235 = vst [vmem:[%s5100_s10 + $0x80] sm:$0xff] %v234_v16  ;;  %237 = vst [vmem:[%s5100_s10 + $0x88] sm:$0xff] %v236_v17  ;;  %v238_v18 = vld [vmem:[%s5092_s9 + $0x360] sm:$0xff]  ;;  %v240_v19 = vld [vmem:[%s5092_s9 + $0x368] sm:$0xff] }
  0x1f   : > { %v242_v20 = vld [vmem:[%s5092_s9 + $0x3c0] sm:$0xff]  ;;  %239 = vst [vmem:[%s5100_s10 + $0x90] sm:$0xff] %v238_v18  ;;  %241 = vst [vmem:[%s5100_s10 + $0x98] sm:$0xff] %v240_v19  ;;  %v244_v21 = vld [vmem:[%s5092_s9 + $0x3c8] sm:$0xff] }
  0x20   : > { %243 = vst [vmem:[%s5100_s10 + $0xa0] sm:$0xff] %v242_v20  ;;  %v246_v22 = vld [vmem:[%s5092_s9 + $0x420] sm:$0xff]  ;;  %v248_v23 = vld [vmem:[%s5092_s9 + $0x428] sm:$0xff]  ;;  %245 = vst [vmem:[%s5100_s10 + $0xa8] sm:$0xff] %v244_v21 }
  0x21   : > { %247 = vst [vmem:[%s5100_s10 + $0xb0] sm:$0xff] %v246_v22  ;;  %249 = vst [vmem:[%s5100_s10 + $0xb8] sm:$0xff] %v248_v23  ;;  %v250_v24 = vld [vmem:[%s5092_s9 + $0x480] sm:$0xff]  ;;  %v252_v25 = vld [vmem:[%s5092_s9 + $0x488] sm:$0xff] }
  0x22   : > { %v254_v26 = vld [vmem:[%s5092_s9 + $0x4e0] sm:$0xff]  ;;  %251 = vst [vmem:[%s5100_s10 + $0xc0] sm:$0xff] %v250_v24  ;;  %253 = vst [vmem:[%s5100_s10 + $0xc8] sm:$0xff] %v252_v25  ;;  %v256_v27 = vld [vmem:[%s5092_s9 + $0x4e8] sm:$0xff] }
  0x23   : > { %255 = vst [vmem:[%s5100_s10 + $0xd0] sm:$0xff] %v254_v26  ;;  %v258_v28 = vld [vmem:[%s5092_s9 + $0x540] sm:$0xff]  ;;  %v260_v29 = vld [vmem:[%s5092_s9 + $0x548] sm:$0xff]  ;;  %257 = vst [vmem:[%s5100_s10 + $0xd8] sm:$0xff] %v256_v27 }
  0x24   : > { %259 = vst [vmem:[%s5100_s10 + $0xe0] sm:$0xff] %v258_v28  ;;  %261 = vst [vmem:[%s5100_s10 + $0xe8] sm:$0xff] %v260_v29  ;;  %v262_v30 = vld [vmem:[%s5092_s9 + $0x5a0] sm:$0xff]  ;;  %v264_v31 = vld [vmem:[%s5092_s9 + $0x5a8] sm:$0xff] }
  0x25   : > { %v266_v32 = vld [vmem:[%s5092_s9 + $0x600] sm:$0xff]  ;;  %263 = vst [vmem:[%s5100_s10 + $0xf0] sm:$0xff] %v262_v30  ;;  %265 = vst [vmem:[%s5100_s10 + $0xf8] sm:$0xff] %v264_v31  ;;  %v268_v33 = vld [vmem:[%s5092_s9 + $0x608] sm:$0xff] }
  0x26   : > { %267 = vst [vmem:[%s5100_s10 + $0x100] sm:$0xff] %v266_v32  ;;  %v270_v34 = vld [vmem:[%s5092_s9 + $0x660] sm:$0xff]  ;;  %v272_v35 = vld [vmem:[%s5092_s9 + $0x668] sm:$0xff]  ;;  %269 = vst [vmem:[%s5100_s10 + $0x108] sm:$0xff] %v268_v33 }
  0x27   : > { %271 = vst [vmem:[%s5100_s10 + $0x110] sm:$0xff] %v270_v34  ;;  %273 = vst [vmem:[%s5100_s10 + $0x118] sm:$0xff] %v272_v35  ;;  %v274_v36 = vld [vmem:[%s5092_s9 + $0x6c0] sm:$0xff]  ;;  %v276_v37 = vld [vmem:[%s5092_s9 + $0x6c8] sm:$0xff] }
  0x28   : > { %v278_v38 = vld [vmem:[%s5092_s9 + $0x720] sm:$0xff]  ;;  %275 = vst [vmem:[%s5100_s10 + $0x120] sm:$0xff] %v274_v36  ;;  %277 = vst [vmem:[%s5100_s10 + $0x128] sm:$0xff] %v276_v37  ;;  %v280_v39 = vld [vmem:[%s5092_s9 + $0x728] sm:$0xff] }
  0x29   : > { %279 = vst [vmem:[%s5100_s10 + $0x130] sm:$0xff] %v278_v38  ;;  %v282_v40 = vld [vmem:[%s5092_s9 + $0x780] sm:$0xff]  ;;  %v284_v41 = vld [vmem:[%s5092_s9 + $0x788] sm:$0xff]  ;;  %281 = vst [vmem:[%s5100_s10 + $0x138] sm:$0xff] %v280_v39 }
  0x2a   : > { %283 = vst [vmem:[%s5100_s10 + $0x140] sm:$0xff] %v282_v40  ;;  %285 = vst [vmem:[%s5100_s10 + $0x148] sm:$0xff] %v284_v41  ;;  %v286_v42 = vld [vmem:[%s5092_s9 + $0x7e0] sm:$0xff]  ;;  %v288_v43 = vld [vmem:[%s5092_s9 + $0x7e8] sm:$0xff] }
  0x2b   : > { %v290_v44 = vld [vmem:[%s5092_s9 + $0x840] sm:$0xff]  ;;  %287 = vst [vmem:[%s5100_s10 + $0x150] sm:$0xff] %v286_v42  ;;  %289 = vst [vmem:[%s5100_s10 + $0x158] sm:$0xff] %v288_v43  ;;  %v292_v45 = vld [vmem:[%s5092_s9 + $0x848] sm:$0xff] }
  0x2c   : > { %291 = vst [vmem:[%s5100_s10 + $0x160] sm:$0xff] %v290_v44  ;;  %v294_v46 = vld [vmem:[%s5092_s9 + $0x8a0] sm:$0xff]  ;;  %v296_v47 = vld [vmem:[%s5092_s9 + $0x8a8] sm:$0xff]  ;;  %293 = vst [vmem:[%s5100_s10 + $0x168] sm:$0xff] %v292_v45 }
  0x2d   : > { %295 = vst [vmem:[%s5100_s10 + $0x170] sm:$0xff] %v294_v46  ;;  %297 = vst [vmem:[%s5100_s10 + $0x178] sm:$0xff] %v296_v47  ;;  %v298_v48 = vld [vmem:[%s5092_s9 + $0x900] sm:$0xff]  ;;  %v300_v49 = vld [vmem:[%s5092_s9 + $0x908] sm:$0xff] }
  0x2e   : > { %v302_v50 = vld [vmem:[%s5092_s9 + $0x960] sm:$0xff]  ;;  %299 = vst [vmem:[%s5100_s10 + $0x180] sm:$0xff] %v298_v48  ;;  %301 = vst [vmem:[%s5100_s10 + $0x188] sm:$0xff] %v300_v49  ;;  %v304_v51 = vld [vmem:[%s5092_s9 + $0x968] sm:$0xff] }
  0x2f   : > { %303 = vst [vmem:[%s5100_s10 + $0x190] sm:$0xff] %v302_v50  ;;  %v306_v52 = vld [vmem:[%s5092_s9 + $0x9c0] sm:$0xff]  ;;  %v308_v53 = vld [vmem:[%s5092_s9 + $0x9c8] sm:$0xff]  ;;  %305 = vst [vmem:[%s5100_s10 + $0x198] sm:$0xff] %v304_v51 }
  0x30   : > { %307 = vst [vmem:[%s5100_s10 + $0x1a0] sm:$0xff] %v306_v52  ;;  %309 = vst [vmem:[%s5100_s10 + $0x1a8] sm:$0xff] %v308_v53  ;;  %v310_v54 = vld [vmem:[%s5092_s9 + $0xa20] sm:$0xff]  ;;  %v312_v55 = vld [vmem:[%s5092_s9 + $0xa28] sm:$0xff] }
  0x31   : > { %v314_v56 = vld [vmem:[%s5092_s9 + $0xa80] sm:$0xff]  ;;  %311 = vst [vmem:[%s5100_s10 + $0x1b0] sm:$0xff] %v310_v54  ;;  %313 = vst [vmem:[%s5100_s10 + $0x1b8] sm:$0xff] %v312_v55  ;;  %v316_v57 = vld [vmem:[%s5092_s9 + $0xa88] sm:$0xff] }
  0x32   : > { %315 = vst [vmem:[%s5100_s10 + $0x1c0] sm:$0xff] %v314_v56  ;;  %v318_v58 = vld [vmem:[%s5092_s9 + $0xae0] sm:$0xff]  ;;  %v320_v59 = vld [vmem:[%s5092_s9 + $0xae8] sm:$0xff]  ;;  %317 = vst [vmem:[%s5100_s10 + $0x1c8] sm:$0xff] %v316_v57 }
  0x33   : > { %319 = vst [vmem:[%s5100_s10 + $0x1d0] sm:$0xff] %v318_v58  ;;  %321 = vst [vmem:[%s5100_s10 + $0x1d8] sm:$0xff] %v320_v59  ;;  %v322_v60 = vld [vmem:[%s5092_s9 + $0xb40] sm:$0xff]  ;;  %v324_v61 = vld [vmem:[%s5092_s9 + $0xb48] sm:$0xff] }
  0x34   : > { %v326_v62 = vld [vmem:[%s5092_s9 + $0xba0] sm:$0xff]  ;;  %323 = vst [vmem:[%s5100_s10 + $0x1e0] sm:$0xff] %v322_v60  ;;  %325 = vst [vmem:[%s5100_s10 + $0x1e8] sm:$0xff] %v324_v61  ;;  %v328_v63 = vld [vmem:[%s5092_s9 + $0xba8] sm:$0xff] }
  0x35   : > { %327 = vst [vmem:[%s5100_s10 + $0x1f0] sm:$0xff] %v326_v62  ;;  %v330_v0 = vld [vmem:[%s5092_s9 + $0xc00] sm:$0xff]  ;;  %v332_v1 = vld [vmem:[%s5092_s9 + $0xc08] sm:$0xff]  ;;  %329 = vst [vmem:[%s5100_s10 + $0x1f8] sm:$0xff] %v328_v63 }
  0x36   : > { %331 = vst [vmem:[%s5100_s10 + $0x200] sm:$0xff] %v330_v0  ;;  %333 = vst [vmem:[%s5100_s10 + $0x208] sm:$0xff] %v332_v1  ;;  %v334_v2 = vld [vmem:[%s5092_s9 + $0xc60] sm:$0xff]  ;;  %v336_v3 = vld [vmem:[%s5092_s9 + $0xc68] sm:$0xff] }
  0x37   : > { %v338_v4 = vld [vmem:[%s5092_s9 + $0xcc0] sm:$0xff]  ;;  %335 = vst [vmem:[%s5100_s10 + $0x210] sm:$0xff] %v334_v2  ;;  %337 = vst [vmem:[%s5100_s10 + $0x218] sm:$0xff] %v336_v3  ;;  %v340_v5 = vld [vmem:[%s5092_s9 + $0xcc8] sm:$0xff] }
  0x38   : > { %339 = vst [vmem:[%s5100_s10 + $0x220] sm:$0xff] %v338_v4  ;;  %v342_v6 = vld [vmem:[%s5092_s9 + $0xd20] sm:$0xff]  ;;  %v344_v7 = vld [vmem:[%s5092_s9 + $0xd28] sm:$0xff]  ;;  %341 = vst [vmem:[%s5100_s10 + $0x228] sm:$0xff] %v340_v5 }
  0x39   : > { %343 = vst [vmem:[%s5100_s10 + $0x230] sm:$0xff] %v342_v6  ;;  %345 = vst [vmem:[%s5100_s10 + $0x238] sm:$0xff] %v344_v7  ;;  %v346_v8 = vld [vmem:[%s5092_s9 + $0xd80] sm:$0xff]  ;;  %v348_v9 = vld [vmem:[%s5092_s9 + $0xd88] sm:$0xff] }
  0x3a   : > { %v350_v10 = vld [vmem:[%s5092_s9 + $0xde0] sm:$0xff]  ;;  %347 = vst [vmem:[%s5100_s10 + $0x240] sm:$0xff] %v346_v8  ;;  %349 = vst [vmem:[%s5100_s10 + $0x248] sm:$0xff] %v348_v9  ;;  %v352_v11 = vld [vmem:[%s5092_s9 + $0xde8] sm:$0xff] }
  0x3b   : > { %351 = vst [vmem:[%s5100_s10 + $0x250] sm:$0xff] %v350_v10  ;;  %v354_v12 = vld [vmem:[%s5092_s9 + $0xe40] sm:$0xff]  ;;  %v356_v13 = vld [vmem:[%s5092_s9 + $0xe48] sm:$0xff]  ;;  %353 = vst [vmem:[%s5100_s10 + $0x258] sm:$0xff] %v352_v11 }
  0x3c   : > { %355 = vst [vmem:[%s5100_s10 + $0x260] sm:$0xff] %v354_v12  ;;  %357 = vst [vmem:[%s5100_s10 + $0x268] sm:$0xff] %v356_v13  ;;  %v358_v14 = vld [vmem:[%s5092_s9 + $0xea0] sm:$0xff]  ;;  %v360_v15 = vld [vmem:[%s5092_s9 + $0xea8] sm:$0xff] }
  0x3d   : > { %v362_v16 = vld [vmem:[%s5092_s9 + $0xf00] sm:$0xff]  ;;  %359 = vst [vmem:[%s5100_s10 + $0x270] sm:$0xff] %v358_v14  ;;  %361 = vst [vmem:[%s5100_s10 + $0x278] sm:$0xff] %v360_v15  ;;  %v364_v17 = vld [vmem:[%s5092_s9 + $0xf08] sm:$0xff] }
  0x3e   : > { %363 = vst [vmem:[%s5100_s10 + $0x280] sm:$0xff] %v362_v16  ;;  %v366_v18 = vld [vmem:[%s5092_s9 + $0xf60] sm:$0xff]  ;;  %v368_v19 = vld [vmem:[%s5092_s9 + $0xf68] sm:$0xff]  ;;  %365 = vst [vmem:[%s5100_s10 + $0x288] sm:$0xff] %v364_v17 }
  0x3f   : > { %367 = vst [vmem:[%s5100_s10 + $0x290] sm:$0xff] %v366_v18  ;;  %369 = vst [vmem:[%s5100_s10 + $0x298] sm:$0xff] %v368_v19  ;;  %v370_v20 = vld [vmem:[%s5092_s9 + $0xfc0] sm:$0xff]  ;;  %v372_v21 = vld [vmem:[%s5092_s9 + $0xfc8] sm:$0xff] }
  0x40   : > { %v374_v22 = vld [vmem:[%s5092_s9 + $0x1020] sm:$0xff]  ;;  %371 = vst [vmem:[%s5100_s10 + $0x2a0] sm:$0xff] %v370_v20  ;;  %373 = vst [vmem:[%s5100_s10 + $0x2a8] sm:$0xff] %v372_v21  ;;  %v376_v23 = vld [vmem:[%s5092_s9 + $0x1028] sm:$0xff] }
  0x41   : > { %375 = vst [vmem:[%s5100_s10 + $0x2b0] sm:$0xff] %v374_v22  ;;  %v378_v24 = vld [vmem:[%s5092_s9 + $0x1080] sm:$0xff]  ;;  %v380_v25 = vld [vmem:[%s5092_s9 + $0x1088] sm:$0xff]  ;;  %377 = vst [vmem:[%s5100_s10 + $0x2b8] sm:$0xff] %v376_v23 }
  0x42   : > { %379 = vst [vmem:[%s5100_s10 + $0x2c0] sm:$0xff] %v378_v24  ;;  %381 = vst [vmem:[%s5100_s10 + $0x2c8] sm:$0xff] %v380_v25  ;;  %v382_v26 = vld [vmem:[%s5092_s9 + $0x10e0] sm:$0xff]  ;;  %v384_v27 = vld [vmem:[%s5092_s9 + $0x10e8] sm:$0xff] }
  0x43   : > { %v386_v28 = vld [vmem:[%s5092_s9 + $0x1140] sm:$0xff]  ;;  %383 = vst [vmem:[%s5100_s10 + $0x2d0] sm:$0xff] %v382_v26  ;;  %385 = vst [vmem:[%s5100_s10 + $0x2d8] sm:$0xff] %v384_v27  ;;  %v388_v29 = vld [vmem:[%s5092_s9 + $0x1148] sm:$0xff] }
  0x44   : > { %387 = vst [vmem:[%s5100_s10 + $0x2e0] sm:$0xff] %v386_v28  ;;  %v390_v30 = vld [vmem:[%s5092_s9 + $0x11a0] sm:$0xff]  ;;  %v392_v31 = vld [vmem:[%s5092_s9 + $0x11a8] sm:$0xff]  ;;  %389 = vst [vmem:[%s5100_s10 + $0x2e8] sm:$0xff] %v388_v29 }
  0x45   : > { %391 = vst [vmem:[%s5100_s10 + $0x2f0] sm:$0xff] %v390_v30  ;;  %393 = vst [vmem:[%s5100_s10 + $0x2f8] sm:$0xff] %v392_v31  ;;  %v394_v32 = vld [vmem:[%s5092_s9 + $0x1200] sm:$0xff]  ;;  %v396_v33 = vld [vmem:[%s5092_s9 + $0x1208] sm:$0xff] }
  0x46   : > { %v398_v34 = vld [vmem:[%s5092_s9 + $0x1260] sm:$0xff]  ;;  %395 = vst [vmem:[%s5100_s10 + $0x300] sm:$0xff] %v394_v32  ;;  %397 = vst [vmem:[%s5100_s10 + $0x308] sm:$0xff] %v396_v33  ;;  %v400_v35 = vld [vmem:[%s5092_s9 + $0x1268] sm:$0xff] }
  0x47   : > { %399 = vst [vmem:[%s5100_s10 + $0x310] sm:$0xff] %v398_v34  ;;  %v402_v36 = vld [vmem:[%s5092_s9 + $0x12c0] sm:$0xff]  ;;  %v404_v37 = vld [vmem:[%s5092_s9 + $0x12c8] sm:$0xff]  ;;  %401 = vst [vmem:[%s5100_s10 + $0x318] sm:$0xff] %v400_v35 }
  0x48   : > { %403 = vst [vmem:[%s5100_s10 + $0x320] sm:$0xff] %v402_v36  ;;  %405 = vst [vmem:[%s5100_s10 + $0x328] sm:$0xff] %v404_v37  ;;  %v406_v38 = vld [vmem:[%s5092_s9 + $0x1320] sm:$0xff]  ;;  %v408_v39 = vld [vmem:[%s5092_s9 + $0x1328] sm:$0xff] }
  0x49   : > { %v410_v40 = vld [vmem:[%s5092_s9 + $0x1380] sm:$0xff]  ;;  %407 = vst [vmem:[%s5100_s10 + $0x330] sm:$0xff] %v406_v38  ;;  %409 = vst [vmem:[%s5100_s10 + $0x338] sm:$0xff] %v408_v39  ;;  %v412_v41 = vld [vmem:[%s5092_s9 + $0x1388] sm:$0xff] }
  0x4a   : > { %411 = vst [vmem:[%s5100_s10 + $0x340] sm:$0xff] %v410_v40  ;;  %v414_v42 = vld [vmem:[%s5092_s9 + $0x13e0] sm:$0xff]  ;;  %v416_v43 = vld [vmem:[%s5092_s9 + $0x13e8] sm:$0xff]  ;;  %413 = vst [vmem:[%s5100_s10 + $0x348] sm:$0xff] %v412_v41 }
  0x4b   : > { %415 = vst [vmem:[%s5100_s10 + $0x350] sm:$0xff] %v414_v42  ;;  %417 = vst [vmem:[%s5100_s10 + $0x358] sm:$0xff] %v416_v43  ;;  %v418_v44 = vld [vmem:[%s5092_s9 + $0x1440] sm:$0xff]  ;;  %v420_v45 = vld [vmem:[%s5092_s9 + $0x1448] sm:$0xff] }
  0x4c   : > { %v422_v46 = vld [vmem:[%s5092_s9 + $0x14a0] sm:$0xff]  ;;  %419 = vst [vmem:[%s5100_s10 + $0x360] sm:$0xff] %v418_v44  ;;  %421 = vst [vmem:[%s5100_s10 + $0x368] sm:$0xff] %v420_v45  ;;  %v424_v47 = vld [vmem:[%s5092_s9 + $0x14a8] sm:$0xff] }
  0x4d   : > { %423 = vst [vmem:[%s5100_s10 + $0x370] sm:$0xff] %v422_v46  ;;  %v426_v48 = vld [vmem:[%s5092_s9 + $0x1500] sm:$0xff]  ;;  %v428_v49 = vld [vmem:[%s5092_s9 + $0x1508] sm:$0xff]  ;;  %425 = vst [vmem:[%s5100_s10 + $0x378] sm:$0xff] %v424_v47 }
  0x4e   : > { %427 = vst [vmem:[%s5100_s10 + $0x380] sm:$0xff] %v426_v48  ;;  %429 = vst [vmem:[%s5100_s10 + $0x388] sm:$0xff] %v428_v49  ;;  %v430_v50 = vld [vmem:[%s5092_s9 + $0x1560] sm:$0xff]  ;;  %v432_v51 = vld [vmem:[%s5092_s9 + $0x1568] sm:$0xff] }
  0x4f   : > { %v434_v52 = vld [vmem:[%s5092_s9 + $0x15c0] sm:$0xff]  ;;  %431 = vst [vmem:[%s5100_s10 + $0x390] sm:$0xff] %v430_v50  ;;  %433 = vst [vmem:[%s5100_s10 + $0x398] sm:$0xff] %v432_v51  ;;  %v436_v53 = vld [vmem:[%s5092_s9 + $0x15c8] sm:$0xff] }
  0x50   : > { %435 = vst [vmem:[%s5100_s10 + $0x3a0] sm:$0xff] %v434_v52  ;;  %v438_v54 = vld [vmem:[%s5092_s9 + $0x1620] sm:$0xff]  ;;  %v440_v55 = vld [vmem:[%s5092_s9 + $0x1628] sm:$0xff]  ;;  %437 = vst [vmem:[%s5100_s10 + $0x3a8] sm:$0xff] %v436_v53 }
  0x51   : > { %439 = vst [vmem:[%s5100_s10 + $0x3b0] sm:$0xff] %v438_v54  ;;  %441 = vst [vmem:[%s5100_s10 + $0x3b8] sm:$0xff] %v440_v55  ;;  %v442_v56 = vld [vmem:[%s5092_s9 + $0x1680] sm:$0xff]  ;;  %v444_v57 = vld [vmem:[%s5092_s9 + $0x1688] sm:$0xff] }
  0x52   : > { %v446_v58 = vld [vmem:[%s5092_s9 + $0x16e0] sm:$0xff]  ;;  %443 = vst [vmem:[%s5100_s10 + $0x3c0] sm:$0xff] %v442_v56  ;;  %445 = vst [vmem:[%s5100_s10 + $0x3c8] sm:$0xff] %v444_v57  ;;  %v448_v59 = vld [vmem:[%s5092_s9 + $0x16e8] sm:$0xff] }
  0x53   : > { %447 = vst [vmem:[%s5100_s10 + $0x3d0] sm:$0xff] %v446_v58  ;;  %v450_v60 = vld [vmem:[%s5092_s9 + $0x1740] sm:$0xff]  ;;  %v452_v61 = vld [vmem:[%s5092_s9 + $0x1748] sm:$0xff]  ;;  %449 = vst [vmem:[%s5100_s10 + $0x3d8] sm:$0xff] %v448_v59 }
  0x54   : > { %451 = vst [vmem:[%s5100_s10 + $0x3e0] sm:$0xff] %v450_v60  ;;  %453 = vst [vmem:[%s5100_s10 + $0x3e8] sm:$0xff] %v452_v61  ;;  %v454_v62 = vld [vmem:[%s5092_s9 + $0x17a0] sm:$0xff]  ;;  %v456_v63 = vld [vmem:[%s5092_s9 + $0x17a8] sm:$0xff] }
  0x55   : > { %v458_v0 = vld [vmem:[%s5092_s9 + $0x1800] sm:$0xff]  ;;  %455 = vst [vmem:[%s5100_s10 + $0x3f0] sm:$0xff] %v454_v62  ;;  %457 = vst [vmem:[%s5100_s10 + $0x3f8] sm:$0xff] %v456_v63  ;;  %v460_v1 = vld [vmem:[%s5092_s9 + $0x1808] sm:$0xff] }
  0x56   : > { %459 = vst [vmem:[%s5100_s10 + $0x400] sm:$0xff] %v458_v0  ;;  %v462_v2 = vld [vmem:[%s5092_s9 + $0x1860] sm:$0xff]  ;;  %v464_v3 = vld [vmem:[%s5092_s9 + $0x1868] sm:$0xff]  ;;  %461 = vst [vmem:[%s5100_s10 + $0x408] sm:$0xff] %v460_v1 }
  0x57   : > { %463 = vst [vmem:[%s5100_s10 + $0x410] sm:$0xff] %v462_v2  ;;  %465 = vst [vmem:[%s5100_s10 + $0x418] sm:$0xff] %v464_v3  ;;  %v466_v4 = vld [vmem:[%s5092_s9 + $0x18c0] sm:$0xff]  ;;  %v468_v5 = vld [vmem:[%s5092_s9 + $0x18c8] sm:$0xff] }
  0x58   : > { %v470_v6 = vld [vmem:[%s5092_s9 + $0x1920] sm:$0xff]  ;;  %467 = vst [vmem:[%s5100_s10 + $0x420] sm:$0xff] %v466_v4  ;;  %469 = vst [vmem:[%s5100_s10 + $0x428] sm:$0xff] %v468_v5  ;;  %v472_v7 = vld [vmem:[%s5092_s9 + $0x1928] sm:$0xff] }
  0x59   : > { %471 = vst [vmem:[%s5100_s10 + $0x430] sm:$0xff] %v470_v6  ;;  %v474_v8 = vld [vmem:[%s5092_s9 + $0x1980] sm:$0xff]  ;;  %v476_v9 = vld [vmem:[%s5092_s9 + $0x1988] sm:$0xff]  ;;  %473 = vst [vmem:[%s5100_s10 + $0x438] sm:$0xff] %v472_v7 }
  0x5a   : > { %475 = vst [vmem:[%s5100_s10 + $0x440] sm:$0xff] %v474_v8  ;;  %477 = vst [vmem:[%s5100_s10 + $0x448] sm:$0xff] %v476_v9  ;;  %v478_v10 = vld [vmem:[%s5092_s9 + $0x19e0] sm:$0xff]  ;;  %v480_v11 = vld [vmem:[%s5092_s9 + $0x19e8] sm:$0xff] }
  0x5b   : > { %v482_v12 = vld [vmem:[%s5092_s9 + $0x1a40] sm:$0xff]  ;;  %479 = vst [vmem:[%s5100_s10 + $0x450] sm:$0xff] %v478_v10  ;;  %481 = vst [vmem:[%s5100_s10 + $0x458] sm:$0xff] %v480_v11  ;;  %v484_v13 = vld [vmem:[%s5092_s9 + $0x1a48] sm:$0xff] }
  0x5c   : > { %483 = vst [vmem:[%s5100_s10 + $0x460] sm:$0xff] %v482_v12  ;;  %v486_v14 = vld [vmem:[%s5092_s9 + $0x1aa0] sm:$0xff]  ;;  %v488_v15 = vld [vmem:[%s5092_s9 + $0x1aa8] sm:$0xff]  ;;  %485 = vst [vmem:[%s5100_s10 + $0x468] sm:$0xff] %v484_v13 }
  0x5d   : > { %487 = vst [vmem:[%s5100_s10 + $0x470] sm:$0xff] %v486_v14  ;;  %489 = vst [vmem:[%s5100_s10 + $0x478] sm:$0xff] %v488_v15  ;;  %v490_v16 = vld [vmem:[%s5092_s9 + $0x1b00] sm:$0xff]  ;;  %v492_v17 = vld [vmem:[%s5092_s9 + $0x1b08] sm:$0xff] }
  0x5e   : > { %v494_v18 = vld [vmem:[%s5092_s9 + $0x1b60] sm:$0xff]  ;;  %491 = vst [vmem:[%s5100_s10 + $0x480] sm:$0xff] %v490_v16  ;;  %493 = vst [vmem:[%s5100_s10 + $0x488] sm:$0xff] %v492_v17  ;;  %v496_v19 = vld [vmem:[%s5092_s9 + $0x1b68] sm:$0xff] }
  0x5f   : > { %495 = vst [vmem:[%s5100_s10 + $0x490] sm:$0xff] %v494_v18  ;;  %v498_v20 = vld [vmem:[%s5092_s9 + $0x1bc0] sm:$0xff]  ;;  %v500_v21 = vld [vmem:[%s5092_s9 + $0x1bc8] sm:$0xff]  ;;  %497 = vst [vmem:[%s5100_s10 + $0x498] sm:$0xff] %v496_v19 }
  0x60   : > { %499 = vst [vmem:[%s5100_s10 + $0x4a0] sm:$0xff] %v498_v20  ;;  %501 = vst [vmem:[%s5100_s10 + $0x4a8] sm:$0xff] %v500_v21  ;;  %v502_v22 = vld [vmem:[%s5092_s9 + $0x1c20] sm:$0xff]  ;;  %v504_v23 = vld [vmem:[%s5092_s9 + $0x1c28] sm:$0xff] }
  0x61   : > { %v506_v24 = vld [vmem:[%s5092_s9 + $0x1c80] sm:$0xff]  ;;  %503 = vst [vmem:[%s5100_s10 + $0x4b0] sm:$0xff] %v502_v22  ;;  %505 = vst [vmem:[%s5100_s10 + $0x4b8] sm:$0xff] %v504_v23  ;;  %v508_v25 = vld [vmem:[%s5092_s9 + $0x1c88] sm:$0xff] }
  0x62   : > { %507 = vst [vmem:[%s5100_s10 + $0x4c0] sm:$0xff] %v506_v24  ;;  %v510_v26 = vld [vmem:[%s5092_s9 + $0x1ce0] sm:$0xff]  ;;  %v512_v27 = vld [vmem:[%s5092_s9 + $0x1ce8] sm:$0xff]  ;;  %509 = vst [vmem:[%s5100_s10 + $0x4c8] sm:$0xff] %v508_v25 }
  0x63   : > { %511 = vst [vmem:[%s5100_s10 + $0x4d0] sm:$0xff] %v510_v26  ;;  %513 = vst [vmem:[%s5100_s10 + $0x4d8] sm:$0xff] %v512_v27  ;;  %v514_v28 = vld [vmem:[%s5092_s9 + $0x1d40] sm:$0xff]  ;;  %v516_v29 = vld [vmem:[%s5092_s9 + $0x1d48] sm:$0xff] }
  0x64   : > { %v518_v30 = vld [vmem:[%s5092_s9 + $0x1da0] sm:$0xff]  ;;  %515 = vst [vmem:[%s5100_s10 + $0x4e0] sm:$0xff] %v514_v28  ;;  %517 = vst [vmem:[%s5100_s10 + $0x4e8] sm:$0xff] %v516_v29  ;;  %v520_v31 = vld [vmem:[%s5092_s9 + $0x1da8] sm:$0xff] }
  0x65   : > { %519 = vst [vmem:[%s5100_s10 + $0x4f0] sm:$0xff] %v518_v30  ;;  %v522_v32 = vld [vmem:[%s5092_s9 + $0x1e00] sm:$0xff]  ;;  %v524_v33 = vld [vmem:[%s5092_s9 + $0x1e08] sm:$0xff]  ;;  %521 = vst [vmem:[%s5100_s10 + $0x4f8] sm:$0xff] %v520_v31 }
  0x66   : > { %523 = vst [vmem:[%s5100_s10 + $0x500] sm:$0xff] %v522_v32  ;;  %525 = vst [vmem:[%s5100_s10 + $0x508] sm:$0xff] %v524_v33  ;;  %v526_v34 = vld [vmem:[%s5092_s9 + $0x1e60] sm:$0xff]  ;;  %v528_v35 = vld [vmem:[%s5092_s9 + $0x1e68] sm:$0xff] }
  0x67   : > { %v530_v36 = vld [vmem:[%s5092_s9 + $0x1ec0] sm:$0xff]  ;;  %527 = vst [vmem:[%s5100_s10 + $0x510] sm:$0xff] %v526_v34  ;;  %529 = vst [vmem:[%s5100_s10 + $0x518] sm:$0xff] %v528_v35  ;;  %v532_v37 = vld [vmem:[%s5092_s9 + $0x1ec8] sm:$0xff] }
  0x68   : > { %531 = vst [vmem:[%s5100_s10 + $0x520] sm:$0xff] %v530_v36  ;;  %v534_v38 = vld [vmem:[%s5092_s9 + $0x1f20] sm:$0xff]  ;;  %v536_v39 = vld [vmem:[%s5092_s9 + $0x1f28] sm:$0xff]  ;;  %533 = vst [vmem:[%s5100_s10 + $0x528] sm:$0xff] %v532_v37 }
  0x69   : > { %535 = vst [vmem:[%s5100_s10 + $0x530] sm:$0xff] %v534_v38  ;;  %537 = vst [vmem:[%s5100_s10 + $0x538] sm:$0xff] %v536_v39  ;;  %v538_v40 = vld [vmem:[%s5092_s9 + $0x1f80] sm:$0xff]  ;;  %v540_v41 = vld [vmem:[%s5092_s9 + $0x1f88] sm:$0xff] }
  0x6a   : > { %v542_v42 = vld [vmem:[%s5092_s9 + $0x1fe0] sm:$0xff]  ;;  %539 = vst [vmem:[%s5100_s10 + $0x540] sm:$0xff] %v538_v40  ;;  %541 = vst [vmem:[%s5100_s10 + $0x548] sm:$0xff] %v540_v41  ;;  %v544_v43 = vld [vmem:[%s5092_s9 + $0x1fe8] sm:$0xff] }
  0x6b   : > { %543 = vst [vmem:[%s5100_s10 + $0x550] sm:$0xff] %v542_v42  ;;  %v546_v44 = vld [vmem:[%s5092_s9 + $0x2040] sm:$0xff]  ;;  %v548_v45 = vld [vmem:[%s5092_s9 + $0x2048] sm:$0xff]  ;;  %545 = vst [vmem:[%s5100_s10 + $0x558] sm:$0xff] %v544_v43 }
  0x6c   : > { %547 = vst [vmem:[%s5100_s10 + $0x560] sm:$0xff] %v546_v44  ;;  %549 = vst [vmem:[%s5100_s10 + $0x568] sm:$0xff] %v548_v45  ;;  %v550_v46 = vld [vmem:[%s5092_s9 + $0x20a0] sm:$0xff]  ;;  %v552_v47 = vld [vmem:[%s5092_s9 + $0x20a8] sm:$0xff] }
  0x6d   : > { %v554_v48 = vld [vmem:[%s5092_s9 + $0x2100] sm:$0xff]  ;;  %551 = vst [vmem:[%s5100_s10 + $0x570] sm:$0xff] %v550_v46  ;;  %553 = vst [vmem:[%s5100_s10 + $0x578] sm:$0xff] %v552_v47  ;;  %v556_v49 = vld [vmem:[%s5092_s9 + $0x2108] sm:$0xff] }
  0x6e   : > { %555 = vst [vmem:[%s5100_s10 + $0x580] sm:$0xff] %v554_v48  ;;  %v558_v50 = vld [vmem:[%s5092_s9 + $0x2160] sm:$0xff]  ;;  %v560_v51 = vld [vmem:[%s5092_s9 + $0x2168] sm:$0xff]  ;;  %557 = vst [vmem:[%s5100_s10 + $0x588] sm:$0xff] %v556_v49 }
  0x6f   : > { %559 = vst [vmem:[%s5100_s10 + $0x590] sm:$0xff] %v558_v50  ;;  %561 = vst [vmem:[%s5100_s10 + $0x598] sm:$0xff] %v560_v51  ;;  %v562_v52 = vld [vmem:[%s5092_s9 + $0x21c0] sm:$0xff]  ;;  %v564_v53 = vld [vmem:[%s5092_s9 + $0x21c8] sm:$0xff] }
  0x70   : > { %v566_v54 = vld [vmem:[%s5092_s9 + $0x2220] sm:$0xff]  ;;  %563 = vst [vmem:[%s5100_s10 + $0x5a0] sm:$0xff] %v562_v52  ;;  %565 = vst [vmem:[%s5100_s10 + $0x5a8] sm:$0xff] %v564_v53  ;;  %v568_v55 = vld [vmem:[%s5092_s9 + $0x2228] sm:$0xff] }
  0x71   : > { %567 = vst [vmem:[%s5100_s10 + $0x5b0] sm:$0xff] %v566_v54  ;;  %v570_v56 = vld [vmem:[%s5092_s9 + $0x2280] sm:$0xff]  ;;  %v572_v57 = vld [vmem:[%s5092_s9 + $0x2288] sm:$0xff]  ;;  %569 = vst [vmem:[%s5100_s10 + $0x5b8] sm:$0xff] %v568_v55 }
  0x72   : > { %571 = vst [vmem:[%s5100_s10 + $0x5c0] sm:$0xff] %v570_v56  ;;  %573 = vst [vmem:[%s5100_s10 + $0x5c8] sm:$0xff] %v572_v57  ;;  %v574_v58 = vld [vmem:[%s5092_s9 + $0x22e0] sm:$0xff]  ;;  %v576_v59 = vld [vmem:[%s5092_s9 + $0x22e8] sm:$0xff] }
  0x73   : > { %v578_v60 = vld [vmem:[%s5092_s9 + $0x2340] sm:$0xff]  ;;  %575 = vst [vmem:[%s5100_s10 + $0x5d0] sm:$0xff] %v574_v58  ;;  %577 = vst [vmem:[%s5100_s10 + $0x5d8] sm:$0xff] %v576_v59  ;;  %v580_v61 = vld [vmem:[%s5092_s9 + $0x2348] sm:$0xff] }
  0x74   : > { %579 = vst [vmem:[%s5100_s10 + $0x5e0] sm:$0xff] %v578_v60  ;;  %v582_v62 = vld [vmem:[%s5092_s9 + $0x23a0] sm:$0xff]  ;;  %v584_v63 = vld [vmem:[%s5092_s9 + $0x23a8] sm:$0xff]  ;;  %581 = vst [vmem:[%s5100_s10 + $0x5e8] sm:$0xff] %v580_v61 }
  0x75   : > { %583 = vst [vmem:[%s5100_s10 + $0x5f0] sm:$0xff] %v582_v62  ;;  %585 = vst [vmem:[%s5100_s10 + $0x5f8] sm:$0xff] %v584_v63 }
  0x76 PF: > { %s600_s11 = sand.u32 1, %s5001_s20   ;;  %s4303_s12 = smul.u32 24576, %s5005_s21 }
  0x77   : > { %s4302_s13 = smul.u32 1536, %s600_s11  ;;  %s5489_s24 = scalar_lea.sflag [#allocation5], %s600_s11 }
  0x78   : > { %s5485_s16 = scalar_lea.hbm %s6047_s3, %s4303_s12  ;;  %s4947_s6 = scalar_lea.hbm %s6047_s3, 147456 }
  0x79   : > { %s604_s17 = scalar_lea.vmem [#allocation4], %s4302_s13  ;;  %s4943_s25 = scalar_lea.hbm %s5485_s16, 24576 }
  0x7a   : > { %s612_s18 = sshll.u32 %s604_s17, 4  ;;  %p4944_p8 = scmp.ne.s32.totalorder %s5485_s16, %s4943_s25  ;;  %s5487_s18 = int_to_ptr.vmem [resolvable:$true] %s612_s18 }
  0x7b   : > { %p4948_p11 = scmp.lt.u32.totalorder %s5485_s16, %s6047_s3  ;;  %p4949_p12 = scmp.lt.u32.totalorder %s4947_s6, %s4943_s25 }
  0x7c   : > { %p4945_p9 = pnand %p4944_p8, %p5075_p4  ;;  %p4951_p0 = scmp.lt.u32.totalorder %s4943_s25, %s5485_s16 }
  0x7d   : > { %p4950_p13 = por %p4949_p12, %p4948_p11 }
  0x7e   : > { %p4946_p10 = pneg %p4945_p9 }
  0x7f   : > { %p4952_p1 = por %p4951_p0, %p4950_p13 }
  0x81   : > { %p4953_p2 = pnand %p4952_p1, %p4946_p10 }
  0x83   : > { %4956 = shalt.err (!%p4953_p2)
}
  0x84   : > { %s4957_s9 = scalar_lea.vmem %s5487_s18, 24576  ;;  %s5007_s10 = smov [#allocation4]  }
  0x85   : > { %p4958_p3 = scmp.ne.s32.totalorder %s5487_s18, %s4957_s9  ;;  %s4961_s11 = sshll.u32 %s5007_s10, 4  ;;  %s4962_s11 = int_to_ptr.vmem [resolvable:$false] %s4961_s11 }
  0x86   : > { %s4963_s12 = scalar_lea.vmem %s4962_s11, 49152  ;;  %p4964_p8 = scmp.lt.s32.totalorder %s5487_s18, %s4962_s11 }
  0x87   : > { %p4959_p5 = pnand %p4958_p3, %p5075_p4  ;;  %p4965_p9 = scmp.lt.s32.totalorder %s4963_s12, %s4957_s9 }
  0x89   : > { %p4960_p7 = pneg %p4959_p5  ;;  %p4966_p11 = por %p4965_p9, %p4964_p8 }
  0x8b   : > { %p4967_p12 = pnand %p4966_p11, %p4960_p7 }
  0x8d   : > { %4970 = shalt.err (!%p4967_p12)
}
  0x8e   : > { %s5008_s13 = smov 384   ;;  %s5009_s14 = smov 24  }
  0x8f   : > { %4305 = dma.hbm_to_vmem [thread:$0]  (%p5075_p4), %s5485_s16, 24576, %s5487_s18, %s5489_s24, %s5008_s13, %s5008_s13, %s5009_s14  }
  0x90 PF: > { %p3856_p10 = scmp.ge.s32.totalorder %s5005_s21, 1  ;;  %p620_p13 = scmp.lt.s32.totalorder %s5005_s21, 7 }
  0x92   : > { %p621_p0 = pnand %p3856_p10, %p620_p13 }
  0x93   : > { %s627_s15 = sand.u32 (!%p621_p0), 1, %s4997_s19  }
  0x94   : > { %624 = sbr.rel (%p621_p0) target bundleno = 1025 (0x401), region = 59  ;;  %s634_s29 = scalar_lea.sflag (!%p621_p0), [#allocation5], %s627_s15 }
  0x95   : > { %s4304_s17 = smul.u32 (!%p621_p0), 1536, %s627_s15 }
  0x97   : > { %s5516_s25 = scalar_lea.vmem (!%p621_p0), [#allocation3], %s4304_s17  ;;  %s5518_s30 = scalar_lea.vmem (!%p621_p0), [#allocation4], %s4304_s17 }
  0x9b   : > { %4988 = dma.done.wait (%p5080_p6), %s634_s29, 24576  }
  0x9c   : > { %4990 = vsyncadd (%p5080_p6), %s634_s29, 4294942720  ;;  %s3857_s27 = sshll.u32 %s5060_s22, 2  ;;  %p3858_p1 = scmp.ne.s32.totalorder %s5060_s22, 0 }
  0x9d   : > { %p669_p4 = scmp.lt.s32.totalorder %s3857_s27, 23  ;;  %v5010_v0 = vmov (!%p3858_p1), 0.0  }
  0x9e   : > { %677 = sbr.rel (%p3858_p1) target bundleno = 165 (0xa5), region = 71  ;;  %678 = vst [vmem:[#allocation2] sm:$0xff] (!%p3858_p1), %v5010_v0  ;;  %679 = vst [vmem:[#allocation2 + $0x8] sm:$0xff] (!%p3858_p1), %v5010_v0 }
  0x9f   : > { %s6057_s27 = smov (!%p669_p4, %s3857_s27), 23  ;;  %680 = vst [vmem:[#allocation2 + $0x10] sm:$0xff] (!%p3858_p1), %v5010_v0  ;;  %681 = vst [vmem:[#allocation2 + $0x18] sm:$0xff] (!%p3858_p1), %v5010_v0 }
  0xa0   : > { %s671_s18 = scalar_lea.vmem %s6046_s2, %s6057_s27  ;;  %682 = vst [vmem:[#allocation2 + $0x20] sm:$0xff] (!%p3858_p1), %v5010_v0  ;;  %683 = vst [vmem:[#allocation2 + $0x28] sm:$0xff] (!%p3858_p1), %v5010_v0 }
  0xa1   : > { %684 = vst [vmem:[#allocation2 + $0x30] sm:$0xff] (!%p3858_p1), %v5010_v0  ;;  %685 = vst [vmem:[#allocation2 + $0x38] sm:$0xff] (!%p3858_p1), %v5010_v0 }
  0xa2   : > { %686 = vst [vmem:[#allocation2 + $0x40] sm:$0xff] (!%p3858_p1), %v5010_v0  ;;  %687 = vst [vmem:[#allocation2 + $0x48] sm:$0xff] (!%p3858_p1), %v5010_v0 }
  0xa3   : > { %688 = vst [vmem:[#allocation2 + $0x50] sm:$0xff] (!%p3858_p1), %v5010_v0  ;;  %689 = vst [vmem:[#allocation2 + $0x58] sm:$0xff] (!%p3858_p1), %v5010_v0 }
  0xa5 PF: > { %v4342_v1 = vld [vmem:[%s5516_s25 + $0x4] ss:$16 sps:$4 sm:$0xff]   ;;  %v4346_v3 = vld [vmem:[%s5516_s25] ss:$16 sps:$4 sm:$0xff]   ;;  %p4249_p6 = scmp.ne.s32.totalorder %s5060_s22, 5 }
  0xa6   : > { %v4344_v2 = vld [vmem:[%s5516_s25 + $0x204] ss:$16 sps:$4 sm:$0xff]   ;;  %1900 = vmatprep.subr.bf16.mxu1 %v4342_v1  ;;  %v4347_v4 = vld [vmem:[%s5516_s25 + $0x200] ss:$16 sps:$4 sm:$0xff]  }
  0xa7   : > { %1943 = vmatprep.subr.bf16.mxu0 %v4344_v2  ;;  %v4348_v5 = vld [vmem:[%s5516_s25 + $0x24] ss:$16 sps:$4 sm:$0xff]   ;;  %1901 = vmatpush1.bf16.msra.mxu1 %v4346_v3  ;;  %v4352_v7 = vld [vmem:[%s5516_s25 + $0x20] ss:$16 sps:$4 sm:$0xff]  }
  0xa8   : > { %1944 = vmatpush1.bf16.msra.mxu0 %v4347_v4  ;;  %v4350_v6 = vld [vmem:[%s5516_s25 + $0x224] ss:$16 sps:$4 sm:$0xff]   ;;  %1902 = vmatprep.subr.bf16.mxu1 %v4348_v5  ;;  %v4353_v8 = vld [vmem:[%s5516_s25 + $0x220] ss:$16 sps:$4 sm:$0xff]   ;;  %v4449_v4 = vld [vmem:[%s5516_s25 + $0xc] ss:$16 sps:$4 sm:$0xff]  }
  0xa9   : > { %1945 = vmatprep.subr.bf16.mxu0 %v4350_v6  ;;  %v4354_v9 = vld [vmem:[%s5516_s25 + $0x44] ss:$16 sps:$4 sm:$0xff]   ;;  %v4358_v11 = vld [vmem:[%s5516_s25 + $0x40] ss:$16 sps:$4 sm:$0xff]  }
  0xaa   : > { %v4356_v10 = vld [vmem:[%s5516_s25 + $0x244] ss:$16 sps:$4 sm:$0xff]   ;;  %v4359_v12 = vld [vmem:[%s5516_s25 + $0x240] ss:$16 sps:$4 sm:$0xff]  }
  0xab   : > { %1903 = vmatpush1.bf16.msra.mxu1 %v4352_v7  ;;  %v4360_v13 = vld [vmem:[%s5516_s25 + $0x64] ss:$16 sps:$4 sm:$0xff]   ;;  %v4364_v15 = vld [vmem:[%s5516_s25 + $0x60] ss:$16 sps:$4 sm:$0xff]  }
  0xac   : > { %1946 = vmatpush1.bf16.msra.mxu0 %v4353_v8  ;;  %1904 = vmatprep.subr.bf16.mxu1 %v4354_v9  ;;  %v4362_v14 = vld [vmem:[%s5516_s25 + $0x264] ss:$16 sps:$4 sm:$0xff]   ;;  %v4365_v16 = vld [vmem:[%s5516_s25 + $0x260] ss:$16 sps:$4 sm:$0xff]   ;;  %v4447_v8 = vld [vmem:[%s5516_s25 + $0x8] ss:$16 sps:$4 sm:$0xff]  }
  0xad   : > { %1947 = vmatprep.subr.bf16.mxu0 %v4356_v10  ;;  %v4366_v17 = vld [vmem:[%s5516_s25 + $0x84] ss:$16 sps:$4 sm:$0xff]   ;;  %v4370_v19 = vld [vmem:[%s5516_s25 + $0x80] ss:$16 sps:$4 sm:$0xff]   ;;  %v4455_v10 = vld [vmem:[%s5516_s25 + $0x2c] ss:$16 sps:$4 sm:$0xff]  }
  0xae   : > { %v4368_v18 = vld [vmem:[%s5516_s25 + $0x284] ss:$16 sps:$4 sm:$0xff]   ;;  %v4371_v20 = vld [vmem:[%s5516_s25 + $0x280] ss:$16 sps:$4 sm:$0xff]  }
  0xaf   : > { %1905 = vmatpush1.bf16.msra.mxu1 %v4358_v11  ;;  %v4372_v21 = vld [vmem:[%s5516_s25 + $0xa4] ss:$16 sps:$4 sm:$0xff]   ;;  %v4376_v23 = vld [vmem:[%s5516_s25 + $0xa0] ss:$16 sps:$4 sm:$0xff]  }
  0xb0   : > { %1948 = vmatpush1.bf16.msra.mxu0 %v4359_v12  ;;  %1906 = vmatprep.subr.bf16.mxu1 %v4360_v13  ;;  %v4374_v22 = vld [vmem:[%s5516_s25 + $0x2a4] ss:$16 sps:$4 sm:$0xff]   ;;  %v4377_v24 = vld [vmem:[%s5516_s25 + $0x2a0] ss:$16 sps:$4 sm:$0xff]   ;;  %v4453_v12 = vld [vmem:[%s5516_s25 + $0x28] ss:$16 sps:$4 sm:$0xff]  }
  0xb1   : > { %1949 = vmatprep.subr.bf16.mxu0 %v4362_v14  ;;  %v4378_v25 = vld [vmem:[%s5516_s25 + $0xc4] ss:$16 sps:$4 sm:$0xff]   ;;  %v4382_v27 = vld [vmem:[%s5516_s25 + $0xc0] ss:$16 sps:$4 sm:$0xff]   ;;  %v4461_v14 = vld [vmem:[%s5516_s25 + $0x4c] ss:$16 sps:$4 sm:$0xff]  }
  0xb2   : > { %v4380_v26 = vld [vmem:[%s5516_s25 + $0x2c4] ss:$16 sps:$4 sm:$0xff]   ;;  %v4383_v28 = vld [vmem:[%s5516_s25 + $0x2c0] ss:$16 sps:$4 sm:$0xff]  }
  0xb3   : > { %1907 = vmatpush1.bf16.msra.mxu1 %v4364_v15  ;;  %v4384_v29 = vld [vmem:[%s5516_s25 + $0xe4] ss:$16 sps:$4 sm:$0xff]   ;;  %v4388_v31 = vld [vmem:[%s5516_s25 + $0xe0] ss:$16 sps:$4 sm:$0xff]  }
  0xb4   : > { %1950 = vmatpush1.bf16.msra.mxu0 %v4365_v16  ;;  %1908 = vmatprep.subr.bf16.mxu1 %v4366_v17  ;;  %v4386_v30 = vld [vmem:[%s5516_s25 + $0x2e4] ss:$16 sps:$4 sm:$0xff]   ;;  %v4389_v32 = vld [vmem:[%s5516_s25 + $0x2e0] ss:$16 sps:$4 sm:$0xff]   ;;  %v4459_v16 = vld [vmem:[%s5516_s25 + $0x48] ss:$16 sps:$4 sm:$0xff]  }
  0xb5   : > { %1951 = vmatprep.subr.bf16.mxu0 %v4368_v18  ;;  %v4390_v33 = vld [vmem:[%s5516_s25 + $0x104] ss:$16 sps:$4 sm:$0xff]   ;;  %v4394_v35 = vld [vmem:[%s5516_s25 + $0x100] ss:$16 sps:$4 sm:$0xff]   ;;  %v4467_v18 = vld [vmem:[%s5516_s25 + $0x6c] ss:$16 sps:$4 sm:$0xff]  }
  0xb6   : > { %v4392_v34 = vld [vmem:[%s5516_s25 + $0x304] ss:$16 sps:$4 sm:$0xff]   ;;  %v4395_v36 = vld [vmem:[%s5516_s25 + $0x300] ss:$16 sps:$4 sm:$0xff]  }
  0xb7   : > { %1909 = vmatpush1.bf16.msra.mxu1 %v4370_v19  ;;  %v4396_v37 = vld [vmem:[%s5516_s25 + $0x124] ss:$16 sps:$4 sm:$0xff]   ;;  %v4400_v39 = vld [vmem:[%s5516_s25 + $0x120] ss:$16 sps:$4 sm:$0xff]  }
  0xb8   : > { %1952 = vmatpush1.bf16.msra.mxu0 %v4371_v20  ;;  %1910 = vmatprep.subr.bf16.mxu1 %v4372_v21  ;;  %v4398_v38 = vld [vmem:[%s5516_s25 + $0x324] ss:$16 sps:$4 sm:$0xff]   ;;  %v4401_v40 = vld [vmem:[%s5516_s25 + $0x320] ss:$16 sps:$4 sm:$0xff]   ;;  %v4465_v20 = vld [vmem:[%s5516_s25 + $0x68] ss:$16 sps:$4 sm:$0xff]  }
  0xb9   : > { %1953 = vmatprep.subr.bf16.mxu0 %v4374_v22  ;;  %v4402_v41 = vld [vmem:[%s5516_s25 + $0x144] ss:$16 sps:$4 sm:$0xff]   ;;  %v4406_v43 = vld [vmem:[%s5516_s25 + $0x140] ss:$16 sps:$4 sm:$0xff]   ;;  %v4473_v22 = vld [vmem:[%s5516_s25 + $0x8c] ss:$16 sps:$4 sm:$0xff]  }
  0xba   : > { %v4404_v42 = vld [vmem:[%s5516_s25 + $0x344] ss:$16 sps:$4 sm:$0xff]   ;;  %v4407_v44 = vld [vmem:[%s5516_s25 + $0x340] ss:$16 sps:$4 sm:$0xff]  }
  0xbb   : > { %1911 = vmatpush1.bf16.msra.mxu1 %v4376_v23  ;;  %v4408_v45 = vld [vmem:[%s5516_s25 + $0x164] ss:$16 sps:$4 sm:$0xff]   ;;  %v4412_v47 = vld [vmem:[%s5516_s25 + $0x160] ss:$16 sps:$4 sm:$0xff]  }
  0xbc   : > { %1954 = vmatpush1.bf16.msra.mxu0 %v4377_v24  ;;  %1912 = vmatprep.subr.bf16.mxu1 %v4378_v25  ;;  %v4410_v46 = vld [vmem:[%s5516_s25 + $0x364] ss:$16 sps:$4 sm:$0xff]   ;;  %v4413_v48 = vld [vmem:[%s5516_s25 + $0x360] ss:$16 sps:$4 sm:$0xff]   ;;  %v4471_v24 = vld [vmem:[%s5516_s25 + $0x88] ss:$16 sps:$4 sm:$0xff]  }
  0xbd   : > { %1955 = vmatprep.subr.bf16.mxu0 %v4380_v26  ;;  %v4414_v49 = vld [vmem:[%s5516_s25 + $0x184] ss:$16 sps:$4 sm:$0xff]   ;;  %v4418_v53 = vld [vmem:[%s5516_s25 + $0x180] ss:$16 sps:$4 sm:$0xff]   ;;  %v4479_v26 = vld [vmem:[%s5516_s25 + $0xac] ss:$16 sps:$4 sm:$0xff]  }
  0xbe   : > { %v4440_v50 = vld [vmem:[%s6044_s0 + $0x4] ss:$24 sps:$4 sm:$0xff]   ;;  %v4419_v54 = vld [vmem:[%s5516_s25 + $0x380] ss:$16 sps:$4 sm:$0xff]  }
  0xbf   : > { %1913 = vmatpush1.bf16.msra.mxu1 %v4382_v27  ;;  %v4416_v51 = vld [vmem:[%s5516_s25 + $0x384] ss:$16 sps:$4 sm:$0xff]   ;;  %1932 = vmatprep.mubr.bf16.mxu1 %v4440_v50  ;;  %v4424_v57 = vld [vmem:[%s5516_s25 + $0x1a0] ss:$16 sps:$4 sm:$0xff]  }
  0xc0   : > { %1956 = vmatpush1.bf16.msra.mxu0 %v4383_v28  ;;  %1914 = vmatprep.subr.bf16.mxu1 %v4384_v29  ;;  %v5588_v52 = vld [vmem:[%s6044_s0 + $0xc] ss:$24 sps:$4 sm:$0xff]   ;;  %v4425_v58 = vld [vmem:[%s5516_s25 + $0x3a0] ss:$16 sps:$4 sm:$0xff]   ;;  %v4477_v28 = vld [vmem:[%s5516_s25 + $0xa8] ss:$16 sps:$4 sm:$0xff]  }
  0xc1   : > { %1957 = vmatprep.subr.bf16.mxu0 %v4386_v30  ;;  %1975 = vmatprep.mubr.bf16.mxu0 %v5588_v52  ;;  %v4420_v55 = vld [vmem:[%s5516_s25 + $0x1a4] ss:$16 sps:$4 sm:$0xff]   ;;  %v4430_v61 = vld [vmem:[%s5516_s25 + $0x1c0] ss:$16 sps:$4 sm:$0xff]   ;;  %v4485_v30 = vld [vmem:[%s5516_s25 + $0xcc] ss:$16 sps:$4 sm:$0xff]  }
  0xc2   : > { %v4422_v56 = vld [vmem:[%s5516_s25 + $0x3a4] ss:$16 sps:$4 sm:$0xff]   ;;  %v4431_v62 = vld [vmem:[%s5516_s25 + $0x3c0] ss:$16 sps:$4 sm:$0xff]  }
  0xc3   : > { %1915 = vmatpush1.bf16.msra.mxu1 %v4388_v31  ;;  %v4426_v59 = vld [vmem:[%s5516_s25 + $0x1c4] ss:$16 sps:$4 sm:$0xff]   ;;  %v4436_v1 = vld [vmem:[%s5516_s25 + $0x1e0] ss:$16 sps:$4 sm:$0xff]  }
  0xc4   : > { %1958 = vmatpush1.bf16.msra.mxu0 %v4389_v32  ;;  %1916 = vmatprep.subr.bf16.mxu1 %v4390_v33  ;;  %v4428_v60 = vld [vmem:[%s5516_s25 + $0x3c4] ss:$16 sps:$4 sm:$0xff]   ;;  %v4437_v2 = vld [vmem:[%s5516_s25 + $0x3e0] ss:$16 sps:$4 sm:$0xff]   ;;  %v4483_v32 = vld [vmem:[%s5516_s25 + $0xc8] ss:$16 sps:$4 sm:$0xff]  }
  0xc5   : > { %1959 = vmatprep.subr.bf16.mxu0 %v4392_v34  ;;  %v4432_v63 = vld [vmem:[%s5516_s25 + $0x1e4] ss:$16 sps:$4 sm:$0xff]   ;;  %v5610_v5 = vld [vmem:[%s6044_s0] ss:$24 sps:$4 sm:$0xff]   ;;  %v4491_v34 = vld [vmem:[%s5516_s25 + $0xec] ss:$16 sps:$4 sm:$0xff]  }
  0xc6   : > { %v4434_v0 = vld [vmem:[%s5516_s25 + $0x3e4] ss:$16 sps:$4 sm:$0xff]   ;;  %v5615_v6 = vld [vmem:[%s6044_s0 + $0x8] ss:$24 sps:$4 sm:$0xff]  }
  0xc7   : > { %1917 = vmatpush1.bf16.msra.mxu1 %v4394_v35  ;;  %v4446_v3 = vld [vmem:[%s5516_s25 + $0x404] ss:$16 sps:$4 sm:$0xff]   ;;  %v4444_v7 = vld [vmem:[%s5516_s25 + $0x400] ss:$16 sps:$4 sm:$0xff]  }
  0xc8   : > { %1960 = vmatpush1.bf16.msra.mxu0 %v4395_v36  ;;  %1918 = vmatprep.subr.bf16.mxu1 %v4396_v37  ;;  %v4452_v9 = vld [vmem:[%s5516_s25 + $0x424] ss:$16 sps:$4 sm:$0xff]   ;;  %v4450_v11 = vld [vmem:[%s5516_s25 + $0x420] ss:$16 sps:$4 sm:$0xff]   ;;  %v4489_v37 = vld [vmem:[%s5516_s25 + $0xe8] ss:$16 sps:$4 sm:$0xff]  }
  0xc9   : > { %1961 = vmatprep.subr.bf16.mxu0 %v4398_v38  ;;  %v4458_v13 = vld [vmem:[%s5516_s25 + $0x444] ss:$16 sps:$4 sm:$0xff]   ;;  %v4456_v15 = vld [vmem:[%s5516_s25 + $0x440] ss:$16 sps:$4 sm:$0xff]  }
  0xca   : > { %v4464_v17 = vld [vmem:[%s5516_s25 + $0x464] ss:$16 sps:$4 sm:$0xff]   ;;  %v4462_v19 = vld [vmem:[%s5516_s25 + $0x460] ss:$16 sps:$4 sm:$0xff]  }
  0xcb   : > { %1919 = vmatpush1.bf16.msra.mxu1 %v4400_v39  ;;  %v4470_v21 = vld [vmem:[%s5516_s25 + $0x484] ss:$16 sps:$4 sm:$0xff]   ;;  %v4468_v23 = vld [vmem:[%s5516_s25 + $0x480] ss:$16 sps:$4 sm:$0xff]   ;;  %v4497_v39 = vld [vmem:[%s5516_s25 + $0x10c] ss:$16 sps:$4 sm:$0xff]  }
  0xcc   : > { %1962 = vmatpush1.bf16.msra.mxu0 %v4401_v40  ;;  %1920 = vmatprep.subr.bf16.mxu1 %v4402_v41  ;;  %v4476_v25 = vld [vmem:[%s5516_s25 + $0x4a4] ss:$16 sps:$4 sm:$0xff]   ;;  %v4474_v27 = vld [vmem:[%s5516_s25 + $0x4a0] ss:$16 sps:$4 sm:$0xff]   ;;  %v4495_v41 = vld [vmem:[%s5516_s25 + $0x108] ss:$16 sps:$4 sm:$0xff]  }
  0xcd   : > { %1963 = vmatprep.subr.bf16.mxu0 %v4404_v42  ;;  %v4482_v29 = vld [vmem:[%s5516_s25 + $0x4c4] ss:$16 sps:$4 sm:$0xff]   ;;  %v4480_v31 = vld [vmem:[%s5516_s25 + $0x4c0] ss:$16 sps:$4 sm:$0xff]  }
  0xce   : > { %v4488_v33 = vld [vmem:[%s5516_s25 + $0x4e4] ss:$16 sps:$4 sm:$0xff]   ;;  %v4486_v36 = vld [vmem:[%s5516_s25 + $0x4e0] ss:$16 sps:$4 sm:$0xff]  }
  0xcf   : > { %1921 = vmatpush1.bf16.msra.mxu1 %v4406_v43  ;;  %v5650_v35 = vld [vmem:[%s6044_s0 + $0x14] ss:$24 sps:$4 sm:$0xff]   ;;  %v4492_v40 = vld [vmem:[%s5516_s25 + $0x500] ss:$16 sps:$4 sm:$0xff]  }
  0xd0   : > { %1964 = vmatpush1.bf16.msra.mxu0 %v4407_v44  ;;  %1922 = vmatprep.subr.bf16.mxu1 %v4408_v45  ;;  %v4494_v38 = vld [vmem:[%s5516_s25 + $0x504] ss:$16 sps:$4 sm:$0xff]   ;;  %v4503_v43 = vld [vmem:[%s5516_s25 + $0x12c] ss:$16 sps:$4 sm:$0xff]   ;;  %v4498_v44 = vld [vmem:[%s5516_s25 + $0x520] ss:$16 sps:$4 sm:$0xff]  }
  0xd1   : > { %1965 = vmatprep.subr.bf16.mxu0 %v4410_v46  ;;  %v4500_v42 = vld [vmem:[%s5516_s25 + $0x524] ss:$16 sps:$4 sm:$0xff]   ;;  %v4501_v45 = vld [vmem:[%s5516_s25 + $0x128] ss:$16 sps:$4 sm:$0xff]  }
  0xd2   : > { %v4506_v46 = vld [vmem:[%s5516_s25 + $0x544] ss:$16 sps:$4 sm:$0xff]  }
  0xd3   : > { %1923 = vmatpush1.bf16.msra.mxu1 %v4412_v47  ;;  %v4509_v47 = vld [vmem:[%s5516_s25 + $0x14c] ss:$16 sps:$4 sm:$0xff]  }
  0xd4   : > { %1966 = vmatpush1.bf16.msra.mxu0 %v4413_v48  ;;  %1924 = vmatprep.subr.bf16.mxu1 %v4414_v49  ;;  %v4504_v48 = vld [vmem:[%s5516_s25 + $0x540] ss:$16 sps:$4 sm:$0xff]   ;;  %v4507_v49 = vld [vmem:[%s5516_s25 + $0x148] ss:$16 sps:$4 sm:$0xff]  }
  0xd5   : > { %1967 = vmatprep.subr.bf16.mxu0 %v4416_v51  ;;  %v4515_v51 = vld [vmem:[%s5516_s25 + $0x16c] ss:$16 sps:$4 sm:$0xff]  }
  0xd7   : > { %1925 = vmatpush1.bf16.msra.mxu1 %v4418_v53  ;;  %v4510_v53 = vld [vmem:[%s5516_s25 + $0x560] ss:$16 sps:$4 sm:$0xff]  }
  0xd8   : > { %1968 = vmatpush1.bf16.msra.mxu0 %v4419_v54  ;;  %1926 = vmatprep.subr.bf16.mxu1 %v4420_v55  ;;  %v4513_v54 = vld [vmem:[%s5516_s25 + $0x168] ss:$16 sps:$4 sm:$0xff]   ;;  %v4518_v55 = vld [vmem:[%s5516_s25 + $0x584] ss:$16 sps:$4 sm:$0xff]  }
  0xd9   : > { %1969 = vmatprep.subr.bf16.mxu0 %v4422_v56  ;;  %v4521_v56 = vld [vmem:[%s5516_s25 + $0x18c] ss:$16 sps:$4 sm:$0xff]  }
  0xdb   : > { %1927 = vmatpush1.bf16.msra.mxu1 %v4424_v57  ;;  %v4516_v57 = vld [vmem:[%s5516_s25 + $0x580] ss:$16 sps:$4 sm:$0xff]  }
  0xdc   : > { %1970 = vmatpush1.bf16.msra.mxu0 %v4425_v58  ;;  %1928 = vmatprep.subr.bf16.mxu1 %v4426_v59  ;;  %v4519_v58 = vld [vmem:[%s5516_s25 + $0x188] ss:$16 sps:$4 sm:$0xff]   ;;  %v4524_v59 = vld [vmem:[%s5516_s25 + $0x5a4] ss:$16 sps:$4 sm:$0xff]  }
  0xdd   : > { %1971 = vmatprep.subr.bf16.mxu0 %v4428_v60  ;;  %v4527_v60 = vld [vmem:[%s5516_s25 + $0x1ac] ss:$16 sps:$4 sm:$0xff]  }
  0xdf   : > { %1929 = vmatpush1.bf16.msra.mxu1 %v4430_v61  ;;  %v4522_v61 = vld [vmem:[%s5516_s25 + $0x5a0] ss:$16 sps:$4 sm:$0xff]  }
  0xe0   : > { %1972 = vmatpush1.bf16.msra.mxu0 %v4431_v62  ;;  %1930 = vmatprep.subr.bf16.mxu1 %v4432_v63  ;;  %v4525_v62 = vld [vmem:[%s5516_s25 + $0x1a8] ss:$16 sps:$4 sm:$0xff]   ;;  %v4530_v63 = vld [vmem:[%s5516_s25 + $0x5c4] ss:$16 sps:$4 sm:$0xff]  }
  0xe1   : > { %1973 = vmatprep.subr.bf16.mxu0 %v4434_v0  ;;  %v4533_v0 = vld [vmem:[%s5516_s25 + $0x1cc] ss:$16 sps:$4 sm:$0xff]  }
  0xe3   : > { %1931 = vmatpush1.bf16.msra.mxu1 %v4436_v1  ;;  %v4528_v1 = vld [vmem:[%s5516_s25 + $0x5c0] ss:$16 sps:$4 sm:$0xff]  }
  0xe4   : > { %1974 = vmatpush1.bf16.msra.mxu0 %v4437_v2  ;;  %2029 = vmatprep.subr.bf16.mxu1 %v4449_v4  ;;  %v4531_v2 = vld [vmem:[%s5516_s25 + $0x1c8] ss:$16 sps:$4 sm:$0xff]   ;;  %v4539_v4 = vld [vmem:[%s5516_s25 + $0x1ec] ss:$16 sps:$4 sm:$0xff]  }
  0xe5   : > { %1986 = vmatprep.subr.bf16.mxu0 %v4446_v3  ;;  %v4536_v3 = vld [vmem:[%s5516_s25 + $0x5e4] ss:$16 sps:$4 sm:$0xff]  }
  0xe6   : > { %1933 = vmatmul.mubr.bf16.vlgmr.msra.gmra.mrb[0].mxu1 %v5610_v5 }
  0xe7   : > { %1976 = vmatmul.mubr.bf16.vlgmr.msra.gmra.mrb[0].mxu0 %v5615_v6  ;;  %2030 = vmatpush1.bf16.msra.mxu1 %v4447_v8  ;;  %v4537_v8 = vld [vmem:[%s5516_s25 + $0x1e8] ss:$16 sps:$4 sm:$0xff]  }
  0xe8   : > { %1987 = vmatpush1.bf16.msra.mxu0 %v4444_v7  ;;  %2031 = vmatprep.subr.bf16.mxu1 %v4455_v10  ;;  %v4534_v7 = vld [vmem:[%s5516_s25 + $0x5e0] ss:$16 sps:$4 sm:$0xff]  }
  0xe9   : > { %1988 = vmatprep.subr.bf16.mxu0 %v4452_v9  ;;  %2061 = vmatprep.mubr.bf16.mxu1 %v4440_v50  ;;  %v4512_v50 = vld [vmem:[%s5516_s25 + $0x564] ss:$16 sps:$4 sm:$0xff]   ;;  %v4545_v9 = vld [vmem:[%s5516_s25 + $0x20c] ss:$16 sps:$4 sm:$0xff]   ;;  %v5691_v10 = vld [vmem:[%s6044_s0 + $0x10] ss:$24 sps:$4 sm:$0xff]  }
  0xea   : > { %2018 = vmatprep.mubr.bf16.mxu0 %v5650_v35 }
  0xeb   : > { %2032 = vmatpush1.bf16.msra.mxu1 %v4453_v12  ;;  %v4548_v12 = vld [vmem:[%s5516_s25 + $0x22c] ss:$16 sps:$4 sm:$0xff]  }
  0xec   : > { %1989 = vmatpush1.bf16.msra.mxu0 %v4450_v11  ;;  %2033 = vmatprep.subr.bf16.mxu1 %v4461_v14  ;;  %v4543_v11 = vld [vmem:[%s5516_s25 + $0x208] ss:$16 sps:$4 sm:$0xff]   ;;  %v4551_v14 = vld [vmem:[%s5516_s25 + $0x24c] ss:$16 sps:$4 sm:$0xff]  }
  0xed   : > { %1990 = vmatprep.subr.bf16.mxu0 %v4458_v13  ;;  %v4546_v13 = vld [vmem:[%s5516_s25 + $0x228] ss:$16 sps:$4 sm:$0xff]  }
  0xef   : > { %2034 = vmatpush1.bf16.msra.mxu1 %v4459_v16  ;;  %v4554_v16 = vld [vmem:[%s5516_s25 + $0x26c] ss:$16 sps:$4 sm:$0xff]  }
  0xf0   : > { %1991 = vmatpush1.bf16.msra.mxu0 %v4456_v15  ;;  %2035 = vmatprep.subr.bf16.mxu1 %v4467_v18  ;;  %v4549_v15 = vld [vmem:[%s5516_s25 + $0x248] ss:$16 sps:$4 sm:$0xff]   ;;  %v4557_v18 = vld [vmem:[%s5516_s25 + $0x28c] ss:$16 sps:$4 sm:$0xff]  }
  0xf1   : > { %1992 = vmatprep.subr.bf16.mxu0 %v4464_v17  ;;  %v4552_v17 = vld [vmem:[%s5516_s25 + $0x268] ss:$16 sps:$4 sm:$0xff]  }
  0xf3   : > { %2036 = vmatpush1.bf16.msra.mxu1 %v4465_v20  ;;  %v4563_v20 = vld [vmem:[%s5516_s25 + $0x2cc] ss:$16 sps:$4 sm:$0xff]  }
  0xf4   : > { %1993 = vmatpush1.bf16.msra.mxu0 %v4462_v19  ;;  %2037 = vmatprep.subr.bf16.mxu1 %v4473_v22  ;;  %v4560_v19 = vld [vmem:[%s5516_s25 + $0x2ac] ss:$16 sps:$4 sm:$0xff]  }
  0xf5   : > { %1994 = vmatprep.subr.bf16.mxu0 %v4470_v21  ;;  %v4561_v21 = vld [vmem:[%s5516_s25 + $0x2c8] ss:$16 sps:$4 sm:$0xff]   ;;  %v4566_v22 = vld [vmem:[%s5516_s25 + $0x2ec] ss:$16 sps:$4 sm:$0xff]  }
  0xf7   : > { %2038 = vmatpush1.bf16.msra.mxu1 %v4471_v24  ;;  %v4641_v24 = vld [vmem:[%s5518_s30 + $0x4] ss:$24 sps:$4 sm:$0xff]  }
  0xf8   : > { %1995 = vmatpush1.bf16.msra.mxu0 %v4468_v23  ;;  %2039 = vmatprep.subr.bf16.mxu1 %v4479_v26  ;;  %v4639_v23 = vld [vmem:[%s5518_s30] ss:$24 sps:$4 sm:$0xff]  }
  0xf9   : > { %1996 = vmatprep.subr.bf16.mxu0 %v4476_v25  ;;  %v4647_v25 = vld [vmem:[%s5518_s30 + $0x34] ss:$24 sps:$4 sm:$0xff]   ;;  %v4564_v26 = vld [vmem:[%s5516_s25 + $0x2e8] ss:$16 sps:$4 sm:$0xff]  }
  0xfb   : > { %2040 = vmatpush1.bf16.msra.mxu1 %v4477_v28  ;;  %v4645_v28 = vld [vmem:[%s5518_s30 + $0x30] ss:$24 sps:$4 sm:$0xff]  }
  0xfc   : > { %1997 = vmatpush1.bf16.msra.mxu0 %v4474_v27  ;;  %2041 = vmatprep.subr.bf16.mxu1 %v4485_v30  ;;  %v4569_v27 = vld [vmem:[%s5516_s25 + $0x30c] ss:$16 sps:$4 sm:$0xff]   ;;  %v4567_v30 = vld [vmem:[%s5516_s25 + $0x308] ss:$16 sps:$4 sm:$0xff]  }
  0xfd   : > { %1998 = vmatprep.subr.bf16.mxu0 %v4482_v29  ;;  %v4653_v29 = vld [vmem:[%s5518_s30 + $0x64] ss:$24 sps:$4 sm:$0xff]  }
  0xff   : > { %2042 = vmatpush1.bf16.msra.mxu1 %v4483_v32  ;;  %v4651_v32 = vld [vmem:[%s5518_s30 + $0x60] ss:$24 sps:$4 sm:$0xff]  }
 0x100   : > { %1999 = vmatpush1.bf16.msra.mxu0 %v4480_v31  ;;  %2043 = vmatprep.subr.bf16.mxu1 %v4491_v34  ;;  %v4572_v31 = vld [vmem:[%s5516_s25 + $0x32c] ss:$16 sps:$4 sm:$0xff]   ;;  %v4570_v34 = vld [vmem:[%s5516_s25 + $0x328] ss:$16 sps:$4 sm:$0xff]  }
 0x101   : > { %2000 = vmatprep.subr.bf16.mxu0 %v4488_v33  ;;  %v4659_v33 = vld [vmem:[%s5518_s30 + $0x94] ss:$24 sps:$4 sm:$0xff]  }
 0x103   : > { %2044 = vmatpush1.bf16.msra.mxu1 %v4489_v37  ;;  %v4657_v37 = vld [vmem:[%s5518_s30 + $0x90] ss:$24 sps:$4 sm:$0xff]  }
 0x104   : > { %2001 = vmatpush1.bf16.msra.mxu0 %v4486_v36  ;;  %2045 = vmatprep.subr.bf16.mxu1 %v4497_v39  ;;  %v4575_v36 = vld [vmem:[%s5516_s25 + $0x34c] ss:$16 sps:$4 sm:$0xff]   ;;  %v4573_v39 = vld [vmem:[%s5516_s25 + $0x348] ss:$16 sps:$4 sm:$0xff]  }
 0x105   : > { %2002 = vmatprep.subr.bf16.mxu0 %v4494_v38  ;;  %v4665_v38 = vld [vmem:[%s5518_s30 + $0xc4] ss:$24 sps:$4 sm:$0xff]  }
 0x107   : > { %2046 = vmatpush1.bf16.msra.mxu1 %v4495_v41  ;;  %v4663_v41 = vld [vmem:[%s5518_s30 + $0xc0] ss:$24 sps:$4 sm:$0xff]  }
 0x108   : > { %2003 = vmatpush1.bf16.msra.mxu0 %v4492_v40  ;;  %2047 = vmatprep.subr.bf16.mxu1 %v4503_v43  ;;  %v4578_v40 = vld [vmem:[%s5516_s25 + $0x36c] ss:$16 sps:$4 sm:$0xff]   ;;  %v4576_v43 = vld [vmem:[%s5516_s25 + $0x368] ss:$16 sps:$4 sm:$0xff]  }
 0x109   : > { %2004 = vmatprep.subr.bf16.mxu0 %v4500_v42  ;;  %v4671_v42 = vld [vmem:[%s5518_s30 + $0xf4] ss:$24 sps:$4 sm:$0xff]  }
 0x10b   : > { %2048 = vmatpush1.bf16.msra.mxu1 %v4501_v45  ;;  %v4669_v45 = vld [vmem:[%s5518_s30 + $0xf0] ss:$24 sps:$4 sm:$0xff]  }
 0x10c   : > { %2005 = vmatpush1.bf16.msra.mxu0 %v4498_v44  ;;  %2049 = vmatprep.subr.bf16.mxu1 %v4509_v47  ;;  %v4581_v44 = vld [vmem:[%s5516_s25 + $0x38c] ss:$16 sps:$4 sm:$0xff]   ;;  %v4579_v47 = vld [vmem:[%s5516_s25 + $0x388] ss:$16 sps:$4 sm:$0xff]  }
 0x10d   : > { %2006 = vmatprep.subr.bf16.mxu0 %v4506_v46  ;;  %v4677_v46 = vld [vmem:[%s5518_s30 + $0x124] ss:$24 sps:$4 sm:$0xff]  }
 0x10f   : > { %2050 = vmatpush1.bf16.msra.mxu1 %v4507_v49  ;;  %v4675_v49 = vld [vmem:[%s5518_s30 + $0x120] ss:$24 sps:$4 sm:$0xff]  }
 0x110   : > { %2007 = vmatpush1.bf16.msra.mxu0 %v4504_v48  ;;  %2051 = vmatprep.subr.bf16.mxu1 %v4515_v51  ;;  %v4584_v48 = vld [vmem:[%s5516_s25 + $0x3ac] ss:$16 sps:$4 sm:$0xff]   ;;  %v4582_v51 = vld [vmem:[%s5516_s25 + $0x3a8] ss:$16 sps:$4 sm:$0xff]  }
 0x111   : > { %2008 = vmatprep.subr.bf16.mxu0 %v4512_v50  ;;  %v4683_v50 = vld [vmem:[%s5518_s30 + $0x154] ss:$24 sps:$4 sm:$0xff]  }
 0x113   : > { %2052 = vmatpush1.bf16.msra.mxu1 %v4513_v54  ;;  %v4681_v54 = vld [vmem:[%s5518_s30 + $0x150] ss:$24 sps:$4 sm:$0xff]  }
 0x114   : > { %2009 = vmatpush1.bf16.msra.mxu0 %v4510_v53  ;;  %2053 = vmatprep.subr.bf16.mxu1 %v4521_v56  ;;  %v4587_v53 = vld [vmem:[%s5516_s25 + $0x3cc] ss:$16 sps:$4 sm:$0xff]  }
 0x115   : > { %2010 = vmatprep.subr.bf16.mxu0 %v4518_v55  ;;  %v4585_v55 = vld [vmem:[%s5516_s25 + $0x3c8] ss:$16 sps:$4 sm:$0xff]   ;;  %v4590_v56 = vld [vmem:[%s5516_s25 + $0x3ec] ss:$16 sps:$4 sm:$0xff]  }
 0x117   : > { %2054 = vmatpush1.bf16.msra.mxu1 %v4519_v58  ;;  %v4593_v58 = vld [vmem:[%s5516_s25 + $0x40c] ss:$16 sps:$4 sm:$0xff]  }
 0x118   : > { %2011 = vmatpush1.bf16.msra.mxu0 %v4516_v57  ;;  %2055 = vmatprep.subr.bf16.mxu1 %v4527_v60  ;;  %v4588_v57 = vld [vmem:[%s5516_s25 + $0x3e8] ss:$16 sps:$4 sm:$0xff]   ;;  %v4596_v60 = vld [vmem:[%s5516_s25 + $0x42c] ss:$16 sps:$4 sm:$0xff]  }
 0x119   : > { %2012 = vmatprep.subr.bf16.mxu0 %v4524_v59  ;;  %v4591_v59 = vld [vmem:[%s5516_s25 + $0x408] ss:$16 sps:$4 sm:$0xff]  }
 0x11b   : > { %2056 = vmatpush1.bf16.msra.mxu1 %v4525_v62  ;;  %v4599_v62 = vld [vmem:[%s5516_s25 + $0x44c] ss:$16 sps:$4 sm:$0xff]  }
 0x11c   : > { %2013 = vmatpush1.bf16.msra.mxu0 %v4522_v61  ;;  %2057 = vmatprep.subr.bf16.mxu1 %v4533_v0  ;;  %v4594_v61 = vld [vmem:[%s5516_s25 + $0x428] ss:$16 sps:$4 sm:$0xff]   ;;  %v4602_v0 = vld [vmem:[%s5516_s25 + $0x46c] ss:$16 sps:$4 sm:$0xff]  }
 0x11d   : > { %2014 = vmatprep.subr.bf16.mxu0 %v4530_v63  ;;  %v4597_v63 = vld [vmem:[%s5516_s25 + $0x448] ss:$16 sps:$4 sm:$0xff]  }
 0x11f   : > { %2058 = vmatpush1.bf16.msra.mxu1 %v4531_v2  ;;  %v4605_v2 = vld [vmem:[%s5516_s25 + $0x48c] ss:$16 sps:$4 sm:$0xff]  }
 0x120   : > { %2015 = vmatpush1.bf16.msra.mxu0 %v4528_v1  ;;  %2059 = vmatprep.subr.bf16.mxu1 %v4539_v4  ;;  %v4600_v1 = vld [vmem:[%s5516_s25 + $0x468] ss:$16 sps:$4 sm:$0xff]   ;;  %v4611_v4 = vld [vmem:[%s5516_s25 + $0x4cc] ss:$16 sps:$4 sm:$0xff]  }
 0x121   : > { %2016 = vmatprep.subr.bf16.mxu0 %v4536_v3  ;;  %v4606_v3 = vld [vmem:[%s5516_s25 + $0x4a8] ss:$16 sps:$4 sm:$0xff]  }
 0x123   : > { %2060 = vmatpush1.bf16.msra.mxu1 %v4537_v8  ;;  %v4687_v8 = vld [vmem:[%s5518_s30 + $0x180] ss:$24 sps:$4 sm:$0xff]  }
 0x124   : > { %2017 = vmatpush1.bf16.msra.mxu0 %v4534_v7  ;;  %2072 = vmatprep.subr.bf16.mxu1 %v4545_v9  ;;  %v4689_v7 = vld [vmem:[%s5518_s30 + $0x184] ss:$24 sps:$4 sm:$0xff]   ;;  %v4609_v9 = vld [vmem:[%s5516_s25 + $0x4c8] ss:$16 sps:$4 sm:$0xff]  }
 0x125   : > { %3398 = vmatprep.subr.bf16.mxu0 %v4641_v24  ;;  %v4719_v24 = vld [vmem:[%s5518_s30 + $0x274] ss:$24 sps:$4 sm:$0xff]  }
 0x126   : > { %2062 = vmatmul.mubr.bf16.vlgmr.msra.gmra.mrb[4].mxu1 %v5610_v5  ;;  %v4555_v5 = vld [vmem:[%s5516_s25 + $0x288] ss:$16 sps:$4 sm:$0xff]  }
 0x127   : > { %2019 = vmatmul.mubr.bf16.vlgmr.msra.gmra.mrb[0].mxu0 %v5691_v10  ;;  %2073 = vmatpush1.bf16.msra.mxu1 %v4543_v11  ;;  %v4614_v11 = vld [vmem:[%s5516_s25 + $0x4ec] ss:$16 sps:$4 sm:$0xff]  }
 0x128   : > { %2104 = vmatprep.mubr.bf16.mxu1 %v5588_v52  ;;  %2074 = vmatprep.subr.bf16.mxu1 %v4548_v12  ;;  %v4558_v52 = vld [vmem:[%s5516_s25 + $0x2a8] ss:$16 sps:$4 sm:$0xff]   ;;  %v4695_v12 = vld [vmem:[%s5518_s30 + $0x1b4] ss:$24 sps:$4 sm:$0xff]  }
 0x129   : > { %3399 = vmatpush1.bf16.msra.mxu0 %v4639_v23  ;;  %v4713_v23 = vld [vmem:[%s5518_s30 + $0x244] ss:$24 sps:$4 sm:$0xff]  }
 0x12a   : > { %3400 = vmatprep.subr.bf16.mxu0 %v4647_v25  ;;  %v4621_v25 = vld [vmem:[%s5516_s25 + $0x548] ss:$16 sps:$4 sm:$0xff]  }
 0x12b   : > { %2075 = vmatpush1.bf16.msra.mxu1 %v4546_v13  ;;  %v4693_v13 = vld [vmem:[%s5518_s30 + $0x1b0] ss:$24 sps:$4 sm:$0xff]  }
 0x12c   : > { %2076 = vmatprep.subr.bf16.mxu1 %v4551_v14  ;;  %v4612_v14 = vld [vmem:[%s5516_s25 + $0x4e8] ss:$16 sps:$4 sm:$0xff]  }
 0x12d   : > { %3401 = vmatpush1.bf16.msra.mxu0 %v4645_v28  ;;  %v4725_v28 = vld [vmem:[%s5518_s30 + $0x2a4] ss:$24 sps:$4 sm:$0xff]  }
 0x12e   : > { %3402 = vmatprep.subr.bf16.mxu0 %v4653_v29  ;;  %v4624_v29 = vld [vmem:[%s5516_s25 + $0x568] ss:$16 sps:$4 sm:$0xff]  }
 0x12f   : > { %2077 = vmatpush1.bf16.msra.mxu1 %v4549_v15  ;;  %v4617_v15 = vld [vmem:[%s5516_s25 + $0x50c] ss:$16 sps:$4 sm:$0xff]  }
 0x130   : > { %2078 = vmatprep.subr.bf16.mxu1 %v4554_v16  ;;  %v4701_v16 = vld [vmem:[%s5518_s30 + $0x1e4] ss:$24 sps:$4 sm:$0xff]  }
 0x131   : > { %3403 = vmatpush1.bf16.msra.mxu0 %v4651_v32  ;;  %v4731_v32 = vld [vmem:[%s5518_s30 + $0x2d4] ss:$24 sps:$4 sm:$0xff]  }
 0x132   : > { %3404 = vmatprep.subr.bf16.mxu0 %v4659_v33  ;;  %v4627_v33 = vld [vmem:[%s5516_s25 + $0x588] ss:$16 sps:$4 sm:$0xff]  }
 0x133   : > { %2079 = vmatpush1.bf16.msra.mxu1 %v4552_v17  ;;  %v4699_v17 = vld [vmem:[%s5518_s30 + $0x1e0] ss:$24 sps:$4 sm:$0xff]  }
 0x134   : > { %2080 = vmatprep.subr.bf16.mxu1 %v4557_v18  ;;  %v4615_v18 = vld [vmem:[%s5516_s25 + $0x508] ss:$16 sps:$4 sm:$0xff]  }
 0x135   : > { %3405 = vmatpush1.bf16.msra.mxu0 %v4657_v37  ;;  %v4630_v37 = vld [vmem:[%s5516_s25 + $0x5a8] ss:$16 sps:$4 sm:$0xff]  }
 0x136   : > { %3406 = vmatprep.subr.bf16.mxu0 %v4665_v38  ;;  %v4635_v38 = vld [vmem:[%s5516_s25 + $0x5cc] ss:$16 sps:$4 sm:$0xff]  }
 0x137   : > { %2081 = vmatpush1.bf16.msra.mxu1 %v4555_v5  ;;  %v4620_v5 = vld [vmem:[%s5516_s25 + $0x52c] ss:$16 sps:$4 sm:$0xff]  }
 0x138   : > { %2082 = vmatprep.subr.bf16.mxu1 %v4560_v19  ;;  %v4707_v19 = vld [vmem:[%s5518_s30 + $0x214] ss:$24 sps:$4 sm:$0xff]  }
 0x139   : > { %3407 = vmatpush1.bf16.msra.mxu0 %v4663_v41  ;;  %v4638_v41 = vld [vmem:[%s5516_s25 + $0x5ec] ss:$16 sps:$4 sm:$0xff]  }
 0x13a   : > { %3408 = vmatprep.subr.bf16.mxu0 %v4671_v42  ;;  %v4636_v42 = vld [vmem:[%s5516_s25 + $0x5e8] ss:$16 sps:$4 sm:$0xff]  }
 0x13b   : > { %2083 = vmatpush1.bf16.msra.mxu1 %v4558_v52  ;;  %v4705_v52 = vld [vmem:[%s5518_s30 + $0x210] ss:$24 sps:$4 sm:$0xff]  }
 0x13c   : > { %2084 = vmatprep.subr.bf16.mxu1 %v4563_v20  ;;  %v4618_v20 = vld [vmem:[%s5516_s25 + $0x528] ss:$16 sps:$4 sm:$0xff]  }
 0x13d   : > { %3409 = vmatpush1.bf16.msra.mxu0 %v4669_v45  ;;  %v4650_v45 = vld [vmem:[%s5518_s30 + $0x3c] ss:$24 sps:$4 sm:$0xff]  }
 0x13e   : > { %3410 = vmatprep.subr.bf16.mxu0 %v4677_v46  ;;  %v4648_v46 = vld [vmem:[%s5518_s30 + $0x38] ss:$24 sps:$4 sm:$0xff]  }
 0x13f   : > { %2085 = vmatpush1.bf16.msra.mxu1 %v4561_v21  ;;  %v4623_v21 = vld [vmem:[%s5516_s25 + $0x54c] ss:$16 sps:$4 sm:$0xff]  }
 0x140   : > { %2086 = vmatprep.subr.bf16.mxu1 %v4566_v22  ;;  %v4711_v22 = vld [vmem:[%s5518_s30 + $0x240] ss:$24 sps:$4 sm:$0xff]  }
 0x141   : > { %3411 = vmatpush1.bf16.msra.mxu0 %v4675_v49  ;;  %v4662_v49 = vld [vmem:[%s5518_s30 + $0x9c] ss:$24 sps:$4 sm:$0xff]  }
 0x142   : > { %3412 = vmatprep.subr.bf16.mxu0 %v4683_v50  ;;  %v4660_v50 = vld [vmem:[%s5518_s30 + $0x98] ss:$24 sps:$4 sm:$0xff]  }
 0x143   : > { %2087 = vmatpush1.bf16.msra.mxu1 %v4564_v26  ;;  %v4626_v26 = vld [vmem:[%s5516_s25 + $0x56c] ss:$16 sps:$4 sm:$0xff]  }
 0x144   : > { %2088 = vmatprep.subr.bf16.mxu1 %v4569_v27  ;;  %v4717_v27 = vld [vmem:[%s5518_s30 + $0x270] ss:$24 sps:$4 sm:$0xff]  }
 0x145   : > { %3413 = vmatpush1.bf16.msra.mxu0 %v4681_v54  ;;  %v4672_v54 = vld [vmem:[%s5518_s30 + $0xf8] ss:$24 sps:$4 sm:$0xff]  }
 0x146   : > { %3414 = vmatprep.subr.bf16.mxu0 %v4689_v7  ;;  %v4716_v7 = vld [vmem:[%s5518_s30 + $0x24c] ss:$24 sps:$4 sm:$0xff]  }
 0x147   : > { %2089 = vmatpush1.bf16.msra.mxu1 %v4567_v30  ;;  %v4629_v30 = vld [vmem:[%s5516_s25 + $0x58c] ss:$16 sps:$4 sm:$0xff]  }
 0x148   : > { %2090 = vmatprep.subr.bf16.mxu1 %v4572_v31  ;;  %v4723_v31 = vld [vmem:[%s5518_s30 + $0x2a0] ss:$24 sps:$4 sm:$0xff]  }
 0x149   : > { %3415 = vmatpush1.bf16.msra.mxu0 %v4687_v8  ;;  %v4714_v8 = vld [vmem:[%s5518_s30 + $0x248] ss:$24 sps:$4 sm:$0xff]  }
 0x14a   : > { %3416 = vmatprep.subr.bf16.mxu0 %v4695_v12  ;;  %v4728_v12 = vld [vmem:[%s5518_s30 + $0x2ac] ss:$24 sps:$4 sm:$0xff]  }
 0x14b   : > { %2091 = vmatpush1.bf16.msra.mxu1 %v4570_v34  ;;  %v4632_v34 = vld [vmem:[%s5516_s25 + $0x5ac] ss:$16 sps:$4 sm:$0xff]  }
 0x14c   : > { %2092 = vmatprep.subr.bf16.mxu1 %v4575_v36  ;;  %v4729_v36 = vld [vmem:[%s5518_s30 + $0x2d0] ss:$24 sps:$4 sm:$0xff]  }
 0x14d   : > { %3417 = vmatpush1.bf16.msra.mxu0 %v4693_v13  ;;  %v4726_v13 = vld [vmem:[%s5518_s30 + $0x2a8] ss:$24 sps:$4 sm:$0xff]  }
 0x14e   : > { %3418 = vmatprep.subr.bf16.mxu0 %v4701_v16  ;;  %v4740_v16 = vld [vmem:[%s5518_s30 + $0x30c] ss:$24 sps:$4 sm:$0xff]  }
 0x14f   : > { %2093 = vmatpush1.bf16.msra.mxu1 %v4573_v39  ;;  %v4633_v39 = vld [vmem:[%s5516_s25 + $0x5c8] ss:$16 sps:$4 sm:$0xff]  }
 0x150   : > { %2094 = vmatprep.subr.bf16.mxu1 %v4578_v40  ;;  %v4737_v40 = vld [vmem:[%s5518_s30 + $0x304] ss:$24 sps:$4 sm:$0xff]  }
 0x151   : > { %3419 = vmatpush1.bf16.msra.mxu0 %v4699_v17  ;;  %v890_v17 = vlaneseq }
 0x152   : > { %3420 = vmatprep.subr.bf16.mxu0 %v4707_v19  ;;  %v5836_v19 = vld [vmem:[%s671_s18] sm:$0xf] }
 0x153   : > { %2095 = vmatpush1.bf16.msra.mxu1 %v4576_v43  ;;  %v4644_v43 = vld [vmem:[%s5518_s30 + $0xc] ss:$24 sps:$4 sm:$0xff]  }
 0x154   : > { %2096 = vmatprep.subr.bf16.mxu1 %v4581_v44  ;;  %v4642_v44 = vld [vmem:[%s5518_s30 + $0x8] ss:$24 sps:$4 sm:$0xff]  }
 0x155   : > { %3421 = vmatpush1.bf16.msra.mxu0 %v4705_v52 }
 0x156   : > { %3422 = vmatprep.subr.bf16.mxu0 %v4713_v23 }
 0x157   : > { %2097 = vmatpush1.bf16.msra.mxu1 %v4579_v47  ;;  %v4656_v47 = vld [vmem:[%s5518_s30 + $0x6c] ss:$24 sps:$4 sm:$0xff]  }
 0x158   : > { %2098 = vmatprep.subr.bf16.mxu1 %v4584_v48  ;;  %v4654_v48 = vld [vmem:[%s5518_s30 + $0x68] ss:$24 sps:$4 sm:$0xff]  }
 0x159   : > { %3423 = vmatpush1.bf16.msra.mxu0 %v4711_v22 }
 0x15a   : > { %3424 = vmatprep.subr.bf16.mxu0 %v4719_v24 }
 0x15b   : > { %2099 = vmatpush1.bf16.msra.mxu1 %v4582_v51  ;;  %v4668_v51 = vld [vmem:[%s5518_s30 + $0xcc] ss:$24 sps:$4 sm:$0xff]  }
 0x15c   : > { %2100 = vmatprep.subr.bf16.mxu1 %v4587_v53  ;;  %v4666_v53 = vld [vmem:[%s5518_s30 + $0xc8] ss:$24 sps:$4 sm:$0xff]  }
 0x15d   : > { %3425 = vmatpush1.bf16.msra.mxu0 %v4717_v27 }
 0x15e   : > { %3426 = vmatprep.subr.bf16.mxu0 %v4725_v28 }
 0x15f   : > { %2101 = vmatpush1.bf16.msra.mxu1 %v4585_v55  ;;  %v4680_v55 = vld [vmem:[%s5518_s30 + $0x12c] ss:$24 sps:$4 sm:$0xff]  }
 0x160   : > { %2102 = vmatprep.subr.bf16.mxu1 %v4590_v56 }
 0x161   : > { %3427 = vmatpush1.bf16.msra.mxu0 %v4723_v31 }
 0x162   : > { %3428 = vmatprep.subr.bf16.mxu0 %v4731_v32 }
 0x163   : > { %2103 = vmatpush1.bf16.msra.mxu1 %v4588_v57 }
 0x164   : > { %2115 = vmatprep.subr.bf16.mxu1 %v4593_v58 }
 0x165   : > { %3429 = vmatpush1.bf16.msra.mxu0 %v4729_v36 }
 0x166   : > { %2105 = vmatmul.mubr.bf16.vlgmr.msra.gmra.mrb[4].mxu1 %v5615_v6  ;;  %v4603_v6 = vld [vmem:[%s5516_s25 + $0x488] ss:$16 sps:$4 sm:$0xff]   ;;  %3441 = vmatprep.subr.bf16.mxu0 %v4737_v40 }
 0x167   : > { %2116 = vmatpush1.bf16.msra.mxu1 %v4591_v59  ;;  %2147 = vmatprep.mubr.bf16.mxu1 %v5650_v35  ;;  %v4608_v35 = vld [vmem:[%s5516_s25 + $0x4ac] ss:$16 sps:$4 sm:$0xff]   ;;  %v4678_v59 = vld [vmem:[%s5518_s30 + $0x128] ss:$24 sps:$4 sm:$0xff]  }
 0x168   : > { %2117 = vmatprep.subr.bf16.mxu1 %v4596_v60 }
 0x16b   : > { %2118 = vmatpush1.bf16.msra.mxu1 %v4594_v61  ;;  %v4686_v61 = vld [vmem:[%s5518_s30 + $0x15c] ss:$24 sps:$4 sm:$0xff]  }
 0x16c   : > { %2119 = vmatprep.subr.bf16.mxu1 %v4599_v62  ;;  %v4684_v62 = vld [vmem:[%s5518_s30 + $0x158] ss:$24 sps:$4 sm:$0xff]  }
 0x16f   : > { %2120 = vmatpush1.bf16.msra.mxu1 %v4597_v63  ;;  %v4692_v63 = vld [vmem:[%s5518_s30 + $0x18c] ss:$24 sps:$4 sm:$0xff]  }
 0x170   : > { %2121 = vmatprep.subr.bf16.mxu1 %v4602_v0  ;;  %v4690_v0 = vld [vmem:[%s5518_s30 + $0x188] ss:$24 sps:$4 sm:$0xff]  }
 0x173   : > { %2122 = vmatpush1.bf16.msra.mxu1 %v4600_v1  ;;  %v4698_v1 = vld [vmem:[%s5518_s30 + $0x1bc] ss:$24 sps:$4 sm:$0xff]  }
 0x174   : > { %2123 = vmatprep.subr.bf16.mxu1 %v4605_v2  ;;  %v4696_v2 = vld [vmem:[%s5518_s30 + $0x1b8] ss:$24 sps:$4 sm:$0xff]  }
 0x177   : > { %2124 = vmatpush1.bf16.msra.mxu1 %v4603_v6  ;;  %v4704_v6 = vld [vmem:[%s5518_s30 + $0x1ec] ss:$24 sps:$4 sm:$0xff]  }
 0x178   : > { %2125 = vmatprep.subr.bf16.mxu1 %v4608_v35  ;;  %v4702_v35 = vld [vmem:[%s5518_s30 + $0x1e8] ss:$24 sps:$4 sm:$0xff]  }
 0x17b   : > { %2126 = vmatpush1.bf16.msra.mxu1 %v4606_v3  ;;  %v4710_v3 = vld [vmem:[%s5518_s30 + $0x21c] ss:$24 sps:$4 sm:$0xff]  }
 0x17c   : > { %2127 = vmatprep.subr.bf16.mxu1 %v4611_v4  ;;  %v4708_v4 = vld [vmem:[%s5518_s30 + $0x218] ss:$24 sps:$4 sm:$0xff]  }
 0x17f   : > { %2128 = vmatpush1.bf16.msra.mxu1 %v4609_v9  ;;  %v4722_v9 = vld [vmem:[%s5518_s30 + $0x27c] ss:$24 sps:$4 sm:$0xff]  }
 0x180   : > { %2129 = vmatprep.subr.bf16.mxu1 %v4614_v11  ;;  %v4720_v11 = vld [vmem:[%s5518_s30 + $0x278] ss:$24 sps:$4 sm:$0xff]  }
 0x183   : > { %2130 = vmatpush1.bf16.msra.mxu1 %v4612_v14  ;;  %v4734_v14 = vld [vmem:[%s5518_s30 + $0x2dc] ss:$24 sps:$4 sm:$0xff]  }
 0x184   : > { %2131 = vmatprep.subr.bf16.mxu1 %v4617_v15  ;;  %v4732_v15 = vld [vmem:[%s5518_s30 + $0x2d8] ss:$24 sps:$4 sm:$0xff]  }
 0x187   : > { %2132 = vmatpush1.bf16.msra.mxu1 %v4615_v18  ;;  %v5828_v18 = vshrl.u32 %v890_v17, 7  ;;  %v4752_v17 = vld [vmem:[%s5518_s30 + $0x36c] ss:$24 sps:$4 sm:$0xff]  }
 0x188   : > { %2133 = vmatprep.subr.bf16.mxu1 %v4620_v5 }
 0x189   : > { %v892_v5 = vsub.s32 0, %v5828_v18  ;;  %v896_v52 = vsub.s32 1, %v5828_v18 }
 0x18b   : > { %2134 = vmatpush1.bf16.msra.mxu1 %v4618_v20  ;;  %v893_v20 = vrot.slane %v5836_v19, %v892_v5 }
 0x18c   : > { %2135 = vmatprep.subr.bf16.mxu1 %v4623_v21  ;;  %v897_v21 = vrot.slane %v5836_v19, %v896_v52 }
 0x18f   : > { %2136 = vmatpush1.bf16.msra.mxu1 %v4621_v25 }
 0x190   : > { %2137 = vmatprep.subr.bf16.mxu1 %v4626_v26 }
 0x193   : > { %2138 = vmatpush1.bf16.msra.mxu1 %v4624_v29 }
 0x194   : > { %2139 = vmatprep.subr.bf16.mxu1 %v4629_v30 }
 0x197   : > { %2140 = vmatpush1.bf16.msra.mxu1 %v4627_v33 }
 0x198   : > { %2141 = vmatprep.subr.bf16.mxu1 %v4632_v34 }
 0x19b   : > { %2142 = vmatpush1.bf16.msra.mxu1 %v4630_v37 }
 0x19c   : > { %2143 = vmatprep.subr.bf16.mxu1 %v4635_v38 }
 0x19f   : > { %2144 = vmatpush1.bf16.msra.mxu1 %v4633_v39 }
 0x1a0   : > { %2145 = vmatprep.subr.bf16.mxu1 %v4638_v41 }
 0x1a3   : > { %2146 = vmatpush1.bf16.msra.mxu1 %v4636_v42 }
 0x1a4   : > { %3484 = vmatprep.subr.bf16.mxu1 %v4644_v43 }
 0x1a6   : > { %2148 = vmatmul.mubr.bf16.vlgmr.msra.gmra.mrb[4].mxu1 %v5691_v10  ;;  %v4674_v10 = vld [vmem:[%s5518_s30 + $0xfc] ss:$24 sps:$4 sm:$0xff]  }
 0x1a7   : > { %3485 = vmatpush1.bf16.msra.mxu1 %v4642_v44 }
 0x1a8   : > { %3486 = vmatprep.subr.bf16.mxu1 %v4650_v45 }
 0x1ab   : > { %3487 = vmatpush1.bf16.msra.mxu1 %v4648_v46 }
 0x1ac   : > { %3488 = vmatprep.subr.bf16.mxu1 %v4656_v47 }
 0x1af   : > { %3489 = vmatpush1.bf16.msra.mxu1 %v4654_v48 }
 0x1b0   : > { %3490 = vmatprep.subr.bf16.mxu1 %v4662_v49 }
 0x1b3   : > { %3491 = vmatpush1.bf16.msra.mxu1 %v4660_v50 }
 0x1b4   : > { %3492 = vmatprep.subr.bf16.mxu1 %v4668_v51 }
 0x1b7   : > { %3493 = vmatpush1.bf16.msra.mxu1 %v4666_v53 }
 0x1b8   : > { %3494 = vmatprep.subr.bf16.mxu1 %v4674_v10 }
 0x1b9   : > { %v1934_v56 = vpop.f32.mrb[0].mxu1 }
 0x1ba   : > { %v1936_v57 = vpop.f32.mrb[1].mxu1  ;;  %v1935_v22 = vadd.f32 %v1934_v56, %v893_v20 }
 0x1bb   : > { %v1938_v58 = vpop.f32.mrb[2].mxu1  ;;  %3495 = vmatpush1.bf16.msra.mxu1 %v4672_v54  ;;  %v1937_v23 = vadd.f32 %v1936_v57, %v897_v21 }
 0x1bc   : > { %v1940_v60 = vpop.f32.mrb[3].mxu1  ;;  %3496 = vmatprep.subr.bf16.mxu1 %v4680_v55  ;;  %v1939_v25 = vadd.f32 %v1938_v58, %v893_v20  ;;  %v4747_v20 = vld [vmem:[%s5518_s30 + $0x360] ss:$24 sps:$4 sm:$0xff]  }
 0x1bd   : > { %v1941_v28 = vadd.f32 %v1940_v60, %v897_v21  ;;  %v4750_v21 = vld [vmem:[%s5518_s30 + $0x368] ss:$24 sps:$4 sm:$0xff]  }
 0x1bf   : > { %3497 = vmatpush1.bf16.msra.mxu1 %v4678_v59 }
 0x1c0   : > { %3498 = vmatprep.subr.bf16.mxu1 %v4686_v61 }
 0x1c3   : > { %3499 = vmatpush1.bf16.msra.mxu1 %v4684_v62 }
 0x1c4   : > { %3500 = vmatprep.subr.bf16.mxu1 %v4692_v63 }
 0x1c7   : > { %3501 = vmatpush1.bf16.msra.mxu1 %v4690_v0 }
 0x1c8   : > { %3502 = vmatprep.subr.bf16.mxu1 %v4698_v1 }
 0x1cb   : > { %3503 = vmatpush1.bf16.msra.mxu1 %v4696_v2 }
 0x1cc   : > { %3504 = vmatprep.subr.bf16.mxu1 %v4704_v6 }
 0x1cf   : > { %3505 = vmatpush1.bf16.msra.mxu1 %v4702_v35 }
 0x1d0   : > { %3506 = vmatprep.subr.bf16.mxu1 %v4710_v3 }
 0x1d3   : > { %3507 = vmatpush1.bf16.msra.mxu1 %v4708_v4 }
 0x1d4   : > { %3508 = vmatprep.subr.bf16.mxu1 %v4716_v7 }
 0x1d7   : > { %3509 = vmatpush1.bf16.msra.mxu1 %v4714_v8 }
 0x1d8   : > { %3510 = vmatprep.subr.bf16.mxu1 %v4722_v9  ;;  %v4735_v9 = vld [vmem:[%s5518_s30 + $0x300] ss:$24 sps:$4 sm:$0xff]  }
 0x1db   : > { %3511 = vmatpush1.bf16.msra.mxu1 %v4720_v11  ;;  %v4738_v11 = vld [vmem:[%s5518_s30 + $0x308] ss:$24 sps:$4 sm:$0xff]  }
 0x1dc   : > { %3512 = vmatprep.subr.bf16.mxu1 %v4728_v12  ;;  %v4743_v12 = vld [vmem:[%s5518_s30 + $0x334] ss:$24 sps:$4 sm:$0xff]  }
 0x1df   : > { %3513 = vmatpush1.bf16.msra.mxu1 %v4726_v13  ;;  %v4746_v13 = vld [vmem:[%s5518_s30 + $0x33c] ss:$24 sps:$4 sm:$0xff]  }
 0x1e0   : > { %3514 = vmatprep.subr.bf16.mxu1 %v4734_v14  ;;  %v4741_v14 = vld [vmem:[%s5518_s30 + $0x330] ss:$24 sps:$4 sm:$0xff]  }
 0x1e3   : > { %3515 = vmatpush1.bf16.msra.mxu1 %v4732_v15  ;;  %v4744_v15 = vld [vmem:[%s5518_s30 + $0x338] ss:$24 sps:$4 sm:$0xff]  }
 0x1e4   : > { %3527 = vmatprep.subr.bf16.mxu1 %v4740_v16  ;;  %v4749_v16 = vld [vmem:[%s5518_s30 + $0x364] ss:$24 sps:$4 sm:$0xff]  }
 0x1fa   : > { %v2020_v24 = vpop.f32.mrb[0].mxu0 }
 0x1fb   : > { %v4266_v26 = vadd.f32 %v2020_v24, %v1935_v22  ;;  %v2022_v27 = vpop.f32.mrb[1].mxu0  ;;  %v4755_v22 = vld [vmem:[%s5518_s30 + $0x394] ss:$24 sps:$4 sm:$0xff]   ;;  %v4753_v24 = vld [vmem:[%s5518_s30 + $0x390] ss:$24 sps:$4 sm:$0xff]  }
 0x1fc   : > { %v4268_v29 = vadd.f32 %v2022_v27, %v1937_v23  ;;  %v2024_v30 = vpop.f32.mrb[2].mxu0  ;;  %v4758_v23 = vld [vmem:[%s5518_s30 + $0x39c] ss:$24 sps:$4 sm:$0xff]   ;;  %v4764_v27 = vld [vmem:[%s5518_s30 + $0x3cc] ss:$24 sps:$4 sm:$0xff]  }
 0x1fd   : > { %v2166_v31 = vmul.f32 0.044715, %v4266_v26  ;;  %v4270_v32 = vadd.f32 %v2024_v30, %v1939_v25  ;;  %v2026_v33 = vpop.f32.mrb[3].mxu0  ;;  %v2158_v61 = vmul.f32 0.5, %v4266_v26  ;;  %v4756_v25 = vld [vmem:[%s5518_s30 + $0x398] ss:$24 sps:$4 sm:$0xff]  }
 0x1fe   : > { %v2167_v34 = vmul.f32 0.044715, %v4268_v29  ;;  %v4272_v36 = vadd.f32 %v2026_v33, %v1941_v28  ;;  %v2159_v0 = vmul.f32 0.5, %v4268_v29  ;;  %v4759_v28 = vld [vmem:[%s5518_s30 + $0x3c0] ss:$24 sps:$4 sm:$0xff]  }
 0x1ff   : > { %v2174_v37 = vmul.f32 %v4266_v26, %v2166_v31  ;;  %v2170_v38 = vmul.f32 0.044715, %v4270_v32  ;;  %v2162_v62 = vmul.f32 0.5, %v4270_v32  ;;  %v4767_v30 = vld [vmem:[%s5518_s30 + $0x3f4] ss:$24 sps:$4 sm:$0xff]  }
 0x200   : > { %v2175_v39 = vmul.f32 %v4268_v29, %v2167_v34  ;;  %v2171_v40 = vmul.f32 0.044715, %v4272_v36  ;;  %v2163_v1 = vmul.f32 0.5, %v4272_v36  ;;  %v4770_v31 = vld [vmem:[%s5518_s30 + $0x3fc] ss:$24 sps:$4 sm:$0xff]  }
 0x201   : > { %v2182_v41 = vmul.f32 %v4266_v26, %v2174_v37  ;;  %v2178_v42 = vmul.f32 %v4270_v32, %v2170_v38  ;;  %v4768_v33 = vld [vmem:[%s5518_s30 + $0x3f8] ss:$24 sps:$4 sm:$0xff]   ;;  %v4773_v34 = vld [vmem:[%s5518_s30 + $0x424] ss:$24 sps:$4 sm:$0xff]   ;;  %v4774_v38 = vld [vmem:[%s5518_s30 + $0x428] ss:$24 sps:$4 sm:$0xff]  }
 0x202   : > { %v2183_v43 = vmul.f32 %v4268_v29, %v2175_v39  ;;  %v2179_v44 = vmul.f32 %v4272_v36, %v2171_v40  ;;  %v4771_v37 = vld [vmem:[%s5518_s30 + $0x420] ss:$24 sps:$4 sm:$0xff]   ;;  %v4779_v39 = vld [vmem:[%s5518_s30 + $0x454] ss:$24 sps:$4 sm:$0xff]  }
 0x203   : > { %v2190_v45 = vadd.f32 %v4266_v26, %v2182_v41  ;;  %v2186_v46 = vmul.f32 %v4270_v32, %v2178_v42  ;;  %v4761_v26 = vld [vmem:[%s5518_s30 + $0x3c4] ss:$24 sps:$4 sm:$0xff]   ;;  %v4777_v41 = vld [vmem:[%s5518_s30 + $0x450] ss:$24 sps:$4 sm:$0xff]  }
 0x204   : > { %v2187_v47 = vmul.f32 %v4272_v36, %v2179_v44  ;;  %v2191_v48 = vadd.f32 %v4268_v29, %v2183_v43  ;;  %v4762_v29 = vld [vmem:[%s5518_s30 + $0x3c8] ss:$24 sps:$4 sm:$0xff]   ;;  %v4782_v40 = vld [vmem:[%s5518_s30 + $0x45c] ss:$24 sps:$4 sm:$0xff]   ;;  %v4780_v42 = vld [vmem:[%s5518_s30 + $0x458] ss:$24 sps:$4 sm:$0xff]  }
 0x205   : > { %v2198_v49 = vmul.f32 0.7978846, %v2190_v45  ;;  %v2194_v50 = vadd.f32 %v4270_v32, %v2186_v46  ;;  %v4765_v32 = vld [vmem:[%s5518_s30 + $0x3f0] ss:$24 sps:$4 sm:$0xff]   ;;  %v4785_v43 = vld [vmem:[%s5518_s30 + $0x484] ss:$24 sps:$4 sm:$0xff]  }
 0x206   : > { %v2195_v51 = vadd.f32 %v4272_v36, %v2187_v47  ;;  %v2199_v53 = vmul.f32 0.7978846, %v2191_v48  ;;  %v4776_v36 = vld [vmem:[%s5518_s30 + $0x42c] ss:$24 sps:$4 sm:$0xff]   ;;  %v4783_v45 = vld [vmem:[%s5518_s30 + $0x480] ss:$24 sps:$4 sm:$0xff]  }
 0x207   : > { %4927 = vtanh.f32 %v2198_v49  ;;  %v2202_v10 = vmul.f32 0.7978846, %v2194_v50  ;;  %v4788_v44 = vld [vmem:[%s5518_s30 + $0x48c] ss:$24 sps:$4 sm:$0xff]   ;;  %v4786_v46 = vld [vmem:[%s5518_s30 + $0x488] ss:$24 sps:$4 sm:$0xff]  }
 0x208   : > { %v2203_v54 = vmul.f32 0.7978846, %v2195_v51  ;;  %4929 = vtanh.f32 %v2199_v53  ;;  %v4791_v47 = vld [vmem:[%s5518_s30 + $0x4b4] ss:$24 sps:$4 sm:$0xff]   ;;  %v4789_v49 = vld [vmem:[%s5518_s30 + $0x4b0] ss:$24 sps:$4 sm:$0xff]  }
 0x209   : > { %4931 = vtanh.f32 %v2202_v10  ;;  %v4794_v48 = vld [vmem:[%s5518_s30 + $0x4bc] ss:$24 sps:$4 sm:$0xff]   ;;  %v4792_v50 = vld [vmem:[%s5518_s30 + $0x4b8] ss:$24 sps:$4 sm:$0xff]   ;;  %v4800_v53 = vld [vmem:[%s5518_s30 + $0x4ec] ss:$24 sps:$4 sm:$0xff]  }
 0x20a   : > { %4933 = vtanh.f32 %v2203_v54  ;;  %v4797_v51 = vld [vmem:[%s5518_s30 + $0x4e4] ss:$24 sps:$4 sm:$0xff]   ;;  %v4795_v10 = vld [vmem:[%s5518_s30 + $0x4e0] ss:$24 sps:$4 sm:$0xff]  }
 0x20b   : > { %v4798_v54 = vld [vmem:[%s5518_s30 + $0x4e8] ss:$24 sps:$4 sm:$0xff]  }
 0x211   : > { %v4928_v55 = vpop.eup %4927 }
 0x212   : > { %v4930_v56 = vpop.eup %4929  ;;  %v2214_v57 = vadd.f32 1.0, %v4928_v55  ;;  %v4803_v55 = vld [vmem:[%s5518_s30 + $0x514] ss:$24 sps:$4 sm:$0xff]  }
 0x213   : > { %v4932_v58 = vpop.eup %4931  ;;  %v2215_v59 = vadd.f32 1.0, %v4930_v56  ;;  %v4806_v56 = vld [vmem:[%s5518_s30 + $0x51c] ss:$24 sps:$4 sm:$0xff]  }
 0x214   : > { %v4934_v60 = vpop.eup %4933  ;;  %v2218_v63 = vadd.f32 1.0, %v4932_v58  ;;  %v2222_v6 = vmul.f32 %v2214_v57, %v2158_v61  ;;  %v4801_v57 = vld [vmem:[%s5518_s30 + $0x510] ss:$24 sps:$4 sm:$0xff]   ;;  %v4807_v61 = vld [vmem:[%s5518_s30 + $0x540] ss:$24 sps:$4 sm:$0xff]  }
 0x215   : > { %v2219_v2 = vadd.f32 1.0, %v4934_v60  ;;  %v2223_v3 = vmul.f32 %v2215_v59, %v2159_v0  ;;  %v4804_v58 = vld [vmem:[%s5518_s30 + $0x518] ss:$24 sps:$4 sm:$0xff]   ;;  %v4809_v59 = vld [vmem:[%s5518_s30 + $0x544] ss:$24 sps:$4 sm:$0xff]  }
 0x216   : > { %v2226_v35 = vmul.f32 %v2218_v63, %v2162_v62  ;;  %v4812_v60 = vld [vmem:[%s5518_s30 + $0x54c] ss:$24 sps:$4 sm:$0xff]   ;;  %v4810_v62 = vld [vmem:[%s5518_s30 + $0x548] ss:$24 sps:$4 sm:$0xff]   ;;  %v4818_v0 = vld [vmem:[%s5518_s30 + $0x57c] ss:$24 sps:$4 sm:$0xff]  }
 0x217   : > { %v2227_v4 = vmul.f32 %v2219_v2, %v2163_v1  ;;  %v4815_v63 = vld [vmem:[%s5518_s30 + $0x574] ss:$24 sps:$4 sm:$0xff]   ;;  %v4813_v1 = vld [vmem:[%s5518_s30 + $0x570] ss:$24 sps:$4 sm:$0xff]  }
 0x218   : > { %v5845_v7 = vpack.c.bf16 %v2226_v35, %v2222_v6  ;;  %v4816_v2 = vld [vmem:[%s5518_s30 + $0x578] ss:$24 sps:$4 sm:$0xff]   ;;  %v4821_v6 = vld [vmem:[%s5518_s30 + $0x5a4] ss:$24 sps:$4 sm:$0xff]  }
 0x219   : > { %v5847_v8 = vpack.c.bf16 %v2227_v4, %v2223_v3  ;;  %v4824_v35 = vld [vmem:[%s5518_s30 + $0x5ac] ss:$24 sps:$4 sm:$0xff]   ;;  %v4819_v3 = vld [vmem:[%s5518_s30 + $0x5a0] ss:$24 sps:$4 sm:$0xff]  }
 0x21a   : > { %v4822_v4 = vld [vmem:[%s5518_s30 + $0x5a8] ss:$24 sps:$4 sm:$0xff]  }
 0x21b   : > { %3430 = vmatprep.mubr.bf16.mxu0 %v5847_v8  ;;  %3516 = vmatprep.mubr.bf16.mxu1 %v5847_v8 }
 0x21c   : > { %3431 = vmatmul.mubr.bf16.vlgmr.msra.gmra.mrb[4].mxu0 %v5845_v7  ;;  %3517 = vmatmul.mubr.bf16.vlgmr.msra.gmra.mrb[8].mxu1 %v5845_v7 }
 0x21d   : > { %3442 = vmatpush1.bf16.msra.mxu0 %v4735_v9  ;;  %3528 = vmatpush1.bf16.msra.mxu1 %v4738_v11  ;;  %v4827_v9 = vld [vmem:[%s5518_s30 + $0x5d4] ss:$24 sps:$4 sm:$0xff]  }
 0x21e   : > { %3443 = vmatprep.subr.bf16.mxu0 %v4743_v12  ;;  %3529 = vmatprep.subr.bf16.mxu1 %v4746_v13  ;;  %v4830_v11 = vld [vmem:[%s5518_s30 + $0x5dc] ss:$24 sps:$4 sm:$0xff]   ;;  %v4825_v12 = vld [vmem:[%s5518_s30 + $0x5d0] ss:$24 sps:$4 sm:$0xff]  }
 0x21f   : > { %v4828_v13 = vld [vmem:[%s5518_s30 + $0x5d8] ss:$24 sps:$4 sm:$0xff]  }
 0x221   : > { %3444 = vmatpush1.bf16.msra.mxu0 %v4741_v14  ;;  %3530 = vmatpush1.bf16.msra.mxu1 %v4744_v15  ;;  %v4833_v14 = vld [vmem:[%s5518_s30 + $0x14] ss:$24 sps:$4 sm:$0xff]   ;;  %v900_v15 = vsub.s32 2, %v5828_v18 }
 0x222   : > { %3445 = vmatprep.subr.bf16.mxu0 %v4749_v16  ;;  %3531 = vmatprep.subr.bf16.mxu1 %v4752_v17  ;;  %v904_v16 = vsub.s32 3, %v5828_v18 }
 0x223   : > { %v901_v17 = vrot.slane %v5836_v19, %v900_v15 }
 0x225   : > { %3446 = vmatpush1.bf16.msra.mxu0 %v4747_v20  ;;  %3532 = vmatpush1.bf16.msra.mxu1 %v4750_v21  ;;  %v905_v20 = vrot.slane %v5836_v19, %v904_v16 }
 0x226   : > { %3447 = vmatprep.subr.bf16.mxu0 %v4755_v22  ;;  %3533 = vmatprep.subr.bf16.mxu1 %v4758_v23 }
 0x229   : > { %3448 = vmatpush1.bf16.msra.mxu0 %v4753_v24  ;;  %3534 = vmatpush1.bf16.msra.mxu1 %v4756_v25 }
 0x22a   : > { %3449 = vmatprep.subr.bf16.mxu0 %v4761_v26  ;;  %3535 = vmatprep.subr.bf16.mxu1 %v4764_v27 }
 0x22d   : > { %3450 = vmatpush1.bf16.msra.mxu0 %v4759_v28  ;;  %3536 = vmatpush1.bf16.msra.mxu1 %v4762_v29 }
 0x22e   : > { %3451 = vmatprep.subr.bf16.mxu0 %v4767_v30  ;;  %3537 = vmatprep.subr.bf16.mxu1 %v4770_v31 }
 0x231   : > { %3452 = vmatpush1.bf16.msra.mxu0 %v4765_v32  ;;  %3538 = vmatpush1.bf16.msra.mxu1 %v4768_v33 }
 0x232   : > { %3453 = vmatprep.subr.bf16.mxu0 %v4773_v34  ;;  %3539 = vmatprep.subr.bf16.mxu1 %v4776_v36 }
 0x235   : > { %3454 = vmatpush1.bf16.msra.mxu0 %v4771_v37  ;;  %3540 = vmatpush1.bf16.msra.mxu1 %v4774_v38 }
 0x236   : > { %3455 = vmatprep.subr.bf16.mxu0 %v4779_v39  ;;  %3541 = vmatprep.subr.bf16.mxu1 %v4782_v40 }
 0x239   : > { %3456 = vmatpush1.bf16.msra.mxu0 %v4777_v41  ;;  %3542 = vmatpush1.bf16.msra.mxu1 %v4780_v42 }
 0x23a   : > { %3457 = vmatprep.subr.bf16.mxu0 %v4785_v43  ;;  %3543 = vmatprep.subr.bf16.mxu1 %v4788_v44 }
 0x23d   : > { %3458 = vmatpush1.bf16.msra.mxu0 %v4783_v45  ;;  %3544 = vmatpush1.bf16.msra.mxu1 %v4786_v46 }
 0x23e   : > { %3459 = vmatprep.subr.bf16.mxu0 %v4791_v47  ;;  %3545 = vmatprep.subr.bf16.mxu1 %v4794_v48 }
 0x241   : > { %3460 = vmatpush1.bf16.msra.mxu0 %v4789_v49  ;;  %3546 = vmatpush1.bf16.msra.mxu1 %v4792_v50 }
 0x242   : > { %3461 = vmatprep.subr.bf16.mxu0 %v4797_v51  ;;  %3547 = vmatprep.subr.bf16.mxu1 %v4800_v53 }
 0x245   : > { %3462 = vmatpush1.bf16.msra.mxu0 %v4795_v10  ;;  %3548 = vmatpush1.bf16.msra.mxu1 %v4798_v54 }
 0x246   : > { %3463 = vmatprep.subr.bf16.mxu0 %v4803_v55  ;;  %3549 = vmatprep.subr.bf16.mxu1 %v4806_v56 }
 0x249   : > { %3464 = vmatpush1.bf16.msra.mxu0 %v4801_v57  ;;  %3550 = vmatpush1.bf16.msra.mxu1 %v4804_v58 }
 0x24a   : > { %3465 = vmatprep.subr.bf16.mxu0 %v4809_v59  ;;  %3551 = vmatprep.subr.bf16.mxu1 %v4812_v60 }
 0x24d   : > { %3466 = vmatpush1.bf16.msra.mxu0 %v4807_v61  ;;  %3552 = vmatpush1.bf16.msra.mxu1 %v4810_v62 }
 0x24e   : > { %3467 = vmatprep.subr.bf16.mxu0 %v4815_v63  ;;  %3553 = vmatprep.subr.bf16.mxu1 %v4818_v0 }
 0x251   : > { %3468 = vmatpush1.bf16.msra.mxu0 %v4813_v1  ;;  %3554 = vmatpush1.bf16.msra.mxu1 %v4816_v2 }
 0x252   : > { %3469 = vmatprep.subr.bf16.mxu0 %v4821_v6  ;;  %3555 = vmatprep.subr.bf16.mxu1 %v4824_v35  ;;  %v4831_v6 = vld [vmem:[%s5518_s30 + $0x10] ss:$24 sps:$4 sm:$0xff]   ;;  %v4836_v35 = vld [vmem:[%s5518_s30 + $0x44] ss:$24 sps:$4 sm:$0xff]  }
 0x255   : > { %3470 = vmatpush1.bf16.msra.mxu0 %v4819_v3  ;;  %3556 = vmatpush1.bf16.msra.mxu1 %v4822_v4  ;;  %v4834_v3 = vld [vmem:[%s5518_s30 + $0x40] ss:$24 sps:$4 sm:$0xff]   ;;  %v4839_v4 = vld [vmem:[%s5518_s30 + $0x74] ss:$24 sps:$4 sm:$0xff]  }
 0x256   : > { %3471 = vmatprep.subr.bf16.mxu0 %v4827_v9  ;;  %3557 = vmatprep.subr.bf16.mxu1 %v4830_v11  ;;  %v4837_v9 = vld [vmem:[%s5518_s30 + $0x70] ss:$24 sps:$4 sm:$0xff]   ;;  %v4842_v11 = vld [vmem:[%s5518_s30 + $0xa4] ss:$24 sps:$4 sm:$0xff]  }
 0x259   : > { %3472 = vmatpush1.bf16.msra.mxu0 %v4825_v12  ;;  %3558 = vmatpush1.bf16.msra.mxu1 %v4828_v13  ;;  %v4840_v12 = vld [vmem:[%s5518_s30 + $0xa0] ss:$24 sps:$4 sm:$0xff]   ;;  %v4845_v13 = vld [vmem:[%s5518_s30 + $0xd4] ss:$24 sps:$4 sm:$0xff]  }
 0x25a   : > { %3570 = vmatprep.subr.bf16.mxu0 %v4833_v14  ;;  %v4843_v14 = vld [vmem:[%s5518_s30 + $0xd0] ss:$24 sps:$4 sm:$0xff]  }
 0x279   : > { %v2149_v21 = vpop.f32.mrb[4].mxu1 }
 0x27a   : > { %v4273_v22 = vadd.f32 %v2149_v21, %v901_v17  ;;  %v2151_v23 = vpop.f32.mrb[5].mxu1  ;;  %v4849_v21 = vld [vmem:[%s5518_s30 + $0x130] ss:$24 sps:$4 sm:$0xff]  }
 0x27b   : > { %v4274_v24 = vadd.f32 %v2151_v23, %v905_v20  ;;  %v2153_v25 = vpop.f32.mrb[6].mxu1  ;;  %v4852_v23 = vld [vmem:[%s5518_s30 + $0x160] ss:$24 sps:$4 sm:$0xff]  }
 0x27c   : > { %v2168_v26 = vmul.f32 0.044715, %v4273_v22  ;;  %v4275_v27 = vadd.f32 %v2153_v25, %v901_v17  ;;  %v2155_v28 = vpop.f32.mrb[7].mxu1  ;;  %v2160_v55 = vmul.f32 0.5, %v4273_v22  ;;  %v4846_v17 = vld [vmem:[%s5518_s30 + $0x100] ss:$24 sps:$4 sm:$0xff]  }
 0x27d   : > { %v2169_v29 = vmul.f32 0.044715, %v4274_v24  ;;  %v4276_v30 = vadd.f32 %v2155_v28, %v905_v20  ;;  %v2161_v58 = vmul.f32 0.5, %v4274_v24  ;;  %v4851_v20 = vld [vmem:[%s5518_s30 + $0x134] ss:$24 sps:$4 sm:$0xff]  }
 0x27e   : > { %v2176_v31 = vmul.f32 %v4273_v22, %v2168_v26  ;;  %v2172_v32 = vmul.f32 0.044715, %v4275_v27  ;;  %v2164_v56 = vmul.f32 0.5, %v4275_v27  ;;  %v4855_v25 = vld [vmem:[%s5518_s30 + $0x190] ss:$24 sps:$4 sm:$0xff]  }
 0x27f   : > { %v2177_v33 = vmul.f32 %v4274_v24, %v2169_v29  ;;  %v2173_v34 = vmul.f32 0.044715, %v4276_v30  ;;  %v2165_v59 = vmul.f32 0.5, %v4276_v30  ;;  %v4860_v26 = vld [vmem:[%s5518_s30 + $0x1c4] ss:$24 sps:$4 sm:$0xff]  }
 0x280   : > { %v2184_v36 = vmul.f32 %v4273_v22, %v2176_v31  ;;  %v2180_v37 = vmul.f32 %v4275_v27, %v2172_v32  ;;  %v4863_v28 = vld [vmem:[%s5518_s30 + $0x1f4] ss:$24 sps:$4 sm:$0xff]   ;;  %v4861_v29 = vld [vmem:[%s5518_s30 + $0x1f0] ss:$24 sps:$4 sm:$0xff]   ;;  %v4864_v31 = vld [vmem:[%s5518_s30 + $0x220] ss:$24 sps:$4 sm:$0xff]  }
 0x281   : > { %v2185_v38 = vmul.f32 %v4274_v24, %v2177_v33  ;;  %v2181_v39 = vmul.f32 %v4276_v30, %v2173_v34  ;;  %v4869_v32 = vld [vmem:[%s5518_s30 + $0x254] ss:$24 sps:$4 sm:$0xff]   ;;  %v4867_v33 = vld [vmem:[%s5518_s30 + $0x250] ss:$24 sps:$4 sm:$0xff]   ;;  %v4872_v34 = vld [vmem:[%s5518_s30 + $0x284] ss:$24 sps:$4 sm:$0xff]  }
 0x282   : > { %v2192_v40 = vadd.f32 %v4273_v22, %v2184_v36  ;;  %v2188_v19 = vmul.f32 %v4275_v27, %v2180_v37  ;;  %v4854_v22 = vld [vmem:[%s5518_s30 + $0x164] ss:$24 sps:$4 sm:$0xff]   ;;  %v4870_v36 = vld [vmem:[%s5518_s30 + $0x280] ss:$24 sps:$4 sm:$0xff]   ;;  %v4875_v37 = vld [vmem:[%s5518_s30 + $0x2b4] ss:$24 sps:$4 sm:$0xff]  }
 0x283   : > { %v2189_v41 = vmul.f32 %v4276_v30, %v2181_v39  ;;  %v2193_v42 = vadd.f32 %v4274_v24, %v2185_v38  ;;  %v4857_v24 = vld [vmem:[%s5518_s30 + $0x194] ss:$24 sps:$4 sm:$0xff]   ;;  %v4873_v38 = vld [vmem:[%s5518_s30 + $0x2b0] ss:$24 sps:$4 sm:$0xff]   ;;  %v4878_v39 = vld [vmem:[%s5518_s30 + $0x2e4] ss:$24 sps:$4 sm:$0xff]  }
 0x284   : > { %v2200_v43 = vmul.f32 0.7978846, %v2192_v40  ;;  %v2196_v44 = vadd.f32 %v4275_v27, %v2188_v19  ;;  %v4858_v27 = vld [vmem:[%s5518_s30 + $0x1c0] ss:$24 sps:$4 sm:$0xff]   ;;  %v4881_v19 = vld [vmem:[%s5518_s30 + $0x314] ss:$24 sps:$4 sm:$0xff]  }
 0x285   : > { %v2197_v45 = vadd.f32 %v4276_v30, %v2189_v41  ;;  %v2201_v46 = vmul.f32 0.7978846, %v2193_v42  ;;  %v4866_v30 = vld [vmem:[%s5518_s30 + $0x224] ss:$24 sps:$4 sm:$0xff]   ;;  %v4876_v40 = vld [vmem:[%s5518_s30 + $0x2e0] ss:$24 sps:$4 sm:$0xff]  }
 0x286   : > { %4935 = vtanh.f32 %v2200_v43  ;;  %v2204_v47 = vmul.f32 0.7978846, %v2196_v44  ;;  %v4879_v41 = vld [vmem:[%s5518_s30 + $0x310] ss:$24 sps:$4 sm:$0xff]   ;;  %v4884_v42 = vld [vmem:[%s5518_s30 + $0x344] ss:$24 sps:$4 sm:$0xff]  }
 0x287   : > { %v2205_v48 = vmul.f32 0.7978846, %v2197_v45  ;;  %4937 = vtanh.f32 %v2201_v46  ;;  %v4882_v43 = vld [vmem:[%s5518_s30 + $0x340] ss:$24 sps:$4 sm:$0xff]   ;;  %v4887_v44 = vld [vmem:[%s5518_s30 + $0x374] ss:$24 sps:$4 sm:$0xff]  }
 0x288   : > { %4939 = vtanh.f32 %v2204_v47  ;;  %v4885_v45 = vld [vmem:[%s5518_s30 + $0x370] ss:$24 sps:$4 sm:$0xff]   ;;  %v4890_v46 = vld [vmem:[%s5518_s30 + $0x3a4] ss:$24 sps:$4 sm:$0xff]   ;;  %v4888_v47 = vld [vmem:[%s5518_s30 + $0x3a0] ss:$24 sps:$4 sm:$0xff]  }
 0x289   : > { %4941 = vtanh.f32 %v2205_v48  ;;  %v4891_v48 = vld [vmem:[%s5518_s30 + $0x3d0] ss:$24 sps:$4 sm:$0xff]  }
 0x290   : > { %v4936_v49 = vpop.eup %4935 }
 0x291   : > { %v4938_v50 = vpop.eup %4937  ;;  %v2216_v51 = vadd.f32 1.0, %v4936_v49  ;;  %v4896_v49 = vld [vmem:[%s5518_s30 + $0x404] ss:$24 sps:$4 sm:$0xff]  }
 0x292   : > { %v4940_v53 = vpop.eup %4939  ;;  %v2217_v10 = vadd.f32 1.0, %v4938_v50  ;;  %v4894_v50 = vld [vmem:[%s5518_s30 + $0x400] ss:$24 sps:$4 sm:$0xff]  }
 0x293   : > { %v4942_v54 = vpop.eup %4941  ;;  %v2220_v57 = vadd.f32 1.0, %v4940_v53  ;;  %v2224_v61 = vmul.f32 %v2216_v51, %v2160_v55  ;;  %v4899_v51 = vld [vmem:[%s5518_s30 + $0x434] ss:$24 sps:$4 sm:$0xff]   ;;  %v4897_v53 = vld [vmem:[%s5518_s30 + $0x430] ss:$24 sps:$4 sm:$0xff]  }
 0x294   : > { %v2221_v60 = vadd.f32 1.0, %v4942_v54  ;;  %v2225_v63 = vmul.f32 %v2217_v10, %v2161_v58  ;;  %v4902_v10 = vld [vmem:[%s5518_s30 + $0x464] ss:$24 sps:$4 sm:$0xff]   ;;  %v4900_v54 = vld [vmem:[%s5518_s30 + $0x460] ss:$24 sps:$4 sm:$0xff]  }
 0x295   : > { %v2228_v62 = vmul.f32 %v2220_v57, %v2164_v56  ;;  %v4905_v55 = vld [vmem:[%s5518_s30 + $0x494] ss:$24 sps:$4 sm:$0xff]   ;;  %v4903_v56 = vld [vmem:[%s5518_s30 + $0x490] ss:$24 sps:$4 sm:$0xff]   ;;  %v4908_v57 = vld [vmem:[%s5518_s30 + $0x4c4] ss:$24 sps:$4 sm:$0xff]  }
 0x296   : > { %v2229_v0 = vmul.f32 %v2221_v60, %v2165_v59  ;;  %v4906_v58 = vld [vmem:[%s5518_s30 + $0x4c0] ss:$24 sps:$4 sm:$0xff]   ;;  %v4911_v59 = vld [vmem:[%s5518_s30 + $0x4f4] ss:$24 sps:$4 sm:$0xff]   ;;  %v4909_v60 = vld [vmem:[%s5518_s30 + $0x4f0] ss:$24 sps:$4 sm:$0xff]  }
 0x297   : > { %v5924_v1 = vpack.c.bf16 %v2228_v62, %v2224_v61  ;;  %v4914_v61 = vld [vmem:[%s5518_s30 + $0x524] ss:$24 sps:$4 sm:$0xff]   ;;  %v4912_v62 = vld [vmem:[%s5518_s30 + $0x520] ss:$24 sps:$4 sm:$0xff]  }
 0x298   : > { %v5926_v2 = vpack.c.bf16 %v2229_v0, %v2225_v63  ;;  %v4917_v63 = vld [vmem:[%s5518_s30 + $0x554] ss:$24 sps:$4 sm:$0xff]   ;;  %v4915_v0 = vld [vmem:[%s5518_s30 + $0x550] ss:$24 sps:$4 sm:$0xff]  }
 0x29a   : > { %3473 = vmatprep.mubr.bf16.mxu0 %v5926_v2  ;;  %3559 = vmatprep.mubr.bf16.mxu1 %v5926_v2 }
 0x29b   : > { %3474 = vmatmul.mubr.bf16.vlgmr.msra.gmra.mrb[4].mxu0 %v5924_v1  ;;  %3560 = vmatmul.mubr.bf16.vlgmr.msra.gmra.mrb[8].mxu1 %v5924_v1 }
 0x29c   : > { %3571 = vmatpush1.bf16.msra.mxu0 %v4831_v6  ;;  %3602 = vmatprep.mubr.bf16.mxu0 %v5847_v8  ;;  %v4848_v8 = vld [vmem:[%s5518_s30 + $0x104] ss:$24 sps:$4 sm:$0xff]   ;;  %v4918_v6 = vld [vmem:[%s5518_s30 + $0x580] ss:$24 sps:$4 sm:$0xff]  }
 0x29d   : > { %3572 = vmatprep.subr.bf16.mxu0 %v4836_v35  ;;  %v4923_v35 = vld [vmem:[%s5518_s30 + $0x5b4] ss:$24 sps:$4 sm:$0xff]  }
 0x2a0   : > { %3573 = vmatpush1.bf16.msra.mxu0 %v4834_v3  ;;  %v4921_v3 = vld [vmem:[%s5518_s30 + $0x5b0] ss:$24 sps:$4 sm:$0xff]  }
 0x2a1   : > { %3574 = vmatprep.subr.bf16.mxu0 %v4839_v4  ;;  %v4926_v4 = vld [vmem:[%s5518_s30 + $0x5e4] ss:$24 sps:$4 sm:$0xff]  }
 0x2a4   : > { %3575 = vmatpush1.bf16.msra.mxu0 %v4837_v9  ;;  %v4924_v9 = vld [vmem:[%s5518_s30 + $0x5e0] ss:$24 sps:$4 sm:$0xff]  }
 0x2a5   : > { %3576 = vmatprep.subr.bf16.mxu0 %v4842_v11  ;;  %v2230_v11 = vld [vmem:[#allocation2] sm:$0xff] }
 0x2a8   : > { %3577 = vmatpush1.bf16.msra.mxu0 %v4840_v12  ;;  %v2232_v12 = vld [vmem:[#allocation2 + $0x10] sm:$0xff] }
 0x2a9   : > { %3578 = vmatprep.subr.bf16.mxu0 %v4845_v13  ;;  %v2231_v13 = vld [vmem:[#allocation2 + $0x8] sm:$0xff] }
 0x2ac   : > { %3579 = vmatpush1.bf16.msra.mxu0 %v4843_v14  ;;  %v2233_v14 = vld [vmem:[#allocation2 + $0x18] sm:$0xff] }
 0x2ad   : > { %3580 = vmatprep.subr.bf16.mxu0 %v4848_v8 }
 0x2b0   : > { %3581 = vmatpush1.bf16.msra.mxu0 %v4846_v17 }
 0x2b1   : > { %3582 = vmatprep.subr.bf16.mxu0 %v4851_v20  ;;  %v2236_v20 = vld [vmem:[#allocation2 + $0x30] sm:$0xff] }
 0x2b4   : > { %3583 = vmatpush1.bf16.msra.mxu0 %v4849_v21  ;;  %v2238_v21 = vld [vmem:[#allocation2 + $0x40] sm:$0xff] }
 0x2b5   : > { %3584 = vmatprep.subr.bf16.mxu0 %v4854_v22 }
 0x2b8   : > { %3585 = vmatpush1.bf16.msra.mxu0 %v4852_v23 }
 0x2b9   : > { %3586 = vmatprep.subr.bf16.mxu0 %v4857_v24 }
 0x2bc   : > { %3587 = vmatpush1.bf16.msra.mxu0 %v4855_v25 }
 0x2bd   : > { %3588 = vmatprep.subr.bf16.mxu0 %v4860_v26  ;;  %v2237_v26 = vld [vmem:[#allocation2 + $0x38] sm:$0xff] }
 0x2c0   : > { %3589 = vmatpush1.bf16.msra.mxu0 %v4858_v27  ;;  %v2239_v27 = vld [vmem:[#allocation2 + $0x48] sm:$0xff] }
 0x2c1   : > { %3590 = vmatprep.subr.bf16.mxu0 %v4863_v28 }
 0x2c4   : > { %3591 = vmatpush1.bf16.msra.mxu0 %v4861_v29 }
 0x2c5   : > { %3592 = vmatprep.subr.bf16.mxu0 %v4866_v30 }
 0x2c8   : > { %3593 = vmatpush1.bf16.msra.mxu0 %v4864_v31 }
 0x2c9   : > { %3594 = vmatprep.subr.bf16.mxu0 %v4869_v32 }
 0x2cc   : > { %3595 = vmatpush1.bf16.msra.mxu0 %v4867_v33 }
 0x2cd   : > { %3596 = vmatprep.subr.bf16.mxu0 %v4872_v34 }
 0x2d0   : > { %3597 = vmatpush1.bf16.msra.mxu0 %v4870_v36 }
 0x2d1   : > { %3598 = vmatprep.subr.bf16.mxu0 %v4875_v37 }
 0x2d4   : > { %3599 = vmatpush1.bf16.msra.mxu0 %v4873_v38  ;;  %v2234_v38 = vld [vmem:[#allocation2 + $0x20] sm:$0xff] }
 0x2d5   : > { %3600 = vmatprep.subr.bf16.mxu0 %v4878_v39  ;;  %v2235_v39 = vld [vmem:[#allocation2 + $0x28] sm:$0xff] }
 0x2d8   : > { %3601 = vmatpush1.bf16.msra.mxu0 %v4876_v40 }
 0x2d9   : > { %3613 = vmatprep.subr.bf16.mxu0 %v4881_v19  ;;  %v2240_v19 = vld [vmem:[#allocation2 + $0x50] sm:$0xff] }
 0x2db   : > { %3603 = vmatmul.mubr.bf16.vlgmr.msra.gmra.mrb[8].mxu0 %v5845_v7  ;;  %v4893_v7 = vld [vmem:[%s5518_s30 + $0x3d4] ss:$24 sps:$4 sm:$0xff]  }
 0x2dc   : > { %3614 = vmatpush1.bf16.msra.mxu0 %v4879_v41  ;;  %3645 = vmatprep.mubr.bf16.mxu0 %v5926_v2  ;;  %v4920_v2 = vld [vmem:[%s5518_s30 + $0x584] ss:$24 sps:$4 sm:$0xff]  }
 0x2dd   : > { %3615 = vmatprep.subr.bf16.mxu0 %v4884_v42 }
 0x2e0   : > { %3616 = vmatpush1.bf16.msra.mxu0 %v4882_v43  ;;  %v2241_v43 = vld [vmem:[#allocation2 + $0x58] sm:$0xff] }
 0x2e1   : > { %3617 = vmatprep.subr.bf16.mxu0 %v4887_v44 }
 0x2e4   : > { %3618 = vmatpush1.bf16.msra.mxu0 %v4885_v45 }
 0x2e5   : > { %3619 = vmatprep.subr.bf16.mxu0 %v4890_v46 }
 0x2e8   : > { %3620 = vmatpush1.bf16.msra.mxu0 %v4888_v47 }
 0x2e9   : > { %3621 = vmatprep.subr.bf16.mxu0 %v4893_v7 }
 0x2ec   : > { %3622 = vmatpush1.bf16.msra.mxu0 %v4891_v48 }
 0x2ed   : > { %3623 = vmatprep.subr.bf16.mxu0 %v4896_v49 }
 0x2f0   : > { %3624 = vmatpush1.bf16.msra.mxu0 %v4894_v50  ;;  %v3696_v50 = vld [vmem:[%s6048_s4] sm:$0x3f] (!%p4249_p6) }
 0x2f1   : > { %3625 = vmatprep.subr.bf16.mxu0 %v4899_v51  ;;  %v3716_v51 = vsub.s32 (!%p4249_p6), 4, %v5828_v18 }
 0x2f4   : > { %3626 = vmatpush1.bf16.msra.mxu0 %v4897_v53  ;;  %v3720_v53 = vsub.s32 (!%p4249_p6), 5, %v5828_v18 }
 0x2f5   : > { %3627 = vmatprep.subr.bf16.mxu0 %v4902_v10  ;;  %v3701_v10 = vrot.slane (!%p4249_p6), %v3696_v50, %v892_v5 }
 0x2f8   : > { %3628 = vmatpush1.bf16.msra.mxu0 %v4900_v54  ;;  %v3705_v54 = vrot.slane (!%p4249_p6), %v3696_v50, %v896_v52 }
 0x2f9   : > { %3629 = vmatprep.subr.bf16.mxu0 %v4905_v55 }
 0x2fc   : > { %3630 = vmatpush1.bf16.msra.mxu0 %v4903_v56 }
 0x2fd   : > { %3631 = vmatprep.subr.bf16.mxu0 %v4908_v57  ;;  %v3709_v57 = vrot.slane (!%p4249_p6), %v3696_v50, %v900_v15 }
 0x300   : > { %3632 = vmatpush1.bf16.msra.mxu0 %v4906_v58  ;;  %v3713_v58 = vrot.slane (!%p4249_p6), %v3696_v50, %v904_v16 }
 0x301   : > { %3633 = vmatprep.subr.bf16.mxu0 %v4911_v59 }
 0x304   : > { %3634 = vmatpush1.bf16.msra.mxu0 %v4909_v60 }
 0x305   : > { %3635 = vmatprep.subr.bf16.mxu0 %v4914_v61  ;;  %v3717_v61 = vrot.slane (!%p4249_p6), %v3696_v50, %v3716_v51 }
 0x308   : > { %3636 = vmatpush1.bf16.msra.mxu0 %v4912_v62  ;;  %v3721_v62 = vrot.slane (!%p4249_p6), %v3696_v50, %v3720_v53 }
 0x309   : > { %3637 = vmatprep.subr.bf16.mxu0 %v4917_v63 }
 0x30c   : > { %3638 = vmatpush1.bf16.msra.mxu0 %v4915_v0 }
 0x30d   : > { %3639 = vmatprep.subr.bf16.mxu0 %v4920_v2 }
 0x310   : > { %3640 = vmatpush1.bf16.msra.mxu0 %v4918_v6 }
 0x311   : > { %3641 = vmatprep.subr.bf16.mxu0 %v4923_v35 }
 0x314   : > { %3642 = vmatpush1.bf16.msra.mxu0 %v4921_v3 }
 0x315   : > { %3643 = vmatprep.subr.bf16.mxu0 %v4926_v4 }
 0x318   : > { %3644 = vmatpush1.bf16.msra.mxu0 %v4924_v9 }
 0x31b   : > { %3646 = vmatmul.mubr.bf16.vlgmr.msra.gmra.mrb[8].mxu0 %v5924_v1 }
 0x36e   : > { %v3475_v8 = vpop.f32.mrb[4].mxu0  ;;  %v3561_v17 = vpop.f32.mrb[8].mxu1 }
 0x36f   : > { %v3656_v22 = vadd.f32 %v3475_v8, %v2230_v11  ;;  %v3658_v23 = vadd.f32 %v3561_v17, %v2232_v12  ;;  %v3477_v24 = vpop.f32.mrb[5].mxu0  ;;  %v3563_v25 = vpop.f32.mrb[9].mxu1 }
 0x370   : > { %v3657_v28 = vadd.f32 %v3477_v24, %v2231_v13  ;;  %v3659_v29 = vadd.f32 %v3563_v25, %v2233_v14  ;;  %v3479_v30 = vpop.f32.mrb[6].mxu0  ;;  %v3565_v31 = vpop.f32.mrb[10].mxu1 }
 0x371   : > { %3668 = vst [vmem:[#allocation2] sm:$0xff] %v3656_v22  ;;  %3670 = vst [vmem:[#allocation2 + $0x10] sm:$0xff] %v3658_v23  ;;  %v3662_v1 = vadd.f32 %v3479_v30, %v2236_v20  ;;  %v3664_v32 = vadd.f32 %v3565_v31, %v2238_v21  ;;  %v3481_v33 = vpop.f32.mrb[7].mxu0  ;;  %v3567_v34 = vpop.f32.mrb[11].mxu1 }
 0x372   : > { %3669 = vst [vmem:[#allocation2 + $0x8] sm:$0xff] %v3657_v28  ;;  %3671 = vst [vmem:[#allocation2 + $0x18] sm:$0xff] %v3659_v29  ;;  %v3663_v36 = vadd.f32 %v3481_v33, %v2237_v26  ;;  %v3665_v37 = vadd.f32 %v3567_v34, %v2239_v27 }
 0x373   : > { %3674 = vst [vmem:[#allocation2 + $0x30] sm:$0xff] %v3662_v1  ;;  %3676 = vst [vmem:[#allocation2 + $0x40] sm:$0xff] %v3664_v32 }
 0x374   : > { %3675 = vst [vmem:[#allocation2 + $0x38] sm:$0xff] %v3663_v36  ;;  %3677 = vst [vmem:[#allocation2 + $0x48] sm:$0xff] %v3665_v37 }
 0x378   : > { %v3684_v48 = vld [vmem:[#allocation2] sm:$0xff] (!%p4249_p6)  ;;  %v3686_v55 = vld [vmem:[#allocation2 + $0x10] sm:$0xff] (!%p4249_p6) }
 0x379   : > { %v3685_v49 = vld [vmem:[#allocation2 + $0x8] sm:$0xff] (!%p4249_p6)  ;;  %v3687_v56 = vld [vmem:[#allocation2 + $0x18] sm:$0xff] (!%p4249_p6)  ;;  %v3728_v2 = vadd.f32 (!%p4249_p6), %v3701_v10, %v3684_v48  ;;  %v3730_v5 = vadd.f32 (!%p4249_p6), %v3709_v57, %v3686_v55 }
 0x37a   : > { %v3690_v63 = vld [vmem:[#allocation2 + $0x30] sm:$0xff] (!%p4249_p6)  ;;  %v3729_v6 = vadd.f32 (!%p4249_p6), %v3705_v54, %v3685_v49  ;;  %v3731_v35 = vadd.f32 (!%p4249_p6), %v3713_v58, %v3687_v56  ;;  %v3692_v3 = vld [vmem:[#allocation2 + $0x40] sm:$0xff] (!%p4249_p6) }
 0x37b   : > { %v3691_v0 = vld [vmem:[#allocation2 + $0x38] sm:$0xff] (!%p4249_p6)  ;;  %v3693_v52 = vld [vmem:[#allocation2 + $0x48] sm:$0xff] (!%p4249_p6)  ;;  %v3734_v12 = vadd.f32 (!%p4249_p6), %v3701_v10, %v3690_v63  ;;  %v3736_v14 = vadd.f32 (!%p4249_p6), %v3709_v57, %v3692_v3 }
 0x37c   : > { %v3735_v15 = vadd.f32 (!%p4249_p6), %v3705_v54, %v3691_v0  ;;  %v4259_v18 = vpack.c.bf16 (!%p4249_p6), %v3729_v6, %v3728_v2  ;;  %v4260_v16 = vpack.c.bf16 (!%p4249_p6), %v3731_v35, %v3730_v5  ;;  %v3737_v8 = vadd.f32 (!%p4249_p6), %v3713_v58, %v3693_v52 }
 0x37e   : > { %v4262_v20 = vpack.c.bf16 (!%p4249_p6), %v3735_v15, %v3734_v12  ;;  %3776 = vst [vmem:[%s6049_s5] sm:$0xff] (!%p4249_p6), %v4259_v18  ;;  %3777 = vst [vmem:[%s6049_s5 + $0x8] sm:$0xff] (!%p4249_p6), %v4260_v16  ;;  %v4263_v23 = vpack.c.bf16 (!%p4249_p6), %v3737_v8, %v3736_v14 }
 0x380   : > { %3779 = vst [vmem:[%s6049_s5 + $0x18] sm:$0xff] (!%p4249_p6), %v4262_v20  ;;  %3780 = vst [vmem:[%s6049_s5 + $0x20] sm:$0xff] (!%p4249_p6), %v4263_v23 }
 0x3ee   : > { %v3647_v40 = vpop.f32.mrb[8].mxu0  ;;  %3683 = sbr.rel (%p4249_p6) target bundleno = 1025 (0x401), region = 75 }
 0x3ef   : > { %v3660_v41 = vadd.f32 %v3647_v40, %v2234_v38  ;;  %v3649_v42 = vpop.f32.mrb[9].mxu0 }
 0x3f0   : > { %v3661_v44 = vadd.f32 %v3649_v42, %v2235_v39  ;;  %v3651_v45 = vpop.f32.mrb[10].mxu0 }
 0x3f1   : > { %3672 = vst [vmem:[#allocation2 + $0x20] sm:$0xff] %v3660_v41  ;;  %v3666_v46 = vadd.f32 %v3651_v45, %v2240_v19  ;;  %v3653_v47 = vpop.f32.mrb[11].mxu0 }
 0x3f2   : > { %3673 = vst [vmem:[#allocation2 + $0x28] sm:$0xff] %v3661_v44  ;;  %v3667_v7 = vadd.f32 %v3653_v47, %v2241_v43 }
 0x3f3   : > { %3678 = vst [vmem:[#allocation2 + $0x50] sm:$0xff] %v3666_v46 }
 0x3f4   : > { %3679 = vst [vmem:[#allocation2 + $0x58] sm:$0xff] %v3667_v7 }
 0x3f8   : > { %v3688_v59 = vld [vmem:[#allocation2 + $0x20] sm:$0xff] }
 0x3f9   : > { %v3689_v60 = vld [vmem:[#allocation2 + $0x28] sm:$0xff]  ;;  %v3732_v9 = vadd.f32 %v3717_v61, %v3688_v59 }
 0x3fa   : > { %v3694_v4 = vld [vmem:[#allocation2 + $0x50] sm:$0xff]  ;;  %v3733_v11 = vadd.f32 %v3721_v62, %v3689_v60 }
 0x3fb   : > { %v3695_v13 = vld [vmem:[#allocation2 + $0x58] sm:$0xff]  ;;  %v3738_v21 = vadd.f32 %v3717_v61, %v3694_v4 }
 0x3fc   : > { %v4261_v17 = vpack.c.bf16 %v3733_v11, %v3732_v9  ;;  %v3739_v22 = vadd.f32 %v3721_v62, %v3695_v13 }
 0x3fe   : > { %3778 = vst [vmem:[%s6049_s5 + $0x10] sm:$0xff] %v4261_v17  ;;  %v4264_v24 = vpack.c.bf16 %v3739_v22, %v3738_v21 }
 0x400   : > { %3781 = vst [vmem:[%s6049_s5 + $0x28] sm:$0xff] %v4264_v24 }
 0x401 PF: > { %p15_p2 = scmp.ge.s32.totalorder %s5063_s23, 8   ;;  %s6052_s18 = smov %s4997_s19 }
 0x402   : > { %s6053_s19 = smov %s5001_s20  ;;  %s6054_s20 = smov %s5073_s26 }
 0x403   : > { %s6055_s21 = smov %s5063_s23  ;;  %17 = sbr.rel (!%p15_p2) target bundleno = 3 (0x3), region = 118 }
 0x40a   :  { %3793 = vsyncpa [#allocation5], 1 }
 0x40b   :  { %3795 = vsyncpa [#allocation5 + $0x1], 1 }

// kernel: bert_classifier_forward.27
= control target key start
LH: loop header
LB: loop body
LE: loop exit
PB: predicated region body
PF: predicated region fallthrough
CT: control target
= control target key end

     0   :  { %v747_v48 = vmov 1983009808   ;;  %v133_v50 = vlaneseq  ;;  %s1117_s0 = inlined_call_operand.vmem [shape: bf16[2,768], index: 0, kind: input, shape index: {}]   ;;  %s1118_s1 = inlined_call_operand.vmem [shape: f32[768,50], index: 1, kind: input, shape index: {}]   ;;  %s1119_s2 = inlined_call_operand.vmem [shape: f32[1,50], index: 2, kind: input, shape index: {}]   ;;  %s1120_s3 = inlined_call_operand.vmem [shape: f32[50,5], index: 3, kind: input, shape index: {}]   ;;  %s1121_s4 = inlined_call_operand.vmem [shape: f32[1,5], index: 4, kind: input, shape index: {}]   ;;  %s1122_s5 = inlined_call_operand.hbm [shape: f32[2,5], index: 5, kind: output, shape index: {}]  }
   0x1   :  { %v40_v0 = vld [vmem:[%s1118_s1 + $0x80] sm:$0xff]  ;;  %v41_v1 = vld [vmem:[%s1118_s1 + $0x88] sm:$0xff]  ;;  %v42_v11 = vld [vmem:[%s1118_s1 + $0x90] sm:$0xff]  ;;  %v131_v49 = vunpack.c.l.s4 %v747_v48 }
   0x2   :  { %v24_v2 = vld [vmem:[%s1118_s1] sm:$0xff]  ;;  %v613_v3 = vpack.c.bf16 %v41_v1, %v40_v0  ;;  %v25_v4 = vld [vmem:[%s1118_s1 + $0x8] sm:$0xff]  ;;  %v43_v13 = vld [vmem:[%s1118_s1 + $0x98] sm:$0xff] }
   0x3   :  { %v72_v5 = vld [vmem:[%s1118_s1 + $0x180] sm:$0xff]  ;;  %v73_v6 = vld [vmem:[%s1118_s1 + $0x188] sm:$0xff]  ;;  %v615_v7 = vpack.c.bf16 %v25_v4, %v24_v2  ;;  %v26_v14 = vld [vmem:[%s1118_s1 + $0x10] sm:$0xff]  ;;  %v617_v16 = vpack.c.bf16 %v43_v13, %v42_v11  ;;  %v132_v1 = vunpack.c.0.s8 %v131_v49  ;;  %v134_v2 = vshrl.u32 %v133_v50, 7 }
   0x4   :  { %v645_v8 = vpack.c.bf16 %v73_v6, %v72_v5  ;;  %v56_v9 = vld [vmem:[%s1118_s1 + $0x100] sm:$0xff]  ;;  %v57_v10 = vld [vmem:[%s1118_s1 + $0x108] sm:$0xff]  ;;  %614 = vmatprep.subr.bf16.mxu0 %v613_v3  ;;  %v27_v15 = vld [vmem:[%s1118_s1 + $0x18] sm:$0xff] }
   0x5   :  { %v647_v12 = vpack.c.bf16 %v57_v10, %v56_v9  ;;  %616 = vmatpush3.bf16.msra.mxu0 %v615_v7  ;;  %v619_v17 = vpack.c.bf16 %v27_v15, %v26_v14  ;;  %v74_v18 = vld [vmem:[%s1118_s1 + $0x190] sm:$0xff]  ;;  %v75_v19 = vld [vmem:[%s1118_s1 + $0x198] sm:$0xff]  ;;  %v44_v23 = vld [vmem:[%s1118_s1 + $0xa0] sm:$0xff]  ;;  %v135_v15 = vsub.s32 %v132_v1, %v134_v2 }
   0x6   :  { %646 = vmatprep.subr.bf16.mxu1 %v645_v8  ;;  %v58_v20 = vld [vmem:[%s1118_s1 + $0x110] sm:$0xff]  ;;  %v649_v21 = vpack.c.bf16 %v75_v19, %v74_v18  ;;  %v59_v22 = vld [vmem:[%s1118_s1 + $0x118] sm:$0xff]  ;;  %v45_v24 = vld [vmem:[%s1118_s1 + $0xa8] sm:$0xff]  ;;  %618 = vmatprep.subr.bf16.mxu0 %v617_v16 }
   0x7   :  { %648 = vmatpush3.bf16.msra.mxu1 %v647_v12  ;;  %v651_v25 = vpack.c.bf16 %v59_v22, %v58_v20  ;;  %v621_v26 = vpack.c.bf16 %v45_v24, %v44_v23  ;;  %v28_v27 = vld [vmem:[%s1118_s1 + $0x20] sm:$0xff]  ;;  %v29_v28 = vld [vmem:[%s1118_s1 + $0x28] sm:$0xff]  ;;  %v46_v35 = vld [vmem:[%s1118_s1 + $0xb0] sm:$0xff] }
   0x8   :  { %v76_v29 = vld [vmem:[%s1118_s1 + $0x1a0] sm:$0xff]  ;;  %650 = vmatprep.subr.bf16.mxu1 %v649_v21  ;;  %v77_v30 = vld [vmem:[%s1118_s1 + $0x1a8] sm:$0xff]  ;;  %v623_v33 = vpack.c.bf16 %v29_v28, %v28_v27  ;;  %v47_v36 = vld [vmem:[%s1118_s1 + $0xb8] sm:$0xff] }
   0x9   :  { %v60_v31 = vld [vmem:[%s1118_s1 + $0x120] sm:$0xff]  ;;  %v61_v32 = vld [vmem:[%s1118_s1 + $0x128] sm:$0xff]  ;;  %620 = vmatpush3.bf16.msra.mxu0 %v619_v17  ;;  %v653_v34 = vpack.c.bf16 %v77_v30, %v76_v29  ;;  %v30_v37 = vld [vmem:[%s1118_s1 + $0x30] sm:$0xff]  ;;  %v625_v39 = vpack.c.bf16 %v47_v36, %v46_v35 }
   0xa   :  { %622 = vmatprep.subr.bf16.mxu0 %v621_v26  ;;  %v655_v38 = vpack.c.bf16 %v61_v32, %v60_v31  ;;  %v31_v40 = vld [vmem:[%s1118_s1 + $0x38] sm:$0xff]  ;;  %v78_v41 = vld [vmem:[%s1118_s1 + $0x1b0] sm:$0xff]  ;;  %v48_v46 = vld [vmem:[%s1118_s1 + $0xc0] sm:$0xff] }
   0xb   :  { %652 = vmatpush3.bf16.msra.mxu1 %v651_v25  ;;  %v79_v42 = vld [vmem:[%s1118_s1 + $0x1b8] sm:$0xff]  ;;  %v62_v44 = vld [vmem:[%s1118_s1 + $0x130] sm:$0xff]  ;;  %v49_v47 = vld [vmem:[%s1118_s1 + $0xc8] sm:$0xff]  ;;  %v627_v51 = vpack.c.bf16 %v31_v40, %v30_v37 }
   0xc   :  { %654 = vmatprep.subr.bf16.mxu1 %v653_v34  ;;  %v657_v43 = vpack.c.bf16 %v79_v42, %v78_v41  ;;  %v63_v45 = vld [vmem:[%s1118_s1 + $0x138] sm:$0xff]  ;;  %v80_v52 = vld [vmem:[%s1118_s1 + $0x1c0] sm:$0xff]  ;;  %v81_v53 = vld [vmem:[%s1118_s1 + $0x1c8] sm:$0xff]  ;;  %v629_v55 = vpack.c.bf16 %v49_v47, %v48_v46 }
   0xd   :  { %624 = vmatpush3.bf16.msra.mxu0 %v623_v33  ;;  %v659_v54 = vpack.c.bf16 %v63_v45, %v62_v44  ;;  %v32_v56 = vld [vmem:[%s1118_s1 + $0x40] sm:$0xff]  ;;  %v33_v57 = vld [vmem:[%s1118_s1 + $0x48] sm:$0xff]  ;;  %v661_v59 = vpack.c.bf16 %v81_v53, %v80_v52  ;;  %v50_v61 = vld [vmem:[%s1118_s1 + $0xd0] sm:$0xff] }
   0xe   :  { %626 = vmatprep.subr.bf16.mxu0 %v625_v39  ;;  %v64_v58 = vld [vmem:[%s1118_s1 + $0x140] sm:$0xff]  ;;  %v65_v60 = vld [vmem:[%s1118_s1 + $0x148] sm:$0xff]  ;;  %v51_v62 = vld [vmem:[%s1118_s1 + $0xd8] sm:$0xff]  ;;  %v631_v3 = vpack.c.bf16 %v33_v57, %v32_v56 }
   0xf   :  { %656 = vmatpush3.bf16.msra.mxu1 %v655_v38  ;;  %v82_v63 = vld [vmem:[%s1118_s1 + $0x1d0] sm:$0xff]  ;;  %v83_v0 = vld [vmem:[%s1118_s1 + $0x1d8] sm:$0xff]  ;;  %v663_v4 = vpack.c.bf16 %v65_v60, %v64_v58  ;;  %v633_v5 = vpack.c.bf16 %v51_v62, %v50_v61  ;;  %v52_v11 = vld [vmem:[%s1118_s1 + $0xe0] sm:$0xff] }
  0x10   :  { %658 = vmatprep.subr.bf16.mxu1 %v657_v43  ;;  %v34_v6 = vld [vmem:[%s1118_s1 + $0x50] sm:$0xff]  ;;  %v35_v7 = vld [vmem:[%s1118_s1 + $0x58] sm:$0xff]  ;;  %v665_v9 = vpack.c.bf16 %v83_v0, %v82_v63  ;;  %v53_v12 = vld [vmem:[%s1118_s1 + $0xe8] sm:$0xff] }
  0x11   :  { %628 = vmatpush3.bf16.msra.mxu0 %v627_v51  ;;  %v66_v8 = vld [vmem:[%s1118_s1 + $0x150] sm:$0xff]  ;;  %v67_v10 = vld [vmem:[%s1118_s1 + $0x158] sm:$0xff]  ;;  %v84_v13 = vld [vmem:[%s1118_s1 + $0x1e0] sm:$0xff]  ;;  %v635_v16 = vpack.c.bf16 %v35_v7, %v34_v6  ;;  %v637_v20 = vpack.c.bf16 %v53_v12, %v52_v11 }
  0x12   :  { %630 = vmatprep.subr.bf16.mxu0 %v629_v55  ;;  %v85_v14 = vld [vmem:[%s1118_s1 + $0x1e8] sm:$0xff]  ;;  %v36_v17 = vld [vmem:[%s1118_s1 + $0x60] sm:$0xff]  ;;  %v667_v19 = vpack.c.bf16 %v67_v10, %v66_v8  ;;  %v54_v26 = vld [vmem:[%s1118_s1 + $0xf0] sm:$0xff] }
  0x13   :  { %660 = vmatpush3.bf16.msra.mxu1 %v659_v54  ;;  %v21_v18 = vld [vmem:[%s1117_s0] sm:$0x3f]  ;;  %v37_v21 = vld [vmem:[%s1118_s1 + $0x68] sm:$0xff]  ;;  %v669_v25 = vpack.c.bf16 %v85_v14, %v84_v13  ;;  %v55_v27 = vld [vmem:[%s1118_s1 + $0xf8] sm:$0xff] }
  0x14   :  { %662 = vmatprep.subr.bf16.mxu1 %v661_v59  ;;  %v68_v22 = vld [vmem:[%s1118_s1 + $0x160] sm:$0xff]  ;;  %v69_v23 = vld [vmem:[%s1118_s1 + $0x168] sm:$0xff]  ;;  %v22_v24 = vunpack.c.l.bf16 %v21_v18  ;;  %v86_v28 = vld [vmem:[%s1118_s1 + $0x1f0] sm:$0xff]  ;;  %v639_v32 = vpack.c.bf16 %v37_v21, %v36_v17  ;;  %v641_v34 = vpack.c.bf16 %v55_v27, %v54_v26  ;;  %v23_v37 = vunpack.c.h.bf16 %v21_v18 }
  0x15   :  { %632 = vmatpush3.bf16.msra.mxu0 %v631_v3  ;;  %v87_v29 = vld [vmem:[%s1118_s1 + $0x1f8] sm:$0xff]  ;;  %v671_v33 = vpack.c.bf16 %v69_v23, %v68_v22  ;;  %v38_v35 = vld [vmem:[%s1118_s1 + $0x70] sm:$0xff]  ;;  %v104_v43 = vld [vmem:[%s1118_s1 + $0x280] sm:$0xff] }
  0x16   :  { %634 = vmatprep.subr.bf16.mxu0 %v633_v5  ;;  %v136_v30 = vrot.slane %v22_v24, %v135_v15  ;;  %v129_v31 = vcombine.high %v22_v24, %v22_v24  ;;  %v39_v36 = vld [vmem:[%s1118_s1 + $0x78] sm:$0xff]  ;;  %v70_v39 = vld [vmem:[%s1118_s1 + $0x170] sm:$0xff]  ;;  %v673_v41 = vpack.c.bf16 %v87_v29, %v86_v28  ;;  %v105_v44 = vld [vmem:[%s1118_s1 + $0x288] sm:$0xff]  ;;  %v989_v51 = vrot.slane %v23_v37, %v135_v15 }
  0x17   :  { %664 = vmatpush3.bf16.msra.mxu1 %v663_v4  ;;  %v71_v42 = vld [vmem:[%s1118_s1 + $0x178] sm:$0xff]  ;;  %v643_v46 = vpack.c.bf16 %v39_v36, %v38_v35  ;;  %v677_v48 = vpack.c.bf16 %v105_v44, %v104_v43  ;;  %v88_v49 = vld [vmem:[%s1118_s1 + $0x200] sm:$0xff]  ;;  %v89_v50 = vld [vmem:[%s1118_s1 + $0x208] sm:$0xff] }
  0x18   :  { %666 = vmatprep.subr.bf16.mxu1 %v665_v9  ;;  %v144_v38 = vcombine.high %v136_v30, %v136_v30  ;;  %v143_v40 = vrot.slane %v129_v31, %v135_v15  ;;  %v675_v47 = vpack.c.bf16 %v71_v42, %v70_v39  ;;  %v106_v52 = vld [vmem:[%s1118_s1 + $0x290] sm:$0xff]  ;;  %v107_v53 = vld [vmem:[%s1118_s1 + $0x298] sm:$0xff]  ;;  %v679_v54 = vpack.c.bf16 %v89_v50, %v88_v49 }
  0x19   :  { %636 = vmatpush3.bf16.msra.mxu0 %v635_v16 }
  0x1a   :  { %638 = vmatprep.subr.bf16.mxu0 %v637_v20  ;;  %224 = vmatprep.mubr.f32.mxu0 %v144_v38  ;;  %v145_v45 = vcombine.high %v143_v40, %v143_v40 }
  0x1b   :  { %668 = vmatpush3.bf16.msra.mxu1 %v667_v19 }
  0x1c   :  { %670 = vmatprep.subr.bf16.mxu1 %v669_v25  ;;  %294 = vmatprep.mubr.f32.mxu1 %v145_v45 }
  0x1d   :  { %640 = vmatpush3.bf16.msra.mxu0 %v639_v32 }
  0x1e   :  { %642 = vmatprep.subr.bf16.mxu0 %v641_v34 }
  0x1f   :  { %672 = vmatpush3.bf16.msra.mxu1 %v671_v33 }
  0x20   :  { %674 = vmatprep.subr.bf16.mxu1 %v673_v41 }
  0x21   :  { %644 = vmatpush3.bf16.msra.mxu0 %v643_v46 }
  0x22   :  { %10 = vsyncpa [#allocation3], 0  ;;  %678 = vmatprep.subr.bf16.mxu0 %v677_v48  ;;  %v681_v55 = vpack.c.bf16 %v107_v53, %v106_v52  ;;  %v90_v56 = vld [vmem:[%s1118_s1 + $0x210] sm:$0xff]  ;;  %v91_v57 = vld [vmem:[%s1118_s1 + $0x218] sm:$0xff]  ;;  %v153_v58 = vcombine.high %v989_v51, %v989_v51  ;;  %v748_v35 = vmov 0.0|0.0   ;;  %v749_v42 = vmov 0.0  }
  0x23   :  { %676 = vmatpush3.bf16.msra.mxu1 %v675_v47  ;;  %v108_v59 = vld [vmem:[%s1118_s1 + $0x2a0] sm:$0xff]  ;;  %v109_v60 = vld [vmem:[%s1118_s1 + $0x2a8] sm:$0xff]  ;;  %v683_v61 = vpack.c.bf16 %v91_v57, %v90_v56  ;;  %v110_v1 = vld [vmem:[%s1118_s1 + $0x2b0] sm:$0xff]  ;;  %vm389_vm0 = vcmask 1041408   ;;  %vm750_vm1 = vmmov 0   ;;  %vm385_vm2 = vcmask 408576  }
  0x24   :  { %225 = vmatmul.mubr.f32.vlgmr.msra.gmra.mrb[0].mxu0 %v136_v30  ;;  %v685_v62 = vpack.c.bf16 %v109_v60, %v108_v59  ;;  %v92_v63 = vld [vmem:[%s1118_s1 + $0x220] sm:$0xff]  ;;  %v93_v0 = vld [vmem:[%s1118_s1 + $0x228] sm:$0xff]  ;;  %v111_v2 = vld [vmem:[%s1118_s1 + $0x2b8] sm:$0xff]  ;;  %709 = vmatprep.subr.bf16.mxu1 %v748_v35  ;;  %s751_s24 = smov [#allocation2]   ;;  %vm463_vm3 = vcmask 33792  }
  0x25   :  { %680 = vmatpush3.bf16.msra.mxu0 %v679_v54  ;;  %364 = vmatprep.mubr.f32.mxu0 %v153_v58  ;;  %v687_v3 = vpack.c.bf16 %v93_v0, %v92_v63  ;;  %v689_v4 = vpack.c.bf16 %v111_v2, %v110_v1  ;;  %v94_v5 = vld [vmem:[%s1118_s1 + $0x230] sm:$0xff]  ;;  %v95_v6 = vld [vmem:[%s1118_s1 + $0x238] sm:$0xff]  ;;  %v112_v7 = vld [vmem:[%s1118_s1 + $0x2c0] sm:$0xff] }
  0x26   :  { %295 = vmatmul.mubr.f32.vlgmr.msra.gmra.mrb[0].mxu1 %v143_v40  ;;  %682 = vmatprep.subr.bf16.mxu0 %v681_v55  ;;  %v113_v8 = vld [vmem:[%s1118_s1 + $0x2c8] sm:$0xff]  ;;  %v691_v9 = vpack.c.bf16 %v95_v6, %v94_v5  ;;  %v96_v11 = vld [vmem:[%s1118_s1 + $0x240] sm:$0xff]  ;;  %v114_v13 = vld [vmem:[%s1118_s1 + $0x2d0] sm:$0xff] }
  0x27   :  { %v693_v10 = vpack.c.bf16 %v113_v8, %v112_v7  ;;  %v97_v12 = vld [vmem:[%s1118_s1 + $0x248] sm:$0xff]  ;;  %v115_v14 = vld [vmem:[%s1118_s1 + $0x2d8] sm:$0xff]  ;;  %v98_v17 = vld [vmem:[%s1118_s1 + $0x250] sm:$0xff]  ;;  %610 = vmatprep.mubr.msk.f32.mxu1 %vm750_vm1, %v749_v42 }
  0x28   :  { %v695_v15 = vpack.c.bf16 %v97_v12, %v96_v11  ;;  %v697_v16 = vpack.c.bf16 %v115_v14, %v114_v13  ;;  %v99_v18 = vld [vmem:[%s1118_s1 + $0x258] sm:$0xff]  ;;  %v116_v19 = vld [vmem:[%s1118_s1 + $0x2e0] sm:$0xff]  ;;  %v117_v20 = vld [vmem:[%s1118_s1 + $0x2e8] sm:$0xff] }
  0x29   :  { %684 = vmatpush3.bf16.msra.mxu0 %v683_v61  ;;  %v699_v21 = vpack.c.bf16 %v99_v18, %v98_v17  ;;  %v701_v22 = vpack.c.bf16 %v117_v20, %v116_v19  ;;  %v100_v23 = vld [vmem:[%s1118_s1 + $0x260] sm:$0xff]  ;;  %v101_v24 = vld [vmem:[%s1118_s1 + $0x268] sm:$0xff]  ;;  %v118_v25 = vld [vmem:[%s1118_s1 + $0x2f0] sm:$0xff] }
  0x2a   :  { %686 = vmatprep.subr.bf16.mxu0 %v685_v62  ;;  %v119_v26 = vld [vmem:[%s1118_s1 + $0x2f8] sm:$0xff]  ;;  %v703_v27 = vpack.c.bf16 %v101_v24, %v100_v23  ;;  %v102_v29 = vld [vmem:[%s1118_s1 + $0x270] sm:$0xff]  ;;  %v371_v32 = vld [vmem:[%s1120_s3] sm:$0xff] }
  0x2b   :  { %v705_v28 = vpack.c.bf16 %v119_v26, %v118_v25  ;;  %v103_v30 = vld [vmem:[%s1118_s1 + $0x278] sm:$0xff]  ;;  %v372_v33 = vld [vmem:[%s1120_s3 + $0x8] sm:$0xff]  ;;  %v373_v34 = vld [vmem:[%s1120_s3 + $0x10] sm:$0xff] }
  0x2c   :  { %v707_v31 = vpack.c.bf16 %v103_v30, %v102_v29  ;;  %v710_v36 = vpack.c.bf16 %v372_v33, %v371_v32  ;;  %v374_v37 = vld [vmem:[%s1120_s3 + $0x18] sm:$0xff]  ;;  %v375_v39 = vld [vmem:[%s1120_s3 + $0x20] sm:$0xff]  ;;  %v376_v40 = vld [vmem:[%s1120_s3 + $0x28] sm:$0xff] }
  0x2d   :  { %688 = vmatpush3.bf16.msra.mxu0 %v687_v3  ;;  %v713_v38 = vpack.c.bf16 %v374_v37, %v373_v34  ;;  %v716_v41 = vpack.c.bf16 %v376_v40, %v375_v39  ;;  %v377_v43 = vld [vmem:[%s1120_s3 + $0x30] sm:$0x3]  ;;  %v479_v45 = vld [vmem:[%s1119_s2] ss:$0 sm:$0xff]  ;;  %s471_s2 = sshll.u32 %s751_s24, 4  ;;  %s472_s2 = int_to_ptr.vmem [resolvable:$true] %s471_s2 }
  0x2e   :  { %690 = vmatprep.subr.bf16.mxu0 %v689_v4  ;;  %711 = vmatpush3.bf16.msra.mxu1 %v710_v36  ;;  %v480_v58 = vld [vmem:[%s1121_s4] ss:$0 sm:$0xff]  ;;  %s723_s25 = scalar_lea.vmem %s472_s2, 32  ;;  %p728_p1 = scmp.lt.s32.totalorder %s472_s2, %s472_s2 }
  0x2f   :  { %712 = vmatprep.subr.bf16.mxu1 %v748_v35  ;;  %p724_p0 = scmp.ne.s32.totalorder %s472_s2, %s723_s25  ;;  %p729_p2 = scmp.lt.s32.totalorder %s723_s25, %s723_s25 }
  0x31   :  { %692 = vmatpush3.bf16.msra.mxu0 %v691_v9  ;;  %p730_p3 = por %p729_p2, %p728_p1 }
  0x32   :  { %694 = vmatprep.subr.bf16.mxu0 %v693_v10  ;;  %714 = vmatpush3.bf16.msra.mxu1 %v713_v38 }
  0x33   :  { %715 = vmatprep.subr.bf16.mxu1 %v748_v35  ;;  %p731_p4 = pnand %p730_p3, %p724_p0 }
  0x35   :  { %696 = vmatpush3.bf16.msra.mxu0 %v695_v15 }
  0x36   :  { %698 = vmatprep.subr.bf16.mxu0 %v697_v16  ;;  %717 = vmatpush3.bf16.msra.mxu1 %v716_v41 }
  0x37   :  { %608 = vmatprep.subr.mxu1 %v749_v42 }
  0x39   :  { %700 = vmatpush3.bf16.msra.mxu0 %v699_v21 }
  0x3a   :  { %702 = vmatprep.subr.bf16.mxu0 %v701_v22  ;;  %609 = vmatpush3.msk.msra.mxu1 %vm389_vm0, %v377_v43 }
  0x3d   :  { %704 = vmatpush3.bf16.msra.mxu0 %v703_v27 }
  0x3e   :  { %706 = vmatprep.subr.bf16.mxu0 %v705_v28 }
  0x41   :  { %708 = vmatpush3.bf16.msra.mxu0 %v707_v31 }
  0x44   :  { %365 = vmatmul.mubr.f32.vlgmr.msra.gmra.mrb[2].mxu0 %v989_v51 }
  0xf7   :  { %v515_v44 = vpop.f32.mrb[0].mxu0 }
  0xf8   :  { %v516_v46 = vpop.f32.mrb[1].mxu0 }
  0xf9   :  { %v550_v47 = vpop.f32.mrb[0].mxu1  ;;  %v517_v48 = vadd.f32 %v516_v46, %v515_v44 }
  0xfa   :  { %v551_v49 = vpop.f32.mrb[1].mxu1 }
  0xfb   :  { %v552_v50 = vadd.f32 %v551_v49, %v550_v47  ;;  %v227_v51 = vadd.f32 %v517_v48, %v479_v45 }
  0xfd   :  { %v297_v52 = vadd.f32 %v552_v50, %v227_v51 }
 0x117   :  { %v585_v53 = vpop.f32.mrb[2].mxu0 }
 0x118   :  { %v586_v54 = vpop.f32.mrb[3].mxu0 }
 0x119   :  { %v587_v55 = vadd.f32 %v586_v54, %v585_v53 }
 0x11b   :  { %v367_v56 = vadd.f32 %v587_v55, %v297_v52 }
 0x11d   :  { %v370_v57 = vmax.f32 %v367_v56, 0.0 }
 0x11f   :  { %611 = vmatmul.mubr.msk.f32.vlgmr.msra.gmra.mrb[2].mxu1 %vm385_vm2, %v370_v57 }
 0x1f2   :  { %v459_v59 = vpop.f32.mrb[2].mxu1 }
 0x1f3   :  { %v460_v60 = vadd.f32 %v480_v58, %v459_v59  ;;  %v612_v61 = vpop.f32.mrb[3].mxu1 }
 0x1f5   :  { %464 = vst.msk [vmem:[#allocation2] sm:$0x3] %vm463_vm3, %v460_v60 }
 0x1f6   :  { %734 = shalt.err (!%p731_p4)
}
 0x1f7   :  { %s735_s28 = scalar_lea.hbm %s1122_s5, 32 }
 0x1f8   :  { %p736_p5 = scmp.ne.s32.totalorder %s1122_s5, %s735_s28  ;;  %p739_p6 = scmp.lt.u32.totalorder %s735_s28, %s1122_s5 }
 0x1fa   :  { %p741_p7 = pnand %p739_p6, %p736_p5 }
 0x1fc   :  { %744 = shalt.err (!%p741_p7)
}
 0x1fd   :  { %474 = dma.vmem_to_hbm [thread:$0]  %s472_s2, 32, %s1122_s5, [#allocation3]  }
 0x1fe   :  { %745 = dma.done.wait [#allocation3], 32  }
 0x1ff   :  { %746 = vsyncadd [#allocation3], 4294967264 }
 0x200   :  { %478 = vsyncpa [#allocation3], 1 }

</bundles_post_ra>
